<compile_context>
chip_gen: v6e
topology: v6e:2x2x1
jax: 0.10.0
libtpu: 0.0.40
codegen_flags: <defaults>
</compile_context>

<pallas_src>
import functools

import jax
import jax.numpy as jnp
from jax.experimental import pallas as pl
from jax.experimental.pallas import tpu as pltpu

_BN_EPS = 1e-5


# ---------------------------------------------------------------------------
# helpers
# ---------------------------------------------------------------------------
def _apply_act(y, act):
    if act == "relu":
        return jnp.maximum(y, 0.0)
    if act == "leaky":
        return jnp.where(y >= 0.0, y, 0.2 * y)
    if act == "sigmoid":
        # numerically stable sigmoid via tanh (EUP path, never overflows)
        return 0.5 * (jnp.tanh(0.5 * y) + 1.0)
    return y


def _pick_tile(m, cap=256):
    """Largest M-tile <= cap that divides m, else full m (block==full dim)."""
    if m <= cap:
        return m
    for t in (256, 128, 64, 32, 16, 8):
        if m % t == 0:
            return t
    return m


# ---------------------------------------------------------------------------
# Kernel 1: plain GEMM + activation (enc1), M-tiled, "parallel".
# ---------------------------------------------------------------------------
def _gemm_act_kernel(a_ref, w_ref, o_ref, *, act):
    y = jnp.dot(a_ref[...], w_ref[...], preferred_element_type=jnp.float32)
    o_ref[...] = _apply_act(y, act).astype(o_ref.dtype)


def gemm_act(a, w, *, act, out_dtype=jnp.bfloat16):
    M, K = a.shape
    N = w.shape[1]
    tm = _pick_tile(M)
    return pl.pallas_call(
        functools.partial(_gemm_act_kernel, act=act),
        out_shape=jax.ShapeDtypeStruct((M, N), out_dtype),
        grid=(M // tm,),
        in_specs=[pl.BlockSpec((tm, K), lambda i: (i, 0)),
                  pl.BlockSpec((K, N), lambda i: (0, 0))],
        out_specs=pl.BlockSpec((tm, N), lambda i: (i, 0)),
        compiler_params=pltpu.CompilerParams(
            dimension_semantics=("parallel",)),
    )(a.astype(jnp.bfloat16), w)


# ---------------------------------------------------------------------------
# Kernel 2: GEMM + training-mode BatchNorm + activation fused in ONE step.
# Used for enc2/enc3 (groups=1: fold/bcast are identities) and for the
# parity-folded deconvs dec2/dec3 (groups=4: columns are (parity, oc);
# fold (N,OC) sums parity groups per channel, bcast (OC,N) broadcasts back).
# Variance is mean-subtracted (no E[x^2]-E[x]^2 cancellation).
# ---------------------------------------------------------------------------
def _gemm_bn_act_kernel(a_ref, w_ref, fold_ref, bcast_ref, g_ref, b_ref,
                        o_ref, *, act, eps, groups):
    y = jnp.dot(a_ref[...], w_ref[...], preferred_element_type=jnp.float32)
    count = y.shape[0] * groups
    colsum = jnp.sum(y, axis=0, keepdims=True)                      # (1, N)
    mean_c = jnp.dot(colsum, fold_ref[...],
                     preferred_element_type=jnp.float32) / count    # (1, OC)
    mean = jnp.dot(mean_c, bcast_ref[...],
                   preferred_element_type=jnp.float32)              # (1, N)
    yc = y - mean
    var_col = jnp.sum(yc * yc, axis=0, keepdims=True)               # (1, N)
    var_c = jnp.dot(var_col, fold_ref[...],
                    preferred_element_type=jnp.float32) / count     # (1, OC)
    inv_c = jax.lax.rsqrt(var_c + eps)
    inv = jnp.dot(inv_c, bcast_ref[...],
                  preferred_element_type=jnp.float32)               # (1, N)
    o_ref[...] = _apply_act(yc * inv * g_ref[...] + b_ref[...],
                            act).astype(o_ref.dtype)


def gemm_bn_act(patches, layer, *, act, out_dtype=jnp.bfloat16):
    w, fold, bcast, g_full, b_full = layer
    M = patches.shape[0]
    K, N = w.shape
    OC = fold.shape[1]
    groups = N // OC
    return pl.pallas_call(
        functools.partial(_gemm_bn_act_kernel, act=act, eps=_BN_EPS,
                          groups=groups),
        out_shape=jax.ShapeDtypeStruct((M, N), out_dtype),
        grid=(1,),
        in_specs=[pl.BlockSpec((M, K), lambda i: (0, 0)),
                  pl.BlockSpec((K, N), lambda i: (0, 0)),
                  pl.BlockSpec((N, OC), lambda i: (0, 0)),
                  pl.BlockSpec((OC, N), lambda i: (0, 0)),
                  pl.BlockSpec((1, N), lambda i: (0, 0)),
                  pl.BlockSpec((1, N), lambda i: (0, 0))],
        out_specs=pl.BlockSpec((M, N), lambda i: (0, 0)),
        compiler_params=pltpu.CompilerParams(
            dimension_semantics=("arbitrary",)),
    )(patches.astype(jnp.bfloat16), w, fold, bcast, g_full, b_full)


# ---------------------------------------------------------------------------
# Kernel 3: encoder head, fully fused:
#   enc4 conv (plain GEMM, 4x4 window covers the whole map) + sigmoid
#   -> fc1 + relu -> fc21 / fc22 -> reparameterization  z = mu + eps * std
# ---------------------------------------------------------------------------
def _encoder_head_kernel(p4_ref, we4_ref, w1_ref, b1_ref, w21_ref, b21_ref,
                         w22_ref, b22_ref, eps_ref, mu_ref, lv_ref, z_ref):
    feat = _apply_act(jnp.dot(p4_ref[...], we4_ref[...],
                              preferred_element_type=jnp.float32), "sigmoid")
    h = jnp.dot(feat.astype(jnp.bfloat16), w1_ref[...],
                preferred_element_type=jnp.float32) + b1_ref[...]
    h = jnp.maximum(h, 0.0).astype(jnp.bfloat16)
    mu = jnp.dot(h, w21_ref[...],
                 preferred_element_type=jnp.float32) + b21_ref[...]
    lv = jnp.dot(h, w22_ref[...],
                 preferred_element_type=jnp.float32) + b22_ref[...]
    mu_ref[...] = mu
    lv_ref[...] = lv
    z_ref[...] = mu + eps_ref[...] * jnp.exp(0.5 * lv)


def encoder_head(p4, q, eps):
    B, K4 = p4.shape
    C4 = q["enc4_w"].shape[1]
    H = q["w1"].shape[1]
    Z = q["w21"].shape[1]
    return pl.pallas_call(
        _encoder_head_kernel,
        out_shape=(jax.ShapeDtypeStruct((B, Z), jnp.float32),) * 3,
        grid=(1,),
        in_specs=[pl.BlockSpec((B, K4), lambda i: (0, 0)),
                  pl.BlockSpec((K4, C4), lambda i: (0, 0)),
                  pl.BlockSpec((C4, H), lambda i: (0, 0)),
                  pl.BlockSpec((1, H), lambda i: (0, 0)),
                  pl.BlockSpec((H, Z), lambda i: (0, 0)),
                  pl.BlockSpec((1, Z), lambda i: (0, 0)),
                  pl.BlockSpec((H, Z), lambda i: (0, 0)),
                  pl.BlockSpec((1, Z), lambda i: (0, 0)),
                  pl.BlockSpec((B, Z), lambda i: (0, 0))],
        out_specs=(pl.BlockSpec((B, Z), lambda i: (0, 0)),) * 3,
        compiler_params=pltpu.CompilerParams(
            dimension_semantics=("arbitrary",)),
    )(p4.astype(jnp.bfloat16), q["enc4_w"], q["w1"], q["b1"],
      q["w21"], q["b21"], q["w22"], q["b22"], eps)


# ---------------------------------------------------------------------------
# Kernel 4: decoder head, fully fused:
#   fc3 + relu -> fc4 + sigmoid -> dec1 (1x1->4x4 ConvTranspose == GEMM)
#   -> BatchNorm(128) + ReLU.  Output columns are (spatial, channel) so a
#   plain reshape yields NHWC (B,4,4,128); channel stats use 128-lane-aligned
#   slices of the in-register f32 accumulator.
# ---------------------------------------------------------------------------
def _decoder_head_kernel(z_ref, w3_ref, b3_ref, w4_ref, b4_ref, wd1_ref,
                         g_ref, be_ref, o_ref, *, eps):
    h3 = jnp.maximum(jnp.dot(z_ref[...], w3_ref[...],
                             preferred_element_type=jnp.float32)
                     + b3_ref[...], 0.0)
    h4 = _apply_act(jnp.dot(h3.astype(jnp.bfloat16), w4_ref[...],
                            preferred_element_type=jnp.float32)
                    + b4_ref[...], "sigmoid")
    d = jnp.dot(h4.astype(jnp.bfloat16), wd1_ref[...],
                preferred_element_type=jnp.float32)        # (B, S*C) f32
    C = g_ref.shape[-1]
    S = d.shape[1] // C
    count = d.shape[0] * S
    ssum = jnp.zeros((1, C), jnp.float32)
    for s in range(S):
        ssum = ssum + jnp.sum(d[:, s * C:(s + 1) * C], axis=0, keepdims=True)
    mean = ssum / count
    vsum = jnp.zeros((1, C), jnp.float32)
    for s in range(S):
        c = d[:, s * C:(s + 1) * C] - mean
        vsum = vsum + jnp.sum(c * c, axis=0, keepdims=True)
    scale = jax.lax.rsqrt(vsum / count + eps) * g_ref[...]
    shift = be_ref[...] - mean * scale
    for s in range(S):
        o_ref[:, s * C:(s + 1) * C] = jnp.maximum(
            d[:, s * C:(s + 1) * C] * scale + shift, 0.0).astype(o_ref.dtype)


def decoder_head(z, q):
    B, Z = z.shape
    H = q["w3"].shape[1]
    N4 = q["w4"].shape[1]
    N1 = q["dec1_w"].shape[1]
    C = q["dec1_gamma"].shape[1]
    return pl.pallas_call(
        functools.partial(_decoder_head_kernel, eps=_BN_EPS),
        out_shape=jax.ShapeDtypeStruct((B, N1), jnp.bfloat16),
        grid=(1,),
        in_specs=[pl.BlockSpec((B, Z), lambda i: (0, 0)),
                  pl.BlockSpec((Z, H), lambda i: (0, 0)),
                  pl.BlockSpec((1, H), lambda i: (0, 0)),
                  pl.BlockSpec((H, N4), lambda i: (0, 0)),
                  pl.BlockSpec((1, N4), lambda i: (0, 0)),
                  pl.BlockSpec((N4, N1), lambda i: (0, 0)),
                  pl.BlockSpec((1, C), lambda i: (0, 0)),
                  pl.BlockSpec((1, C), lambda i: (0, 0))],
        out_specs=pl.BlockSpec((B, N1), lambda i: (0, 0)),
        compiler_params=pltpu.CompilerParams(
            dimension_semantics=("arbitrary",)),
    )(z.astype(jnp.bfloat16), q["w3"], q["b3"], q["w4"], q["b4"],
      q["dec1_w"], q["dec1_gamma"], q["dec1_beta"])


# ---------------------------------------------------------------------------
# Kernel 5: final ConvTranspose (OC=3) computed TRANSPOSED so the kernel
# output is lane-dense (last dim = B*H*W); parity axis = grid ("parallel").
# ---------------------------------------------------------------------------
def _dec4_kernel(w_ref, p_ref, o_ref):
    y = jnp.dot(w_ref[0], p_ref[0], preferred_element_type=jnp.float32)
    o_ref[0] = _apply_act(y, "sigmoid")


def deconv_final(x_nhwc, w_t):
    B, H, W, C = x_nhwc.shape
    OC = w_t.shape[1]
    M = B * H * W
    pt = _subpixel_patches_T(x_nhwc)                       # (4, 4C, M) bf16
    y = pl.pallas_call(
        _dec4_kernel,
        out_shape=jax.ShapeDtypeStruct((4, OC, M), jnp.float32),
        grid=(4,),
        in_specs=[pl.BlockSpec((1, OC, 4 * C), lambda s: (s, 0, 0)),
                  pl.BlockSpec((1, 4 * C, M), lambda s: (s, 0, 0))],
        out_specs=pl.BlockSpec((1, OC, M), lambda s: (s, 0, 0)),
        compiler_params=pltpu.CompilerParams(
            dimension_semantics=("parallel",)),
    )(w_t, pt)
    y = y.reshape(2, 2, OC, B, H, W).transpose(3, 2, 4, 0, 5, 1)
    return y.reshape(B, OC, 2 * H, 2 * W)                  # NCHW


# ---------------------------------------------------------------------------
# XLA-side patch extraction (stays outside the kernels; cheap at this size)
# ---------------------------------------------------------------------------
def _im2col(x, k, stride, pad, pad_k_to=None):
    x = x.astype(jnp.bfloat16)
    if pad:
        x = jnp.pad(x, ((0, 0), (pad, pad), (pad, pad), (0, 0)))
    B, H, W, C = x.shape
    OH = (H - k) // stride + 1
    OW = (W - k) // stride + 1
    cols = [x[:, i:i + stride * (OH - 1) + 1:stride,
              j:j + stride * (OW - 1) + 1:stride, :]
            for i in range(k) for j in range(k)]
    patches = jnp.stack(cols, axis=3).reshape(B * OH * OW, k * k * C)
    if pad_k_to is not None and pad_k_to > patches.shape[1]:
        patches = jnp.pad(patches, ((0, 0), (0, pad_k_to - patches.shape[1])))
    return patches


def _fold_subpixel_patches(x):
    """3x3-tap patches of the pad-1 input, shared by all 4 output parities."""
    B, H, W, C = x.shape
    xp = jnp.pad(x.astype(jnp.bfloat16), ((0, 0), (1, 1), (1, 1), (0, 0)))
    cols = [xp[:, ty:ty + H, tx:tx + W, :]
            for ty in range(3) for tx in range(3)]
    return jnp.stack(cols, axis=3).reshape(B * H * W, 9 * C)


def _subpixel_patches_T(x):
    """Transposed per-parity 2x2-tap patches, built directly in (4,4C,M)."""
    B, H, W, C = x.shape
    xc = jnp.transpose(x.astype(jnp.bfloat16), (3, 0, 1, 2))   # (C,B,H,W)
    xcp = jnp.pad(xc, ((0, 0), (0, 0), (1, 1), (1, 1)))
    subs = []
    for py in (0, 1):
        for px in (0, 1):
            taps = [xcp[:, :, py + dy:py + dy + H, px + dx:px + dx + W]
                    for dy in (0, 1) for dx in (0, 1)]          # each (C,B,H,W)
            subs.append(jnp.stack(taps, axis=0).reshape(4 * C, B * H * W))
    return jnp.stack(subs, axis=0)                              # (4, 4C, M)


def deconv_s2_bn(x, layer):
    """ConvTranspose(k=4,s=2,p=1) + BN + ReLU: one parity-folded GEMM call."""
    B, H, W, _ = x.shape
    oc = layer[2].shape[0]                                 # bcast: (OC, 4*OC)
    y = gemm_bn_act(_fold_subpixel_patches(x), layer, act="relu")
    y = y.reshape(B, H, W, 2, 2, oc).transpose(0, 1, 3, 2, 4, 5)
    return y.reshape(B, 2 * H, 2 * W, oc)                  # NHWC


# ---------------------------------------------------------------------------
# Parameters: PyTorch-layout init, then ONE-TIME packing into GEMM-ready
# bf16 layouts (+ BN fold/broadcast matrices and tiled gamma/beta).
# ---------------------------------------------------------------------------
def init_params(key, hidden_dim, z_size):
    keys = iter(jax.random.split(key, 24))

    def w(shape):
        return (0.05 * jax.random.normal(next(keys), shape)).astype(jnp.float32)

    def bn(c):
        return (jnp.ones((c,), jnp.float32), jnp.zeros((c,), jnp.float32))

    p = {}
    p["enc1_w"] = w((32, 3, 4, 4))
    p["enc2_w"] = w((64, 32, 4, 4));   p["enc2_bn"] = bn(64)
    p["enc3_w"] = w((128, 64, 4, 4));  p["enc3_bn"] = bn(128)
    p["enc4_w"] = w((256, 128, 4, 4))
    p["fc1_w"] = w((hidden_dim, 256));     p["fc1_b"] = w((hidden_dim,))
    p["fc21_w"] = w((z_size, hidden_dim)); p["fc21_b"] = w((z_size,))
    p["fc22_w"] = w((z_size, hidden_dim)); p["fc22_b"] = w((z_size,))
    p["fc3_w"] = w((hidden_dim, z_size));  p["fc3_b"] = w((hidden_dim,))
    p["fc4_w"] = w((256, hidden_dim));     p["fc4_b"] = w((256,))
    p["dec1_w"] = w((256, 128, 4, 4)); p["dec1_bn"] = bn(128)
    p["dec2_w"] = w((128, 64, 4, 4));  p["dec2_bn"] = bn(64)
    p["dec3_w"] = w((64, 32, 4, 4));   p["dec3_bn"] = bn(32)
    p["dec4_w"] = w((32, 3, 4, 4))
    return p


def _subpixel_weights(w_iohw):
    """(IC,OC,4,4) ConvTranspose weight -> (4, 4*IC, OC) per-parity 2x2 taps."""
    IC, OC = w_iohw.shape[:2]
    subs = []
    for py in (0, 1):
        for px in (0, 1):
            taps = [w_iohw[:, :, (3 - py) - 2 * dy, (3 - px) - 2 * dx]
                    for dy in (0, 1) for dx in (0, 1)]
            subs.append(jnp.stack(taps, axis=0).reshape(4 * IC, OC))
    return jnp.stack(subs, axis=0)


def _fold_subpixel_weight(w_iohw):
    """(IC,OC,4,4) -> (9*IC, 4*OC): 3x3 shared taps, parity-major columns."""
    IC, OC = w_iohw.shape[:2]
    zeros = jnp.zeros((IC, OC), w_iohw.dtype)
    rows = []
    for ty in range(3):
        for tx in range(3):
            blocks = []
            for py in (0, 1):
                for px in (0, 1):
                    dy, dx = ty - py, tx - px
                    if dy in (0, 1) and dx in (0, 1):
                        blocks.append(
                            w_iohw[:, :, 3 - py - 2 * dy, 3 - px - 2 * dx])
                    else:
                        blocks.append(zeros)
            rows.append(jnp.concatenate(blocks, axis=1))   # (IC, 4*OC)
    return jnp.concatenate(rows, axis=0)                   # (9*IC, 4*OC)


def pack_params(p):
    bf, f32 = jnp.bfloat16, jnp.float32

    def conv_gemm(w_oihw, pad_k_to=None):     # (OC,IC,KH,KW) -> (KH*KW*IC, OC)
        OC, IC, KH, KW = w_oihw.shape
        w = jnp.transpose(w_oihw, (2, 3, 1, 0)).reshape(KH * KW * IC, OC)
        if pad_k_to is not None and pad_k_to > w.shape[0]:
            w = jnp.pad(w, ((0, pad_k_to - w.shape[0]), (0, 0)))
        return w.astype(bf)

    def bn_gemm_layer(w_gemm, bn_pair, groups):
        gamma, beta = bn_pair
        N = w_gemm.shape[1]
        oc = N // groups
        fold = jnp.tile(jnp.eye(oc, dtype=f32), (groups, 1))       # (N, OC)
        bcast = jnp.tile(jnp.eye(oc, dtype=f32), (1, groups))      # (OC, N)
        g_full = jnp.tile(gamma.reshape(1, oc).astype(f32), (1, groups))
        b_full = jnp.tile(beta.reshape(1, oc).astype(f32), (1, groups))
        return (w_gemm, fold, bcast, g_full, b_full)

    q = {}
    # encoder convs
    q["enc1_w"] = conv_gemm(p["enc1_w"], pad_k_to=128)             # K 48 -> 128
    q["enc2"] = bn_gemm_layer(conv_gemm(p["enc2_w"]), p["enc2_bn"], 1)
    q["enc3"] = bn_gemm_layer(conv_gemm(p["enc3_w"]), p["enc3_bn"], 1)
    q["enc4_w"] = conv_gemm(p["enc4_w"])                           # (2048, 256)

    # FC heads (PyTorch Linear stores (out,in); GEMM wants (in,out))
    q["w1"] = p["fc1_w"].T.astype(bf);  q["b1"] = p["fc1_b"].reshape(1, -1)
    q["w21"] = p["fc21_w"].T.astype(bf); q["b21"] = p["fc21_b"].reshape(1, -1)
    q["w22"] = p["fc22_w"].T.astype(bf); q["b22"] = p["fc22_b"].reshape(1, -1)
    q["w3"] = p["fc3_w"].T.astype(bf);  q["b3"] = p["fc3_b"].reshape(1, -1)
    q["w4"] = p["fc4_w"].T.astype(bf);  q["b4"] = p["fc4_b"].reshape(1, -1)

    # dec1 (1x1 -> 4x4, s=1, p=0): plain GEMM, columns (ky, kx, oc) so the
    # output reshapes straight to NHWC; BN params kept per-channel.
    IC, OC, KH, KW = p["dec1_w"].shape
    q["dec1_w"] = (jnp.transpose(p["dec1_w"], (0, 2, 3, 1))
                   .reshape(IC, KH * KW * OC).astype(bf))
    q["dec1_gamma"] = p["dec1_bn"][0].reshape(1, OC)
    q["dec1_beta"] = p["dec1_bn"][1].reshape(1, OC)

    # dec2 / dec3: parity folded into N (lane-dense 256 / 128 outputs)
    q["dec2"] = bn_gemm_layer(_fold_subpixel_weight(p["dec2_w"]).astype(bf),
                              p["dec2_bn"], 4)
    q["dec3"] = bn_gemm_layer(_fold_subpixel_weight(p["dec3_w"]).astype(bf),
                              p["dec3_bn"], 4)
    # dec4: transposed (lane-dense) per-parity sub-kernels (4, OC, 4*IC)
    q["dec4_w"] = jnp.transpose(_subpixel_weights(p["dec4_w"]),
                                (0, 2, 1)).astype(bf)
    return q


# ---------------------------------------------------------------------------
# forward == vae2.forward: returns ((mu, logvar), decoded)
# ---------------------------------------------------------------------------
def forward(params, x_nchw, key):
    B = x_nchw.shape[0]
    x = jnp.transpose(x_nchw, (0, 2, 3, 1))                # NCHW -> NHWC

    # encoder: 32 -> 16 -> 8 -> 4 -> 1
    h = gemm_act(_im2col(x, 4, 2, 1, pad_k_to=128), params["enc1_w"],
                 act="leaky").reshape(B, 16, 16, 32)
    h = gemm_bn_act(_im2col(h, 4, 2, 1), params["enc2"],
                    act="leaky").reshape(B, 8, 8, 64)
    h = gemm_bn_act(_im2col(h, 4, 2, 1), params["enc3"],
                    act="leaky").reshape(B, 4, 4, 128)

    # enc4 (k=4,s=2,p=0 on a 4x4 map) == full-window GEMM: patches = flatten
    p4 = h.reshape(B, 4 * 4 * 128)
    z_size = params["w21"].shape[1]
    eps = jax.random.normal(key, (B, z_size), dtype=jnp.float32)
    mu, logvar, z = encoder_head(p4, params, eps)          # fused + reparam

    # decoder: fc3 -> fc4 -> dec1+BN (one kernel) -> 4 -> 8 -> 16 -> 32
    d = decoder_head(z, params).reshape(B, 4, 4, 128)      # NHWC bf16
    d = deconv_s2_bn(d, params["dec2"])                    # (B, 8, 8, 64)
    d = deconv_s2_bn(d, params["dec3"])                    # (B,16,16,32)
    decoded = deconv_final(d, params["dec4_w"])            # (B,3,32,32) NCHW
    return (mu, logvar), decoded


if __name__ == "__main__":
    root = jax.random.PRNGKey(0)
    k_params, k_x, k_eps = jax.random.split(root, 3)

    hidden_dim, z_size = 32, 8
    params = pack_params(init_params(k_params, hidden_dim, z_size))

    # image_size must be 32 so the four stride-2 convs bottleneck to (B,256,1,1)
    x = jax.random.normal(k_x, (2, 3, 32, 32), dtype=jnp.float32)

    (mu, logvar), decoded = jax.jit(forward)(params, x, k_eps)
    jax.block_until_ready(decoded)

    assert mu.shape == (2, z_size) and logvar.shape == (2, z_size)
    assert decoded.shape == (2, 3, 32, 32)
    assert bool(jnp.all(jnp.isfinite(decoded)))
    assert bool(jnp.all((decoded >= 0.0) & (decoded <= 1.0)))
    print("KERNEL_OK")
</pallas_src>

<mosaic_0001>
module attributes {stable_mosaic.version = 11 : i64} {
  func.func @_gemm_act_kernel(%arg0: i32, %arg1: memref<256x128xbf16, #tpu.memory_space<vmem>>, %arg2: memref<128x32xbf16, #tpu.memory_space<vmem>>, %arg3: memref<256x32xbf16, #tpu.memory_space<vmem>>) attributes {dimension_semantics = [#tpu.dimension_semantics<parallel>], iteration_bounds = array<i64: 2>, scalar_prefetch = 0 : i64, scratch_operands = 0 : i64, tpu.core_type = #tpu.core_type<tc>, window_params = [{transform_indices = @transform_0, window_bounds = array<i64: 256, 128>}, {pipeline_mode = #tpu.pipeline_mode<synchronous>, transform_indices = @transform_1, window_bounds = array<i64: 128, 32>}, {transform_indices = @transform_2, window_bounds = array<i64: 256, 32>}]} {
    %c0 = arith.constant 0 : index
    %c0_0 = arith.constant 0 : index
    %0 = vector.load %arg1[%c0, %c0_0] : memref<256x128xbf16, #tpu.memory_space<vmem>>, vector<256x128xbf16>
    %c0_1 = arith.constant 0 : index
    %c0_2 = arith.constant 0 : index
    %1 = vector.load %arg2[%c0_1, %c0_2] : memref<128x32xbf16, #tpu.memory_space<vmem>>, vector<128x32xbf16>
    %cst = arith.constant dense<0.000000e+00> : vector<256x32xf32>
    %2 = tpu.matmul %0, %1, %cst {dimension_numbers = #tpu.dot_dimension_numbers<[1], [0], [0], [1], [0, 0, 1, 1], [], []>} : vector<256x128xbf16>, vector<128x32xbf16>, vector<256x32xf32> -> vector<256x32xf32>
    %cst_3 = arith.constant 0.000000e+00 : f32
    %3 = vector.broadcast %cst_3 : f32 to vector<256x32xf32>
    %4 = arith.cmpf oge, %2, %3 : vector<256x32xf32>
    %cst_4 = arith.constant 2.000000e-01 : f32
    %5 = vector.broadcast %cst_4 : f32 to vector<256x32xf32>
    %6 = arith.mulf %5, %2 : vector<256x32xf32>
    %7 = arith.select %4, %2, %6 : vector<256x32xi1>, vector<256x32xf32>
    %8 = arith.truncf %7 : vector<256x32xf32> to vector<256x32xbf16>
    %c0_5 = arith.constant 0 : index
    %c0_6 = arith.constant 0 : index
    %9 = vector.load %arg3[%c0_5, %c0_6] : memref<256x32xbf16, #tpu.memory_space<vmem>>, vector<256x32xbf16>
    tpu.vector_store %arg3[%c0_5, %c0_6], %8 {strides = array<i32>} : memref<256x32xbf16, #tpu.memory_space<vmem>>, vector<256x32xbf16>,
    return
  }
  func.func @transform_0(%arg0: i32) -> (i32, i32) {
    %c0_i32 = arith.constant 0 : i32
    %c0_i32_0 = arith.constant 0 : i32
    return %arg0, %c0_i32 : i32, i32
  }
  func.func @transform_1(%arg0: i32) -> (i32, i32) {
    %c0_i32 = arith.constant 0 : i32
    %c0_i32_0 = arith.constant 0 : i32
    %c0_i32_1 = arith.constant 0 : i32
    return %c0_i32, %c0_i32_0 : i32, i32
  }
  func.func @transform_2(%arg0: i32) -> (i32, i32) {
    %c0_i32 = arith.constant 0 : i32
    %c0_i32_0 = arith.constant 0 : i32
    return %arg0, %c0_i32 : i32, i32
  }
}

module attributes {stable_mosaic.version = 11 : i64} {
  func.func @_gemm_bn_act_kernel(%arg0: i32, %arg1: memref<128x512xbf16, #tpu.memory_space<vmem>>, %arg2: memref<512x64xbf16, #tpu.memory_space<vmem>>, %arg3: memref<64x64xf32, #tpu.memory_space<vmem>>, %arg4: memref<64x64xf32, #tpu.memory_space<vmem>>, %arg5: memref<1x64xf32, #tpu.memory_space<vmem>>, %arg6: memref<1x64xf32, #tpu.memory_space<vmem>>, %arg7: memref<128x64xbf16, #tpu.memory_space<vmem>>) attributes {dimension_semantics = [#tpu.dimension_semantics<arbitrary>], iteration_bounds = array<i64: 1>, scalar_prefetch = 0 : i64, scratch_operands = 0 : i64, tpu.core_type = #tpu.core_type<tc>, window_params = [{pipeline_mode = #tpu.pipeline_mode<synchronous>, transform_indices = @transform_0, window_bounds = array<i64: 128, 512>}, {pipeline_mode = #tpu.pipeline_mode<synchronous>, transform_indices = @transform_1, window_bounds = array<i64: 512, 64>}, {pipeline_mode = #tpu.pipeline_mode<synchronous>, transform_indices = @transform_2, window_bounds = array<i64: 64, 64>}, {pipeline_mode = #tpu.pipeline_mode<synchronous>, transform_indices = @transform_3, window_bounds = array<i64: 64, 64>}, {pipeline_mode = #tpu.pipeline_mode<synchronous>, transform_indices = @transform_4, window_bounds = array<i64: 1, 64>}, {pipeline_mode = #tpu.pipeline_mode<synchronous>, transform_indices = @transform_5, window_bounds = array<i64: 1, 64>}, {pipeline_mode = #tpu.pipeline_mode<synchronous>, transform_indices = @transform_6, window_bounds = array<i64: 128, 64>}]} {
    %c0 = arith.constant 0 : index
    %c0_0 = arith.constant 0 : index
    %0 = vector.load %arg1[%c0, %c0_0] : memref<128x512xbf16, #tpu.memory_space<vmem>>, vector<128x512xbf16>
    %c0_1 = arith.constant 0 : index
    %c0_2 = arith.constant 0 : index
    %1 = vector.load %arg2[%c0_1, %c0_2] : memref<512x64xbf16, #tpu.memory_space<vmem>>, vector<512x64xbf16>
    %cst = arith.constant dense<0.000000e+00> : vector<128x64xf32>
    %2 = tpu.matmul %0, %1, %cst {dimension_numbers = #tpu.dot_dimension_numbers<[1], [0], [0], [1], [0, 0, 1, 1], [], []>} : vector<128x512xbf16>, vector<512x64xbf16>, vector<128x64xf32> -> vector<128x64xf32>
    %cst_3 = arith.constant dense<0.000000e+00> : vector<64xf32>
    %3 = vector.multi_reduction <add>, %2, %cst_3 [0] : vector<128x64xf32> to vector<64xf32>
    %4 = vector.shape_cast %3 : vector<64xf32> to vector<1x64xf32>
    %c0_4 = arith.constant 0 : index
    %c0_5 = arith.constant 0 : index
    %5 = vector.load %arg3[%c0_4, %c0_5] : memref<64x64xf32, #tpu.memory_space<vmem>>, vector<64x64xf32>
    %cst_6 = arith.constant dense<0.000000e+00> : vector<1x64xf32>
    %6 = tpu.matmul %4, %5, %cst_6 {dimension_numbers = #tpu.dot_dimension_numbers<[1], [0], [0], [1], [0, 0, 1, 1], [], []>} : vector<1x64xf32>, vector<64x64xf32>, vector<1x64xf32> -> vector<1x64xf32>
    %cst_7 = arith.constant 1.280000e+02 : f32
    %7 = vector.broadcast %cst_7 : f32 to vector<1x64xf32>
    %8 = arith.divf %6, %7 : vector<1x64xf32>
    %c0_8 = arith.constant 0 : index
    %c0_9 = arith.constant 0 : index
    %9 = vector.load %arg4[%c0_8, %c0_9] : memref<64x64xf32, #tpu.memory_space<vmem>>, vector<64x64xf32>
    %cst_10 = arith.constant dense<0.000000e+00> : vector<1x64xf32>
    %10 = tpu.matmul %8, %9, %cst_10 {dimension_numbers = #tpu.dot_dimension_numbers<[1], [0], [0], [1], [0, 0, 1, 1], [], []>} : vector<1x64xf32>, vector<64x64xf32>, vector<1x64xf32> -> vector<1x64xf32>
    %11 = vector.broadcast %10 : vector<1x64xf32> to vector<128x64xf32>
    %12 = arith.subf %2, %11 : vector<128x64xf32>
    %13 = arith.mulf %12, %12 : vector<128x64xf32>
    %cst_11 = arith.constant dense<0.000000e+00> : vector<64xf32>
    %14 = vector.multi_reduction <add>, %13, %cst_11 [0] : vector<128x64xf32> to vector<64xf32>
    %15 = vector.shape_cast %14 : vector<64xf32> to vector<1x64xf32>
    %c0_12 = arith.constant 0 : index
    %c0_13 = arith.constant 0 : index
    %16 = vector.load %arg3[%c0_12, %c0_13] : memref<64x64xf32, #tpu.memory_space<vmem>>, vector<64x64xf32>
    %cst_14 = arith.constant dense<0.000000e+00> : vector<1x64xf32>
    %17 = tpu.matmul %15, %16, %cst_14 {dimension_numbers = #tpu.dot_dimension_numbers<[1], [0], [0], [1], [0, 0, 1, 1], [], []>} : vector<1x64xf32>, vector<64x64xf32>, vector<1x64xf32> -> vector<1x64xf32>
    %cst_15 = arith.constant 1.280000e+02 : f32
    %18 = vector.broadcast %cst_15 : f32 to vector<1x64xf32>
    %19 = arith.divf %17, %18 : vector<1x64xf32>
    %cst_16 = arith.constant 9.99999974E-6 : f32
    %20 = vector.broadcast %cst_16 : f32 to vector<1x64xf32>
    %21 = arith.addf %19, %20 : vector<1x64xf32>
    %22 = math.rsqrt %21 : vector<1x64xf32>
    %c0_17 = arith.constant 0 : index
    %c0_18 = arith.constant 0 : index
    %23 = vector.load %arg4[%c0_17, %c0_18] : memref<64x64xf32, #tpu.memory_space<vmem>>, vector<64x64xf32>
    %cst_19 = arith.constant dense<0.000000e+00> : vector<1x64xf32>
    %24 = tpu.matmul %22, %23, %cst_19 {dimension_numbers = #tpu.dot_dimension_numbers<[1], [0], [0], [1], [0, 0, 1, 1], [], []>} : vector<1x64xf32>, vector<64x64xf32>, vector<1x64xf32> -> vector<1x64xf32>
    %25 = vector.broadcast %24 : vector<1x64xf32> to vector<128x64xf32>
    %26 = arith.mulf %12, %25 : vector<128x64xf32>
    %c0_20 = arith.constant 0 : index
    %c0_21 = arith.constant 0 : index
    %27 = vector.load %arg5[%c0_20, %c0_21] : memref<1x64xf32, #tpu.memory_space<vmem>>, vector<1x64xf32>
    %28 = vector.broadcast %27 : vector<1x64xf32> to vector<128x64xf32>
    %29 = arith.mulf %26, %28 : vector<128x64xf32>
    %c0_22 = arith.constant 0 : index
    %c0_23 = arith.constant 0 : index
    %30 = vector.load %arg6[%c0_22, %c0_23] : memref<1x64xf32, #tpu.memory_space<vmem>>, vector<1x64xf32>
    %31 = vector.broadcast %30 : vector<1x64xf32> to vector<128x64xf32>
    %32 = arith.addf %29, %31 : vector<128x64xf32>
    %cst_24 = arith.constant 0.000000e+00 : f32
    %33 = vector.broadcast %cst_24 : f32 to vector<128x64xf32>
    %34 = arith.cmpf oge, %32, %33 : vector<128x64xf32>
    %cst_25 = arith.constant 2.000000e-01 : f32
    %35 = vector.broadcast %cst_25 : f32 to vector<128x64xf32>
    %36 = arith.mulf %35, %32 : vector<128x64xf32>
    %37 = arith.select %34, %32, %36 : vector<128x64xi1>, vector<128x64xf32>
    %38 = arith.truncf %37 : vector<128x64xf32> to vector<128x64xbf16>
    %c0_26 = arith.constant 0 : index
    %c0_27 = arith.constant 0 : index
    %39 = vector.load %arg7[%c0_26, %c0_27] : memref<128x64xbf16, #tpu.memory_space<vmem>>, vector<128x64xbf16>
    tpu.vector_store %arg7[%c0_26, %c0_27], %38 {strides = array<i32>} : memref<128x64xbf16, #tpu.memory_space<vmem>>, vector<128x64xbf16>,
    return
  }
  func.func @transform_0(%arg0: i32) -> (i32, i32) {
    %c0_i32 = arith.constant 0 : i32
    %c0_i32_0 = arith.constant 0 : i32
    %c0_i32_1 = arith.constant 0 : i32
    return %c0_i32, %c0_i32_0 : i32, i32
  }
  func.func @transform_1(%arg0: i32) -> (i32, i32) {
    %c0_i32 = arith.constant 0 : i32
    %c0_i32_0 = arith.constant 0 : i32
    %c0_i32_1 = arith.constant 0 : i32
    return %c0_i32, %c0_i32_0 : i32, i32
  }
  func.func @transform_2(%arg0: i32) -> (i32, i32) {
    %c0_i32 = arith.constant 0 : i32
    %c0_i32_0 = arith.constant 0 : i32
    %c0_i32_1 = arith.constant 0 : i32
    return %c0_i32, %c0_i32_0 : i32, i32
  }
  func.func @transform_3(%arg0: i32) -> (i32, i32) {
    %c0_i32 = arith.constant 0 : i32
    %c0_i32_0 = arith.constant 0 : i32
    %c0_i32_1 = arith.constant 0 : i32
    return %c0_i32, %c0_i32_0 : i32, i32
  }
  func.func @transform_4(%arg0: i32) -> (i32, i32) {
    %c0_i32 = arith.constant 0 : i32
    %c0_i32_0 = arith.constant 0 : i32
    %c0_i32_1 = arith.constant 0 : i32
    return %c0_i32, %c0_i32_0 : i32, i32
  }
  func.func @transform_5(%arg0: i32) -> (i32, i32) {
    %c0_i32 = arith.constant 0 : i32
    %c0_i32_0 = arith.constant 0 : i32
    %c0_i32_1 = arith.constant 0 : i32
    return %c0_i32, %c0_i32_0 : i32, i32
  }
  func.func @transform_6(%arg0: i32) -> (i32, i32) {
    %c0_i32 = arith.constant 0 : i32
    %c0_i32_0 = arith.constant 0 : i32
    %c0_i32_1 = arith.constant 0 : i32
    return %c0_i32, %c0_i32_0 : i32, i32
  }
}

module attributes {stable_mosaic.version = 11 : i64} {
  func.func @_gemm_bn_act_kernel(%arg0: i32, %arg1: memref<32x1024xbf16, #tpu.memory_space<vmem>>, %arg2: memref<1024x128xbf16, #tpu.memory_space<vmem>>, %arg3: memref<128x128xf32, #tpu.memory_space<vmem>>, %arg4: memref<128x128xf32, #tpu.memory_space<vmem>>, %arg5: memref<1x128xf32, #tpu.memory_space<vmem>>, %arg6: memref<1x128xf32, #tpu.memory_space<vmem>>, %arg7: memref<32x128xbf16, #tpu.memory_space<vmem>>) attributes {dimension_semantics = [#tpu.dimension_semantics<arbitrary>], iteration_bounds = array<i64: 1>, scalar_prefetch = 0 : i64, scratch_operands = 0 : i64, tpu.core_type = #tpu.core_type<tc>, window_params = [{pipeline_mode = #tpu.pipeline_mode<synchronous>, transform_indices = @transform_0, window_bounds = array<i64: 32, 1024>}, {pipeline_mode = #tpu.pipeline_mode<synchronous>, transform_indices = @transform_1, window_bounds = array<i64: 1024, 128>}, {pipeline_mode = #tpu.pipeline_mode<synchronous>, transform_indices = @transform_2, window_bounds = array<i64: 128, 128>}, {pipeline_mode = #tpu.pipeline_mode<synchronous>, transform_indices = @transform_3, window_bounds = array<i64: 128, 128>}, {pipeline_mode = #tpu.pipeline_mode<synchronous>, transform_indices = @transform_4, window_bounds = array<i64: 1, 128>}, {pipeline_mode = #tpu.pipeline_mode<synchronous>, transform_indices = @transform_5, window_bounds = array<i64: 1, 128>}, {pipeline_mode = #tpu.pipeline_mode<synchronous>, transform_indices = @transform_6, window_bounds = array<i64: 32, 128>}]} {
    %c0 = arith.constant 0 : index
    %c0_0 = arith.constant 0 : index
    %0 = vector.load %arg1[%c0, %c0_0] : memref<32x1024xbf16, #tpu.memory_space<vmem>>, vector<32x1024xbf16>
    %c0_1 = arith.constant 0 : index
    %c0_2 = arith.constant 0 : index
    %1 = vector.load %arg2[%c0_1, %c0_2] : memref<1024x128xbf16, #tpu.memory_space<vmem>>, vector<1024x128xbf16>
    %cst = arith.constant dense<0.000000e+00> : vector<32x128xf32>
    %2 = tpu.matmul %0, %1, %cst {dimension_numbers = #tpu.dot_dimension_numbers<[1], [0], [0], [1], [0, 0, 1, 1], [], []>} : vector<32x1024xbf16>, vector<1024x128xbf16>, vector<32x128xf32> -> vector<32x128xf32>
    %cst_3 = arith.constant dense<0.000000e+00> : vector<128xf32>
    %3 = vector.multi_reduction <add>, %2, %cst_3 [0] : vector<32x128xf32> to vector<128xf32>
    %4 = vector.shape_cast %3 : vector<128xf32> to vector<1x128xf32>
    %c0_4 = arith.constant 0 : index
    %c0_5 = arith.constant 0 : index
    %5 = vector.load %arg3[%c0_4, %c0_5] : memref<128x128xf32, #tpu.memory_space<vmem>>, vector<128x128xf32>
    %cst_6 = arith.constant dense<0.000000e+00> : vector<1x128xf32>
    %6 = tpu.matmul %4, %5, %cst_6 {dimension_numbers = #tpu.dot_dimension_numbers<[1], [0], [0], [1], [0, 0, 1, 1], [], []>} : vector<1x128xf32>, vector<128x128xf32>, vector<1x128xf32> -> vector<1x128xf32>
    %cst_7 = arith.constant 3.200000e+01 : f32
    %7 = vector.broadcast %cst_7 : f32 to vector<1x128xf32>
    %8 = arith.divf %6, %7 : vector<1x128xf32>
    %c0_8 = arith.constant 0 : index
    %c0_9 = arith.constant 0 : index
    %9 = vector.load %arg4[%c0_8, %c0_9] : memref<128x128xf32, #tpu.memory_space<vmem>>, vector<128x128xf32>
    %cst_10 = arith.constant dense<0.000000e+00> : vector<1x128xf32>
    %10 = tpu.matmul %8, %9, %cst_10 {dimension_numbers = #tpu.dot_dimension_numbers<[1], [0], [0], [1], [0, 0, 1, 1], [], []>} : vector<1x128xf32>, vector<128x128xf32>, vector<1x128xf32> -> vector<1x128xf32>
    %11 = vector.broadcast %10 : vector<1x128xf32> to vector<32x128xf32>
    %12 = arith.subf %2, %11 : vector<32x128xf32>
    %13 = arith.mulf %12, %12 : vector<32x128xf32>
    %cst_11 = arith.constant dense<0.000000e+00> : vector<128xf32>
    %14 = vector.multi_reduction <add>, %13, %cst_11 [0] : vector<32x128xf32> to vector<128xf32>
    %15 = vector.shape_cast %14 : vector<128xf32> to vector<1x128xf32>
    %c0_12 = arith.constant 0 : index
    %c0_13 = arith.constant 0 : index
    %16 = vector.load %arg3[%c0_12, %c0_13] : memref<128x128xf32, #tpu.memory_space<vmem>>, vector<128x128xf32>
    %cst_14 = arith.constant dense<0.000000e+00> : vector<1x128xf32>
    %17 = tpu.matmul %15, %16, %cst_14 {dimension_numbers = #tpu.dot_dimension_numbers<[1], [0], [0], [1], [0, 0, 1, 1], [], []>} : vector<1x128xf32>, vector<128x128xf32>, vector<1x128xf32> -> vector<1x128xf32>
    %cst_15 = arith.constant 3.200000e+01 : f32
    %18 = vector.broadcast %cst_15 : f32 to vector<1x128xf32>
    %19 = arith.divf %17, %18 : vector<1x128xf32>
    %cst_16 = arith.constant 9.99999974E-6 : f32
    %20 = vector.broadcast %cst_16 : f32 to vector<1x128xf32>
    %21 = arith.addf %19, %20 : vector<1x128xf32>
    %22 = math.rsqrt %21 : vector<1x128xf32>
    %c0_17 = arith.constant 0 : index
    %c0_18 = arith.constant 0 : index
    %23 = vector.load %arg4[%c0_17, %c0_18] : memref<128x128xf32, #tpu.memory_space<vmem>>, vector<128x128xf32>
    %cst_19 = arith.constant dense<0.000000e+00> : vector<1x128xf32>
    %24 = tpu.matmul %22, %23, %cst_19 {dimension_numbers = #tpu.dot_dimension_numbers<[1], [0], [0], [1], [0, 0, 1, 1], [], []>} : vector<1x128xf32>, vector<128x128xf32>, vector<1x128xf32> -> vector<1x128xf32>
    %25 = vector.broadcast %24 : vector<1x128xf32> to vector<32x128xf32>
    %26 = arith.mulf %12, %25 : vector<32x128xf32>
    %c0_20 = arith.constant 0 : index
    %c0_21 = arith.constant 0 : index
    %27 = vector.load %arg5[%c0_20, %c0_21] : memref<1x128xf32, #tpu.memory_space<vmem>>, vector<1x128xf32>
    %28 = vector.broadcast %27 : vector<1x128xf32> to vector<32x128xf32>
    %29 = arith.mulf %26, %28 : vector<32x128xf32>
    %c0_22 = arith.constant 0 : index
    %c0_23 = arith.constant 0 : index
    %30 = vector.load %arg6[%c0_22, %c0_23] : memref<1x128xf32, #tpu.memory_space<vmem>>, vector<1x128xf32>
    %31 = vector.broadcast %30 : vector<1x128xf32> to vector<32x128xf32>
    %32 = arith.addf %29, %31 : vector<32x128xf32>
    %cst_24 = arith.constant 0.000000e+00 : f32
    %33 = vector.broadcast %cst_24 : f32 to vector<32x128xf32>
    %34 = arith.cmpf oge, %32, %33 : vector<32x128xf32>
    %cst_25 = arith.constant 2.000000e-01 : f32
    %35 = vector.broadcast %cst_25 : f32 to vector<32x128xf32>
    %36 = arith.mulf %35, %32 : vector<32x128xf32>
    %37 = arith.select %34, %32, %36 : vector<32x128xi1>, vector<32x128xf32>
    %38 = arith.truncf %37 : vector<32x128xf32> to vector<32x128xbf16>
    %c0_26 = arith.constant 0 : index
    %c0_27 = arith.constant 0 : index
    %39 = vector.load %arg7[%c0_26, %c0_27] : memref<32x128xbf16, #tpu.memory_space<vmem>>, vector<32x128xbf16>
    tpu.vector_store %arg7[%c0_26, %c0_27], %38 {strides = array<i32>} : memref<32x128xbf16, #tpu.memory_space<vmem>>, vector<32x128xbf16>,
    return
  }
  func.func @transform_0(%arg0: i32) -> (i32, i32) {
    %c0_i32 = arith.constant 0 : i32
    %c0_i32_0 = arith.constant 0 : i32
    %c0_i32_1 = arith.constant 0 : i32
    return %c0_i32, %c0_i32_0 : i32, i32
  }
  func.func @transform_1(%arg0: i32) -> (i32, i32) {
    %c0_i32 = arith.constant 0 : i32
    %c0_i32_0 = arith.constant 0 : i32
    %c0_i32_1 = arith.constant 0 : i32
    return %c0_i32, %c0_i32_0 : i32, i32
  }
  func.func @transform_2(%arg0: i32) -> (i32, i32) {
    %c0_i32 = arith.constant 0 : i32
    %c0_i32_0 = arith.constant 0 : i32
    %c0_i32_1 = arith.constant 0 : i32
    return %c0_i32, %c0_i32_0 : i32, i32
  }
  func.func @transform_3(%arg0: i32) -> (i32, i32) {
    %c0_i32 = arith.constant 0 : i32
    %c0_i32_0 = arith.constant 0 : i32
    %c0_i32_1 = arith.constant 0 : i32
    return %c0_i32, %c0_i32_0 : i32, i32
  }
  func.func @transform_4(%arg0: i32) -> (i32, i32) {
    %c0_i32 = arith.constant 0 : i32
    %c0_i32_0 = arith.constant 0 : i32
    %c0_i32_1 = arith.constant 0 : i32
    return %c0_i32, %c0_i32_0 : i32, i32
  }
  func.func @transform_5(%arg0: i32) -> (i32, i32) {
    %c0_i32 = arith.constant 0 : i32
    %c0_i32_0 = arith.constant 0 : i32
    %c0_i32_1 = arith.constant 0 : i32
    return %c0_i32, %c0_i32_0 : i32, i32
  }
  func.func @transform_6(%arg0: i32) -> (i32, i32) {
    %c0_i32 = arith.constant 0 : i32
    %c0_i32_0 = arith.constant 0 : i32
    %c0_i32_1 = arith.constant 0 : i32
    return %c0_i32, %c0_i32_0 : i32, i32
  }
}

module attributes {stable_mosaic.version = 11 : i64} {
  func.func @_encoder_head_kernel(%arg0: i32, %arg1: memref<2x2048xbf16, #tpu.memory_space<vmem>>, %arg2: memref<2048x256xbf16, #tpu.memory_space<vmem>>, %arg3: memref<256x32xbf16, #tpu.memory_space<vmem>>, %arg4: memref<1x32xf32, #tpu.memory_space<vmem>>, %arg5: memref<32x8xbf16, #tpu.memory_space<vmem>>, %arg6: memref<1x8xf32, #tpu.memory_space<vmem>>, %arg7: memref<32x8xbf16, #tpu.memory_space<vmem>>, %arg8: memref<1x8xf32, #tpu.memory_space<vmem>>, %arg9: memref<2x8xf32, #tpu.memory_space<vmem>>, %arg10: memref<2x8xf32, #tpu.memory_space<vmem>>, %arg11: memref<2x8xf32, #tpu.memory_space<vmem>>, %arg12: memref<2x8xf32, #tpu.memory_space<vmem>>) attributes {dimension_semantics = [#tpu.dimension_semantics<arbitrary>], iteration_bounds = array<i64: 1>, scalar_prefetch = 0 : i64, scratch_operands = 0 : i64, tpu.core_type = #tpu.core_type<tc>, window_params = [{pipeline_mode = #tpu.pipeline_mode<synchronous>, transform_indices = @transform_0, window_bounds = array<i64: 2, 2048>}, {pipeline_mode = #tpu.pipeline_mode<synchronous>, transform_indices = @transform_1, window_bounds = array<i64: 2048, 256>}, {pipeline_mode = #tpu.pipeline_mode<synchronous>, transform_indices = @transform_2, window_bounds = array<i64: 256, 32>}, {pipeline_mode = #tpu.pipeline_mode<synchronous>, transform_indices = @transform_3, window_bounds = array<i64: 1, 32>}, {pipeline_mode = #tpu.pipeline_mode<synchronous>, transform_indices = @transform_4, window_bounds = array<i64: 32, 8>}, {pipeline_mode = #tpu.pipeline_mode<synchronous>, transform_indices = @transform_5, window_bounds = array<i64: 1, 8>}, {pipeline_mode = #tpu.pipeline_mode<synchronous>, transform_indices = @transform_6, window_bounds = array<i64: 32, 8>}, {pipeline_mode = #tpu.pipeline_mode<synchronous>, transform_indices = @transform_7, window_bounds = array<i64: 1, 8>}, {pipeline_mode = #tpu.pipeline_mode<synchronous>, transform_indices = @transform_8, window_bounds = array<i64: 2, 8>}, {pipeline_mode = #tpu.pipeline_mode<synchronous>, transform_indices = @transform_9, window_bounds = array<i64: 2, 8>}, {pipeline_mode = #tpu.pipeline_mode<synchronous>, transform_indices = @transform_10, window_bounds = array<i64: 2, 8>}, {pipeline_mode = #tpu.pipeline_mode<synchronous>, transform_indices = @transform_11, window_bounds = array<i64: 2, 8>}]} {
    %c0 = arith.constant 0 : index
    %c0_0 = arith.constant 0 : index
    %0 = vector.load %arg1[%c0, %c0_0] : memref<2x2048xbf16, #tpu.memory_space<vmem>>, vector<2x2048xbf16>
    %c0_1 = arith.constant 0 : index
    %c0_2 = arith.constant 0 : index
    %1 = vector.load %arg2[%c0_1, %c0_2] : memref<2048x256xbf16, #tpu.memory_space<vmem>>, vector<2048x256xbf16>
    %cst = arith.constant dense<0.000000e+00> : vector<2x256xf32>
    %2 = tpu.matmul %0, %1, %cst {dimension_numbers = #tpu.dot_dimension_numbers<[1], [0], [0], [1], [0, 0, 1, 1], [], []>} : vector<2x2048xbf16>, vector<2048x256xbf16>, vector<2x256xf32> -> vector<2x256xf32>
    %cst_3 = arith.constant 5.000000e-01 : f32
    %3 = vector.broadcast %cst_3 : f32 to vector<2x256xf32>
    %4 = arith.mulf %3, %2 : vector<2x256xf32>
    %5 = math.tanh %4 : vector<2x256xf32>
    %cst_4 = arith.constant 1.000000e+00 : f32
    %6 = vector.broadcast %cst_4 : f32 to vector<2x256xf32>
    %7 = arith.addf %5, %6 : vector<2x256xf32>
    %cst_5 = arith.constant 5.000000e-01 : f32
    %8 = vector.broadcast %cst_5 : f32 to vector<2x256xf32>
    %9 = arith.mulf %8, %7 : vector<2x256xf32>
    %10 = arith.truncf %9 : vector<2x256xf32> to vector<2x256xbf16>
    %c0_6 = arith.constant 0 : index
    %c0_7 = arith.constant 0 : index
    %11 = vector.load %arg3[%c0_6, %c0_7] : memref<256x32xbf16, #tpu.memory_space<vmem>>, vector<256x32xbf16>
    %cst_8 = arith.constant dense<0.000000e+00> : vector<2x32xf32>
    %12 = tpu.matmul %10, %11, %cst_8 {dimension_numbers = #tpu.dot_dimension_numbers<[1], [0], [0], [1], [0, 0, 1, 1], [], []>} : vector<2x256xbf16>, vector<256x32xbf16>, vector<2x32xf32> -> vector<2x32xf32>
    %c0_9 = arith.constant 0 : index
    %c0_10 = arith.constant 0 : index
    %13 = vector.load %arg4[%c0_9, %c0_10] : memref<1x32xf32, #tpu.memory_space<vmem>>, vector<1x32xf32>
    %14 = vector.broadcast %13 : vector<1x32xf32> to vector<2x32xf32>
    %15 = arith.addf %12, %14 : vector<2x32xf32>
    %cst_11 = arith.constant 0.000000e+00 : f32
    %16 = vector.broadcast %cst_11 : f32 to vector<2x32xf32>
    %17 = arith.maximumf %15, %16 : vector<2x32xf32>
    %18 = arith.truncf %17 : vector<2x32xf32> to vector<2x32xbf16>
    %c0_12 = arith.constant 0 : index
    %c0_13 = arith.constant 0 : index
    %19 = vector.load %arg5[%c0_12, %c0_13] : memref<32x8xbf16, #tpu.memory_space<vmem>>, vector<32x8xbf16>
    %cst_14 = arith.constant dense<0.000000e+00> : vector<2x8xf32>
    %20 = tpu.matmul %18, %19, %cst_14 {dimension_numbers = #tpu.dot_dimension_numbers<[1], [0], [0], [1], [0, 0, 1, 1], [], []>} : vector<2x32xbf16>, vector<32x8xbf16>, vector<2x8xf32> -> vector<2x8xf32>
    %c0_15 = arith.constant 0 : index
    %c0_16 = arith.constant 0 : index
    %21 = vector.load %arg6[%c0_15, %c0_16] : memref<1x8xf32, #tpu.memory_space<vmem>>, vector<1x8xf32>
    %22 = vector.broadcast %21 : vector<1x8xf32> to vector<2x8xf32>
    %23 = arith.addf %20, %22 : vector<2x8xf32>
    %c0_17 = arith.constant 0 : index
    %c0_18 = arith.constant 0 : index
    %24 = vector.load %arg7[%c0_17, %c0_18] : memref<32x8xbf16, #tpu.memory_space<vmem>>, vector<32x8xbf16>
    %cst_19 = arith.constant dense<0.000000e+00> : vector<2x8xf32>
    %25 = tpu.matmul %18, %24, %cst_19 {dimension_numbers = #tpu.dot_dimension_numbers<[1], [0], [0], [1], [0, 0, 1, 1], [], []>} : vector<2x32xbf16>, vector<32x8xbf16>, vector<2x8xf32> -> vector<2x8xf32>
    %c0_20 = arith.constant 0 : index
    %c0_21 = arith.constant 0 : index
    %26 = vector.load %arg8[%c0_20, %c0_21] : memref<1x8xf32, #tpu.memory_space<vmem>>, vector<1x8xf32>
    %27 = vector.broadcast %26 : vector<1x8xf32> to vector<2x8xf32>
    %28 = arith.addf %25, %27 : vector<2x8xf32>
    %c0_22 = arith.constant 0 : index
    %c0_23 = arith.constant 0 : index
    %29 = vector.load %arg10[%c0_22, %c0_23] : memref<2x8xf32, #tpu.memory_space<vmem>>, vector<2x8xf32>
    tpu.vector_store %arg10[%c0_22, %c0_23], %23 {strides = array<i32>} : memref<2x8xf32, #tpu.memory_space<vmem>>, vector<2x8xf32>,
    %c0_24 = arith.constant 0 : index
    %c0_25 = arith.constant 0 : index
    %30 = vector.load %arg11[%c0_24, %c0_25] : memref<2x8xf32, #tpu.memory_space<vmem>>, vector<2x8xf32>
    tpu.vector_store %arg11[%c0_24, %c0_25], %28 {strides = array<i32>} : memref<2x8xf32, #tpu.memory_space<vmem>>, vector<2x8xf32>,
    %c0_26 = arith.constant 0 : index
    %c0_27 = arith.constant 0 : index
    %31 = vector.load %arg9[%c0_26, %c0_27] : memref<2x8xf32, #tpu.memory_space<vmem>>, vector<2x8xf32>
    %cst_28 = arith.constant 5.000000e-01 : f32
    %32 = vector.broadcast %cst_28 : f32 to vector<2x8xf32>
    %33 = arith.mulf %32, %28 : vector<2x8xf32>
    %34 = math.exp %33 : vector<2x8xf32>
    %35 = arith.mulf %31, %34 : vector<2x8xf32>
    %36 = arith.addf %23, %35 : vector<2x8xf32>
    %c0_29 = arith.constant 0 : index
    %c0_30 = arith.constant 0 : index
    %37 = vector.load %arg12[%c0_29, %c0_30] : memref<2x8xf32, #tpu.memory_space<vmem>>, vector<2x8xf32>
    tpu.vector_store %arg12[%c0_29, %c0_30], %36 {strides = array<i32>} : memref<2x8xf32, #tpu.memory_space<vmem>>, vector<2x8xf32>,
    return
  }
  func.func @transform_0(%arg0: i32) -> (i32, i32) {
    %c0_i32 = arith.constant 0 : i32
    %c0_i32_0 = arith.constant 0 : i32
    %c0_i32_1 = arith.constant 0 : i32
    return %c0_i32, %c0_i32_0 : i32, i32
  }
  func.func @transform_1(%arg0: i32) -> (i32, i32) {
    %c0_i32 = arith.constant 0 : i32
    %c0_i32_0 = arith.constant 0 : i32
    %c0_i32_1 = arith.constant 0 : i32
    return %c0_i32, %c0_i32_0 : i32, i32
  }
  func.func @transform_2(%arg0: i32) -> (i32, i32) {
    %c0_i32 = arith.constant 0 : i32
    %c0_i32_0 = arith.constant 0 : i32
    %c0_i32_1 = arith.constant 0 : i32
    return %c0_i32, %c0_i32_0 : i32, i32
  }
  func.func @transform_3(%arg0: i32) -> (i32, i32) {
    %c0_i32 = arith.constant 0 : i32
    %c0_i32_0 = arith.constant 0 : i32
    %c0_i32_1 = arith.constant 0 : i32
    return %c0_i32, %c0_i32_0 : i32, i32
  }
  func.func @transform_4(%arg0: i32) -> (i32, i32) {
    %c0_i32 = arith.constant 0 : i32
    %c0_i32_0 = arith.constant 0 : i32
    %c0_i32_1 = arith.constant 0 : i32
    return %c0_i32, %c0_i32_0 : i32, i32
  }
  func.func @transform_5(%arg0: i32) -> (i32, i32) {
    %c0_i32 = arith.constant 0 : i32
    %c0_i32_0 = arith.constant 0 : i32
    %c0_i32_1 = arith.constant 0 : i32
    return %c0_i32, %c0_i32_0 : i32, i32
  }
  func.func @transform_6(%arg0: i32) -> (i32, i32) {
    %c0_i32 = arith.constant 0 : i32
    %c0_i32_0 = arith.constant 0 : i32
    %c0_i32_1 = arith.constant 0 : i32
    return %c0_i32, %c0_i32_0 : i32, i32
  }
  func.func @transform_7(%arg0: i32) -> (i32, i32) {
    %c0_i32 = arith.constant 0 : i32
    %c0_i32_0 = arith.constant 0 : i32
    %c0_i32_1 = arith.constant 0 : i32
    return %c0_i32, %c0_i32_0 : i32, i32
  }
  func.func @transform_8(%arg0: i32) -> (i32, i32) {
    %c0_i32 = arith.constant 0 : i32
    %c0_i32_0 = arith.constant 0 : i32
    %c0_i32_1 = arith.constant 0 : i32
    return %c0_i32, %c0_i32_0 : i32, i32
  }
  func.func @transform_9(%arg0: i32) -> (i32, i32) {
    %c0_i32 = arith.constant 0 : i32
    %c0_i32_0 = arith.constant 0 : i32
    %c0_i32_1 = arith.constant 0 : i32
    return %c0_i32, %c0_i32_0 : i32, i32
  }
  func.func @transform_10(%arg0: i32) -> (i32, i32) {
    %c0_i32 = arith.constant 0 : i32
    %c0_i32_0 = arith.constant 0 : i32
    %c0_i32_1 = arith.constant 0 : i32
    return %c0_i32, %c0_i32_0 : i32, i32
  }
  func.func @transform_11(%arg0: i32) -> (i32, i32) {
    %c0_i32 = arith.constant 0 : i32
    %c0_i32_0 = arith.constant 0 : i32
    %c0_i32_1 = arith.constant 0 : i32
    return %c0_i32, %c0_i32_0 : i32, i32
  }
}

module attributes {stable_mosaic.version = 11 : i64} {
  func.func @_decoder_head_kernel(%arg0: i32, %arg1: memref<2x8xbf16, #tpu.memory_space<vmem>>, %arg2: memref<8x32xbf16, #tpu.memory_space<vmem>>, %arg3: memref<1x32xf32, #tpu.memory_space<vmem>>, %arg4: memref<32x256xbf16, #tpu.memory_space<vmem>>, %arg5: memref<1x256xf32, #tpu.memory_space<vmem>>, %arg6: memref<256x2048xbf16, #tpu.memory_space<vmem>>, %arg7: memref<1x128xf32, #tpu.memory_space<vmem>>, %arg8: memref<1x128xf32, #tpu.memory_space<vmem>>, %arg9: memref<2x2048xbf16, #tpu.memory_space<vmem>>) attributes {dimension_semantics = [#tpu.dimension_semantics<arbitrary>], iteration_bounds = array<i64: 1>, scalar_prefetch = 0 : i64, scratch_operands = 0 : i64, tpu.core_type = #tpu.core_type<tc>, window_params = [{pipeline_mode = #tpu.pipeline_mode<synchronous>, transform_indices = @transform_0, window_bounds = array<i64: 2, 8>}, {pipeline_mode = #tpu.pipeline_mode<synchronous>, transform_indices = @transform_1, window_bounds = array<i64: 8, 32>}, {pipeline_mode = #tpu.pipeline_mode<synchronous>, transform_indices = @transform_2, window_bounds = array<i64: 1, 32>}, {pipeline_mode = #tpu.pipeline_mode<synchronous>, transform_indices = @transform_3, window_bounds = array<i64: 32, 256>}, {pipeline_mode = #tpu.pipeline_mode<synchronous>, transform_indices = @transform_4, window_bounds = array<i64: 1, 256>}, {pipeline_mode = #tpu.pipeline_mode<synchronous>, transform_indices = @transform_5, window_bounds = array<i64: 256, 2048>}, {pipeline_mode = #tpu.pipeline_mode<synchronous>, transform_indices = @transform_6, window_bounds = array<i64: 1, 128>}, {pipeline_mode = #tpu.pipeline_mode<synchronous>, transform_indices = @transform_7, window_bounds = array<i64: 1, 128>}, {pipeline_mode = #tpu.pipeline_mode<synchronous>, transform_indices = @transform_8, window_bounds = array<i64: 2, 2048>}]} {
    %c0 = arith.constant 0 : index
    %c0_0 = arith.constant 0 : index
    %0 = vector.load %arg1[%c0, %c0_0] : memref<2x8xbf16, #tpu.memory_space<vmem>>, vector<2x8xbf16>
    %c0_1 = arith.constant 0 : index
    %c0_2 = arith.constant 0 : index
    %1 = vector.load %arg2[%c0_1, %c0_2] : memref<8x32xbf16, #tpu.memory_space<vmem>>, vector<8x32xbf16>
    %cst = arith.constant dense<0.000000e+00> : vector<2x32xf32>
    %2 = tpu.matmul %0, %1, %cst {dimension_numbers = #tpu.dot_dimension_numbers<[1], [0], [0], [1], [0, 0, 1, 1], [], []>} : vector<2x8xbf16>, vector<8x32xbf16>, vector<2x32xf32> -> vector<2x32xf32>
    %c0_3 = arith.constant 0 : index
    %c0_4 = arith.constant 0 : index
    %3 = vector.load %arg3[%c0_3, %c0_4] : memref<1x32xf32, #tpu.memory_space<vmem>>, vector<1x32xf32>
    %4 = vector.broadcast %3 : vector<1x32xf32> to vector<2x32xf32>
    %5 = arith.addf %2, %4 : vector<2x32xf32>
    %cst_5 = arith.constant 0.000000e+00 : f32
    %6 = vector.broadcast %cst_5 : f32 to vector<2x32xf32>
    %7 = arith.maximumf %5, %6 : vector<2x32xf32>
    %8 = arith.truncf %7 : vector<2x32xf32> to vector<2x32xbf16>
    %c0_6 = arith.constant 0 : index
    %c0_7 = arith.constant 0 : index
    %9 = vector.load %arg4[%c0_6, %c0_7] : memref<32x256xbf16, #tpu.memory_space<vmem>>, vector<32x256xbf16>
    %cst_8 = arith.constant dense<0.000000e+00> : vector<2x256xf32>
    %10 = tpu.matmul %8, %9, %cst_8 {dimension_numbers = #tpu.dot_dimension_numbers<[1], [0], [0], [1], [0, 0, 1, 1], [], []>} : vector<2x32xbf16>, vector<32x256xbf16>, vector<2x256xf32> -> vector<2x256xf32>
    %c0_9 = arith.constant 0 : index
    %c0_10 = arith.constant 0 : index
    %11 = vector.load %arg5[%c0_9, %c0_10] : memref<1x256xf32, #tpu.memory_space<vmem>>, vector<1x256xf32>
    %12 = vector.broadcast %11 : vector<1x256xf32> to vector<2x256xf32>
    %13 = arith.addf %10, %12 : vector<2x256xf32>
    %cst_11 = arith.constant 5.000000e-01 : f32
    %14 = vector.broadcast %cst_11 : f32 to vector<2x256xf32>
    %15 = arith.mulf %14, %13 : vector<2x256xf32>
    %16 = math.tanh %15 : vector<2x256xf32>
    %cst_12 = arith.constant 1.000000e+00 : f32
    %17 = vector.broadcast %cst_12 : f32 to vector<2x256xf32>
    %18 = arith.addf %16, %17 : vector<2x256xf32>
    %cst_13 = arith.constant 5.000000e-01 : f32
    %19 = vector.broadcast %cst_13 : f32 to vector<2x256xf32>
    %20 = arith.mulf %19, %18 : vector<2x256xf32>
    %21 = arith.truncf %20 : vector<2x256xf32> to vector<2x256xbf16>
    %c0_14 = arith.constant 0 : index
    %c0_15 = arith.constant 0 : index
    %22 = vector.load %arg6[%c0_14, %c0_15] : memref<256x2048xbf16, #tpu.memory_space<vmem>>, vector<256x2048xbf16>
    %cst_16 = arith.constant dense<0.000000e+00> : vector<2x2048xf32>
    %23 = tpu.matmul %21, %22, %cst_16 {dimension_numbers = #tpu.dot_dimension_numbers<[1], [0], [0], [1], [0, 0, 1, 1], [], []>} : vector<2x256xbf16>, vector<256x2048xbf16>, vector<2x2048xf32> -> vector<2x2048xf32>
    %cst_17 = arith.constant 0.000000e+00 : f32
    %24 = vector.broadcast %cst_17 : f32 to vector<1x128xf32>
    %25 = vector.extract_strided_slice %23 {offsets = [0, 0], sizes = [2, 128], strides = [1, 1]} : vector<2x2048xf32> to vector<2x128xf32>
    %cst_18 = arith.constant dense<0.000000e+00> : vector<128xf32>
    %26 = vector.multi_reduction <add>, %25, %cst_18 [0] : vector<2x128xf32> to vector<128xf32>
    %27 = vector.shape_cast %26 : vector<128xf32> to vector<1x128xf32>
    %28 = arith.addf %24, %27 : vector<1x128xf32>
    %29 = vector.extract_strided_slice %23 {offsets = [0, 128], sizes = [2, 128], strides = [1, 1]} : vector<2x2048xf32> to vector<2x128xf32>
    %cst_19 = arith.constant dense<0.000000e+00> : vector<128xf32>
    %30 = vector.multi_reduction <add>, %29, %cst_19 [0] : vector<2x128xf32> to vector<128xf32>
    %31 = vector.shape_cast %30 : vector<128xf32> to vector<1x128xf32>
    %32 = arith.addf %28, %31 : vector<1x128xf32>
    %33 = vector.extract_strided_slice %23 {offsets = [0, 256], sizes = [2, 128], strides = [1, 1]} : vector<2x2048xf32> to vector<2x128xf32>
    %cst_20 = arith.constant dense<0.000000e+00> : vector<128xf32>
    %34 = vector.multi_reduction <add>, %33, %cst_20 [0] : vector<2x128xf32> to vector<128xf32>
    %35 = vector.shape_cast %34 : vector<128xf32> to vector<1x128xf32>
    %36 = arith.addf %32, %35 : vector<1x128xf32>
    %37 = vector.extract_strided_slice %23 {offsets = [0, 384], sizes = [2, 128], strides = [1, 1]} : vector<2x2048xf32> to vector<2x128xf32>
    %cst_21 = arith.constant dense<0.000000e+00> : vector<128xf32>
    %38 = vector.multi_reduction <add>, %37, %cst_21 [0] : vector<2x128xf32> to vector<128xf32>
    %39 = vector.shape_cast %38 : vector<128xf32> to vector<1x128xf32>
    %40 = arith.addf %36, %39 : vector<1x128xf32>
    %41 = vector.extract_strided_slice %23 {offsets = [0, 512], sizes = [2, 128], strides = [1, 1]} : vector<2x2048xf32> to vector<2x128xf32>
    %cst_22 = arith.constant dense<0.000000e+00> : vector<128xf32>
    %42 = vector.multi_reduction <add>, %41, %cst_22 [0] : vector<2x128xf32> to vector<128xf32>
    %43 = vector.shape_cast %42 : vector<128xf32> to vector<1x128xf32>
    %44 = arith.addf %40, %43 : vector<1x128xf32>
    %45 = vector.extract_strided_slice %23 {offsets = [0, 640], sizes = [2, 128], strides = [1, 1]} : vector<2x2048xf32> to vector<2x128xf32>
    %cst_23 = arith.constant dense<0.000000e+00> : vector<128xf32>
    %46 = vector.multi_reduction <add>, %45, %cst_23 [0] : vector<2x128xf32> to vector<128xf32>
    %47 = vector.shape_cast %46 : vector<128xf32> to vector<1x128xf32>
    %48 = arith.addf %44, %47 : vector<1x128xf32>
    %49 = vector.extract_strided_slice %23 {offsets = [0, 768], sizes = [2, 128], strides = [1, 1]} : vector<2x2048xf32> to vector<2x128xf32>
    %cst_24 = arith.constant dense<0.000000e+00> : vector<128xf32>
    %50 = vector.multi_reduction <add>, %49, %cst_24 [0] : vector<2x128xf32> to vector<128xf32>
    %51 = vector.shape_cast %50 : vector<128xf32> to vector<1x128xf32>
    %52 = arith.addf %48, %51 : vector<1x128xf32>
    %53 = vector.extract_strided_slice %23 {offsets = [0, 896], sizes = [2, 128], strides = [1, 1]} : vector<2x2048xf32> to vector<2x128xf32>
    %cst_25 = arith.constant dense<0.000000e+00> : vector<128xf32>
    %54 = vector.multi_reduction <add>, %53, %cst_25 [0] : vector<2x128xf32> to vector<128xf32>
    %55 = vector.shape_cast %54 : vector<128xf32> to vector<1x128xf32>
    %56 = arith.addf %52, %55 : vector<1x128xf32>
    %57 = vector.extract_strided_slice %23 {offsets = [0, 1024], sizes = [2, 128], strides = [1, 1]} : vector<2x2048xf32> to vector<2x128xf32>
    %cst_26 = arith.constant dense<0.000000e+00> : vector<128xf32>
    %58 = vector.multi_reduction <add>, %57, %cst_26 [0] : vector<2x128xf32> to vector<128xf32>
    %59 = vector.shape_cast %58 : vector<128xf32> to vector<1x128xf32>
    %60 = arith.addf %56, %59 : vector<1x128xf32>
    %61 = vector.extract_strided_slice %23 {offsets = [0, 1152], sizes = [2, 128], strides = [1, 1]} : vector<2x2048xf32> to vector<2x128xf32>
    %cst_27 = arith.constant dense<0.000000e+00> : vector<128xf32>
    %62 = vector.multi_reduction <add>, %61, %cst_27 [0] : vector<2x128xf32> to vector<128xf32>
    %63 = vector.shape_cast %62 : vector<128xf32> to vector<1x128xf32>
    %64 = arith.addf %60, %63 : vector<1x128xf32>
    %65 = vector.extract_strided_slice %23 {offsets = [0, 1280], sizes = [2, 128], strides = [1, 1]} : vector<2x2048xf32> to vector<2x128xf32>
    %cst_28 = arith.constant dense<0.000000e+00> : vector<128xf32>
    %66 = vector.multi_reduction <add>, %65, %cst_28 [0] : vector<2x128xf32> to vector<128xf32>
    %67 = vector.shape_cast %66 : vector<128xf32> to vector<1x128xf32>
    %68 = arith.addf %64, %67 : vector<1x128xf32>
    %69 = vector.extract_strided_slice %23 {offsets = [0, 1408], sizes = [2, 128], strides = [1, 1]} : vector<2x2048xf32> to vector<2x128xf32>
    %cst_29 = arith.constant dense<0.000000e+00> : vector<128xf32>
    %70 = vector.multi_reduction <add>, %69, %cst_29 [0] : vector<2x128xf32> to vector<128xf32>
    %71 = vector.shape_cast %70 : vector<128xf32> to vector<1x128xf32>
    %72 = arith.addf %68, %71 : vector<1x128xf32>
    %73 = vector.extract_strided_slice %23 {offsets = [0, 1536], sizes = [2, 128], strides = [1, 1]} : vector<2x2048xf32> to vector<2x128xf32>
    %cst_30 = arith.constant dense<0.000000e+00> : vector<128xf32>
    %74 = vector.multi_reduction <add>, %73, %cst_30 [0] : vector<2x128xf32> to vector<128xf32>
    %75 = vector.shape_cast %74 : vector<128xf32> to vector<1x128xf32>
    %76 = arith.addf %72, %75 : vector<1x128xf32>
    %77 = vector.extract_strided_slice %23 {offsets = [0, 1664], sizes = [2, 128], strides = [1, 1]} : vector<2x2048xf32> to vector<2x128xf32>
    %cst_31 = arith.constant dense<0.000000e+00> : vector<128xf32>
    %78 = vector.multi_reduction <add>, %77, %cst_31 [0] : vector<2x128xf32> to vector<128xf32>
    %79 = vector.shape_cast %78 : vector<128xf32> to vector<1x128xf32>
    %80 = arith.addf %76, %79 : vector<1x128xf32>
    %81 = vector.extract_strided_slice %23 {offsets = [0, 1792], sizes = [2, 128], strides = [1, 1]} : vector<2x2048xf32> to vector<2x128xf32>
    %cst_32 = arith.constant dense<0.000000e+00> : vector<128xf32>
    %82 = vector.multi_reduction <add>, %81, %cst_32 [0] : vector<2x128xf32> to vector<128xf32>
    %83 = vector.shape_cast %82 : vector<128xf32> to vector<1x128xf32>
    %84 = arith.addf %80, %83 : vector<1x128xf32>
    %85 = vector.extract_strided_slice %23 {offsets = [0, 1920], sizes = [2, 128], strides = [1, 1]} : vector<2x2048xf32> to vector<2x128xf32>
    %cst_33 = arith.constant dense<0.000000e+00> : vector<128xf32>
    %86 = vector.multi_reduction <add>, %85, %cst_33 [0] : vector<2x128xf32> to vector<128xf32>
    %87 = vector.shape_cast %86 : vector<128xf32> to vector<1x128xf32>
    %88 = arith.addf %84, %87 : vector<1x128xf32>
    %cst_34 = arith.constant 3.200000e+01 : f32
    %89 = vector.broadcast %cst_34 : f32 to vector<1x128xf32>
    %90 = arith.divf %88, %89 : vector<1x128xf32>
    %cst_35 = arith.constant 0.000000e+00 : f32
    %91 = vector.broadcast %cst_35 : f32 to vector<1x128xf32>
    %92 = vector.extract_strided_slice %23 {offsets = [0, 0], sizes = [2, 128], strides = [1, 1]} : vector<2x2048xf32> to vector<2x128xf32>
    %93 = vector.broadcast %90 : vector<1x128xf32> to vector<2x128xf32>
    %94 = arith.subf %92, %93 : vector<2x128xf32>
    %95 = arith.mulf %94, %94 : vector<2x128xf32>
    %cst_36 = arith.constant dense<0.000000e+00> : vector<128xf32>
    %96 = vector.multi_reduction <add>, %95, %cst_36 [0] : vector<2x128xf32> to vector<128xf32>
    %97 = vector.shape_cast %96 : vector<128xf32> to vector<1x128xf32>
    %98 = arith.addf %91, %97 : vector<1x128xf32>
    %99 = vector.extract_strided_slice %23 {offsets = [0, 128], sizes = [2, 128], strides = [1, 1]} : vector<2x2048xf32> to vector<2x128xf32>
    %100 = vector.broadcast %90 : vector<1x128xf32> to vector<2x128xf32>
    %101 = arith.subf %99, %100 : vector<2x128xf32>
    %102 = arith.mulf %101, %101 : vector<2x128xf32>
    %cst_37 = arith.constant dense<0.000000e+00> : vector<128xf32>
    %103 = vector.multi_reduction <add>, %102, %cst_37 [0] : vector<2x128xf32> to vector<128xf32>
    %104 = vector.shape_cast %103 : vector<128xf32> to vector<1x128xf32>
    %105 = arith.addf %98, %104 : vector<1x128xf32>
    %106 = vector.extract_strided_slice %23 {offsets = [0, 256], sizes = [2, 128], strides = [1, 1]} : vector<2x2048xf32> to vector<2x128xf32>
    %107 = vector.broadcast %90 : vector<1x128xf32> to vector<2x128xf32>
    %108 = arith.subf %106, %107 : vector<2x128xf32>
    %109 = arith.mulf %108, %108 : vector<2x128xf32>
    %cst_38 = arith.constant dense<0.000000e+00> : vector<128xf32>
    %110 = vector.multi_reduction <add>, %109, %cst_38 [0] : vector<2x128xf32> to vector<128xf32>
    %111 = vector.shape_cast %110 : vector<128xf32> to vector<1x128xf32>
    %112 = arith.addf %105, %111 : vector<1x128xf32>
    %113 = vector.extract_strided_slice %23 {offsets = [0, 384], sizes = [2, 128], strides = [1, 1]} : vector<2x2048xf32> to vector<2x128xf32>
    %114 = vector.broadcast %90 : vector<1x128xf32> to vector<2x128xf32>
    %115 = arith.subf %113, %114 : vector<2x128xf32>
    %116 = arith.mulf %115, %115 : vector<2x128xf32>
    %cst_39 = arith.constant dense<0.000000e+00> : vector<128xf32>
    %117 = vector.multi_reduction <add>, %116, %cst_39 [0] : vector<2x128xf32> to vector<128xf32>
    %118 = vector.shape_cast %117 : vector<128xf32> to vector<1x128xf32>
    %119 = arith.addf %112, %118 : vector<1x128xf32>
    %120 = vector.extract_strided_slice %23 {offsets = [0, 512], sizes = [2, 128], strides = [1, 1]} : vector<2x2048xf32> to vector<2x128xf32>
    %121 = vector.broadcast %90 : vector<1x128xf32> to vector<2x128xf32>
    %122 = arith.subf %120, %121 : vector<2x128xf32>
    %123 = arith.mulf %122, %122 : vector<2x128xf32>
    %cst_40 = arith.constant dense<0.000000e+00> : vector<128xf32>
    %124 = vector.multi_reduction <add>, %123, %cst_40 [0] : vector<2x128xf32> to vector<128xf32>
    %125 = vector.shape_cast %124 : vector<128xf32> to vector<1x128xf32>
    %126 = arith.addf %119, %125 : vector<1x128xf32>
    %127 = vector.extract_strided_slice %23 {offsets = [0, 640], sizes = [2, 128], strides = [1, 1]} : vector<2x2048xf32> to vector<2x128xf32>
    %128 = vector.broadcast %90 : vector<1x128xf32> to vector<2x128xf32>
    %129 = arith.subf %127, %128 : vector<2x128xf32>
    %130 = arith.mulf %129, %129 : vector<2x128xf32>
    %cst_41 = arith.constant dense<0.000000e+00> : vector<128xf32>
    %131 = vector.multi_reduction <add>, %130, %cst_41 [0] : vector<2x128xf32> to vector<128xf32>
    %132 = vector.shape_cast %131 : vector<128xf32> to vector<1x128xf32>
    %133 = arith.addf %126, %132 : vector<1x128xf32>
    %134 = vector.extract_strided_slice %23 {offsets = [0, 768], sizes = [2, 128], strides = [1, 1]} : vector<2x2048xf32> to vector<2x128xf32>
    %135 = vector.broadcast %90 : vector<1x128xf32> to vector<2x128xf32>
    %136 = arith.subf %134, %135 : vector<2x128xf32>
    %137 = arith.mulf %136, %136 : vector<2x128xf32>
    %cst_42 = arith.constant dense<0.000000e+00> : vector<128xf32>
    %138 = vector.multi_reduction <add>, %137, %cst_42 [0] : vector<2x128xf32> to vector<128xf32>
    %139 = vector.shape_cast %138 : vector<128xf32> to vector<1x128xf32>
    %140 = arith.addf %133, %139 : vector<1x128xf32>
    %141 = vector.extract_strided_slice %23 {offsets = [0, 896], sizes = [2, 128], strides = [1, 1]} : vector<2x2048xf32> to vector<2x128xf32>
    %142 = vector.broadcast %90 : vector<1x128xf32> to vector<2x128xf32>
    %143 = arith.subf %141, %142 : vector<2x128xf32>
    %144 = arith.mulf %143, %143 : vector<2x128xf32>
    %cst_43 = arith.constant dense<0.000000e+00> : vector<128xf32>
    %145 = vector.multi_reduction <add>, %144, %cst_43 [0] : vector<2x128xf32> to vector<128xf32>
    %146 = vector.shape_cast %145 : vector<128xf32> to vector<1x128xf32>
    %147 = arith.addf %140, %146 : vector<1x128xf32>
    %148 = vector.extract_strided_slice %23 {offsets = [0, 1024], sizes = [2, 128], strides = [1, 1]} : vector<2x2048xf32> to vector<2x128xf32>
    %149 = vector.broadcast %90 : vector<1x128xf32> to vector<2x128xf32>
    %150 = arith.subf %148, %149 : vector<2x128xf32>
    %151 = arith.mulf %150, %150 : vector<2x128xf32>
    %cst_44 = arith.constant dense<0.000000e+00> : vector<128xf32>
    %152 = vector.multi_reduction <add>, %151, %cst_44 [0] : vector<2x128xf32> to vector<128xf32>
    %153 = vector.shape_cast %152 : vector<128xf32> to vector<1x128xf32>
    %154 = arith.addf %147, %153 : vector<1x128xf32>
    %155 = vector.extract_strided_slice %23 {offsets = [0, 1152], sizes = [2, 128], strides = [1, 1]} : vector<2x2048xf32> to vector<2x128xf32>
    %156 = vector.broadcast %90 : vector<1x128xf32> to vector<2x128xf32>
    %157 = arith.subf %155, %156 : vector<2x128xf32>
    %158 = arith.mulf %157, %157 : vector<2x128xf32>
    %cst_45 = arith.constant dense<0.000000e+00> : vector<128xf32>
    %159 = vector.multi_reduction <add>, %158, %cst_45 [0] : vector<2x128xf32> to vector<128xf32>
    %160 = vector.shape_cast %159 : vector<128xf32> to vector<1x128xf32>
    %161 = arith.addf %154, %160 : vector<1x128xf32>
    %162 = vector.extract_strided_slice %23 {offsets = [0, 1280], sizes = [2, 128], strides = [1, 1]} : vector<2x2048xf32> to vector<2x128xf32>
    %163 = vector.broadcast %90 : vector<1x128xf32> to vector<2x128xf32>
    %164 = arith.subf %162, %163 : vector<2x128xf32>
    %165 = arith.mulf %164, %164 : vector<2x128xf32>
    %cst_46 = arith.constant dense<0.000000e+00> : vector<128xf32>
    %166 = vector.multi_reduction <add>, %165, %cst_46 [0] : vector<2x128xf32> to vector<128xf32>
    %167 = vector.shape_cast %166 : vector<128xf32> to vector<1x128xf32>
    %168 = arith.addf %161, %167 : vector<1x128xf32>
    %169 = vector.extract_strided_slice %23 {offsets = [0, 1408], sizes = [2, 128], strides = [1, 1]} : vector<2x2048xf32> to vector<2x128xf32>
    %170 = vector.broadcast %90 : vector<1x128xf32> to vector<2x128xf32>
    %171 = arith.subf %169, %170 : vector<2x128xf32>
    %172 = arith.mulf %171, %171 : vector<2x128xf32>
    %cst_47 = arith.constant dense<0.000000e+00> : vector<128xf32>
    %173 = vector.multi_reduction <add>, %172, %cst_47 [0] : vector<2x128xf32> to vector<128xf32>
    %174 = vector.shape_cast %173 : vector<128xf32> to vector<1x128xf32>
    %175 = arith.addf %168, %174 : vector<1x128xf32>
    %176 = vector.extract_strided_slice %23 {offsets = [0, 1536], sizes = [2, 128], strides = [1, 1]} : vector<2x2048xf32> to vector<2x128xf32>
    %177 = vector.broadcast %90 : vector<1x128xf32> to vector<2x128xf32>
    %178 = arith.subf %176, %177 : vector<2x128xf32>
    %179 = arith.mulf %178, %178 : vector<2x128xf32>
    %cst_48 = arith.constant dense<0.000000e+00> : vector<128xf32>
    %180 = vector.multi_reduction <add>, %179, %cst_48 [0] : vector<2x128xf32> to vector<128xf32>
    %181 = vector.shape_cast %180 : vector<128xf32> to vector<1x128xf32>
    %182 = arith.addf %175, %181 : vector<1x128xf32>
    %183 = vector.extract_strided_slice %23 {offsets = [0, 1664], sizes = [2, 128], strides = [1, 1]} : vector<2x2048xf32> to vector<2x128xf32>
    %184 = vector.broadcast %90 : vector<1x128xf32> to vector<2x128xf32>
    %185 = arith.subf %183, %184 : vector<2x128xf32>
    %186 = arith.mulf %185, %185 : vector<2x128xf32>
    %cst_49 = arith.constant dense<0.000000e+00> : vector<128xf32>
    %187 = vector.multi_reduction <add>, %186, %cst_49 [0] : vector<2x128xf32> to vector<128xf32>
    %188 = vector.shape_cast %187 : vector<128xf32> to vector<1x128xf32>
    %189 = arith.addf %182, %188 : vector<1x128xf32>
    %190 = vector.extract_strided_slice %23 {offsets = [0, 1792], sizes = [2, 128], strides = [1, 1]} : vector<2x2048xf32> to vector<2x128xf32>
    %191 = vector.broadcast %90 : vector<1x128xf32> to vector<2x128xf32>
    %192 = arith.subf %190, %191 : vector<2x128xf32>
    %193 = arith.mulf %192, %192 : vector<2x128xf32>
    %cst_50 = arith.constant dense<0.000000e+00> : vector<128xf32>
    %194 = vector.multi_reduction <add>, %193, %cst_50 [0] : vector<2x128xf32> to vector<128xf32>
    %195 = vector.shape_cast %194 : vector<128xf32> to vector<1x128xf32>
    %196 = arith.addf %189, %195 : vector<1x128xf32>
    %197 = vector.extract_strided_slice %23 {offsets = [0, 1920], sizes = [2, 128], strides = [1, 1]} : vector<2x2048xf32> to vector<2x128xf32>
    %198 = vector.broadcast %90 : vector<1x128xf32> to vector<2x128xf32>
    %199 = arith.subf %197, %198 : vector<2x128xf32>
    %200 = arith.mulf %199, %199 : vector<2x128xf32>
    %cst_51 = arith.constant dense<0.000000e+00> : vector<128xf32>
    %201 = vector.multi_reduction <add>, %200, %cst_51 [0] : vector<2x128xf32> to vector<128xf32>
    %202 = vector.shape_cast %201 : vector<128xf32> to vector<1x128xf32>
    %203 = arith.addf %196, %202 : vector<1x128xf32>
    %cst_52 = arith.constant 3.200000e+01 : f32
    %204 = vector.broadcast %cst_52 : f32 to vector<1x128xf32>
    %205 = arith.divf %203, %204 : vector<1x128xf32>
    %cst_53 = arith.constant 9.99999974E-6 : f32
    %206 = vector.broadcast %cst_53 : f32 to vector<1x128xf32>
    %207 = arith.addf %205, %206 : vector<1x128xf32>
    %208 = math.rsqrt %207 : vector<1x128xf32>
    %c0_54 = arith.constant 0 : index
    %c0_55 = arith.constant 0 : index
    %209 = vector.load %arg7[%c0_54, %c0_55] : memref<1x128xf32, #tpu.memory_space<vmem>>, vector<1x128xf32>
    %210 = arith.mulf %208, %209 : vector<1x128xf32>
    %c0_56 = arith.constant 0 : index
    %c0_57 = arith.constant 0 : index
    %211 = vector.load %arg8[%c0_56, %c0_57] : memref<1x128xf32, #tpu.memory_space<vmem>>, vector<1x128xf32>
    %212 = arith.mulf %90, %210 : vector<1x128xf32>
    %213 = arith.subf %211, %212 : vector<1x128xf32>
    %214 = vector.extract_strided_slice %23 {offsets = [0, 0], sizes = [2, 128], strides = [1, 1]} : vector<2x2048xf32> to vector<2x128xf32>
    %215 = vector.broadcast %210 : vector<1x128xf32> to vector<2x128xf32>
    %216 = arith.mulf %214, %215 : vector<2x128xf32>
    %217 = vector.broadcast %213 : vector<1x128xf32> to vector<2x128xf32>
    %218 = arith.addf %216, %217 : vector<2x128xf32>
    %cst_58 = arith.constant 0.000000e+00 : f32
    %219 = vector.broadcast %cst_58 : f32 to vector<2x128xf32>
    %220 = arith.maximumf %218, %219 : vector<2x128xf32>
    %221 = arith.truncf %220 : vector<2x128xf32> to vector<2x128xbf16>
    %c0_59 = arith.constant 0 : index
    %c0_60 = arith.constant 0 : index
    %222 = vector.load %arg9[%c0_59, %c0_60] : memref<2x2048xbf16, #tpu.memory_space<vmem>>, vector<2x128xbf16>
    tpu.vector_store %arg9[%c0_59, %c0_60], %221 {strides = array<i32>} : memref<2x2048xbf16, #tpu.memory_space<vmem>>, vector<2x128xbf16>,
    %223 = vector.extract_strided_slice %23 {offsets = [0, 128], sizes = [2, 128], strides = [1, 1]} : vector<2x2048xf32> to vector<2x128xf32>
    %224 = vector.broadcast %210 : vector<1x128xf32> to vector<2x128xf32>
    %225 = arith.mulf %223, %224 : vector<2x128xf32>
    %226 = vector.broadcast %213 : vector<1x128xf32> to vector<2x128xf32>
    %227 = arith.addf %225, %226 : vector<2x128xf32>
    %cst_61 = arith.constant 0.000000e+00 : f32
    %228 = vector.broadcast %cst_61 : f32 to vector<2x128xf32>
    %229 = arith.maximumf %227, %228 : vector<2x128xf32>
    %230 = arith.truncf %229 : vector<2x128xf32> to vector<2x128xbf16>
    %c0_62 = arith.constant 0 : index
    %c128 = arith.constant 128 : index
    %231 = vector.load %arg9[%c0_62, %c128] : memref<2x2048xbf16, #tpu.memory_space<vmem>>, vector<2x128xbf16>
    tpu.vector_store %arg9[%c0_62, %c128], %230 {strides = array<i32>} : memref<2x2048xbf16, #tpu.memory_space<vmem>>, vector<2x128xbf16>,
    %232 = vector.extract_strided_slice %23 {offsets = [0, 256], sizes = [2, 128], strides = [1, 1]} : vector<2x2048xf32> to vector<2x128xf32>
    %233 = vector.broadcast %210 : vector<1x128xf32> to vector<2x128xf32>
    %234 = arith.mulf %232, %233 : vector<2x128xf32>
    %235 = vector.broadcast %213 : vector<1x128xf32> to vector<2x128xf32>
    %236 = arith.addf %234, %235 : vector<2x128xf32>
    %cst_63 = arith.constant 0.000000e+00 : f32
    %237 = vector.broadcast %cst_63 : f32 to vector<2x128xf32>
    %238 = arith.maximumf %236, %237 : vector<2x128xf32>
    %239 = arith.truncf %238 : vector<2x128xf32> to vector<2x128xbf16>
    %c0_64 = arith.constant 0 : index
    %c256 = arith.constant 256 : index
    %240 = vector.load %arg9[%c0_64, %c256] : memref<2x2048xbf16, #tpu.memory_space<vmem>>, vector<2x128xbf16>
    tpu.vector_store %arg9[%c0_64, %c256], %239 {strides = array<i32>} : memref<2x2048xbf16, #tpu.memory_space<vmem>>, vector<2x128xbf16>,
    %241 = vector.extract_strided_slice %23 {offsets = [0, 384], sizes = [2, 128], strides = [1, 1]} : vector<2x2048xf32> to vector<2x128xf32>
    %242 = vector.broadcast %210 : vector<1x128xf32> to vector<2x128xf32>
    %243 = arith.mulf %241, %242 : vector<2x128xf32>
    %244 = vector.broadcast %213 : vector<1x128xf32> to vector<2x128xf32>
    %245 = arith.addf %243, %244 : vector<2x128xf32>
    %cst_65 = arith.constant 0.000000e+00 : f32
    %246 = vector.broadcast %cst_65 : f32 to vector<2x128xf32>
    %247 = arith.maximumf %245, %246 : vector<2x128xf32>
    %248 = arith.truncf %247 : vector<2x128xf32> to vector<2x128xbf16>
    %c0_66 = arith.constant 0 : index
    %c384 = arith.constant 384 : index
    %249 = vector.load %arg9[%c0_66, %c384] : memref<2x2048xbf16, #tpu.memory_space<vmem>>, vector<2x128xbf16>
    tpu.vector_store %arg9[%c0_66, %c384], %248 {strides = array<i32>} : memref<2x2048xbf16, #tpu.memory_space<vmem>>, vector<2x128xbf16>,
    %250 = vector.extract_strided_slice %23 {offsets = [0, 512], sizes = [2, 128], strides = [1, 1]} : vector<2x2048xf32> to vector<2x128xf32>
    %251 = vector.broadcast %210 : vector<1x128xf32> to vector<2x128xf32>
    %252 = arith.mulf %250, %251 : vector<2x128xf32>
    %253 = vector.broadcast %213 : vector<1x128xf32> to vector<2x128xf32>
    %254 = arith.addf %252, %253 : vector<2x128xf32>
    %cst_67 = arith.constant 0.000000e+00 : f32
    %255 = vector.broadcast %cst_67 : f32 to vector<2x128xf32>
    %256 = arith.maximumf %254, %255 : vector<2x128xf32>
    %257 = arith.truncf %256 : vector<2x128xf32> to vector<2x128xbf16>
    %c0_68 = arith.constant 0 : index
    %c512 = arith.constant 512 : index
    %258 = vector.load %arg9[%c0_68, %c512] : memref<2x2048xbf16, #tpu.memory_space<vmem>>, vector<2x128xbf16>
    tpu.vector_store %arg9[%c0_68, %c512], %257 {strides = array<i32>} : memref<2x2048xbf16, #tpu.memory_space<vmem>>, vector<2x128xbf16>,
    %259 = vector.extract_strided_slice %23 {offsets = [0, 640], sizes = [2, 128], strides = [1, 1]} : vector<2x2048xf32> to vector<2x128xf32>
    %260 = vector.broadcast %210 : vector<1x128xf32> to vector<2x128xf32>
    %261 = arith.mulf %259, %260 : vector<2x128xf32>
    %262 = vector.broadcast %213 : vector<1x128xf32> to vector<2x128xf32>
    %263 = arith.addf %261, %262 : vector<2x128xf32>
    %cst_69 = arith.constant 0.000000e+00 : f32
    %264 = vector.broadcast %cst_69 : f32 to vector<2x128xf32>
    %265 = arith.maximumf %263, %264 : vector<2x128xf32>
    %266 = arith.truncf %265 : vector<2x128xf32> to vector<2x128xbf16>
    %c0_70 = arith.constant 0 : index
    %c640 = arith.constant 640 : index
    %267 = vector.load %arg9[%c0_70, %c640] : memref<2x2048xbf16, #tpu.memory_space<vmem>>, vector<2x128xbf16>
    tpu.vector_store %arg9[%c0_70, %c640], %266 {strides = array<i32>} : memref<2x2048xbf16, #tpu.memory_space<vmem>>, vector<2x128xbf16>,
    %268 = vector.extract_strided_slice %23 {offsets = [0, 768], sizes = [2, 128], strides = [1, 1]} : vector<2x2048xf32> to vector<2x128xf32>
    %269 = vector.broadcast %210 : vector<1x128xf32> to vector<2x128xf32>
    %270 = arith.mulf %268, %269 : vector<2x128xf32>
    %271 = vector.broadcast %213 : vector<1x128xf32> to vector<2x128xf32>
    %272 = arith.addf %270, %271 : vector<2x128xf32>
    %cst_71 = arith.constant 0.000000e+00 : f32
    %273 = vector.broadcast %cst_71 : f32 to vector<2x128xf32>
    %274 = arith.maximumf %272, %273 : vector<2x128xf32>
    %275 = arith.truncf %274 : vector<2x128xf32> to vector<2x128xbf16>
    %c0_72 = arith.constant 0 : index
    %c768 = arith.constant 768 : index
    %276 = vector.load %arg9[%c0_72, %c768] : memref<2x2048xbf16, #tpu.memory_space<vmem>>, vector<2x128xbf16>
    tpu.vector_store %arg9[%c0_72, %c768], %275 {strides = array<i32>} : memref<2x2048xbf16, #tpu.memory_space<vmem>>, vector<2x128xbf16>,
    %277 = vector.extract_strided_slice %23 {offsets = [0, 896], sizes = [2, 128], strides = [1, 1]} : vector<2x2048xf32> to vector<2x128xf32>
    %278 = vector.broadcast %210 : vector<1x128xf32> to vector<2x128xf32>
    %279 = arith.mulf %277, %278 : vector<2x128xf32>
    %280 = vector.broadcast %213 : vector<1x128xf32> to vector<2x128xf32>
    %281 = arith.addf %279, %280 : vector<2x128xf32>
    %cst_73 = arith.constant 0.000000e+00 : f32
    %282 = vector.broadcast %cst_73 : f32 to vector<2x128xf32>
    %283 = arith.maximumf %281, %282 : vector<2x128xf32>
    %284 = arith.truncf %283 : vector<2x128xf32> to vector<2x128xbf16>
    %c0_74 = arith.constant 0 : index
    %c896 = arith.constant 896 : index
    %285 = vector.load %arg9[%c0_74, %c896] : memref<2x2048xbf16, #tpu.memory_space<vmem>>, vector<2x128xbf16>
    tpu.vector_store %arg9[%c0_74, %c896], %284 {strides = array<i32>} : memref<2x2048xbf16, #tpu.memory_space<vmem>>, vector<2x128xbf16>,
    %286 = vector.extract_strided_slice %23 {offsets = [0, 1024], sizes = [2, 128], strides = [1, 1]} : vector<2x2048xf32> to vector<2x128xf32>
    %287 = vector.broadcast %210 : vector<1x128xf32> to vector<2x128xf32>
    %288 = arith.mulf %286, %287 : vector<2x128xf32>
    %289 = vector.broadcast %213 : vector<1x128xf32> to vector<2x128xf32>
    %290 = arith.addf %288, %289 : vector<2x128xf32>
    %cst_75 = arith.constant 0.000000e+00 : f32
    %291 = vector.broadcast %cst_75 : f32 to vector<2x128xf32>
    %292 = arith.maximumf %290, %291 : vector<2x128xf32>
    %293 = arith.truncf %292 : vector<2x128xf32> to vector<2x128xbf16>
    %c0_76 = arith.constant 0 : index
    %c1024 = arith.constant 1024 : index
    %294 = vector.load %arg9[%c0_76, %c1024] : memref<2x2048xbf16, #tpu.memory_space<vmem>>, vector<2x128xbf16>
    tpu.vector_store %arg9[%c0_76, %c1024], %293 {strides = array<i32>} : memref<2x2048xbf16, #tpu.memory_space<vmem>>, vector<2x128xbf16>,
    %295 = vector.extract_strided_slice %23 {offsets = [0, 1152], sizes = [2, 128], strides = [1, 1]} : vector<2x2048xf32> to vector<2x128xf32>
    %296 = vector.broadcast %210 : vector<1x128xf32> to vector<2x128xf32>
    %297 = arith.mulf %295, %296 : vector<2x128xf32>
    %298 = vector.broadcast %213 : vector<1x128xf32> to vector<2x128xf32>
    %299 = arith.addf %297, %298 : vector<2x128xf32>
    %cst_77 = arith.constant 0.000000e+00 : f32
    %300 = vector.broadcast %cst_77 : f32 to vector<2x128xf32>
    %301 = arith.maximumf %299, %300 : vector<2x128xf32>
    %302 = arith.truncf %301 : vector<2x128xf32> to vector<2x128xbf16>
    %c0_78 = arith.constant 0 : index
    %c1152 = arith.constant 1152 : index
    %303 = vector.load %arg9[%c0_78, %c1152] : memref<2x2048xbf16, #tpu.memory_space<vmem>>, vector<2x128xbf16>
    tpu.vector_store %arg9[%c0_78, %c1152], %302 {strides = array<i32>} : memref<2x2048xbf16, #tpu.memory_space<vmem>>, vector<2x128xbf16>,
    %304 = vector.extract_strided_slice %23 {offsets = [0, 1280], sizes = [2, 128], strides = [1, 1]} : vector<2x2048xf32> to vector<2x128xf32>
    %305 = vector.broadcast %210 : vector<1x128xf32> to vector<2x128xf32>
    %306 = arith.mulf %304, %305 : vector<2x128xf32>
    %307 = vector.broadcast %213 : vector<1x128xf32> to vector<2x128xf32>
    %308 = arith.addf %306, %307 : vector<2x128xf32>
    %cst_79 = arith.constant 0.000000e+00 : f32
    %309 = vector.broadcast %cst_79 : f32 to vector<2x128xf32>
    %310 = arith.maximumf %308, %309 : vector<2x128xf32>
    %311 = arith.truncf %310 : vector<2x128xf32> to vector<2x128xbf16>
    %c0_80 = arith.constant 0 : index
    %c1280 = arith.constant 1280 : index
    %312 = vector.load %arg9[%c0_80, %c1280] : memref<2x2048xbf16, #tpu.memory_space<vmem>>, vector<2x128xbf16>
    tpu.vector_store %arg9[%c0_80, %c1280], %311 {strides = array<i32>} : memref<2x2048xbf16, #tpu.memory_space<vmem>>, vector<2x128xbf16>,
    %313 = vector.extract_strided_slice %23 {offsets = [0, 1408], sizes = [2, 128], strides = [1, 1]} : vector<2x2048xf32> to vector<2x128xf32>
    %314 = vector.broadcast %210 : vector<1x128xf32> to vector<2x128xf32>
    %315 = arith.mulf %313, %314 : vector<2x128xf32>
    %316 = vector.broadcast %213 : vector<1x128xf32> to vector<2x128xf32>
    %317 = arith.addf %315, %316 : vector<2x128xf32>
    %cst_81 = arith.constant 0.000000e+00 : f32
    %318 = vector.broadcast %cst_81 : f32 to vector<2x128xf32>
    %319 = arith.maximumf %317, %318 : vector<2x128xf32>
    %320 = arith.truncf %319 : vector<2x128xf32> to vector<2x128xbf16>
    %c0_82 = arith.constant 0 : index
    %c1408 = arith.constant 1408 : index
    %321 = vector.load %arg9[%c0_82, %c1408] : memref<2x2048xbf16, #tpu.memory_space<vmem>>, vector<2x128xbf16>
    tpu.vector_store %arg9[%c0_82, %c1408], %320 {strides = array<i32>} : memref<2x2048xbf16, #tpu.memory_space<vmem>>, vector<2x128xbf16>,
    %322 = vector.extract_strided_slice %23 {offsets = [0, 1536], sizes = [2, 128], strides = [1, 1]} : vector<2x2048xf32> to vector<2x128xf32>
    %323 = vector.broadcast %210 : vector<1x128xf32> to vector<2x128xf32>
    %324 = arith.mulf %322, %323 : vector<2x128xf32>
    %325 = vector.broadcast %213 : vector<1x128xf32> to vector<2x128xf32>
    %326 = arith.addf %324, %325 : vector<2x128xf32>
    %cst_83 = arith.constant 0.000000e+00 : f32
    %327 = vector.broadcast %cst_83 : f32 to vector<2x128xf32>
    %328 = arith.maximumf %326, %327 : vector<2x128xf32>
    %329 = arith.truncf %328 : vector<2x128xf32> to vector<2x128xbf16>
    %c0_84 = arith.constant 0 : index
    %c1536 = arith.constant 1536 : index
    %330 = vector.load %arg9[%c0_84, %c1536] : memref<2x2048xbf16, #tpu.memory_space<vmem>>, vector<2x128xbf16>
    tpu.vector_store %arg9[%c0_84, %c1536], %329 {strides = array<i32>} : memref<2x2048xbf16, #tpu.memory_space<vmem>>, vector<2x128xbf16>,
    %331 = vector.extract_strided_slice %23 {offsets = [0, 1664], sizes = [2, 128], strides = [1, 1]} : vector<2x2048xf32> to vector<2x128xf32>
    %332 = vector.broadcast %210 : vector<1x128xf32> to vector<2x128xf32>
    %333 = arith.mulf %331, %332 : vector<2x128xf32>
    %334 = vector.broadcast %213 : vector<1x128xf32> to vector<2x128xf32>
    %335 = arith.addf %333, %334 : vector<2x128xf32>
    %cst_85 = arith.constant 0.000000e+00 : f32
    %336 = vector.broadcast %cst_85 : f32 to vector<2x128xf32>
    %337 = arith.maximumf %335, %336 : vector<2x128xf32>
    %338 = arith.truncf %337 : vector<2x128xf32> to vector<2x128xbf16>
    %c0_86 = arith.constant 0 : index
    %c1664 = arith.constant 1664 : index
    %339 = vector.load %arg9[%c0_86, %c1664] : memref<2x2048xbf16, #tpu.memory_space<vmem>>, vector<2x128xbf16>
    tpu.vector_store %arg9[%c0_86, %c1664], %338 {strides = array<i32>} : memref<2x2048xbf16, #tpu.memory_space<vmem>>, vector<2x128xbf16>,
    %340 = vector.extract_strided_slice %23 {offsets = [0, 1792], sizes = [2, 128], strides = [1, 1]} : vector<2x2048xf32> to vector<2x128xf32>
    %341 = vector.broadcast %210 : vector<1x128xf32> to vector<2x128xf32>
    %342 = arith.mulf %340, %341 : vector<2x128xf32>
    %343 = vector.broadcast %213 : vector<1x128xf32> to vector<2x128xf32>
    %344 = arith.addf %342, %343 : vector<2x128xf32>
    %cst_87 = arith.constant 0.000000e+00 : f32
    %345 = vector.broadcast %cst_87 : f32 to vector<2x128xf32>
    %346 = arith.maximumf %344, %345 : vector<2x128xf32>
    %347 = arith.truncf %346 : vector<2x128xf32> to vector<2x128xbf16>
    %c0_88 = arith.constant 0 : index
    %c1792 = arith.constant 1792 : index
    %348 = vector.load %arg9[%c0_88, %c1792] : memref<2x2048xbf16, #tpu.memory_space<vmem>>, vector<2x128xbf16>
    tpu.vector_store %arg9[%c0_88, %c1792], %347 {strides = array<i32>} : memref<2x2048xbf16, #tpu.memory_space<vmem>>, vector<2x128xbf16>,
    %349 = vector.extract_strided_slice %23 {offsets = [0, 1920], sizes = [2, 128], strides = [1, 1]} : vector<2x2048xf32> to vector<2x128xf32>
    %350 = vector.broadcast %210 : vector<1x128xf32> to vector<2x128xf32>
    %351 = arith.mulf %349, %350 : vector<2x128xf32>
    %352 = vector.broadcast %213 : vector<1x128xf32> to vector<2x128xf32>
    %353 = arith.addf %351, %352 : vector<2x128xf32>
    %cst_89 = arith.constant 0.000000e+00 : f32
    %354 = vector.broadcast %cst_89 : f32 to vector<2x128xf32>
    %355 = arith.maximumf %353, %354 : vector<2x128xf32>
    %356 = arith.truncf %355 : vector<2x128xf32> to vector<2x128xbf16>
    %c0_90 = arith.constant 0 : index
    %c1920 = arith.constant 1920 : index
    %357 = vector.load %arg9[%c0_90, %c1920] : memref<2x2048xbf16, #tpu.memory_space<vmem>>, vector<2x128xbf16>
    tpu.vector_store %arg9[%c0_90, %c1920], %356 {strides = array<i32>} : memref<2x2048xbf16, #tpu.memory_space<vmem>>, vector<2x128xbf16>,
    return
  }
  func.func @transform_0(%arg0: i32) -> (i32, i32) {
    %c0_i32 = arith.constant 0 : i32
    %c0_i32_0 = arith.constant 0 : i32
    %c0_i32_1 = arith.constant 0 : i32
    return %c0_i32, %c0_i32_0 : i32, i32
  }
  func.func @transform_1(%arg0: i32) -> (i32, i32) {
    %c0_i32 = arith.constant 0 : i32
    %c0_i32_0 = arith.constant 0 : i32
    %c0_i32_1 = arith.constant 0 : i32
    return %c0_i32, %c0_i32_0 : i32, i32
  }
  func.func @transform_2(%arg0: i32) -> (i32, i32) {
    %c0_i32 = arith.constant 0 : i32
    %c0_i32_0 = arith.constant 0 : i32
    %c0_i32_1 = arith.constant 0 : i32
    return %c0_i32, %c0_i32_0 : i32, i32
  }
  func.func @transform_3(%arg0: i32) -> (i32, i32) {
    %c0_i32 = arith.constant 0 : i32
    %c0_i32_0 = arith.constant 0 : i32
    %c0_i32_1 = arith.constant 0 : i32
    return %c0_i32, %c0_i32_0 : i32, i32
  }
  func.func @transform_4(%arg0: i32) -> (i32, i32) {
    %c0_i32 = arith.constant 0 : i32
    %c0_i32_0 = arith.constant 0 : i32
    %c0_i32_1 = arith.constant 0 : i32
    return %c0_i32, %c0_i32_0 : i32, i32
  }
  func.func @transform_5(%arg0: i32) -> (i32, i32) {
    %c0_i32 = arith.constant 0 : i32
    %c0_i32_0 = arith.constant 0 : i32
    %c0_i32_1 = arith.constant 0 : i32
    return %c0_i32, %c0_i32_0 : i32, i32
  }
  func.func @transform_6(%arg0: i32) -> (i32, i32) {
    %c0_i32 = arith.constant 0 : i32
    %c0_i32_0 = arith.constant 0 : i32
    %c0_i32_1 = arith.constant 0 : i32
    return %c0_i32, %c0_i32_0 : i32, i32
  }
  func.func @transform_7(%arg0: i32) -> (i32, i32) {
    %c0_i32 = arith.constant 0 : i32
    %c0_i32_0 = arith.constant 0 : i32
    %c0_i32_1 = arith.constant 0 : i32
    return %c0_i32, %c0_i32_0 : i32, i32
  }
  func.func @transform_8(%arg0: i32) -> (i32, i32) {
    %c0_i32 = arith.constant 0 : i32
    %c0_i32_0 = arith.constant 0 : i32
    %c0_i32_1 = arith.constant 0 : i32
    return %c0_i32, %c0_i32_0 : i32, i32
  }
}

module attributes {stable_mosaic.version = 11 : i64} {
  func.func @_gemm_bn_act_kernel(%arg0: i32, %arg1: memref<32x1152xbf16, #tpu.memory_space<vmem>>, %arg2: memref<1152x256xbf16, #tpu.memory_space<vmem>>, %arg3: memref<256x64xf32, #tpu.memory_space<vmem>>, %arg4: memref<64x256xf32, #tpu.memory_space<vmem>>, %arg5: memref<1x256xf32, #tpu.memory_space<vmem>>, %arg6: memref<1x256xf32, #tpu.memory_space<vmem>>, %arg7: memref<32x256xbf16, #tpu.memory_space<vmem>>) attributes {dimension_semantics = [#tpu.dimension_semantics<arbitrary>], iteration_bounds = array<i64: 1>, scalar_prefetch = 0 : i64, scratch_operands = 0 : i64, tpu.core_type = #tpu.core_type<tc>, window_params = [{pipeline_mode = #tpu.pipeline_mode<synchronous>, transform_indices = @transform_0, window_bounds = array<i64: 32, 1152>}, {pipeline_mode = #tpu.pipeline_mode<synchronous>, transform_indices = @transform_1, window_bounds = array<i64: 1152, 256>}, {pipeline_mode = #tpu.pipeline_mode<synchronous>, transform_indices = @transform_2, window_bounds = array<i64: 256, 64>}, {pipeline_mode = #tpu.pipeline_mode<synchronous>, transform_indices = @transform_3, window_bounds = array<i64: 64, 256>}, {pipeline_mode = #tpu.pipeline_mode<synchronous>, transform_indices = @transform_4, window_bounds = array<i64: 1, 256>}, {pipeline_mode = #tpu.pipeline_mode<synchronous>, transform_indices = @transform_5, window_bounds = array<i64: 1, 256>}, {pipeline_mode = #tpu.pipeline_mode<synchronous>, transform_indices = @transform_6, window_bounds = array<i64: 32, 256>}]} {
    %c0 = arith.constant 0 : index
    %c0_0 = arith.constant 0 : index
    %0 = vector.load %arg1[%c0, %c0_0] : memref<32x1152xbf16, #tpu.memory_space<vmem>>, vector<32x1152xbf16>
    %c0_1 = arith.constant 0 : index
    %c0_2 = arith.constant 0 : index
    %1 = vector.load %arg2[%c0_1, %c0_2] : memref<1152x256xbf16, #tpu.memory_space<vmem>>, vector<1152x256xbf16>
    %cst = arith.constant dense<0.000000e+00> : vector<32x256xf32>
    %2 = tpu.matmul %0, %1, %cst {dimension_numbers = #tpu.dot_dimension_numbers<[1], [0], [0], [1], [0, 0, 1, 1], [], []>} : vector<32x1152xbf16>, vector<1152x256xbf16>, vector<32x256xf32> -> vector<32x256xf32>
    %cst_3 = arith.constant dense<0.000000e+00> : vector<256xf32>
    %3 = vector.multi_reduction <add>, %2, %cst_3 [0] : vector<32x256xf32> to vector<256xf32>
    %4 = vector.shape_cast %3 : vector<256xf32> to vector<1x256xf32>
    %c0_4 = arith.constant 0 : index
    %c0_5 = arith.constant 0 : index
    %5 = vector.load %arg3[%c0_4, %c0_5] : memref<256x64xf32, #tpu.memory_space<vmem>>, vector<256x64xf32>
    %cst_6 = arith.constant dense<0.000000e+00> : vector<1x64xf32>
    %6 = tpu.matmul %4, %5, %cst_6 {dimension_numbers = #tpu.dot_dimension_numbers<[1], [0], [0], [1], [0, 0, 1, 1], [], []>} : vector<1x256xf32>, vector<256x64xf32>, vector<1x64xf32> -> vector<1x64xf32>
    %cst_7 = arith.constant 1.280000e+02 : f32
    %7 = vector.broadcast %cst_7 : f32 to vector<1x64xf32>
    %8 = arith.divf %6, %7 : vector<1x64xf32>
    %c0_8 = arith.constant 0 : index
    %c0_9 = arith.constant 0 : index
    %9 = vector.load %arg4[%c0_8, %c0_9] : memref<64x256xf32, #tpu.memory_space<vmem>>, vector<64x256xf32>
    %cst_10 = arith.constant dense<0.000000e+00> : vector<1x256xf32>
    %10 = tpu.matmul %8, %9, %cst_10 {dimension_numbers = #tpu.dot_dimension_numbers<[1], [0], [0], [1], [0, 0, 1, 1], [], []>} : vector<1x64xf32>, vector<64x256xf32>, vector<1x256xf32> -> vector<1x256xf32>
    %11 = vector.broadcast %10 : vector<1x256xf32> to vector<32x256xf32>
    %12 = arith.subf %2, %11 : vector<32x256xf32>
    %13 = arith.mulf %12, %12 : vector<32x256xf32>
    %cst_11 = arith.constant dense<0.000000e+00> : vector<256xf32>
    %14 = vector.multi_reduction <add>, %13, %cst_11 [0] : vector<32x256xf32> to vector<256xf32>
    %15 = vector.shape_cast %14 : vector<256xf32> to vector<1x256xf32>
    %c0_12 = arith.constant 0 : index
    %c0_13 = arith.constant 0 : index
    %16 = vector.load %arg3[%c0_12, %c0_13] : memref<256x64xf32, #tpu.memory_space<vmem>>, vector<256x64xf32>
    %cst_14 = arith.constant dense<0.000000e+00> : vector<1x64xf32>
    %17 = tpu.matmul %15, %16, %cst_14 {dimension_numbers = #tpu.dot_dimension_numbers<[1], [0], [0], [1], [0, 0, 1, 1], [], []>} : vector<1x256xf32>, vector<256x64xf32>, vector<1x64xf32> -> vector<1x64xf32>
    %cst_15 = arith.constant 1.280000e+02 : f32
    %18 = vector.broadcast %cst_15 : f32 to vector<1x64xf32>
    %19 = arith.divf %17, %18 : vector<1x64xf32>
    %cst_16 = arith.constant 9.99999974E-6 : f32
    %20 = vector.broadcast %cst_16 : f32 to vector<1x64xf32>
    %21 = arith.addf %19, %20 : vector<1x64xf32>
    %22 = math.rsqrt %21 : vector<1x64xf32>
    %c0_17 = arith.constant 0 : index
    %c0_18 = arith.constant 0 : index
    %23 = vector.load %arg4[%c0_17, %c0_18] : memref<64x256xf32, #tpu.memory_space<vmem>>, vector<64x256xf32>
    %cst_19 = arith.constant dense<0.000000e+00> : vector<1x256xf32>
    %24 = tpu.matmul %22, %23, %cst_19 {dimension_numbers = #tpu.dot_dimension_numbers<[1], [0], [0], [1], [0, 0, 1, 1], [], []>} : vector<1x64xf32>, vector<64x256xf32>, vector<1x256xf32> -> vector<1x256xf32>
    %25 = vector.broadcast %24 : vector<1x256xf32> to vector<32x256xf32>
    %26 = arith.mulf %12, %25 : vector<32x256xf32>
    %c0_20 = arith.constant 0 : index
    %c0_21 = arith.constant 0 : index
    %27 = vector.load %arg5[%c0_20, %c0_21] : memref<1x256xf32, #tpu.memory_space<vmem>>, vector<1x256xf32>
    %28 = vector.broadcast %27 : vector<1x256xf32> to vector<32x256xf32>
    %29 = arith.mulf %26, %28 : vector<32x256xf32>
    %c0_22 = arith.constant 0 : index
    %c0_23 = arith.constant 0 : index
    %30 = vector.load %arg6[%c0_22, %c0_23] : memref<1x256xf32, #tpu.memory_space<vmem>>, vector<1x256xf32>
    %31 = vector.broadcast %30 : vector<1x256xf32> to vector<32x256xf32>
    %32 = arith.addf %29, %31 : vector<32x256xf32>
    %cst_24 = arith.constant 0.000000e+00 : f32
    %33 = vector.broadcast %cst_24 : f32 to vector<32x256xf32>
    %34 = arith.maximumf %32, %33 : vector<32x256xf32>
    %35 = arith.truncf %34 : vector<32x256xf32> to vector<32x256xbf16>
    %c0_25 = arith.constant 0 : index
    %c0_26 = arith.constant 0 : index
    %36 = vector.load %arg7[%c0_25, %c0_26] : memref<32x256xbf16, #tpu.memory_space<vmem>>, vector<32x256xbf16>
    tpu.vector_store %arg7[%c0_25, %c0_26], %35 {strides = array<i32>} : memref<32x256xbf16, #tpu.memory_space<vmem>>, vector<32x256xbf16>,
    return
  }
  func.func @transform_0(%arg0: i32) -> (i32, i32) {
    %c0_i32 = arith.constant 0 : i32
    %c0_i32_0 = arith.constant 0 : i32
    %c0_i32_1 = arith.constant 0 : i32
    return %c0_i32, %c0_i32_0 : i32, i32
  }
  func.func @transform_1(%arg0: i32) -> (i32, i32) {
    %c0_i32 = arith.constant 0 : i32
    %c0_i32_0 = arith.constant 0 : i32
    %c0_i32_1 = arith.constant 0 : i32
    return %c0_i32, %c0_i32_0 : i32, i32
  }
  func.func @transform_2(%arg0: i32) -> (i32, i32) {
    %c0_i32 = arith.constant 0 : i32
    %c0_i32_0 = arith.constant 0 : i32
    %c0_i32_1 = arith.constant 0 : i32
    return %c0_i32, %c0_i32_0 : i32, i32
  }
  func.func @transform_3(%arg0: i32) -> (i32, i32) {
    %c0_i32 = arith.constant 0 : i32
    %c0_i32_0 = arith.constant 0 : i32
    %c0_i32_1 = arith.constant 0 : i32
    return %c0_i32, %c0_i32_0 : i32, i32
  }
  func.func @transform_4(%arg0: i32) -> (i32, i32) {
    %c0_i32 = arith.constant 0 : i32
    %c0_i32_0 = arith.constant 0 : i32
    %c0_i32_1 = arith.constant 0 : i32
    return %c0_i32, %c0_i32_0 : i32, i32
  }
  func.func @transform_5(%arg0: i32) -> (i32, i32) {
    %c0_i32 = arith.constant 0 : i32
    %c0_i32_0 = arith.constant 0 : i32
    %c0_i32_1 = arith.constant 0 : i32
    return %c0_i32, %c0_i32_0 : i32, i32
  }
  func.func @transform_6(%arg0: i32) -> (i32, i32) {
    %c0_i32 = arith.constant 0 : i32
    %c0_i32_0 = arith.constant 0 : i32
    %c0_i32_1 = arith.constant 0 : i32
    return %c0_i32, %c0_i32_0 : i32, i32
  }
}

module attributes {stable_mosaic.version = 11 : i64} {
  func.func @_gemm_bn_act_kernel(%arg0: i32, %arg1: memref<128x576xbf16, #tpu.memory_space<vmem>>, %arg2: memref<576x128xbf16, #tpu.memory_space<vmem>>, %arg3: memref<128x32xf32, #tpu.memory_space<vmem>>, %arg4: memref<32x128xf32, #tpu.memory_space<vmem>>, %arg5: memref<1x128xf32, #tpu.memory_space<vmem>>, %arg6: memref<1x128xf32, #tpu.memory_space<vmem>>, %arg7: memref<128x128xbf16, #tpu.memory_space<vmem>>) attributes {dimension_semantics = [#tpu.dimension_semantics<arbitrary>], iteration_bounds = array<i64: 1>, scalar_prefetch = 0 : i64, scratch_operands = 0 : i64, tpu.core_type = #tpu.core_type<tc>, window_params = [{pipeline_mode = #tpu.pipeline_mode<synchronous>, transform_indices = @transform_0, window_bounds = array<i64: 128, 576>}, {pipeline_mode = #tpu.pipeline_mode<synchronous>, transform_indices = @transform_1, window_bounds = array<i64: 576, 128>}, {pipeline_mode = #tpu.pipeline_mode<synchronous>, transform_indices = @transform_2, window_bounds = array<i64: 128, 32>}, {pipeline_mode = #tpu.pipeline_mode<synchronous>, transform_indices = @transform_3, window_bounds = array<i64: 32, 128>}, {pipeline_mode = #tpu.pipeline_mode<synchronous>, transform_indices = @transform_4, window_bounds = array<i64: 1, 128>}, {pipeline_mode = #tpu.pipeline_mode<synchronous>, transform_indices = @transform_5, window_bounds = array<i64: 1, 128>}, {pipeline_mode = #tpu.pipeline_mode<synchronous>, transform_indices = @transform_6, window_bounds = array<i64: 128, 128>}]} {
    %c0 = arith.constant 0 : index
    %c0_0 = arith.constant 0 : index
    %0 = vector.load %arg1[%c0, %c0_0] : memref<128x576xbf16, #tpu.memory_space<vmem>>, vector<128x576xbf16>
    %c0_1 = arith.constant 0 : index
    %c0_2 = arith.constant 0 : index
    %1 = vector.load %arg2[%c0_1, %c0_2] : memref<576x128xbf16, #tpu.memory_space<vmem>>, vector<576x128xbf16>
    %cst = arith.constant dense<0.000000e+00> : vector<128x128xf32>
    %2 = tpu.matmul %0, %1, %cst {dimension_numbers = #tpu.dot_dimension_numbers<[1], [0], [0], [1], [0, 0, 1, 1], [], []>} : vector<128x576xbf16>, vector<576x128xbf16>, vector<128x128xf32> -> vector<128x128xf32>
    %cst_3 = arith.constant dense<0.000000e+00> : vector<128xf32>
    %3 = vector.multi_reduction <add>, %2, %cst_3 [0] : vector<128x128xf32> to vector<128xf32>
    %4 = vector.shape_cast %3 : vector<128xf32> to vector<1x128xf32>
    %c0_4 = arith.constant 0 : index
    %c0_5 = arith.constant 0 : index
    %5 = vector.load %arg3[%c0_4, %c0_5] : memref<128x32xf32, #tpu.memory_space<vmem>>, vector<128x32xf32>
    %cst_6 = arith.constant dense<0.000000e+00> : vector<1x32xf32>
    %6 = tpu.matmul %4, %5, %cst_6 {dimension_numbers = #tpu.dot_dimension_numbers<[1], [0], [0], [1], [0, 0, 1, 1], [], []>} : vector<1x128xf32>, vector<128x32xf32>, vector<1x32xf32> -> vector<1x32xf32>
    %cst_7 = arith.constant 5.120000e+02 : f32
    %7 = vector.broadcast %cst_7 : f32 to vector<1x32xf32>
    %8 = arith.divf %6, %7 : vector<1x32xf32>
    %c0_8 = arith.constant 0 : index
    %c0_9 = arith.constant 0 : index
    %9 = vector.load %arg4[%c0_8, %c0_9] : memref<32x128xf32, #tpu.memory_space<vmem>>, vector<32x128xf32>
    %cst_10 = arith.constant dense<0.000000e+00> : vector<1x128xf32>
    %10 = tpu.matmul %8, %9, %cst_10 {dimension_numbers = #tpu.dot_dimension_numbers<[1], [0], [0], [1], [0, 0, 1, 1], [], []>} : vector<1x32xf32>, vector<32x128xf32>, vector<1x128xf32> -> vector<1x128xf32>
    %11 = vector.broadcast %10 : vector<1x128xf32> to vector<128x128xf32>
    %12 = arith.subf %2, %11 : vector<128x128xf32>
    %13 = arith.mulf %12, %12 : vector<128x128xf32>
    %cst_11 = arith.constant dense<0.000000e+00> : vector<128xf32>
    %14 = vector.multi_reduction <add>, %13, %cst_11 [0] : vector<128x128xf32> to vector<128xf32>
    %15 = vector.shape_cast %14 : vector<128xf32> to vector<1x128xf32>
    %c0_12 = arith.constant 0 : index
    %c0_13 = arith.constant 0 : index
    %16 = vector.load %arg3[%c0_12, %c0_13] : memref<128x32xf32, #tpu.memory_space<vmem>>, vector<128x32xf32>
    %cst_14 = arith.constant dense<0.000000e+00> : vector<1x32xf32>
    %17 = tpu.matmul %15, %16, %cst_14 {dimension_numbers = #tpu.dot_dimension_numbers<[1], [0], [0], [1], [0, 0, 1, 1], [], []>} : vector<1x128xf32>, vector<128x32xf32>, vector<1x32xf32> -> vector<1x32xf32>
    %cst_15 = arith.constant 5.120000e+02 : f32
    %18 = vector.broadcast %cst_15 : f32 to vector<1x32xf32>
    %19 = arith.divf %17, %18 : vector<1x32xf32>
    %cst_16 = arith.constant 9.99999974E-6 : f32
    %20 = vector.broadcast %cst_16 : f32 to vector<1x32xf32>
    %21 = arith.addf %19, %20 : vector<1x32xf32>
    %22 = math.rsqrt %21 : vector<1x32xf32>
    %c0_17 = arith.constant 0 : index
    %c0_18 = arith.constant 0 : index
    %23 = vector.load %arg4[%c0_17, %c0_18] : memref<32x128xf32, #tpu.memory_space<vmem>>, vector<32x128xf32>
    %cst_19 = arith.constant dense<0.000000e+00> : vector<1x128xf32>
    %24 = tpu.matmul %22, %23, %cst_19 {dimension_numbers = #tpu.dot_dimension_numbers<[1], [0], [0], [1], [0, 0, 1, 1], [], []>} : vector<1x32xf32>, vector<32x128xf32>, vector<1x128xf32> -> vector<1x128xf32>
    %25 = vector.broadcast %24 : vector<1x128xf32> to vector<128x128xf32>
    %26 = arith.mulf %12, %25 : vector<128x128xf32>
    %c0_20 = arith.constant 0 : index
    %c0_21 = arith.constant 0 : index
    %27 = vector.load %arg5[%c0_20, %c0_21] : memref<1x128xf32, #tpu.memory_space<vmem>>, vector<1x128xf32>
    %28 = vector.broadcast %27 : vector<1x128xf32> to vector<128x128xf32>
    %29 = arith.mulf %26, %28 : vector<128x128xf32>
    %c0_22 = arith.constant 0 : index
    %c0_23 = arith.constant 0 : index
    %30 = vector.load %arg6[%c0_22, %c0_23] : memref<1x128xf32, #tpu.memory_space<vmem>>, vector<1x128xf32>
    %31 = vector.broadcast %30 : vector<1x128xf32> to vector<128x128xf32>
    %32 = arith.addf %29, %31 : vector<128x128xf32>
    %cst_24 = arith.constant 0.000000e+00 : f32
    %33 = vector.broadcast %cst_24 : f32 to vector<128x128xf32>
    %34 = arith.maximumf %32, %33 : vector<128x128xf32>
    %35 = arith.truncf %34 : vector<128x128xf32> to vector<128x128xbf16>
    %c0_25 = arith.constant 0 : index
    %c0_26 = arith.constant 0 : index
    %36 = vector.load %arg7[%c0_25, %c0_26] : memref<128x128xbf16, #tpu.memory_space<vmem>>, vector<128x128xbf16>
    tpu.vector_store %arg7[%c0_25, %c0_26], %35 {strides = array<i32>} : memref<128x128xbf16, #tpu.memory_space<vmem>>, vector<128x128xbf16>,
    return
  }
  func.func @transform_0(%arg0: i32) -> (i32, i32) {
    %c0_i32 = arith.constant 0 : i32
    %c0_i32_0 = arith.constant 0 : i32
    %c0_i32_1 = arith.constant 0 : i32
    return %c0_i32, %c0_i32_0 : i32, i32
  }
  func.func @transform_1(%arg0: i32) -> (i32, i32) {
    %c0_i32 = arith.constant 0 : i32
    %c0_i32_0 = arith.constant 0 : i32
    %c0_i32_1 = arith.constant 0 : i32
    return %c0_i32, %c0_i32_0 : i32, i32
  }
  func.func @transform_2(%arg0: i32) -> (i32, i32) {
    %c0_i32 = arith.constant 0 : i32
    %c0_i32_0 = arith.constant 0 : i32
    %c0_i32_1 = arith.constant 0 : i32
    return %c0_i32, %c0_i32_0 : i32, i32
  }
  func.func @transform_3(%arg0: i32) -> (i32, i32) {
    %c0_i32 = arith.constant 0 : i32
    %c0_i32_0 = arith.constant 0 : i32
    %c0_i32_1 = arith.constant 0 : i32
    return %c0_i32, %c0_i32_0 : i32, i32
  }
  func.func @transform_4(%arg0: i32) -> (i32, i32) {
    %c0_i32 = arith.constant 0 : i32
    %c0_i32_0 = arith.constant 0 : i32
    %c0_i32_1 = arith.constant 0 : i32
    return %c0_i32, %c0_i32_0 : i32, i32
  }
  func.func @transform_5(%arg0: i32) -> (i32, i32) {
    %c0_i32 = arith.constant 0 : i32
    %c0_i32_0 = arith.constant 0 : i32
    %c0_i32_1 = arith.constant 0 : i32
    return %c0_i32, %c0_i32_0 : i32, i32
  }
  func.func @transform_6(%arg0: i32) -> (i32, i32) {
    %c0_i32 = arith.constant 0 : i32
    %c0_i32_0 = arith.constant 0 : i32
    %c0_i32_1 = arith.constant 0 : i32
    return %c0_i32, %c0_i32_0 : i32, i32
  }
}

module attributes {stable_mosaic.version = 11 : i64} {
  func.func @_dec4_kernel(%arg0: i32, %arg1: memref<1x3x128xbf16, #tpu.memory_space<vmem>>, %arg2: memref<1x128x512xbf16, #tpu.memory_space<vmem>>, %arg3: memref<1x3x512xf32, #tpu.memory_space<vmem>>) attributes {dimension_semantics = [#tpu.dimension_semantics<parallel>], iteration_bounds = array<i64: 4>, scalar_prefetch = 0 : i64, scratch_operands = 0 : i64, tpu.core_type = #tpu.core_type<tc>, window_params = [{transform_indices = @transform_0, window_bounds = array<i64: 1, 3, 128>}, {transform_indices = @transform_1, window_bounds = array<i64: 1, 128, 512>}, {transform_indices = @transform_2, window_bounds = array<i64: 1, 3, 512>}]} {
    %c0 = arith.constant 0 : index
    %c0_0 = arith.constant 0 : index
    %c0_1 = arith.constant 0 : index
    %0 = vector.load %arg1[%c0, %c0_0, %c0_1] : memref<1x3x128xbf16, #tpu.memory_space<vmem>>, vector<1x3x128xbf16>
    %1 = vector.shape_cast %0 : vector<1x3x128xbf16> to vector<3x128xbf16>
    %c0_2 = arith.constant 0 : index
    %c0_3 = arith.constant 0 : index
    %c0_4 = arith.constant 0 : index
    %2 = vector.load %arg2[%c0_2, %c0_3, %c0_4] : memref<1x128x512xbf16, #tpu.memory_space<vmem>>, vector<1x128x512xbf16>
    %3 = vector.shape_cast %2 : vector<1x128x512xbf16> to vector<128x512xbf16>
    %cst = arith.constant dense<0.000000e+00> : vector<3x512xf32>
    %4 = tpu.matmul %1, %3, %cst {dimension_numbers = #tpu.dot_dimension_numbers<[1], [0], [0], [1], [0, 0, 1, 1], [], []>} : vector<3x128xbf16>, vector<128x512xbf16>, vector<3x512xf32> -> vector<3x512xf32>
    %cst_5 = arith.constant 5.000000e-01 : f32
    %5 = vector.broadcast %cst_5 : f32 to vector<3x512xf32>
    %6 = arith.mulf %5, %4 : vector<3x512xf32>
    %7 = math.tanh %6 : vector<3x512xf32>
    %cst_6 = arith.constant 1.000000e+00 : f32
    %8 = vector.broadcast %cst_6 : f32 to vector<3x512xf32>
    %9 = arith.addf %7, %8 : vector<3x512xf32>
    %cst_7 = arith.constant 5.000000e-01 : f32
    %10 = vector.broadcast %cst_7 : f32 to vector<3x512xf32>
    %11 = arith.mulf %10, %9 : vector<3x512xf32>
    %c0_8 = arith.constant 0 : index
    %c0_9 = arith.constant 0 : index
    %c0_10 = arith.constant 0 : index
    %12 = vector.load %arg3[%c0_8, %c0_9, %c0_10] : memref<1x3x512xf32, #tpu.memory_space<vmem>>, vector<1x3x512xf32>
    %13 = vector.shape_cast %12 : vector<1x3x512xf32> to vector<3x512xf32>
    %14 = vector.shape_cast %11 : vector<3x512xf32> to vector<1x3x512xf32>
    tpu.vector_store %arg3[%c0_8, %c0_9, %c0_10], %14 {strides = array<i32>} : memref<1x3x512xf32, #tpu.memory_space<vmem>>, vector<1x3x512xf32>,
    return
  }
  func.func @transform_0(%arg0: i32) -> (i32, i32, i32) {
    %c0_i32 = arith.constant 0 : i32
    %c0_i32_0 = arith.constant 0 : i32
    %c0_i32_1 = arith.constant 0 : i32
    return %arg0, %c0_i32, %c0_i32_0 : i32, i32, i32
  }
  func.func @transform_1(%arg0: i32) -> (i32, i32, i32) {
    %c0_i32 = arith.constant 0 : i32
    %c0_i32_0 = arith.constant 0 : i32
    %c0_i32_1 = arith.constant 0 : i32
    return %arg0, %c0_i32, %c0_i32_0 : i32, i32, i32
  }
  func.func @transform_2(%arg0: i32) -> (i32, i32, i32) {
    %c0_i32 = arith.constant 0 : i32
    %c0_i32_0 = arith.constant 0 : i32
    %c0_i32_1 = arith.constant 0 : i32
    return %arg0, %c0_i32, %c0_i32_0 : i32, i32, i32
  }
}

</mosaic_0001>

<bundles_post_ra>
// kernel: forward.8
= control target key start
LH: loop header
LB: loop body
LE: loop exit
PB: predicated region body
PF: predicated region fallthrough
CT: control target
= control target key end

     0   :  { %s1056_s9 = smov 0   ;;  %s1188_s0 = inlined_call_operand.vmem [shape: bf16[512,128], index: 0, kind: input, shape index: {}]   ;;  %s1189_s1 = inlined_call_operand.vmem [shape: bf16[128,32], index: 1, kind: input, shape index: {}]   ;;  %s1190_s2 = inlined_call_operand.vmem [shape: bf16[512,32], index: 2, kind: output, shape index: {}]  }
   0x1 LB: > { %s814_s10 = sadd.s32 4294967295, %s1039_s9   ;;  %p818_p0 = scmp.ge.s32.totalorder %s1039_s9, 1  ;;  %s1039_s9 = sphi %s1056_s9, %s12_s9  }
   0x2   : > { %p113_p1 = scmp.lt.s32.totalorder %s1039_s9, 3 }
   0x4   : > { %p114_p2 = pnand %p818_p0, %p113_p1 }
   0x5   : > { %s819_s13 = sshll.u32 (!%p114_p2), %s814_s10, 5 }
   0x6   : > { %117 = sbr.rel (%p114_p2) target bundleno = 274 (0x112), region = 28  ;;  %p136_p3 = scmp.lt.s32.totalorder (!%p114_p2), %s819_s13, 63 }
   0xb   : > { %v1009_v0 = vld [vmem:[%s1189_s1 + $0x38] sm:$0xff]   ;;  %v1010_v1 = vld [vmem:[%s1189_s1 + $0x30] sm:$0xff]   ;;  %s1192_s13 = smov (!%p136_p3, %s819_s13), 63  ;;  %v1011_v2 = vld [vmem:[%s1189_s1 + $0x28] sm:$0xff]   ;;  %vm725_vm2 = vcmask 257024  }
   0xc   : > { %937 = vmatprep.subr.bf16.mxu0 %v1009_v0  ;;  %985 = vmatprep.subr.bf16.mxu1 %v1009_v0  ;;  %s820_s18 = sshll.u32 %s1192_s13, 2  ;;  %v1012_v3 = vld [vmem:[%s1189_s1 + $0x20] sm:$0xff]   ;;  %v1013_v6 = vld [vmem:[%s1189_s1 + $0x18] sm:$0xff]   ;;  %v1014_v7 = vld [vmem:[%s1189_s1 + $0x10] sm:$0xff]  }
   0xd   : > { %938 = vmatpush3.bf16.msra.mxu0 %v1009_v0  ;;  %993 = vmatpush3.bf16.msra.mxu1 %v1009_v0  ;;  %s1081_s21 = scalar_lea.vmem %s1188_s0, %s820_s18  ;;  %v1015_v8 = vld [vmem:[%s1189_s1 + $0x8] sm:$0xff]   ;;  %v1016_v9 = vld [vmem:[%s1189_s1] sm:$0xff]   ;;  %s1119_s6 = scalar_lea.vmem %s1190_s2, %s820_s18 }
   0xe   : > { %939 = vmatprep.subr.bf16.mxu0 %v1010_v1  ;;  %986 = vmatprep.subr.bf16.mxu1 %v1010_v1  ;;  %v1017_v4 = vld [vmem:[%s1081_s21] sm:$0xff]   ;;  %v1019_v10 = vld [vmem:[%s1081_s21 + $0x8] sm:$0xff]   ;;  %v1021_v12 = vld [vmem:[%s1081_s21 + $0x10] sm:$0xff]  }
   0xf   : > { %v1018_v5 = vld [vmem:[%s1081_s21 + $0x40] sm:$0xff]   ;;  %953 = vmatprep.mubr.bf16.mxu0 %v1017_v4  ;;  %v1020_v11 = vld [vmem:[%s1081_s21 + $0x48] sm:$0xff]   ;;  %v1022_v13 = vld [vmem:[%s1081_s21 + $0x50] sm:$0xff]  }
  0x10   : > { %969 = vmatprep.mubr.bf16.mxu1 %v1018_v5  ;;  %v1023_v14 = vld [vmem:[%s1081_s21 + $0x18] sm:$0xff]   ;;  %v1025_v16 = vld [vmem:[%s1081_s21 + $0x20] sm:$0xff]   ;;  %v1027_v18 = vld [vmem:[%s1081_s21 + $0x28] sm:$0xff]  }
  0x11   : > { %940 = vmatpush3.bf16.msra.mxu0 %v1010_v1  ;;  %994 = vmatpush3.bf16.msra.mxu1 %v1010_v1  ;;  %v1024_v15 = vld [vmem:[%s1081_s21 + $0x58] sm:$0xff]   ;;  %v1026_v17 = vld [vmem:[%s1081_s21 + $0x60] sm:$0xff]   ;;  %v1028_v19 = vld [vmem:[%s1081_s21 + $0x68] sm:$0xff]  }
  0x12   : > { %941 = vmatprep.subr.bf16.mxu0 %v1011_v2  ;;  %987 = vmatprep.subr.bf16.mxu1 %v1011_v2  ;;  %v1029_v20 = vld [vmem:[%s1081_s21 + $0x30] sm:$0xff]   ;;  %v1031_v22 = vld [vmem:[%s1081_s21 + $0x38] sm:$0xff]  }
  0x13   : > { %v1030_v21 = vld [vmem:[%s1081_s21 + $0x70] sm:$0xff]   ;;  %v1032_v23 = vld [vmem:[%s1081_s21 + $0x78] sm:$0xff]  }
  0x15   : > { %942 = vmatpush3.bf16.msra.mxu0 %v1011_v2  ;;  %995 = vmatpush3.bf16.msra.mxu1 %v1011_v2 }
  0x16   : > { %943 = vmatprep.subr.bf16.mxu0 %v1012_v3  ;;  %988 = vmatprep.subr.bf16.mxu1 %v1012_v3 }
  0x19   : > { %944 = vmatpush3.bf16.msra.mxu0 %v1012_v3  ;;  %996 = vmatpush3.bf16.msra.mxu1 %v1012_v3 }
  0x1a   : > { %945 = vmatprep.subr.bf16.mxu0 %v1013_v6  ;;  %989 = vmatprep.subr.bf16.mxu1 %v1013_v6 }
  0x1d   : > { %946 = vmatpush3.bf16.msra.mxu0 %v1013_v6  ;;  %997 = vmatpush3.bf16.msra.mxu1 %v1013_v6 }
  0x1e   : > { %947 = vmatprep.subr.bf16.mxu0 %v1014_v7  ;;  %990 = vmatprep.subr.bf16.mxu1 %v1014_v7 }
  0x21   : > { %948 = vmatpush3.bf16.msra.mxu0 %v1014_v7  ;;  %998 = vmatpush3.bf16.msra.mxu1 %v1014_v7 }
  0x22   : > { %949 = vmatprep.subr.bf16.mxu0 %v1015_v8  ;;  %991 = vmatprep.subr.bf16.mxu1 %v1015_v8 }
  0x25   : > { %950 = vmatpush3.bf16.msra.mxu0 %v1015_v8  ;;  %999 = vmatpush3.bf16.msra.mxu1 %v1015_v8 }
  0x26   : > { %951 = vmatprep.subr.bf16.mxu0 %v1016_v9  ;;  %992 = vmatprep.subr.bf16.mxu1 %v1016_v9 }
  0x29   : > { %952 = vmatpush3.bf16.msra.mxu0 %v1016_v9  ;;  %1000 = vmatpush3.bf16.msra.mxu1 %v1016_v9 }
  0x2c   : > { %954 = vmatmul.mubr.bf16.vlgmr.msra.gmra.mxu0 %v1019_v10  ;;  %970 = vmatmul.mubr.bf16.vlgmr.msra.gmra.mxu1 %v1020_v11 }
  0x2d   : > { %957 = vmatprep.mubr.bf16.mxu0 %v1021_v12  ;;  %973 = vmatprep.mubr.bf16.mxu1 %v1022_v13 }
  0x34   : > { %958 = vmatmul.mubr.bf16.gmra.mxu0 %v1023_v14  ;;  %974 = vmatmul.mubr.bf16.gmra.mxu1 %v1024_v15 }
  0x35   : > { %961 = vmatprep.mubr.bf16.mxu0 %v1025_v16  ;;  %977 = vmatprep.mubr.bf16.mxu1 %v1026_v17 }
  0x3c   : > { %962 = vmatmul.mubr.bf16.gmra.mxu0 %v1027_v18  ;;  %978 = vmatmul.mubr.bf16.gmra.mxu1 %v1028_v19 }
  0x3d   : > { %965 = vmatprep.mubr.bf16.mxu0 %v1029_v20  ;;  %981 = vmatprep.mubr.bf16.mxu1 %v1030_v21 }
  0x44   : > { %966 = vmatmul.mubr.bf16.gmra.mxu0 %v1031_v22  ;;  %982 = vmatmul.mubr.bf16.gmra.mxu1 %v1032_v23 }
  0xec   : > { %v955_v24 = vpop.f32.mrf.mxu0  ;;  %v971_v25 = vpop.f32.mrf.mxu1 }
  0xed   : > { %vm503_vm0 = vcmp.ge.f32.partialorder %v955_v24, 0.0  ;;  %v535_v26 = vmul.f32 0.2, %v955_v24  ;;  %vm519_vm1 = vcmp.ge.f32.partialorder %v971_v25, 0.0  ;;  %v551_v27 = vmul.f32 0.2, %v971_v25 }
  0xee   : > { %v374_v28 = vpop.f32.mrf.mxu0  ;;  %v438_v29 = vpop.f32.mrf.mxu1 }
  0xef   : > { %v567_v30 = vsel %vm503_vm0, %v955_v24, %v535_v26  ;;  %v583_v31 = vsel %vm519_vm1, %v971_v25, %v551_v27  ;;  %vm501_vm3 = vcmp.ge.f32.partialorder %v374_v28, 0.0  ;;  %v533_v32 = vmul.f32 0.2, %v374_v28 }
  0xf0   : > { %v883_v33 = vpack.c.bf16 %v567_v30, %v567_v30  ;;  %v899_v34 = vpack.c.bf16 %v583_v31, %v583_v31  ;;  %vm517_vm4 = vcmp.ge.f32.partialorder %v438_v29, 0.0  ;;  %v549_v35 = vmul.f32 0.2, %v438_v29  ;;  %v956_v36 = vpop.f32.mrf.mxu0  ;;  %v972_v37 = vpop.f32.mrf.mxu1 }
  0xf1   : > { %v565_v38 = vsel %vm501_vm3, %v374_v28, %v533_v32  ;;  %vm504_vm5 = vcmp.ge.f32.partialorder %v956_v36, 0.0  ;;  %v536_v39 = vmul.f32 0.2, %v956_v36  ;;  %vm520_vm6 = vcmp.ge.f32.partialorder %v972_v37, 0.0 }
  0xf2   : > { %728 = vst.msk [vmem:[%s1119_s6 + $0x8] sm:$0xf] %vm725_vm2, %v883_v33  ;;  %744 = vst.msk [vmem:[%s1119_s6 + $0x48] sm:$0xf] %vm725_vm2, %v899_v34  ;;  %v881_v40 = vpack.c.bf16 %v565_v38, %v565_v38  ;;  %v581_v41 = vsel %vm517_vm4, %v438_v29, %v549_v35  ;;  %v552_v42 = vmul.f32 0.2, %v972_v37  ;;  %v377_v43 = vpop.f32.mrf.mxu0  ;;  %v441_v44 = vpop.f32.mrf.mxu1 }
  0xf3   : > { %v897_v45 = vpack.c.bf16 %v581_v41, %v581_v41  ;;  %v568_v46 = vsel %vm504_vm5, %v956_v36, %v536_v39  ;;  %vm502_vm7 = vcmp.ge.f32.partialorder %v377_v43, 0.0  ;;  %v534_v47 = vmul.f32 0.2, %v377_v43 }
  0xf4   : > { %726 = vst.msk [vmem:[%s1119_s6] sm:$0xf] %vm725_vm2, %v881_v40  ;;  %v884_v48 = vpack.c.bf16 %v568_v46, %v568_v46  ;;  %v584_v49 = vsel %vm520_vm6, %v972_v37, %v552_v42  ;;  %vm518_vm8 = vcmp.ge.f32.partialorder %v441_v44, 0.0  ;;  %v550_v50 = vmul.f32 0.2, %v441_v44  ;;  %v959_v51 = vpop.f32.mrf.mxu0  ;;  %v975_v52 = vpop.f32.mrf.mxu1 }
  0xf5   : > { %742 = vst.msk [vmem:[%s1119_s6 + $0x40] sm:$0xf] %vm725_vm2, %v897_v45  ;;  %v900_v53 = vpack.c.bf16 %v584_v49, %v584_v49  ;;  %v566_v54 = vsel %vm502_vm7, %v377_v43, %v534_v47  ;;  %vm507_vm9 = vcmp.ge.f32.partialorder %v959_v51, 0.0  ;;  %v539_v55 = vmul.f32 0.2, %v959_v51 }
  0xf6   : > { %729 = vst.msk [vmem:[%s1119_s6 + $0xc] sm:$0xf] %vm725_vm2, %v884_v48  ;;  %v882_v56 = vpack.c.bf16 %v566_v54, %v566_v54  ;;  %v582_v57 = vsel %vm518_vm8, %v441_v44, %v550_v50  ;;  %vm523_vm10 = vcmp.ge.f32.partialorder %v975_v52, 0.0  ;;  %v555_v58 = vmul.f32 0.2, %v975_v52  ;;  %v390_v59 = vpop.f32.mrf.mxu0  ;;  %v454_v60 = vpop.f32.mrf.mxu1 }
  0xf7   : > { %745 = vst.msk [vmem:[%s1119_s6 + $0x4c] sm:$0xf] %vm725_vm2, %v900_v53  ;;  %v898_v61 = vpack.c.bf16 %v582_v57, %v582_v57  ;;  %v571_v62 = vsel %vm507_vm9, %v959_v51, %v539_v55  ;;  %vm505_vm11 = vcmp.ge.f32.partialorder %v390_v59, 0.0  ;;  %v537_v63 = vmul.f32 0.2, %v390_v59 }
  0xf8   : > { %727 = vst.msk [vmem:[%s1119_s6 + $0x4] sm:$0xf] %vm725_vm2, %v882_v56  ;;  %v887_v0 = vpack.c.bf16 %v571_v62, %v571_v62  ;;  %v587_v1 = vsel %vm523_vm10, %v975_v52, %v555_v58  ;;  %vm521_vm12 = vcmp.ge.f32.partialorder %v454_v60, 0.0  ;;  %v553_v2 = vmul.f32 0.2, %v454_v60  ;;  %v960_v3 = vpop.f32.mrf.mxu0  ;;  %v976_v4 = vpop.f32.mrf.mxu1 }
  0xf9   : > { %743 = vst.msk [vmem:[%s1119_s6 + $0x44] sm:$0xf] %vm725_vm2, %v898_v61  ;;  %v903_v5 = vpack.c.bf16 %v587_v1, %v587_v1  ;;  %v569_v6 = vsel %vm505_vm11, %v390_v59, %v537_v63  ;;  %vm508_vm13 = vcmp.ge.f32.partialorder %v960_v3, 0.0  ;;  %v540_v7 = vmul.f32 0.2, %v960_v3 }
  0xfa   : > { %732 = vst.msk [vmem:[%s1119_s6 + $0x18] sm:$0xf] %vm725_vm2, %v887_v0  ;;  %v885_v8 = vpack.c.bf16 %v569_v6, %v569_v6  ;;  %v585_v9 = vsel %vm521_vm12, %v454_v60, %v553_v2  ;;  %vm524_vm14 = vcmp.ge.f32.partialorder %v976_v4, 0.0  ;;  %v556_v10 = vmul.f32 0.2, %v976_v4  ;;  %v393_v11 = vpop.f32.mrf.mxu0  ;;  %v457_v12 = vpop.f32.mrf.mxu1 }
  0xfb   : > { %748 = vst.msk [vmem:[%s1119_s6 + $0x58] sm:$0xf] %vm725_vm2, %v903_v5  ;;  %v901_v13 = vpack.c.bf16 %v585_v9, %v585_v9  ;;  %v572_v14 = vsel %vm508_vm13, %v960_v3, %v540_v7  ;;  %vm506_vm15 = vcmp.ge.f32.partialorder %v393_v11, 0.0  ;;  %v538_v15 = vmul.f32 0.2, %v393_v11 }
  0xfc   : > { %730 = vst.msk [vmem:[%s1119_s6 + $0x10] sm:$0xf] %vm725_vm2, %v885_v8  ;;  %v888_v16 = vpack.c.bf16 %v572_v14, %v572_v14  ;;  %v588_v17 = vsel %vm524_vm14, %v976_v4, %v556_v10  ;;  %vm522_vm0 = vcmp.ge.f32.partialorder %v457_v12, 0.0  ;;  %v554_v18 = vmul.f32 0.2, %v457_v12  ;;  %v963_v19 = vpop.f32.mrf.mxu0  ;;  %v979_v20 = vpop.f32.mrf.mxu1 }
  0xfd   : > { %746 = vst.msk [vmem:[%s1119_s6 + $0x50] sm:$0xf] %vm725_vm2, %v901_v13  ;;  %v904_v21 = vpack.c.bf16 %v588_v17, %v588_v17  ;;  %v570_v22 = vsel %vm506_vm15, %v393_v11, %v538_v15  ;;  %vm511_vm1 = vcmp.ge.f32.partialorder %v963_v19, 0.0  ;;  %v543_v23 = vmul.f32 0.2, %v963_v19 }
  0xfe   : > { %733 = vst.msk [vmem:[%s1119_s6 + $0x1c] sm:$0xf] %vm725_vm2, %v888_v16  ;;  %v886_v24 = vpack.c.bf16 %v570_v22, %v570_v22  ;;  %v586_v25 = vsel %vm522_vm0, %v457_v12, %v554_v18  ;;  %vm527_vm3 = vcmp.ge.f32.partialorder %v979_v20, 0.0  ;;  %v559_v26 = vmul.f32 0.2, %v979_v20  ;;  %v406_v27 = vpop.f32.mrf.mxu0  ;;  %v470_v28 = vpop.f32.mrf.mxu1 }
  0xff   : > { %749 = vst.msk [vmem:[%s1119_s6 + $0x5c] sm:$0xf] %vm725_vm2, %v904_v21  ;;  %v902_v29 = vpack.c.bf16 %v586_v25, %v586_v25  ;;  %v575_v30 = vsel %vm511_vm1, %v963_v19, %v543_v23  ;;  %vm509_vm4 = vcmp.ge.f32.partialorder %v406_v27, 0.0  ;;  %v541_v31 = vmul.f32 0.2, %v406_v27 }
 0x100   : > { %731 = vst.msk [vmem:[%s1119_s6 + $0x14] sm:$0xf] %vm725_vm2, %v886_v24  ;;  %v891_v32 = vpack.c.bf16 %v575_v30, %v575_v30  ;;  %v591_v33 = vsel %vm527_vm3, %v979_v20, %v559_v26  ;;  %vm525_vm5 = vcmp.ge.f32.partialorder %v470_v28, 0.0  ;;  %v557_v34 = vmul.f32 0.2, %v470_v28  ;;  %v964_v35 = vpop.f32.mrf.mxu0  ;;  %v980_v36 = vpop.f32.mrf.mxu1 }
 0x101   : > { %747 = vst.msk [vmem:[%s1119_s6 + $0x54] sm:$0xf] %vm725_vm2, %v902_v29  ;;  %v907_v37 = vpack.c.bf16 %v591_v33, %v591_v33  ;;  %v573_v38 = vsel %vm509_vm4, %v406_v27, %v541_v31  ;;  %vm512_vm6 = vcmp.ge.f32.partialorder %v964_v35, 0.0  ;;  %v544_v39 = vmul.f32 0.2, %v964_v35 }
 0x102   : > { %736 = vst.msk [vmem:[%s1119_s6 + $0x28] sm:$0xf] %vm725_vm2, %v891_v32  ;;  %v889_v40 = vpack.c.bf16 %v573_v38, %v573_v38  ;;  %v589_v41 = vsel %vm525_vm5, %v470_v28, %v557_v34  ;;  %vm528_vm7 = vcmp.ge.f32.partialorder %v980_v36, 0.0  ;;  %v560_v42 = vmul.f32 0.2, %v980_v36  ;;  %v409_v43 = vpop.f32.mrf.mxu0  ;;  %v473_v44 = vpop.f32.mrf.mxu1 }
 0x103   : > { %752 = vst.msk [vmem:[%s1119_s6 + $0x68] sm:$0xf] %vm725_vm2, %v907_v37  ;;  %v905_v45 = vpack.c.bf16 %v589_v41, %v589_v41  ;;  %v576_v46 = vsel %vm512_vm6, %v964_v35, %v544_v39  ;;  %vm510_vm8 = vcmp.ge.f32.partialorder %v409_v43, 0.0  ;;  %v542_v47 = vmul.f32 0.2, %v409_v43 }
 0x104   : > { %734 = vst.msk [vmem:[%s1119_s6 + $0x20] sm:$0xf] %vm725_vm2, %v889_v40  ;;  %v892_v48 = vpack.c.bf16 %v576_v46, %v576_v46  ;;  %v592_v49 = vsel %vm528_vm7, %v980_v36, %v560_v42  ;;  %vm526_vm9 = vcmp.ge.f32.partialorder %v473_v44, 0.0  ;;  %v558_v50 = vmul.f32 0.2, %v473_v44  ;;  %v967_v51 = vpop.f32.mrf.mxu0  ;;  %v983_v52 = vpop.f32.mrf.mxu1 }
 0x105   : > { %750 = vst.msk [vmem:[%s1119_s6 + $0x60] sm:$0xf] %vm725_vm2, %v905_v45  ;;  %v908_v53 = vpack.c.bf16 %v592_v49, %v592_v49  ;;  %v574_v54 = vsel %vm510_vm8, %v409_v43, %v542_v47  ;;  %vm515_vm10 = vcmp.ge.f32.partialorder %v967_v51, 0.0  ;;  %v547_v55 = vmul.f32 0.2, %v967_v51 }
 0x106   : > { %737 = vst.msk [vmem:[%s1119_s6 + $0x2c] sm:$0xf] %vm725_vm2, %v892_v48  ;;  %v890_v56 = vpack.c.bf16 %v574_v54, %v574_v54  ;;  %v590_v57 = vsel %vm526_vm9, %v473_v44, %v558_v50  ;;  %vm531_vm11 = vcmp.ge.f32.partialorder %v983_v52, 0.0  ;;  %v563_v58 = vmul.f32 0.2, %v983_v52  ;;  %v422_v59 = vpop.f32.mrf.mxu0  ;;  %v486_v60 = vpop.f32.mrf.mxu1 }
 0x107   : > { %753 = vst.msk [vmem:[%s1119_s6 + $0x6c] sm:$0xf] %vm725_vm2, %v908_v53  ;;  %v906_v61 = vpack.c.bf16 %v590_v57, %v590_v57  ;;  %v579_v62 = vsel %vm515_vm10, %v967_v51, %v547_v55  ;;  %vm513_vm12 = vcmp.ge.f32.partialorder %v422_v59, 0.0  ;;  %v545_v63 = vmul.f32 0.2, %v422_v59 }
 0x108   : > { %735 = vst.msk [vmem:[%s1119_s6 + $0x24] sm:$0xf] %vm725_vm2, %v890_v56  ;;  %v895_v0 = vpack.c.bf16 %v579_v62, %v579_v62  ;;  %v595_v1 = vsel %vm531_vm11, %v983_v52, %v563_v58  ;;  %vm529_vm13 = vcmp.ge.f32.partialorder %v486_v60, 0.0  ;;  %v561_v2 = vmul.f32 0.2, %v486_v60  ;;  %v968_v3 = vpop.f32.mrf.mxu0  ;;  %v984_v4 = vpop.f32.mrf.mxu1 }
 0x109   : > { %751 = vst.msk [vmem:[%s1119_s6 + $0x64] sm:$0xf] %vm725_vm2, %v906_v61  ;;  %v911_v5 = vpack.c.bf16 %v595_v1, %v595_v1  ;;  %v577_v6 = vsel %vm513_vm12, %v422_v59, %v545_v63  ;;  %vm516_vm14 = vcmp.ge.f32.partialorder %v968_v3, 0.0  ;;  %v548_v7 = vmul.f32 0.2, %v968_v3 }
 0x10a   : > { %740 = vst.msk [vmem:[%s1119_s6 + $0x38] sm:$0xf] %vm725_vm2, %v895_v0  ;;  %v893_v8 = vpack.c.bf16 %v577_v6, %v577_v6  ;;  %v593_v9 = vsel %vm529_vm13, %v486_v60, %v561_v2  ;;  %vm532_vm15 = vcmp.ge.f32.partialorder %v984_v4, 0.0  ;;  %v564_v10 = vmul.f32 0.2, %v984_v4  ;;  %v425_v11 = vpop.f32.mrf.mxu0  ;;  %v489_v12 = vpop.f32.mrf.mxu1 }
 0x10b   : > { %756 = vst.msk [vmem:[%s1119_s6 + $0x78] sm:$0xf] %vm725_vm2, %v911_v5  ;;  %v909_v13 = vpack.c.bf16 %v593_v9, %v593_v9  ;;  %v580_v14 = vsel %vm516_vm14, %v968_v3, %v548_v7  ;;  %vm514_vm0 = vcmp.ge.f32.partialorder %v425_v11, 0.0  ;;  %v546_v15 = vmul.f32 0.2, %v425_v11 }
 0x10c   : > { %738 = vst.msk [vmem:[%s1119_s6 + $0x30] sm:$0xf] %vm725_vm2, %v893_v8  ;;  %v896_v16 = vpack.c.bf16 %v580_v14, %v580_v14  ;;  %v596_v17 = vsel %vm532_vm15, %v984_v4, %v564_v10  ;;  %vm530_vm1 = vcmp.ge.f32.partialorder %v489_v12, 0.0  ;;  %v562_v18 = vmul.f32 0.2, %v489_v12 }
 0x10d   : > { %754 = vst.msk [vmem:[%s1119_s6 + $0x70] sm:$0xf] %vm725_vm2, %v909_v13  ;;  %v912_v19 = vpack.c.bf16 %v596_v17, %v596_v17  ;;  %v578_v20 = vsel %vm514_vm0, %v425_v11, %v546_v15 }
 0x10e   : > { %741 = vst.msk [vmem:[%s1119_s6 + $0x3c] sm:$0xf] %vm725_vm2, %v896_v16  ;;  %v894_v21 = vpack.c.bf16 %v578_v20, %v578_v20  ;;  %v594_v22 = vsel %vm530_vm1, %v489_v12, %v562_v18 }
 0x10f   : > { %757 = vst.msk [vmem:[%s1119_s6 + $0x7c] sm:$0xf] %vm725_vm2, %v912_v19  ;;  %v910_v23 = vpack.c.bf16 %v594_v22, %v594_v22 }
 0x110   : > { %739 = vst.msk [vmem:[%s1119_s6 + $0x34] sm:$0xf] %vm725_vm2, %v894_v21 }
 0x111   : > { %755 = vst.msk [vmem:[%s1119_s6 + $0x74] sm:$0xf] %vm725_vm2, %v910_v23 }
 0x112 PF: > { %s12_s9 = sadd.s32 1, %s1039_s9  }
 0x113   : > { %p9_p4 = scmp.ge.s32.totalorder %s12_s9, 4  }
 0x115   :  { %11 = sbr.rel (!%p9_p4) target bundleno = 1 (0x1), region = 58 }

// kernel: forward.9
= control target key start
LH: loop header
LB: loop body
LE: loop exit
PB: predicated region body
PF: predicated region fallthrough
CT: control target
= control target key end

     0   :  { %vm1716_vm0 = vmmov 0   ;;  %vm666_vm1 = vcmask 523264   ;;  %s2344_s1 = inlined_call_operand.vmem [shape: bf16[512,64], index: 1, kind: input, shape index: {}]   ;;  %s2345_s0 = inlined_call_operand.vmem [shape: bf16[128,512], index: 0, kind: input, shape index: {}]   ;;  %s2346_s2 = inlined_call_operand.vmem [shape: f32[64,64], index: 2, kind: input, shape index: {}]   ;;  %s2347_s3 = inlined_call_operand.vmem [shape: f32[64,64], index: 3, kind: input, shape index: {}]   ;;  %s2348_s4 = inlined_call_operand.vmem [shape: f32[1,64], index: 4, kind: input, shape index: {}]   ;;  %s2349_s5 = inlined_call_operand.vmem [shape: f32[1,64], index: 5, kind: input, shape index: {}]   ;;  %s2350_s6 = inlined_call_operand.vmem [shape: bf16[128,64], index: 6, kind: output, shape index: {}]  }
   0x1   :  { %v1633_v0 = vld [vmem:[%s2344_s1 + $0x78] sm:$0xff]   ;;  %v1637_v4 = vld [vmem:[%s2344_s1 + $0x70] sm:$0xff]   ;;  %v1641_v8 = vld [vmem:[%s2344_s1 + $0x68] sm:$0xff]  }
   0x2   :  { %v1634_v1 = vld [vmem:[%s2344_s1 + $0xf8] sm:$0xff]   ;;  %1391 = vmatprep.subr.bf16.mxu0 %v1633_v0  ;;  %v1638_v5 = vld [vmem:[%s2344_s1 + $0xf0] sm:$0xff]   ;;  %v1642_v9 = vld [vmem:[%s2344_s1 + $0xe8] sm:$0xff]   ;;  %v1715_v0 = vmov 0.0  }
   0x3   :  { %v1635_v2 = vld [vmem:[%s2344_s1 + $0x38] sm:$0xff]   ;;  %1455 = vmatprep.subr.bf16.mxu1 %v1634_v1  ;;  %v1639_v6 = vld [vmem:[%s2344_s1 + $0x30] sm:$0xff]   ;;  %v1643_v10 = vld [vmem:[%s2344_s1 + $0x28] sm:$0xff]  }
   0x4   :  { %v1636_v3 = vld [vmem:[%s2344_s1 + $0xb8] sm:$0xff]   ;;  %1392 = vmatpush3.bf16.msra.mxu0 %v1635_v2  ;;  %v1640_v7 = vld [vmem:[%s2344_s1 + $0xb0] sm:$0xff]   ;;  %v1644_v11 = vld [vmem:[%s2344_s1 + $0xa8] sm:$0xff]  }
   0x5   :  { %1456 = vmatpush3.bf16.msra.mxu1 %v1636_v3  ;;  %1393 = vmatprep.subr.bf16.mxu0 %v1637_v4  ;;  %v1645_v12 = vld [vmem:[%s2344_s1 + $0x60] sm:$0xff]   ;;  %v1649_v16 = vld [vmem:[%s2344_s1 + $0x58] sm:$0xff]   ;;  %v1653_v20 = vld [vmem:[%s2344_s1 + $0x50] sm:$0xff]  }
   0x6   :  { %1457 = vmatprep.subr.bf16.mxu1 %v1638_v5  ;;  %v1646_v13 = vld [vmem:[%s2344_s1 + $0xe0] sm:$0xff]   ;;  %v1650_v17 = vld [vmem:[%s2344_s1 + $0xd8] sm:$0xff]   ;;  %v1654_v21 = vld [vmem:[%s2344_s1 + $0xd0] sm:$0xff]  }
   0x7   :  { %v1647_v14 = vld [vmem:[%s2344_s1 + $0x20] sm:$0xff]   ;;  %v1651_v18 = vld [vmem:[%s2344_s1 + $0x18] sm:$0xff]   ;;  %v1655_v22 = vld [vmem:[%s2344_s1 + $0x10] sm:$0xff]  }
   0x8   :  { %1394 = vmatpush3.bf16.msra.mxu0 %v1639_v6  ;;  %v1648_v15 = vld [vmem:[%s2344_s1 + $0xa0] sm:$0xff]   ;;  %v1652_v19 = vld [vmem:[%s2344_s1 + $0x98] sm:$0xff]   ;;  %v1656_v23 = vld [vmem:[%s2344_s1 + $0x90] sm:$0xff]  }
   0x9   :  { %1458 = vmatpush3.bf16.msra.mxu1 %v1640_v7  ;;  %1395 = vmatprep.subr.bf16.mxu0 %v1641_v8  ;;  %v1657_v24 = vld [vmem:[%s2344_s1 + $0x48] sm:$0xff]   ;;  %v1661_v28 = vld [vmem:[%s2344_s1 + $0x40] sm:$0xff]   ;;  %v1949_v1 = vld [vmem:[%s2346_s2 + $0x38] sm:$0xff] }
   0xa   :  { %1459 = vmatprep.subr.bf16.mxu1 %v1642_v9  ;;  %v1658_v25 = vld [vmem:[%s2344_s1 + $0xc8] sm:$0xff]   ;;  %v1662_v29 = vld [vmem:[%s2344_s1 + $0xc0] sm:$0xff]   ;;  %v1956_v2 = vld [vmem:[%s2346_s2 + $0x30] sm:$0xff] }
   0xb   :  { %v1659_v26 = vld [vmem:[%s2344_s1 + $0x8] sm:$0xff]   ;;  %v1663_v30 = vld [vmem:[%s2344_s1] sm:$0xff]   ;;  %v1977_v5 = vld [vmem:[%s2346_s2 + $0x18] sm:$0xff] }
   0xc   :  { %1396 = vmatpush3.bf16.msra.mxu0 %v1643_v10  ;;  %v1660_v27 = vld [vmem:[%s2344_s1 + $0x88] sm:$0xff]   ;;  %v1664_v31 = vld [vmem:[%s2344_s1 + $0x80] sm:$0xff]   ;;  %v1984_v6 = vld [vmem:[%s2346_s2 + $0x10] sm:$0xff] }
   0xd   :  { %1460 = vmatpush3.bf16.msra.mxu1 %v1644_v11  ;;  %1397 = vmatprep.subr.bf16.mxu0 %v1645_v12  ;;  %v1665_v32 = vld [vmem:[%s2345_s0] ss:$16 sps:$4 sm:$0xff]   ;;  %v1667_v33 = vld [vmem:[%s2345_s0 + $0x4] ss:$16 sps:$4 sm:$0xff]   ;;  %v1668_v34 = vld [vmem:[%s2345_s0 + $0x8] ss:$16 sps:$4 sm:$0xff]  }
   0xe   :  { %1461 = vmatprep.subr.bf16.mxu1 %v1646_v13  ;;  %v1670_v35 = vld [vmem:[%s2345_s0 + $0xc] ss:$16 sps:$4 sm:$0xff]   ;;  %504 = vmatprep.mubr.bf16.mxu0 %v1667_v33  ;;  %v1671_v36 = vld [vmem:[%s2345_s0 + $0x24] ss:$16 sps:$4 sm:$0xff]   ;;  %v1675_v38 = vld [vmem:[%s2345_s0 + $0x20] ss:$16 sps:$4 sm:$0xff]  }
   0xf   :  { %601 = vmatprep.mubr.bf16.mxu1 %v1670_v35  ;;  %v1673_v37 = vld [vmem:[%s2345_s0 + $0x2c] ss:$16 sps:$4 sm:$0xff]   ;;  %v1676_v39 = vld [vmem:[%s2345_s0 + $0x28] ss:$16 sps:$4 sm:$0xff]   ;;  %v1677_v40 = vld [vmem:[%s2345_s0 + $0x44] ss:$16 sps:$4 sm:$0xff]  }
  0x10   :  { %1398 = vmatpush3.bf16.msra.mxu0 %v1647_v14  ;;  %v1679_v41 = vld [vmem:[%s2345_s0 + $0x4c] ss:$16 sps:$4 sm:$0xff]   ;;  %v1681_v42 = vld [vmem:[%s2345_s0 + $0x40] ss:$16 sps:$4 sm:$0xff]   ;;  %v1682_v43 = vld [vmem:[%s2345_s0 + $0x48] ss:$16 sps:$4 sm:$0xff]  }
  0x11   :  { %1462 = vmatpush3.bf16.msra.mxu1 %v1648_v15  ;;  %1399 = vmatprep.subr.bf16.mxu0 %v1649_v16  ;;  %v1683_v44 = vld [vmem:[%s2345_s0 + $0x64] ss:$16 sps:$4 sm:$0xff]   ;;  %v1685_v45 = vld [vmem:[%s2345_s0 + $0x6c] ss:$16 sps:$4 sm:$0xff]   ;;  %v1687_v46 = vld [vmem:[%s2345_s0 + $0x60] ss:$16 sps:$4 sm:$0xff]  }
  0x12   :  { %1463 = vmatprep.subr.bf16.mxu1 %v1650_v17  ;;  %v1688_v47 = vld [vmem:[%s2345_s0 + $0x68] ss:$16 sps:$4 sm:$0xff]   ;;  %v1689_v48 = vld [vmem:[%s2345_s0 + $0x84] ss:$16 sps:$4 sm:$0xff]   ;;  %v1691_v49 = vld [vmem:[%s2345_s0 + $0x8c] ss:$16 sps:$4 sm:$0xff]  }
  0x13   :  { %v1693_v50 = vld [vmem:[%s2345_s0 + $0x80] ss:$16 sps:$4 sm:$0xff]   ;;  %v1694_v51 = vld [vmem:[%s2345_s0 + $0x88] ss:$16 sps:$4 sm:$0xff]   ;;  %v1695_v52 = vld [vmem:[%s2345_s0 + $0xa4] ss:$16 sps:$4 sm:$0xff]  }
  0x14   :  { %1400 = vmatpush3.bf16.msra.mxu0 %v1651_v18  ;;  %v1697_v53 = vld [vmem:[%s2345_s0 + $0xac] ss:$16 sps:$4 sm:$0xff]   ;;  %v1699_v54 = vld [vmem:[%s2345_s0 + $0xa0] ss:$16 sps:$4 sm:$0xff]   ;;  %v1700_v55 = vld [vmem:[%s2345_s0 + $0xa8] ss:$16 sps:$4 sm:$0xff]  }
  0x15   :  { %1464 = vmatpush3.bf16.msra.mxu1 %v1652_v19  ;;  %1401 = vmatprep.subr.bf16.mxu0 %v1653_v20  ;;  %v1701_v56 = vld [vmem:[%s2345_s0 + $0xc4] ss:$16 sps:$4 sm:$0xff]   ;;  %v1703_v57 = vld [vmem:[%s2345_s0 + $0xcc] ss:$16 sps:$4 sm:$0xff]   ;;  %v1705_v58 = vld [vmem:[%s2345_s0 + $0xc0] ss:$16 sps:$4 sm:$0xff]  }
  0x16   :  { %1465 = vmatprep.subr.bf16.mxu1 %v1654_v21  ;;  %v1706_v59 = vld [vmem:[%s2345_s0 + $0xc8] ss:$16 sps:$4 sm:$0xff]   ;;  %v1707_v60 = vld [vmem:[%s2345_s0 + $0xe4] ss:$16 sps:$4 sm:$0xff]   ;;  %v1709_v61 = vld [vmem:[%s2345_s0 + $0xec] ss:$16 sps:$4 sm:$0xff]  }
  0x17   :  { %v1711_v62 = vld [vmem:[%s2345_s0 + $0xe0] ss:$16 sps:$4 sm:$0xff]   ;;  %v1712_v63 = vld [vmem:[%s2345_s0 + $0xe8] ss:$16 sps:$4 sm:$0xff]  }
  0x18   :  { %1402 = vmatpush3.bf16.msra.mxu0 %v1655_v22  ;;  %v1963_v3 = vld [vmem:[%s2346_s2 + $0x28] sm:$0xff]  ;;  %v1970_v4 = vld [vmem:[%s2346_s2 + $0x20] sm:$0xff]  ;;  %v2009_v9 = vld [vmem:[%s2347_s3 + $0x38] sm:$0xff] }
  0x19   :  { %1466 = vmatpush3.bf16.msra.mxu1 %v1656_v23  ;;  %1403 = vmatprep.subr.bf16.mxu0 %v1657_v24  ;;  %v1991_v7 = vld [vmem:[%s2346_s2 + $0x8] sm:$0xff]  ;;  %v1998_v8 = vld [vmem:[%s2346_s2] sm:$0xff]  ;;  %v2014_v10 = vld [vmem:[%s2347_s3 + $0x30] sm:$0xff] }
  0x1a   :  { %1467 = vmatprep.subr.bf16.mxu1 %v1658_v25  ;;  %v2021_v11 = vld [vmem:[%s2347_s3 + $0x28] sm:$0xff]  ;;  %v2028_v12 = vld [vmem:[%s2347_s3 + $0x20] sm:$0xff]  ;;  %v2035_v13 = vld [vmem:[%s2347_s3 + $0x18] sm:$0xff] }
  0x1b   :  { %v2042_v14 = vld [vmem:[%s2347_s3 + $0x10] sm:$0xff]  ;;  %v2049_v15 = vld [vmem:[%s2347_s3 + $0x8] sm:$0xff]  ;;  %v2056_v16 = vld [vmem:[%s2347_s3] sm:$0xff] }
  0x1c   :  { %1404 = vmatpush3.bf16.msra.mxu0 %v1659_v26 }
  0x1d   :  { %1468 = vmatpush3.bf16.msra.mxu1 %v1660_v27  ;;  %1405 = vmatprep.subr.bf16.mxu0 %v1661_v28 }
  0x1e   :  { %1469 = vmatprep.subr.bf16.mxu1 %v1662_v29 }
  0x20   :  { %1406 = vmatpush3.bf16.msra.mxu0 %v1663_v30 }
  0x21   :  { %1470 = vmatpush3.bf16.msra.mxu1 %v1664_v31  ;;  %1555 = vmatprep.subr.mxu0 %v1715_v0 }
  0x22   :  { %1574 = vmatprep.subr.mxu1 %v1715_v0 }
  0x23   :  { %505 = vmatmul.mubr.bf16.vlgmr.msra.gmra.mxu0 %v1665_v32 }
  0x24   :  { %602 = vmatmul.mubr.bf16.vlgmr.msra.gmra.mxu1 %v1668_v34  ;;  %512 = vmatprep.mubr.bf16.mxu0 %v1671_v36 }
  0x25   :  { %609 = vmatprep.mubr.bf16.mxu1 %v1673_v37  ;;  %1556 = vmatpush3.msra.mxu0 %v1949_v1 }
  0x26   :  { %1557 = vmatprep.subr.mxu0 %v1715_v0  ;;  %1575 = vmatpush3.msra.mxu1 %v2009_v9 }
  0x27   :  { %1558 = vmatpush3.msra.mxu0 %v1956_v2  ;;  %1576 = vmatprep.subr.mxu1 %v1715_v0 }
  0x28   :  { %1559 = vmatprep.subr.mxu0 %v1715_v0  ;;  %1577 = vmatpush3.msra.mxu1 %v2014_v10 }
  0x29   :  { %1560 = vmatpush3.msra.mxu0 %v1963_v3  ;;  %1578 = vmatprep.subr.mxu1 %v1715_v0 }
  0x2a   :  { %1561 = vmatprep.subr.mxu0 %v1715_v0  ;;  %1579 = vmatpush3.msra.mxu1 %v2021_v11 }
  0x2b   :  { %513 = vmatmul.mubr.bf16.gmra.mxu0 %v1675_v38  ;;  %1580 = vmatprep.subr.mxu1 %v1715_v0 }
  0x2c   :  { %610 = vmatmul.mubr.bf16.gmra.mxu1 %v1676_v39  ;;  %520 = vmatprep.mubr.bf16.mxu0 %v1677_v40 }
  0x2d   :  { %617 = vmatprep.mubr.bf16.mxu1 %v1679_v41  ;;  %1562 = vmatpush3.msra.mxu0 %v1970_v4 }
  0x2e   :  { %1563 = vmatprep.subr.mxu0 %v1715_v0  ;;  %1581 = vmatpush3.msra.mxu1 %v2028_v12 }
  0x2f   :  { %1564 = vmatpush3.msra.mxu0 %v1977_v5  ;;  %1582 = vmatprep.subr.mxu1 %v1715_v0 }
  0x30   :  { %1565 = vmatprep.subr.mxu0 %v1715_v0  ;;  %1583 = vmatpush3.msra.mxu1 %v2035_v13 }
  0x31   :  { %1566 = vmatpush3.msra.mxu0 %v1984_v6  ;;  %1584 = vmatprep.subr.mxu1 %v1715_v0 }
  0x32   :  { %1567 = vmatprep.subr.mxu0 %v1715_v0  ;;  %1585 = vmatpush3.msra.mxu1 %v2042_v14 }
  0x33   :  { %521 = vmatmul.mubr.bf16.gmra.mxu0 %v1681_v42  ;;  %1586 = vmatprep.subr.mxu1 %v1715_v0 }
  0x34   :  { %618 = vmatmul.mubr.bf16.gmra.mxu1 %v1682_v43  ;;  %528 = vmatprep.mubr.bf16.mxu0 %v1683_v44 }
  0x35   :  { %625 = vmatprep.mubr.bf16.mxu1 %v1685_v45  ;;  %1568 = vmatpush3.msra.mxu0 %v1991_v7 }
  0x36   :  { %1569 = vmatprep.subr.mxu0 %v1715_v0  ;;  %1587 = vmatpush3.msra.mxu1 %v2049_v15 }
  0x37   :  { %1570 = vmatpush3.msra.mxu0 %v1998_v8  ;;  %1588 = vmatprep.subr.mxu1 %v1715_v0 }
  0x38   :  { %1593 = vmatprep.subr.mxu0 %v1715_v0  ;;  %1589 = vmatpush3.msra.mxu1 %v2056_v16 }
  0x39   :  { %1612 = vmatprep.subr.mxu1 %v1715_v0 }
  0x3b   :  { %529 = vmatmul.mubr.bf16.gmra.mxu0 %v1687_v46 }
  0x3c   :  { %626 = vmatmul.mubr.bf16.gmra.mxu1 %v1688_v47  ;;  %536 = vmatprep.mubr.bf16.mxu0 %v1689_v48 }
  0x3d   :  { %633 = vmatprep.mubr.bf16.mxu1 %v1691_v49 }
  0x43   :  { %537 = vmatmul.mubr.bf16.gmra.mxu0 %v1693_v50 }
  0x44   :  { %634 = vmatmul.mubr.bf16.gmra.mxu1 %v1694_v51  ;;  %544 = vmatprep.mubr.bf16.mxu0 %v1695_v52 }
  0x45   :  { %641 = vmatprep.mubr.bf16.mxu1 %v1697_v53 }
  0x4b   :  { %545 = vmatmul.mubr.bf16.gmra.mxu0 %v1699_v54 }
  0x4c   :  { %642 = vmatmul.mubr.bf16.gmra.mxu1 %v1700_v55  ;;  %552 = vmatprep.mubr.bf16.mxu0 %v1701_v56 }
  0x4d   :  { %649 = vmatprep.mubr.bf16.mxu1 %v1703_v57 }
  0x53   :  { %553 = vmatmul.mubr.bf16.gmra.mxu0 %v1705_v58 }
  0x54   :  { %650 = vmatmul.mubr.bf16.gmra.mxu1 %v1706_v59  ;;  %560 = vmatprep.mubr.bf16.mxu0 %v1707_v60 }
  0x55   :  { %657 = vmatprep.mubr.bf16.mxu1 %v1709_v61 }
  0x5b   :  { %561 = vmatmul.mubr.bf16.gmra.mxu0 %v1711_v62 }
  0x5c   :  { %658 = vmatmul.mubr.bf16.gmra.mxu1 %v1712_v63  ;;  %1571 = vmatprep.mubr.msk.f32.mxu0 %vm1716_vm0, %v1715_v0 }
  0x5d   :  { %1590 = vmatprep.mubr.msk.f32.mxu1 %vm1716_vm0, %v1715_v0 }
  0xe3   :  { %v1407_v17 = vpop.f32.mrf.mxu0 }
  0xe4   :  { %v1471_v18 = vpop.f32.mrf.mxu1 }
  0xe5   :  { %v1408_v19 = vpop.f32.mrf.mxu0 }
  0xe6   :  { %v1472_v20 = vpop.f32.mrf.mxu1  ;;  %v1409_v50 = vadd.f32 %v1408_v19, %v1407_v17 }
  0xe7   :  { %v1410_v21 = vpop.f32.mrf.mxu0  ;;  %v1473_v51 = vadd.f32 %v1472_v20, %v1471_v18 }
  0xe8   :  { %v1474_v22 = vpop.f32.mrf.mxu1 }
  0xe9   :  { %v1411_v23 = vpop.f32.mrf.mxu0  ;;  %v2064_v61 = vadd.f32 %v1473_v51, %v1409_v50 }
  0xea   :  { %v1475_v24 = vpop.f32.mrf.mxu1  ;;  %v1412_v47 = vadd.f32 %v1411_v23, %v1410_v21 }
  0xeb   :  { %v1413_v25 = vpop.f32.mrf.mxu0  ;;  %v1476_v48 = vadd.f32 %v1475_v24, %v1474_v22 }
  0xec   :  { %v1477_v26 = vpop.f32.mrf.mxu1 }
  0xed   :  { %v1414_v27 = vpop.f32.mrf.mxu0  ;;  %v2062_v57 = vadd.f32 %v1476_v48, %v1412_v47 }
  0xee   :  { %v1478_v28 = vpop.f32.mrf.mxu1  ;;  %v1415_v53 = vadd.f32 %v1414_v27, %v1413_v25 }
  0xef   :  { %v1416_v29 = vpop.f32.mrf.mxu0  ;;  %v1479_v54 = vadd.f32 %v1478_v28, %v1477_v26  ;;  %v668_v19 = vsel %vm666_vm1, %v2062_v57, 0.0  ;;  %v667_v26 = vsel %vm666_vm1, %v2064_v61, 0.0 }
  0xf0   :  { %v1480_v30 = vpop.f32.mrf.mxu1 }
  0xf1   :  { %v1417_v31 = vpop.f32.mrf.mxu0  ;;  %v2066_v63 = vadd.f32 %v1479_v54, %v1415_v53 }
  0xf2   :  { %v1481_v32 = vpop.f32.mrf.mxu1  ;;  %v1418_v58 = vadd.f32 %v1417_v31, %v1416_v29 }
  0xf3   :  { %v1419_v33 = vpop.f32.mrf.mxu0  ;;  %v1482_v59 = vadd.f32 %v1481_v32, %v1480_v30  ;;  %v670_v28 = vsel %vm666_vm1, %v2066_v63, 0.0 }
  0xf4   :  { %v1483_v34 = vpop.f32.mrf.mxu1 }
  0xf5   :  { %v1420_v35 = vpop.f32.mrf.mxu0  ;;  %v2070_v20 = vadd.f32 %v1482_v59, %v1418_v58 }
  0xf6   :  { %v1484_v36 = vpop.f32.mrf.mxu1  ;;  %v1421_v21 = vadd.f32 %v1420_v35, %v1419_v33  ;;  %v669_v33 = vadd.f32 %v668_v19, %v667_v26 }
  0xf7   :  { %v1422_v37 = vpop.f32.mrf.mxu0  ;;  %v1485_v22 = vadd.f32 %v1484_v36, %v1483_v34  ;;  %v672_v35 = vsel %vm666_vm1, %v2070_v20, 0.0 }
  0xf8   :  { %v1486_v38 = vpop.f32.mrf.mxu1 }
  0xf9   :  { %v1423_v39 = vpop.f32.mrf.mxu0  ;;  %v2076_v29 = vadd.f32 %v1485_v22, %v1421_v21 }
  0xfa   :  { %v1487_v40 = vpop.f32.mrf.mxu1  ;;  %v1424_v23 = vadd.f32 %v1423_v39, %v1422_v37 }
  0xfb   :  { %v1425_v41 = vpop.f32.mrf.mxu0  ;;  %v1488_v24 = vadd.f32 %v1487_v40, %v1486_v38  ;;  %v671_v40 = vadd.f32 %v670_v28, %v669_v33  ;;  %v674_v48 = vsel %vm666_vm1, %v2076_v29, 0.0 }
  0xfc   :  { %v1489_v42 = vpop.f32.mrf.mxu1 }
  0xfd   :  { %v1426_v43 = vpop.f32.mrf.mxu0  ;;  %v2080_v36 = vadd.f32 %v1488_v24, %v1424_v23 }
  0xfe   :  { %v1490_v44 = vpop.f32.mrf.mxu1  ;;  %v1427_v30 = vadd.f32 %v1426_v43, %v1425_v41 }
  0xff   :  { %v1428_v45 = vpop.f32.mrf.mxu0  ;;  %v1491_v31 = vadd.f32 %v1490_v44, %v1489_v42  ;;  %v673_v44 = vadd.f32 %v672_v35, %v671_v40  ;;  %v676_v53 = vsel %vm666_vm1, %v2080_v36, 0.0 }
 0x100   :  { %v1492_v46 = vpop.f32.mrf.mxu1 }
 0x101   :  { %v1429_v49 = vpop.f32.mrf.mxu0  ;;  %v2084_v50 = vadd.f32 %v1491_v31, %v1427_v30 }
 0x102   :  { %v1493_v52 = vpop.f32.mrf.mxu1  ;;  %v1430_v37 = vadd.f32 %v1429_v49, %v1428_v45 }
 0x103   :  { %v1431_v55 = vpop.f32.mrf.mxu0  ;;  %v1494_v38 = vadd.f32 %v1493_v52, %v1492_v46  ;;  %v675_v52 = vadd.f32 %v674_v48, %v673_v44  ;;  %v678_v59 = vsel %vm666_vm1, %v2084_v50, 0.0 }
 0x104   :  { %v1495_v56 = vpop.f32.mrf.mxu1 }
 0x105   :  { %v1432_v60 = vpop.f32.mrf.mxu0  ;;  %v2088_v54 = vadd.f32 %v1494_v38, %v1430_v37 }
 0x106   :  { %v1496_v62 = vpop.f32.mrf.mxu1  ;;  %v1433_v41 = vadd.f32 %v1432_v60, %v1431_v55 }
 0x107   :  { %v1434_v17 = vpop.f32.mrf.mxu0  ;;  %v1497_v42 = vadd.f32 %v1496_v62, %v1495_v56  ;;  %v677_v62 = vadd.f32 %v676_v53, %v675_v52  ;;  %v680_v19 = vsel %vm666_vm1, %v2088_v54, 0.0 }
 0x108   :  { %v1498_v18 = vpop.f32.mrf.mxu1 }
 0x109   :  { %v1435_v25 = vpop.f32.mrf.mxu0  ;;  %v2092_v21 = vadd.f32 %v1497_v42, %v1433_v41 }
 0x10a   :  { %v1499_v27 = vpop.f32.mrf.mxu1  ;;  %v1436_v45 = vadd.f32 %v1435_v25, %v1434_v17  ;;  %v679_v25 = vadd.f32 %v678_v59, %v677_v62 }
 0x10b   :  { %v1437_v32 = vpop.f32.mrf.mxu0  ;;  %v1500_v46 = vadd.f32 %v1499_v27, %v1498_v18  ;;  %v682_v27 = vsel %vm666_vm1, %v2092_v21, 0.0 }
 0x10c   :  { %v1501_v34 = vpop.f32.mrf.mxu1  ;;  %v681_v33 = vadd.f32 %v680_v19, %v679_v25 }
 0x10d   :  { %v1438_v39 = vpop.f32.mrf.mxu0  ;;  %v2096_v23 = vadd.f32 %v1500_v46, %v1436_v45 }
 0x10e   :  { %v1502_v47 = vpop.f32.mrf.mxu1  ;;  %v1439_v55 = vadd.f32 %v1438_v39, %v1437_v32  ;;  %v683_v39 = vadd.f32 %v682_v27, %v681_v33 }
 0x10f   :  { %v1440_v43 = vpop.f32.mrf.mxu0  ;;  %v1503_v56 = vadd.f32 %v1502_v47, %v1501_v34  ;;  %v684_v35 = vsel %vm666_vm1, %v2096_v23, 0.0 }
 0x110   :  { %v1504_v51 = vpop.f32.mrf.mxu1  ;;  %v685_v44 = vadd.f32 %v684_v35, %v683_v39 }
 0x111   :  { %v1441_v49 = vpop.f32.mrf.mxu0  ;;  %v2100_v28 = vadd.f32 %v1503_v56, %v1439_v55 }
 0x112   :  { %v1505_v58 = vpop.f32.mrf.mxu1  ;;  %v1442_v17 = vadd.f32 %v1441_v49, %v1440_v43 }
 0x113   :  { %v1443_v60 = vpop.f32.mrf.mxu0  ;;  %v1506_v18 = vadd.f32 %v1505_v58, %v1504_v51  ;;  %v686_v48 = vsel %vm666_vm1, %v2100_v28, 0.0 }
 0x114   :  { %v1507_v22 = vpop.f32.mrf.mxu1  ;;  %v687_v49 = vadd.f32 %v686_v48, %v685_v44 }
 0x115   :  { %v1444_v24 = vpop.f32.mrf.mxu0  ;;  %v2104_v37 = vadd.f32 %v1506_v18, %v1442_v17 }
 0x116   :  { %v1508_v26 = vpop.f32.mrf.mxu1  ;;  %v1445_v30 = vadd.f32 %v1444_v24, %v1443_v60 }
 0x117   :  { %v1509_v31 = vadd.f32 %v1508_v26, %v1507_v22  ;;  %v1446_v32 = vpop.f32.mrf.mxu0  ;;  %v688_v53 = vsel %vm666_vm1, %v2104_v37, 0.0 }
 0x118   :  { %v1510_v34 = vpop.f32.mrf.mxu1  ;;  %v689_v60 = vadd.f32 %v688_v53, %v687_v49 }
 0x119   :  { %v1447_v38 = vpop.f32.mrf.mxu0  ;;  %v2108_v41 = vadd.f32 %v1509_v31, %v1445_v30 }
 0x11a   :  { %v1448_v40 = vadd.f32 %v1447_v38, %v1446_v32  ;;  %v1511_v47 = vpop.f32.mrf.mxu1 }
 0x11b   :  { %v1512_v42 = vadd.f32 %v1511_v47, %v1510_v34  ;;  %v1449_v43 = vpop.f32.mrf.mxu0  ;;  %v690_v59 = vsel %vm666_vm1, %v2108_v41, 0.0 }
 0x11c   :  { %v1513_v51 = vpop.f32.mrf.mxu1  ;;  %v691_v18 = vadd.f32 %v690_v59, %v689_v60 }
 0x11d   :  { %v2112_v45 = vadd.f32 %v1512_v42, %v1448_v40  ;;  %v1450_v46 = vpop.f32.mrf.mxu0 }
 0x11e   :  { %v1451_v52 = vadd.f32 %v1450_v46, %v1449_v43  ;;  %v1514_v58 = vpop.f32.mrf.mxu1 }
 0x11f   :  { %v1515_v55 = vadd.f32 %v1514_v58, %v1513_v51  ;;  %v1452_v56 = vpop.f32.mrf.mxu0  ;;  %v692_v22 = vsel %vm666_vm1, %v2112_v45, 0.0 }
 0x120   :  { %v1516_v62 = vpop.f32.mrf.mxu1  ;;  %v693_v30 = vadd.f32 %v692_v22, %v691_v18 }
 0x121   :  { %v2118_v19 = vadd.f32 %v1515_v55, %v1451_v52  ;;  %v1453_v17 = vpop.f32.mrf.mxu0 }
 0x122   :  { %v1454_v24 = vadd.f32 %v1453_v17, %v1452_v56  ;;  %v1517_v25 = vpop.f32.mrf.mxu1 }
 0x123   :  { %v694_v26 = vsel %vm666_vm1, %v2118_v19, 0.0  ;;  %v1518_v27 = vadd.f32 %v1517_v25, %v1516_v62 }
 0x124   :  { %v695_v32 = vadd.f32 %v694_v26, %v693_v30 }
 0x125   :  { %v2122_v31 = vadd.f32 %v1518_v27, %v1454_v24 }
 0x127   :  { %v696_v33 = vsel %vm666_vm1, %v2122_v31, 0.0 }
 0x128   :  { %v697_v34 = vadd.f32 %v696_v33, %v695_v32 }
 0x12a   :  { %v698_v35 = vrot.slane %v697_v34, 4 }
 0x12c   :  { %v699_v38 = vadd.f32 %v698_v35, %v697_v34 }
 0x12e   :  { %v700_v39 = vrot.slane %v699_v38, 2 }
 0x130   :  { %v701_v40 = vadd.f32 %v700_v39, %v699_v38 }
 0x132   :  { %v702_v47 = vrot.slane %v701_v40, 1 }
 0x134   :  { %v703_v48 = vadd.f32 %v702_v47, %v701_v40 }
 0x136   :  { %1572 = vmatmul.mubr.msk.f32.vlgmr.msra.gmra.mxu0 %vm666_vm1, %v703_v48 }
 0x137   :  { %1594 = vmatpush3.msra.mxu0 %v1949_v1  ;;  %1609 = vmatprep.mubr.msk.f32.mxu0 %vm1716_vm0, %v1715_v0 }
 0x138   :  { %1595 = vmatprep.subr.mxu0 %v1715_v0 }
 0x139   :  { %1596 = vmatpush3.msra.mxu0 %v1956_v2 }
 0x13a   :  { %1597 = vmatprep.subr.mxu0 %v1715_v0 }
 0x13b   :  { %1598 = vmatpush3.msra.mxu0 %v1963_v3 }
 0x13c   :  { %1599 = vmatprep.subr.mxu0 %v1715_v0 }
 0x13d   :  { %1600 = vmatpush3.msra.mxu0 %v1970_v4  ;;  %v868_v4 = vlaneseq }
 0x13e   :  { %1601 = vmatprep.subr.mxu0 %v1715_v0 }
 0x13f   :  { %1602 = vmatpush3.msra.mxu0 %v1977_v5  ;;  %v2162_v5 = vshrl.u32 %v868_v4, 7 }
 0x140   :  { %1603 = vmatprep.subr.mxu0 %v1715_v0 }
 0x141   :  { %1604 = vmatpush3.msra.mxu0 %v1984_v6  ;;  %v870_v6 = vsub.s32 0, %v2162_v5  ;;  %v1357_v5 = vld [vmem:[%s2348_s4] ss:$0 sm:$0xff] }
 0x142   :  { %1605 = vmatprep.subr.mxu0 %v1715_v0 }
 0x143   :  { %1606 = vmatpush3.msra.mxu0 %v1991_v7 }
 0x144   :  { %1607 = vmatprep.subr.mxu0 %v1715_v0 }
 0x145   :  { %1608 = vmatpush3.msra.mxu0 %v1998_v8 }
 0x1f6   :  { %v781_v1 = vpop.f32.mrf.mxu0 }
 0x1f7   :  { %v786_v2 = vmul.f32 0.0078125, %v781_v1 }
 0x1f8   :  { %v1573_v3 = vpop.f32.mrf.mxu0 }
 0x1f9   :  { %1591 = vmatmul.mubr.msk.f32.vlgmr.msra.gmra.mxu1 %vm666_vm1, %v786_v2 }
 0x1fa   :  { %1613 = vmatpush3.msra.mxu1 %v2009_v9  ;;  %1628 = vmatprep.mubr.msk.f32.mxu1 %vm1716_vm0, %v1715_v0 }
 0x1fb   :  { %1614 = vmatprep.subr.mxu1 %v1715_v0 }
 0x1fc   :  { %1615 = vmatpush3.msra.mxu1 %v2014_v10 }
 0x1fd   :  { %1616 = vmatprep.subr.mxu1 %v1715_v0 }
 0x1fe   :  { %1617 = vmatpush3.msra.mxu1 %v2021_v11 }
 0x1ff   :  { %1618 = vmatprep.subr.mxu1 %v1715_v0 }
 0x200   :  { %1619 = vmatpush3.msra.mxu1 %v2028_v12 }
 0x201   :  { %1620 = vmatprep.subr.mxu1 %v1715_v0 }
 0x202   :  { %1621 = vmatpush3.msra.mxu1 %v2035_v13 }
 0x203   :  { %1622 = vmatprep.subr.mxu1 %v1715_v0 }
 0x204   :  { %1623 = vmatpush3.msra.mxu1 %v2042_v14 }
 0x205   :  { %1624 = vmatprep.subr.mxu1 %v1715_v0 }
 0x206   :  { %1625 = vmatpush3.msra.mxu1 %v2049_v15 }
 0x207   :  { %1626 = vmatprep.subr.mxu1 %v1715_v0 }
 0x208   :  { %1627 = vmatpush3.msra.mxu1 %v2056_v16 }
 0x2b9   :  { %v864_v7 = vpop.f32.mrf.mxu1 }
 0x2ba   :  { %v871_v8 = vrot.slane %v864_v7, %v870_v6 }
 0x2bb   :  { %v1592_v9 = vpop.f32.mrf.mxu1 }
 0x2bc   :  { %v2168_v10 = vsub.f32 %v2064_v61, %v871_v8  ;;  %v2171_v11 = vsub.f32 %v2062_v57, %v871_v8  ;;  %v2174_v0 = vsub.f32 %v2066_v63, %v871_v8  ;;  %v2177_v12 = vsub.f32 %v2070_v20, %v871_v8 }
 0x2bd   :  { %v2184_v15 = vsub.f32 %v2076_v29, %v871_v8  ;;  %v2189_v57 = vsub.f32 %v2080_v36, %v871_v8  ;;  %v2196_v43 = vsub.f32 %v2084_v50, %v871_v8  ;;  %v2202_v36 = vsub.f32 %v2088_v54, %v871_v8 }
 0x2be   :  { %v888_v13 = vmul.f32 %v2168_v10, %v2168_v10  ;;  %v889_v14 = vmul.f32 %v2171_v11, %v2171_v11  ;;  %v890_v16 = vmul.f32 %v2174_v0, %v2174_v0  ;;  %v891_v61 = vmul.f32 %v2177_v12, %v2177_v12 }
 0x2bf   :  { %v892_v29 = vmul.f32 %v2184_v15, %v2184_v15  ;;  %v893_v53 = vmul.f32 %v2189_v57, %v2189_v57  ;;  %v2208_v52 = vsub.f32 %v2092_v21, %v871_v8  ;;  %v894_v50 = vmul.f32 %v2196_v43, %v2196_v43 }
 0x2c0   :  { %v904_v63 = vsel %vm666_vm1, %v888_v13, 0.0  ;;  %v905_v20 = vsel %vm666_vm1, %v889_v14, 0.0  ;;  %v907_v44 = vsel %vm666_vm1, %v890_v16, 0.0  ;;  %v909_v46 = vsel %vm666_vm1, %v891_v61, 0.0 }
 0x2c1   :  { %v906_v42 = vadd.f32 %v905_v20, %v904_v63  ;;  %v911_v58 = vsel %vm666_vm1, %v892_v29, 0.0  ;;  %v2214_v55 = vsub.f32 %v2096_v23, %v871_v8  ;;  %v895_v54 = vmul.f32 %v2202_v36, %v2202_v36 }
 0x2c2   :  { %v913_v56 = vsel %vm666_vm1, %v893_v53, 0.0  ;;  %v2220_v62 = vsub.f32 %v2100_v28, %v871_v8  ;;  %v896_v21 = vmul.f32 %v2208_v52, %v2208_v52  ;;  %v915_v22 = vsel %vm666_vm1, %v894_v50, 0.0 }
 0x2c3   :  { %v908_v51 = vadd.f32 %v907_v44, %v906_v42  ;;  %v883_v18 = vsub.f32 %v2104_v37, %v871_v8  ;;  %v897_v23 = vmul.f32 %v2214_v55, %v2214_v55  ;;  %v917_v24 = vsel %vm666_vm1, %v895_v54, 0.0 }
 0x2c4   :  { %v884_v26 = vsub.f32 %v2108_v41, %v871_v8  ;;  %v898_v28 = vmul.f32 %v2220_v62, %v2220_v62  ;;  %v919_v27 = vsel %vm666_vm1, %v896_v21, 0.0  ;;  %v885_v32 = vsub.f32 %v2112_v45, %v871_v8 }
 0x2c5   :  { %v910_v49 = vadd.f32 %v909_v46, %v908_v51  ;;  %v899_v33 = vmul.f32 %v883_v18, %v883_v18  ;;  %v921_v34 = vsel %vm666_vm1, %v897_v23, 0.0  ;;  %v886_v35 = vsub.f32 %v2118_v19, %v871_v8 }
 0x2c6   :  { %v900_v38 = vmul.f32 %v884_v26, %v884_v26  ;;  %v923_v39 = vsel %vm666_vm1, %v898_v28, 0.0  ;;  %v887_v41 = vsub.f32 %v2122_v31, %v871_v8  ;;  %v901_v47 = vmul.f32 %v885_v32, %v885_v32 }
 0x2c7   :  { %v912_v59 = vadd.f32 %v911_v58, %v910_v49  ;;  %v925_v48 = vsel %vm666_vm1, %v899_v33, 0.0  ;;  %v902_v2 = vmul.f32 %v886_v35, %v886_v35 }
 0x2c8   :  { %v927_v3 = vsel %vm666_vm1, %v900_v38, 0.0  ;;  %v903_v4 = vmul.f32 %v887_v41, %v887_v41  ;;  %v929_v7 = vsel %vm666_vm1, %v901_v47, 0.0 }
 0x2c9   :  { %v914_v60 = vadd.f32 %v913_v56, %v912_v59  ;;  %v931_v19 = vsel %vm666_vm1, %v902_v2, 0.0 }
 0x2ca   :  { %v933_v14 = vsel %vm666_vm1, %v903_v4, 0.0 }
 0x2cb   :  { %v916_v17 = vadd.f32 %v915_v22, %v914_v60 }
 0x2cd   :  { %v918_v25 = vadd.f32 %v917_v24, %v916_v17 }
 0x2cf   :  { %v920_v30 = vadd.f32 %v919_v27, %v918_v25 }
 0x2d1   :  { %v922_v37 = vadd.f32 %v921_v34, %v920_v30 }
 0x2d3   :  { %v924_v40 = vadd.f32 %v923_v39, %v922_v37 }
 0x2d5   :  { %v926_v1 = vadd.f32 %v925_v48, %v924_v40 }
 0x2d7   :  { %v928_v45 = vadd.f32 %v927_v3, %v926_v1 }
 0x2d9   :  { %v930_v9 = vadd.f32 %v929_v7, %v928_v45 }
 0x2db   :  { %v932_v13 = vadd.f32 %v931_v19, %v930_v9 }
 0x2dd   :  { %v934_v16 = vadd.f32 %v933_v14, %v932_v13 }
 0x2df   :  { %v935_v61 = vrot.slane %v934_v16, 4 }
 0x2e1   :  { %v936_v31 = vadd.f32 %v935_v61, %v934_v16 }
 0x2e3   :  { %v937_v8 = vrot.slane %v936_v31, 2 }
 0x2e5   :  { %v938_v63 = vadd.f32 %v937_v8, %v936_v31 }
 0x2e7   :  { %v939_v20 = vrot.slane %v938_v63, 1 }
 0x2e9   :  { %v940_v42 = vadd.f32 %v939_v20, %v938_v63 }
 0x2eb   :  { %1610 = vmatmul.mubr.msk.f32.vlgmr.msra.gmra.mxu0 %vm666_vm1, %v940_v42 }
 0x3ab   :  { %v1010_v29 = vpop.f32.mrf.mxu0 }
 0x3ac   :  { %v1014_v44 = vmul.f32 0.0078125, %v1010_v29 }
 0x3ad   :  { %v1611_v51 = vpop.f32.mrf.mxu0 }
 0x3ae   :  { %v1015_v53 = vadd.f32 1e-05, %v1014_v44 }
 0x3b0   :  { %1713 = vrsqrt.f32 %v1015_v53 }
 0x3bd   :  { %v1714_v46 = vpop.eup %1713 }
 0x3be   :  { %1629 = vmatmul.mubr.msk.f32.vlgmr.msra.gmra.mxu1 %vm666_vm1, %v1714_v46 }
 0x47e   :  { %v1086_v49 = vpop.f32.mrf.mxu1 }
 0x47f   :  { %v1093_v50 = vrot.slane %v1086_v49, %v870_v6 }
 0x480   :  { %v1630_v58 = vpop.f32.mrf.mxu1 }
 0x481   :  { %v1094_v59 = vmul.f32 %v1093_v50, %v2168_v10  ;;  %v1095_v54 = vmul.f32 %v1093_v50, %v2171_v11  ;;  %v1096_v56 = vmul.f32 %v1093_v50, %v2174_v0  ;;  %v1097_v60 = vmul.f32 %v1093_v50, %v2177_v12 }
 0x482   :  { %v1098_v21 = vmul.f32 %v1093_v50, %v2184_v15  ;;  %v1099_v22 = vmul.f32 %v1093_v50, %v2189_v57  ;;  %v1100_v17 = vmul.f32 %v1093_v50, %v2196_v43  ;;  %v1101_v23 = vmul.f32 %v1093_v50, %v2202_v36 }
 0x483   :  { %v1102_v6 = vmul.f32 %v1093_v50, %v2208_v52  ;;  %v1103_v10 = vmul.f32 %v1093_v50, %v2214_v55  ;;  %v1104_v11 = vmul.f32 %v1093_v50, %v2220_v62  ;;  %v1105_v0 = vmul.f32 %v1093_v50, %v883_v18  ;;  %v1358_v52 = vld [vmem:[%s2349_s5] ss:$0 sm:$0xff] }
 0x484   :  { %v1106_v12 = vmul.f32 %v1093_v50, %v884_v26  ;;  %v1107_v24 = vmul.f32 %v1093_v50, %v885_v32  ;;  %v1108_v15 = vmul.f32 %v1093_v50, %v886_v35  ;;  %v1109_v25 = vmul.f32 %v1093_v50, %v887_v41 }
 0x485   :  { %v1117_v57 = vmul.f32 %v1357_v5, %v1094_v59  ;;  %v1118_v28 = vmul.f32 %v1357_v5, %v1095_v54  ;;  %v1119_v43 = vmul.f32 %v1357_v5, %v1096_v56  ;;  %v1120_v27 = vmul.f32 %v1357_v5, %v1097_v60 }
 0x486   :  { %v1121_v36 = vmul.f32 %v1357_v5, %v1098_v21  ;;  %v1122_v30 = vmul.f32 %v1357_v5, %v1099_v22  ;;  %v1123_v33 = vmul.f32 %v1357_v5, %v1100_v17  ;;  %v1124_v34 = vmul.f32 %v1357_v5, %v1101_v23 }
 0x487   :  { %v1125_v55 = vmul.f32 %v1357_v5, %v1102_v6  ;;  %v1126_v37 = vmul.f32 %v1357_v5, %v1103_v10  ;;  %v1127_v62 = vmul.f32 %v1357_v5, %v1104_v11  ;;  %v1128_v18 = vmul.f32 %v1357_v5, %v1105_v0 }
 0x488   :  { %v1129_v26 = vmul.f32 %v1357_v5, %v1106_v12  ;;  %v1130_v32 = vmul.f32 %v1357_v5, %v1107_v24  ;;  %v1131_v35 = vmul.f32 %v1357_v5, %v1108_v15  ;;  %v1132_v38 = vmul.f32 %v1357_v5, %v1109_v25 }
 0x489   :  { %v1140_v39 = vadd.f32 %v1358_v52, %v1117_v57  ;;  %v1141_v40 = vadd.f32 %v1358_v52, %v1118_v28  ;;  %v1142_v41 = vadd.f32 %v1358_v52, %v1119_v43  ;;  %v1143_v47 = vadd.f32 %v1358_v52, %v1120_v27 }
 0x48a   :  { %v1144_v48 = vadd.f32 %v1358_v52, %v1121_v36  ;;  %v1145_v1 = vadd.f32 %v1358_v52, %v1122_v30  ;;  %v1146_v2 = vadd.f32 %v1358_v52, %v1123_v33  ;;  %v1147_v3 = vadd.f32 %v1358_v52, %v1124_v34 }
 0x48b   :  { %v1148_v45 = vadd.f32 %v1358_v52, %v1125_v55  ;;  %v1149_v4 = vadd.f32 %v1358_v52, %v1126_v37  ;;  %v1150_v7 = vadd.f32 %v1358_v52, %v1127_v62  ;;  %v1151_v9 = vadd.f32 %v1358_v52, %v1128_v18 }
 0x48c   :  { %v1152_v19 = vadd.f32 %v1358_v52, %v1129_v26  ;;  %v1153_v13 = vadd.f32 %v1358_v52, %v1130_v32  ;;  %v1154_v14 = vadd.f32 %v1358_v52, %v1131_v35  ;;  %v1155_v16 = vadd.f32 %v1358_v52, %v1132_v38 }
 0x48d   :  { %vm1157_vm3 = vcmp.ge.f32.partialorder %v1141_v40, 0.0  ;;  %vm1158_vm4 = vcmp.ge.f32.partialorder %v1142_v41, 0.0  ;;  %vm1159_vm5 = vcmp.ge.f32.partialorder %v1143_v47, 0.0  ;;  %vm1160_vm6 = vcmp.ge.f32.partialorder %v1144_v48, 0.0 }
 0x48e   :  { %vm1161_vm7 = vcmp.ge.f32.partialorder %v1145_v1, 0.0  ;;  %vm1163_vm9 = vcmp.ge.f32.partialorder %v1147_v3, 0.0  ;;  %vm1164_vm10 = vcmp.ge.f32.partialorder %v1148_v45, 0.0  ;;  %vm1165_vm11 = vcmp.ge.f32.partialorder %v1149_v4, 0.0 }
 0x48f   :  { %vm1166_vm12 = vcmp.ge.f32.partialorder %v1150_v7, 0.0  ;;  %vm1167_vm13 = vcmp.ge.f32.partialorder %v1151_v9, 0.0  ;;  %vm1168_vm14 = vcmp.ge.f32.partialorder %v1152_v19, 0.0  ;;  %vm1169_vm15 = vcmp.ge.f32.partialorder %v1153_v13, 0.0 }
 0x490   :  { %vm1170_vm0 = vcmp.ge.f32.partialorder %v1154_v14, 0.0  ;;  %vm1171_vm1 = vcmp.ge.f32.partialorder %v1155_v16, 0.0  ;;  %v1172_v61 = vmul.f32 0.2, %v1140_v39  ;;  %v1173_v31 = vmul.f32 0.2, %v1141_v40 }
 0x491   :  { %v1174_v8 = vmul.f32 0.2, %v1142_v41  ;;  %v1175_v63 = vmul.f32 0.2, %v1143_v47  ;;  %v1176_v20 = vmul.f32 0.2, %v1144_v48 }
 0x492   :  { %v1177_v42 = vmul.f32 0.2, %v1145_v1  ;;  %v1178_v29 = vmul.f32 0.2, %v1146_v2  ;;  %v1179_v44 = vmul.f32 0.2, %v1147_v3  ;;  %v1189_v58 = vsel %vm1157_vm3, %v1141_v40, %v1173_v31 }
 0x493   :  { %v1180_v51 = vmul.f32 0.2, %v1148_v45  ;;  %vm2351_vm8 = vcmp.ge.f32.partialorder %v1140_v39, 0.0  ;;  %v1181_v46 = vmul.f32 0.2, %v1149_v4  ;;  %v1190_v60 = vsel %vm1158_vm4, %v1142_v41, %v1174_v8 }
 0x494   :  { %v1188_v53 = vsel %vm2351_vm8, %v1140_v39, %v1172_v61  ;;  %v1182_v49 = vmul.f32 0.2, %v1150_v7  ;;  %v1183_v50 = vmul.f32 0.2, %v1151_v9  ;;  %v1184_v59 = vmul.f32 0.2, %v1152_v19 }
 0x495   :  { %v1185_v54 = vmul.f32 0.2, %v1153_v13  ;;  %v1186_v56 = vmul.f32 0.2, %v1154_v14  ;;  %v1187_v21 = vmul.f32 0.2, %v1155_v16  ;;  %v1191_v22 = vsel %vm1159_vm5, %v1143_v47, %v1175_v63 }
 0x496   :  { %v1192_v17 = vsel %vm1160_vm6, %v1144_v48, %v1176_v20  ;;  %v1193_v23 = vsel %vm1161_vm7, %v1145_v1, %v1177_v42  ;;  %vm2352_vm2 = vcmp.ge.f32.partialorder %v1146_v2, 0.0  ;;  %v1195_v6 = vsel %vm1163_vm9, %v1147_v3, %v1179_v44 }
 0x497   :  { %v1194_v5 = vsel %vm2352_vm2, %v1146_v2, %v1178_v29  ;;  %v1196_v10 = vsel %vm1164_vm10, %v1148_v45, %v1180_v51  ;;  %v1197_v11 = vsel %vm1165_vm11, %v1149_v4, %v1181_v46  ;;  %v1198_v0 = vsel %vm1166_vm12, %v1150_v7, %v1182_v49 }
 0x498   :  { %v1199_v12 = vsel %vm1167_vm13, %v1151_v9, %v1183_v50  ;;  %v1200_v24 = vsel %vm1168_vm14, %v1152_v19, %v1184_v59  ;;  %v1201_v15 = vsel %vm1169_vm15, %v1153_v13, %v1185_v54  ;;  %v1202_v25 = vsel %vm1170_vm0, %v1154_v14, %v1186_v56 }
 0x499   :  { %v1203_v57 = vsel %vm1171_vm1, %v1155_v16, %v1187_v21  ;;  %v1375_v28 = vpack.c.bf16 %v1188_v53, %v1188_v53  ;;  %v1376_v43 = vpack.c.bf16 %v1189_v58, %v1189_v58  ;;  %v1377_v27 = vpack.c.bf16 %v1190_v60, %v1190_v60 }
 0x49a   :  { %v1378_v36 = vpack.c.bf16 %v1191_v22, %v1191_v22  ;;  %v1379_v30 = vpack.c.bf16 %v1192_v17, %v1192_v17  ;;  %v1380_v33 = vpack.c.bf16 %v1193_v23, %v1193_v23  ;;  %v1381_v34 = vpack.c.bf16 %v1194_v5, %v1194_v5 }
 0x49b   :  { %v1382_v52 = vpack.c.bf16 %v1195_v6, %v1195_v6  ;;  %v1383_v55 = vpack.c.bf16 %v1196_v10, %v1196_v10  ;;  %v1384_v37 = vpack.c.bf16 %v1197_v11, %v1197_v11  ;;  %vm2353_vm2 = vcmask 519168  }
 0x49c   :  { %1269 = vst.msk [vmem:[%s2350_s6] sm:$0xf] %vm2353_vm2, %v1375_v28  ;;  %vm2354_vm3 = vmmov %vm2353_vm2  ;;  %v1385_v62 = vpack.c.bf16 %v1198_v0, %v1198_v0  ;;  %v1386_v18 = vpack.c.bf16 %v1199_v12, %v1199_v12  ;;  %v1387_v26 = vpack.c.bf16 %v1200_v24, %v1200_v24  ;;  %v1388_v32 = vpack.c.bf16 %v1201_v15, %v1201_v15 }
 0x49d   :  { %1270 = vst.msk [vmem:[%s2350_s6 + $0x4] sm:$0xf] %vm2354_vm3, %v1376_v43  ;;  %vm2355_vm4 = vmmov %vm2353_vm2  ;;  %v1389_v35 = vpack.c.bf16 %v1202_v25, %v1202_v25  ;;  %v1390_v38 = vpack.c.bf16 %v1203_v57, %v1203_v57 }
 0x49e   :  { %1271 = vst.msk [vmem:[%s2350_s6 + $0x8] sm:$0xf] %vm2355_vm4, %v1377_v27  ;;  %vm2356_vm5 = vmmov %vm2353_vm2 }
 0x49f   :  { %1272 = vst.msk [vmem:[%s2350_s6 + $0xc] sm:$0xf] %vm2356_vm5, %v1378_v36  ;;  %vm2357_vm6 = vmmov %vm2353_vm2 }
 0x4a0   :  { %1273 = vst.msk [vmem:[%s2350_s6 + $0x10] sm:$0xf] %vm2357_vm6, %v1379_v30  ;;  %vm2358_vm7 = vmmov %vm2353_vm2 }
 0x4a1   :  { %1274 = vst.msk [vmem:[%s2350_s6 + $0x14] sm:$0xf] %vm2358_vm7, %v1380_v33  ;;  %vm2359_vm8 = vmmov %vm2353_vm2 }
 0x4a2   :  { %1275 = vst.msk [vmem:[%s2350_s6 + $0x18] sm:$0xf] %vm2359_vm8, %v1381_v34  ;;  %vm2360_vm9 = vmmov %vm2353_vm2 }
 0x4a3   :  { %1276 = vst.msk [vmem:[%s2350_s6 + $0x1c] sm:$0xf] %vm2360_vm9, %v1382_v52  ;;  %vm2361_vm10 = vmmov %vm2353_vm2 }
 0x4a4   :  { %1277 = vst.msk [vmem:[%s2350_s6 + $0x20] sm:$0xf] %vm2361_vm10, %v1383_v55  ;;  %vm2362_vm11 = vmmov %vm2353_vm2 }
 0x4a5   :  { %1278 = vst.msk [vmem:[%s2350_s6 + $0x24] sm:$0xf] %vm2362_vm11, %v1384_v37  ;;  %vm2363_vm12 = vmmov %vm2353_vm2 }
 0x4a6   :  { %1279 = vst.msk [vmem:[%s2350_s6 + $0x28] sm:$0xf] %vm2363_vm12, %v1385_v62  ;;  %vm2364_vm13 = vmmov %vm2353_vm2 }
 0x4a7   :  { %1280 = vst.msk [vmem:[%s2350_s6 + $0x2c] sm:$0xf] %vm2364_vm13, %v1386_v18  ;;  %vm2365_vm14 = vmmov %vm2353_vm2 }
 0x4a8   :  { %1281 = vst.msk [vmem:[%s2350_s6 + $0x30] sm:$0xf] %vm2365_vm14, %v1387_v26  ;;  %vm2366_vm15 = vmmov %vm2353_vm2 }
 0x4a9   :  { %1282 = vst.msk [vmem:[%s2350_s6 + $0x34] sm:$0xf] %vm2366_vm15, %v1388_v32  ;;  %vm2367_vm0 = vmmov %vm2353_vm2 }
 0x4aa   :  { %1283 = vst.msk [vmem:[%s2350_s6 + $0x38] sm:$0xf] %vm2367_vm0, %v1389_v35  ;;  %vm2368_vm1 = vmmov %vm2367_vm0 }
 0x4ab   :  { %1284 = vst.msk [vmem:[%s2350_s6 + $0x3c] sm:$0xf] %vm2368_vm1, %v1390_v38 }

// kernel: forward.10
= control target key start
LH: loop header
LB: loop body
LE: loop exit
PB: predicated region body
PF: predicated region fallthrough
CT: control target
= control target key end

     0   :  { %vm1731_vm0 = vmmov 0   ;;  %s2323_s1 = inlined_call_operand.vmem [shape: bf16[1024,128], index: 1, kind: input, shape index: {}]   ;;  %s2324_s0 = inlined_call_operand.vmem [shape: bf16[32,1024], index: 0, kind: input, shape index: {}]   ;;  %s2325_s2 = inlined_call_operand.vmem [shape: f32[128,128], index: 2, kind: input, shape index: {}]   ;;  %s2326_s3 = inlined_call_operand.vmem [shape: f32[128,128], index: 3, kind: input, shape index: {}]   ;;  %s2327_s4 = inlined_call_operand.vmem [shape: f32[1,128], index: 4, kind: input, shape index: {}]   ;;  %s2328_s5 = inlined_call_operand.vmem [shape: f32[1,128], index: 5, kind: input, shape index: {}]   ;;  %s2329_s6 = inlined_call_operand.vmem [shape: bf16[32,128], index: 6, kind: output, shape index: {}]  }
   0x1   :  { %v1664_v0 = vld [vmem:[%s2323_s1 + $0x78] sm:$0xff]   ;;  %v1668_v4 = vld [vmem:[%s2323_s1 + $0x70] sm:$0xff]   ;;  %v1672_v8 = vld [vmem:[%s2323_s1 + $0x68] sm:$0xff]  }
   0x2   :  { %v1665_v1 = vld [vmem:[%s2323_s1 + $0xf8] sm:$0xff]   ;;  %1342 = vmatprep.subr.bf16.mxu0 %v1664_v0  ;;  %v1669_v5 = vld [vmem:[%s2323_s1 + $0xf0] sm:$0xff]   ;;  %v1673_v9 = vld [vmem:[%s2323_s1 + $0xe8] sm:$0xff]  }
   0x3   :  { %v1666_v2 = vld [vmem:[%s2323_s1 + $0x38] sm:$0xff]   ;;  %1370 = vmatprep.subr.bf16.mxu1 %v1665_v1  ;;  %v1670_v6 = vld [vmem:[%s2323_s1 + $0x30] sm:$0xff]   ;;  %v1674_v10 = vld [vmem:[%s2323_s1 + $0x28] sm:$0xff]  }
   0x4   :  { %v1667_v3 = vld [vmem:[%s2323_s1 + $0xb8] sm:$0xff]   ;;  %1343 = vmatpush3.bf16.msra.mxu0 %v1666_v2  ;;  %v1671_v7 = vld [vmem:[%s2323_s1 + $0xb0] sm:$0xff]   ;;  %v1675_v11 = vld [vmem:[%s2323_s1 + $0xa8] sm:$0xff]  }
   0x5   :  { %1371 = vmatpush3.bf16.msra.mxu1 %v1667_v3  ;;  %1344 = vmatprep.subr.bf16.mxu0 %v1668_v4  ;;  %v1676_v12 = vld [vmem:[%s2323_s1 + $0x60] sm:$0xff]   ;;  %v1680_v16 = vld [vmem:[%s2323_s1 + $0x58] sm:$0xff]   ;;  %v1684_v20 = vld [vmem:[%s2323_s1 + $0x50] sm:$0xff]  }
   0x6   :  { %1372 = vmatprep.subr.bf16.mxu1 %v1669_v5  ;;  %v1677_v13 = vld [vmem:[%s2323_s1 + $0xe0] sm:$0xff]   ;;  %v1681_v17 = vld [vmem:[%s2323_s1 + $0xd8] sm:$0xff]   ;;  %v1685_v21 = vld [vmem:[%s2323_s1 + $0xd0] sm:$0xff]  }
   0x7   :  { %v1678_v14 = vld [vmem:[%s2323_s1 + $0x20] sm:$0xff]   ;;  %v1682_v18 = vld [vmem:[%s2323_s1 + $0x18] sm:$0xff]   ;;  %v1686_v22 = vld [vmem:[%s2323_s1 + $0x10] sm:$0xff]  }
   0x8   :  { %1345 = vmatpush3.bf16.msra.mxu0 %v1670_v6  ;;  %v1679_v15 = vld [vmem:[%s2323_s1 + $0xa0] sm:$0xff]   ;;  %v1683_v19 = vld [vmem:[%s2323_s1 + $0x98] sm:$0xff]   ;;  %v1687_v23 = vld [vmem:[%s2323_s1 + $0x90] sm:$0xff]  }
   0x9   :  { %1373 = vmatpush3.bf16.msra.mxu1 %v1671_v7  ;;  %1346 = vmatprep.subr.bf16.mxu0 %v1672_v8  ;;  %v1688_v24 = vld [vmem:[%s2323_s1 + $0x48] sm:$0xff]   ;;  %v1692_v28 = vld [vmem:[%s2323_s1 + $0x40] sm:$0xff]   ;;  %v1696_v40 = vld [vmem:[%s2323_s1 + $0x178] sm:$0xff]  }
   0xa   :  { %1374 = vmatprep.subr.bf16.mxu1 %v1673_v9  ;;  %v1689_v25 = vld [vmem:[%s2323_s1 + $0xc8] sm:$0xff]   ;;  %v1693_v29 = vld [vmem:[%s2323_s1 + $0xc0] sm:$0xff]   ;;  %v1697_v41 = vld [vmem:[%s2323_s1 + $0x1f8] sm:$0xff]  }
   0xb   :  { %v1690_v26 = vld [vmem:[%s2323_s1 + $0x8] sm:$0xff]   ;;  %v1694_v30 = vld [vmem:[%s2323_s1] sm:$0xff]   ;;  %v1698_v42 = vld [vmem:[%s2323_s1 + $0x138] sm:$0xff]  }
   0xc   :  { %1347 = vmatpush3.bf16.msra.mxu0 %v1674_v10  ;;  %v1691_v27 = vld [vmem:[%s2323_s1 + $0x88] sm:$0xff]   ;;  %v1695_v31 = vld [vmem:[%s2323_s1 + $0x80] sm:$0xff]   ;;  %v1699_v43 = vld [vmem:[%s2323_s1 + $0x1b8] sm:$0xff]  }
   0xd   :  { %1375 = vmatpush3.bf16.msra.mxu1 %v1675_v11  ;;  %1348 = vmatprep.subr.bf16.mxu0 %v1676_v12  ;;  %v24_v32 = vld [vmem:[%s2324_s0] sm:$0xff]  ;;  %v25_v34 = vld [vmem:[%s2324_s0 + $0x8] sm:$0xff]  ;;  %v1700_v44 = vld [vmem:[%s2323_s1 + $0x170] sm:$0xff]  }
   0xe   :  { %1376 = vmatprep.subr.bf16.mxu1 %v1677_v13  ;;  %v28_v33 = vld [vmem:[%s2324_s0 + $0x20] sm:$0xff]  ;;  %v29_v37 = vld [vmem:[%s2324_s0 + $0x28] sm:$0xff]  ;;  %v1701_v45 = vld [vmem:[%s2323_s1 + $0x1f0] sm:$0xff]  }
   0xf   :  { %v1241_v35 = vcombine.low %v24_v32, %v28_v33  ;;  %v1242_v36 = vcombine.high %v24_v32, %v28_v33  ;;  %v1243_v38 = vcombine.low %v25_v34, %v29_v37  ;;  %v1244_v39 = vcombine.high %v25_v34, %v29_v37  ;;  %v1702_v46 = vld [vmem:[%s2323_s1 + $0x130] sm:$0xff]   ;;  %v1704_v48 = vld [vmem:[%s2323_s1 + $0x168] sm:$0xff]   ;;  %v1708_v52 = vld [vmem:[%s2323_s1 + $0x160] sm:$0xff]  }
  0x10   :  { %1349 = vmatpush3.bf16.msra.mxu0 %v1678_v14  ;;  %v1703_v47 = vld [vmem:[%s2323_s1 + $0x1b0] sm:$0xff]   ;;  %v1705_v49 = vld [vmem:[%s2323_s1 + $0x1e8] sm:$0xff]   ;;  %v1709_v53 = vld [vmem:[%s2323_s1 + $0x1e0] sm:$0xff]   ;;  %v2330_v32 = vmov 0.0  }
  0x11   :  { %1377 = vmatpush3.bf16.msra.mxu1 %v1679_v15  ;;  %1350 = vmatprep.subr.bf16.mxu0 %v1680_v16  ;;  %v1706_v50 = vld [vmem:[%s2323_s1 + $0x128] sm:$0xff]   ;;  %v1710_v54 = vld [vmem:[%s2323_s1 + $0x120] sm:$0xff]   ;;  %v1712_v56 = vld [vmem:[%s2323_s1 + $0x158] sm:$0xff]  }
  0x12   :  { %1378 = vmatprep.subr.bf16.mxu1 %v1681_v17  ;;  %664 = vmatprep.mubr.bf16.mxu0 %v1242_v36  ;;  %v1707_v51 = vld [vmem:[%s2323_s1 + $0x1a8] sm:$0xff]   ;;  %v1711_v55 = vld [vmem:[%s2323_s1 + $0x1a0] sm:$0xff]   ;;  %v1713_v57 = vld [vmem:[%s2323_s1 + $0x1d8] sm:$0xff]  }
  0x13   :  { %713 = vmatprep.mubr.bf16.mxu1 %v1244_v39  ;;  %v32_v58 = vld [vmem:[%s2324_s0 + $0x40] sm:$0xff]  ;;  %v33_v61 = vld [vmem:[%s2324_s0 + $0x48] sm:$0xff]  ;;  %v1714_v1 = vld [vmem:[%s2323_s1 + $0x118] sm:$0xff]  }
  0x14   :  { %1351 = vmatpush3.bf16.msra.mxu0 %v1682_v18  ;;  %v36_v59 = vld [vmem:[%s2324_s0 + $0x60] sm:$0xff]  ;;  %v37_v62 = vld [vmem:[%s2324_s0 + $0x68] sm:$0xff]  ;;  %v1715_v3 = vld [vmem:[%s2323_s1 + $0x198] sm:$0xff]  }
  0x15   :  { %1379 = vmatpush3.bf16.msra.mxu1 %v1683_v19  ;;  %1352 = vmatprep.subr.bf16.mxu0 %v1684_v20  ;;  %v1250_v60 = vcombine.high %v32_v58, %v36_v59  ;;  %v1249_v63 = vcombine.low %v32_v58, %v36_v59  ;;  %v1252_v0 = vcombine.high %v33_v61, %v37_v62  ;;  %v1716_v4 = vld [vmem:[%s2323_s1 + $0x150] sm:$0xff]   ;;  %v1720_v8 = vld [vmem:[%s2323_s1 + $0x148] sm:$0xff]   ;;  %v1724_v12 = vld [vmem:[%s2323_s1 + $0x140] sm:$0xff]  }
  0x16   :  { %1380 = vmatprep.subr.bf16.mxu1 %v1685_v21  ;;  %v1251_v2 = vcombine.low %v33_v61, %v37_v62  ;;  %v1717_v5 = vld [vmem:[%s2323_s1 + $0x1d0] sm:$0xff]   ;;  %v1721_v9 = vld [vmem:[%s2323_s1 + $0x1c8] sm:$0xff]   ;;  %v1725_v13 = vld [vmem:[%s2323_s1 + $0x1c0] sm:$0xff]  }
  0x17   :  { %v1718_v6 = vld [vmem:[%s2323_s1 + $0x110] sm:$0xff]   ;;  %v1722_v10 = vld [vmem:[%s2323_s1 + $0x108] sm:$0xff]   ;;  %v1726_v14 = vld [vmem:[%s2323_s1 + $0x100] sm:$0xff]  }
  0x18   :  { %1353 = vmatpush3.bf16.msra.mxu0 %v1686_v22  ;;  %v1719_v7 = vld [vmem:[%s2323_s1 + $0x190] sm:$0xff]   ;;  %v1723_v11 = vld [vmem:[%s2323_s1 + $0x188] sm:$0xff]   ;;  %v1727_v15 = vld [vmem:[%s2323_s1 + $0x180] sm:$0xff]  }
  0x19   :  { %1381 = vmatpush3.bf16.msra.mxu1 %v1687_v23  ;;  %1354 = vmatprep.subr.bf16.mxu0 %v1688_v24  ;;  %v26_v16 = vld [vmem:[%s2324_s0 + $0x10] sm:$0xff]  ;;  %v27_v18 = vld [vmem:[%s2324_s0 + $0x18] sm:$0xff]  ;;  %v2033_v36 = vld [vmem:[%s2325_s2 + $0x60] sm:$0xff] }
  0x1a   :  { %1382 = vmatprep.subr.bf16.mxu1 %v1689_v25  ;;  %v30_v17 = vld [vmem:[%s2324_s0 + $0x30] sm:$0xff]  ;;  %v31_v19 = vld [vmem:[%s2324_s0 + $0x38] sm:$0xff]  ;;  %v2054_v39 = vld [vmem:[%s2325_s2 + $0x48] sm:$0xff] }
  0x1b   :  { %v1245_v20 = vcombine.low %v26_v16, %v30_v17  ;;  %v1246_v21 = vcombine.high %v26_v16, %v30_v17  ;;  %v1247_v22 = vcombine.low %v27_v18, %v31_v19  ;;  %v1248_v23 = vcombine.high %v27_v18, %v31_v19  ;;  %v34_v24 = vld [vmem:[%s2324_s0 + $0x50] sm:$0xff]  ;;  %v2011_v33 = vld [vmem:[%s2325_s2 + $0x78] sm:$0xff]  ;;  %v2196_v59 = vld [vmem:[%s2326_s3 + $0x28] sm:$0xff] }
  0x1c   :  { %1355 = vmatpush3.bf16.msra.mxu0 %v1690_v26  ;;  %v38_v25 = vld [vmem:[%s2324_s0 + $0x70] sm:$0xff]  ;;  %v35_v26 = vld [vmem:[%s2324_s0 + $0x58] sm:$0xff]  ;;  %2340 = vst [vmem:[#allocation4_spill] sm:$0xff] %v2196_v59 }
  0x1d   :  { %1383 = vmatpush3.bf16.msra.mxu1 %v1691_v27  ;;  %1356 = vmatprep.subr.bf16.mxu0 %v1692_v28  ;;  %v1254_v27 = vcombine.high %v34_v24, %v38_v25  ;;  %v39_v28 = vld [vmem:[%s2324_s0 + $0x78] sm:$0xff]  ;;  %v2019_v34 = vld [vmem:[%s2325_s2 + $0x70] sm:$0xff] }
  0x1e   :  { %1384 = vmatprep.subr.bf16.mxu1 %v1693_v29  ;;  %v1256_v29 = vcombine.high %v35_v26, %v39_v28  ;;  %v2040_v37 = vld [vmem:[%s2325_s2 + $0x58] sm:$0xff]  ;;  %v2189_v58 = vld [vmem:[%s2326_s3 + $0x30] sm:$0xff] }
  0x1f   :  { %2339 = vst [vmem:[#allocation3_spill] sm:$0xff] %v2189_v58  ;;  %v2210_v61 = vld [vmem:[%s2326_s3 + $0x18] sm:$0xff]  ;;  %v2217_v62 = vld [vmem:[%s2326_s3 + $0x10] sm:$0xff] }
  0x20   :  { %1357 = vmatpush3.bf16.msra.mxu0 %v1694_v30  ;;  %v1253_v30 = vcombine.low %v34_v24, %v38_v25  ;;  %2342 = vst [vmem:[#allocation6_spill] sm:$0xff] %v2210_v61  ;;  %2343 = vst [vmem:[#allocation7_spill] sm:$0xff] %v2217_v62 }
  0x21   :  { %1385 = vmatpush3.bf16.msra.mxu1 %v1695_v31  ;;  %1398 = vmatprep.subr.bf16.mxu0 %v1696_v40  ;;  %v1255_v31 = vcombine.low %v35_v26, %v39_v28  ;;  %v2061_v40 = vld [vmem:[%s2325_s2 + $0x40] sm:$0xff] }
  0x22   :  { %1426 = vmatprep.subr.bf16.mxu1 %v1697_v41  ;;  %v2068_v41 = vld [vmem:[%s2325_s2 + $0x38] sm:$0xff] }
  0x23   :  { %665 = vmatmul.mubr.bf16.vlgmr.msra.gmra.mxu0 %v1241_v35  ;;  %v2026_v35 = vld [vmem:[%s2325_s2 + $0x68] sm:$0xff] }
  0x24   :  { %714 = vmatmul.mubr.bf16.vlgmr.msra.gmra.mxu1 %v1243_v38  ;;  %1399 = vmatpush3.bf16.msra.mxu0 %v1698_v42  ;;  %v2047_v38 = vld [vmem:[%s2325_s2 + $0x50] sm:$0xff] }
  0x25   :  { %1427 = vmatpush3.bf16.msra.mxu1 %v1699_v43  ;;  %1400 = vmatprep.subr.bf16.mxu0 %v1700_v44  ;;  %v2075_v42 = vld [vmem:[%s2325_s2 + $0x30] sm:$0xff]  ;;  %v2082_v43 = vld [vmem:[%s2325_s2 + $0x28] sm:$0xff]  ;;  %v2089_v44 = vld [vmem:[%s2325_s2 + $0x20] sm:$0xff] }
  0x26   :  { %1428 = vmatprep.subr.bf16.mxu1 %v1701_v45  ;;  %672 = vmatprep.mubr.bf16.mxu0 %v1250_v60  ;;  %v2096_v45 = vld [vmem:[%s2325_s2 + $0x18] sm:$0xff]  ;;  %v2203_v60 = vld [vmem:[%s2326_s3 + $0x20] sm:$0xff] }
  0x27   :  { %721 = vmatprep.mubr.bf16.mxu1 %v1252_v0  ;;  %2341 = vst [vmem:[#allocation5_spill] sm:$0xff] %v2203_v60 }
  0x28   :  { %1401 = vmatpush3.bf16.msra.mxu0 %v1702_v46  ;;  %v2103_v46 = vld [vmem:[%s2325_s2 + $0x10] sm:$0xff] }
  0x29   :  { %1429 = vmatpush3.bf16.msra.mxu1 %v1703_v47  ;;  %1402 = vmatprep.subr.bf16.mxu0 %v1704_v48  ;;  %v2110_v47 = vld [vmem:[%s2325_s2 + $0x8] sm:$0xff]  ;;  %v2117_v48 = vld [vmem:[%s2325_s2] sm:$0xff] }
  0x2a   :  { %1430 = vmatprep.subr.bf16.mxu1 %v1705_v49  ;;  %v2128_v49 = vld [vmem:[%s2326_s3 + $0x78] sm:$0xff] }
  0x2b   :  { %673 = vmatmul.mubr.bf16.gmra.mxu0 %v1249_v63 }
  0x2c   :  { %1403 = vmatpush3.bf16.msra.mxu0 %v1706_v50  ;;  %722 = vmatmul.mubr.bf16.gmra.mxu1 %v1251_v2  ;;  %v2133_v50 = vld [vmem:[%s2326_s3 + $0x70] sm:$0xff] }
  0x2d   :  { %1431 = vmatpush3.bf16.msra.mxu1 %v1707_v51  ;;  %1404 = vmatprep.subr.bf16.mxu0 %v1708_v52  ;;  %v2140_v51 = vld [vmem:[%s2326_s3 + $0x68] sm:$0xff]  ;;  %v2147_v52 = vld [vmem:[%s2326_s3 + $0x60] sm:$0xff] }
  0x2e   :  { %1432 = vmatprep.subr.bf16.mxu1 %v1709_v53  ;;  %762 = vmatprep.mubr.bf16.mxu0 %v1246_v21  ;;  %v2154_v53 = vld [vmem:[%s2326_s3 + $0x58] sm:$0xff] }
  0x2f   :  { %811 = vmatprep.mubr.bf16.mxu1 %v1248_v23 }
  0x30   :  { %1405 = vmatpush3.bf16.msra.mxu0 %v1710_v54  ;;  %v2161_v54 = vld [vmem:[%s2326_s3 + $0x50] sm:$0xff] }
  0x31   :  { %1433 = vmatpush3.bf16.msra.mxu1 %v1711_v55  ;;  %1406 = vmatprep.subr.bf16.mxu0 %v1712_v56  ;;  %v2168_v55 = vld [vmem:[%s2326_s3 + $0x48] sm:$0xff]  ;;  %v2175_v56 = vld [vmem:[%s2326_s3 + $0x40] sm:$0xff] }
  0x32   :  { %1434 = vmatprep.subr.bf16.mxu1 %v1713_v57  ;;  %v2182_v57 = vld [vmem:[%s2326_s3 + $0x38] sm:$0xff] }
  0x33   :  { %2338 = vst [vmem:[#allocation2_spill] sm:$0xff] %v2182_v57 }
  0x34   :  { %1407 = vmatpush3.bf16.msra.mxu0 %v1714_v1 }
  0x35   :  { %1435 = vmatpush3.bf16.msra.mxu1 %v1715_v3  ;;  %1408 = vmatprep.subr.bf16.mxu0 %v1716_v4 }
  0x36   :  { %1436 = vmatprep.subr.bf16.mxu1 %v1717_v5 }
  0x38   :  { %1409 = vmatpush3.bf16.msra.mxu0 %v1718_v6 }
  0x39   :  { %1437 = vmatpush3.bf16.msra.mxu1 %v1719_v7  ;;  %1410 = vmatprep.subr.bf16.mxu0 %v1720_v8 }
  0x3a   :  { %1438 = vmatprep.subr.bf16.mxu1 %v1721_v9 }
  0x3c   :  { %1411 = vmatpush3.bf16.msra.mxu0 %v1722_v10 }
  0x3d   :  { %1439 = vmatpush3.bf16.msra.mxu1 %v1723_v11  ;;  %1412 = vmatprep.subr.bf16.mxu0 %v1724_v12 }
  0x3e   :  { %1440 = vmatprep.subr.bf16.mxu1 %v1725_v13 }
  0x40   :  { %1413 = vmatpush3.bf16.msra.mxu0 %v1726_v14 }
  0x41   :  { %1441 = vmatpush3.bf16.msra.mxu1 %v1727_v15  ;;  %1522 = vmatprep.subr.mxu0 %v2330_v32 }
  0x42   :  { %1557 = vmatprep.subr.mxu1 %v2330_v32 }
  0x43   :  { %763 = vmatmul.mubr.bf16.vlgmr.msra.gmra.mxu0 %v1245_v20 }
  0x44   :  { %812 = vmatmul.mubr.bf16.vlgmr.msra.gmra.mxu1 %v1247_v22  ;;  %770 = vmatprep.mubr.bf16.mxu0 %v1254_v27 }
  0x45   :  { %819 = vmatprep.mubr.bf16.mxu1 %v1256_v29  ;;  %1523 = vmatpush3.msra.mxu0 %v2011_v33 }
  0x46   :  { %1524 = vmatprep.subr.mxu0 %v2330_v32  ;;  %1558 = vmatpush3.msra.mxu1 %v2128_v49 }
  0x47   :  { %1525 = vmatpush3.msra.mxu0 %v2019_v34  ;;  %1559 = vmatprep.subr.mxu1 %v2330_v32 }
  0x48   :  { %1526 = vmatprep.subr.mxu0 %v2330_v32  ;;  %1560 = vmatpush3.msra.mxu1 %v2133_v50 }
  0x49   :  { %1527 = vmatpush3.msra.mxu0 %v2026_v35  ;;  %1561 = vmatprep.subr.mxu1 %v2330_v32 }
  0x4a   :  { %1528 = vmatprep.subr.mxu0 %v2330_v32  ;;  %1562 = vmatpush3.msra.mxu1 %v2140_v51 }
  0x4b   :  { %771 = vmatmul.mubr.bf16.gmra.mxu0 %v1253_v30  ;;  %1563 = vmatprep.subr.mxu1 %v2330_v32 }
  0x4c   :  { %820 = vmatmul.mubr.bf16.gmra.mxu1 %v1255_v31  ;;  %1529 = vmatpush3.msra.mxu0 %v2033_v36 }
  0x4d   :  { %1530 = vmatprep.subr.mxu0 %v2330_v32  ;;  %1554 = vmatprep.mubr.msk.f32.mxu0 %vm1731_vm0, %v2330_v32 }
  0x4e   :  { %1531 = vmatpush3.msra.mxu0 %v2040_v37  ;;  %1589 = vmatprep.mubr.msk.f32.mxu1 %vm1731_vm0, %v2330_v32 }
  0x4f   :  { %1532 = vmatprep.subr.mxu0 %v2330_v32  ;;  %1564 = vmatpush3.msra.mxu1 %v2147_v52 }
  0x50   :  { %1533 = vmatpush3.msra.mxu0 %v2047_v38  ;;  %1565 = vmatprep.subr.mxu1 %v2330_v32 }
  0x51   :  { %1534 = vmatprep.subr.mxu0 %v2330_v32  ;;  %1566 = vmatpush3.msra.mxu1 %v2154_v53 }
  0x52   :  { %1535 = vmatpush3.msra.mxu0 %v2054_v39  ;;  %1567 = vmatprep.subr.mxu1 %v2330_v32 }
  0x53   :  { %1536 = vmatprep.subr.mxu0 %v2330_v32  ;;  %1568 = vmatpush3.msra.mxu1 %v2161_v54 }
  0x54   :  { %1537 = vmatpush3.msra.mxu0 %v2061_v40  ;;  %1569 = vmatprep.subr.mxu1 %v2330_v32 }
  0x55   :  { %1538 = vmatprep.subr.mxu0 %v2330_v32  ;;  %1570 = vmatpush3.msra.mxu1 %v2168_v55 }
  0x56   :  { %1539 = vmatpush3.msra.mxu0 %v2068_v41  ;;  %1571 = vmatprep.subr.mxu1 %v2330_v32 }
  0x57   :  { %1540 = vmatprep.subr.mxu0 %v2330_v32  ;;  %1572 = vmatpush3.msra.mxu1 %v2175_v56 }
  0x58   :  { %1541 = vmatpush3.msra.mxu0 %v2075_v42  ;;  %1573 = vmatprep.subr.mxu1 %v2330_v32 }
  0x59   :  { %1542 = vmatprep.subr.mxu0 %v2330_v32  ;;  %1574 = vmatpush3.msra.mxu1 %v2182_v57 }
  0x5a   :  { %1543 = vmatpush3.msra.mxu0 %v2082_v43  ;;  %1575 = vmatprep.subr.mxu1 %v2330_v32 }
  0x5b   :  { %1544 = vmatprep.subr.mxu0 %v2330_v32  ;;  %1576 = vmatpush3.msra.mxu1 %v2189_v58 }
  0x5c   :  { %1545 = vmatpush3.msra.mxu0 %v2089_v44  ;;  %1577 = vmatprep.subr.mxu1 %v2330_v32 }
  0x5d   :  { %1546 = vmatprep.subr.mxu0 %v2330_v32  ;;  %1578 = vmatpush3.msra.mxu1 %v2196_v59 }
  0x5e   :  { %1547 = vmatpush3.msra.mxu0 %v2096_v45  ;;  %1579 = vmatprep.subr.mxu1 %v2330_v32 }
  0x5f   :  { %1548 = vmatprep.subr.mxu0 %v2330_v32  ;;  %1580 = vmatpush3.msra.mxu1 %v2203_v60 }
  0x60   :  { %1549 = vmatpush3.msra.mxu0 %v2103_v46  ;;  %1581 = vmatprep.subr.mxu1 %v2330_v32 }
  0x61   :  { %1550 = vmatprep.subr.mxu0 %v2330_v32  ;;  %1582 = vmatpush3.msra.mxu1 %v2210_v61 }
  0x62   :  { %1551 = vmatpush3.msra.mxu0 %v2110_v47  ;;  %1583 = vmatprep.subr.mxu1 %v2330_v32 }
  0x63   :  { %1552 = vmatprep.subr.mxu0 %v2330_v32  ;;  %1584 = vmatpush3.msra.mxu1 %v2217_v62 }
  0x64   :  { %1553 = vmatpush3.msra.mxu0 %v2117_v48  ;;  %1585 = vmatprep.subr.mxu1 %v2330_v32 }
  0x65   :  { %1592 = vmatprep.subr.mxu0 %v2330_v32 }
  0xe3   :  { %v1358_v63 = vpop.f32.mrf.mxu0 }
  0xe4   :  { %v1386_v0 = vpop.f32.mrf.mxu1 }
  0xe5   :  { %v1359_v1 = vpop.f32.mrf.mxu0 }
  0xe6   :  { %v1387_v2 = vpop.f32.mrf.mxu1  ;;  %v1360_v23 = vadd.f32 %v1359_v1, %v1358_v63 }
  0xe7   :  { %v1361_v3 = vpop.f32.mrf.mxu0  ;;  %v1388_v24 = vadd.f32 %v1387_v2, %v1386_v0 }
  0xe8   :  { %v1389_v4 = vpop.f32.mrf.mxu1 }
  0xe9   :  { %v1362_v5 = vpop.f32.mrf.mxu0  ;;  %v716_v61 = vadd.f32 %v1388_v24, %v1360_v23 }
  0xea   :  { %v1390_v6 = vpop.f32.mrf.mxu1  ;;  %v1363_v19 = vadd.f32 %v1362_v5, %v1361_v3 }
  0xeb   :  { %v1364_v7 = vpop.f32.mrf.mxu0  ;;  %v1391_v20 = vadd.f32 %v1390_v6, %v1389_v4 }
  0xec   :  { %v1392_v8 = vpop.f32.mrf.mxu1 }
  0xed   :  { %v1365_v9 = vpop.f32.mrf.mxu0  ;;  %v719_v29 = vadd.f32 %v1391_v20, %v1363_v19 }
  0xee   :  { %v1393_v10 = vpop.f32.mrf.mxu1  ;;  %v1366_v25 = vadd.f32 %v1365_v9, %v1364_v7 }
  0xef   :  { %v1367_v11 = vpop.f32.mrf.mxu0  ;;  %v1394_v26 = vadd.f32 %v1393_v10, %v1392_v8 }
  0xf0   :  { %v1395_v12 = vpop.f32.mrf.mxu1 }
  0xf1   :  { %v1368_v13 = vpop.f32.mrf.mxu0  ;;  %v724_v59 = vadd.f32 %v1394_v26, %v1366_v25 }
  0xf2   :  { %v1396_v14 = vpop.f32.mrf.mxu1  ;;  %v1369_v58 = vadd.f32 %v1368_v13, %v1367_v11 }
  0xf3   :  { %v1397_v4 = vadd.f32 %v1396_v14, %v1395_v12 }
 0x103   :  { %v1414_v15 = vpop.f32.mrf.mxu0 }
 0x104   :  { %v1442_v16 = vpop.f32.mrf.mxu1 }
 0x105   :  { %v1415_v17 = vpop.f32.mrf.mxu0 }
 0x106   :  { %v1443_v18 = vpop.f32.mrf.mxu1  ;;  %v1416_v30 = vadd.f32 %v1415_v17, %v1414_v15  ;;  %v727_v17 = vadd.f32 %v1397_v4, %v1369_v58 }
 0x107   :  { %v1417_v21 = vpop.f32.mrf.mxu0  ;;  %v1444_v2 = vadd.f32 %v1443_v18, %v1442_v16 }
 0x108   :  { %v1445_v22 = vpop.f32.mrf.mxu1  ;;  %v765_v5 = vadd.f32 %v1416_v30, %v716_v61 }
 0x109   :  { %v1418_v27 = vpop.f32.mrf.mxu0 }
 0x10a   :  { %v1446_v28 = vpop.f32.mrf.mxu1  ;;  %v1419_v31 = vadd.f32 %v1418_v27, %v1417_v21  ;;  %v2225_v19 = vadd.f32 %v1444_v2, %v765_v5  ;;  %v2344_v21 = vmov 0.0   ;;  %v1321_v2 = vld [vmem:[%s2327_s4] ss:$0 sm:$0xff] }
 0x10b   :  { %v1420_v32 = vpop.f32.mrf.mxu0  ;;  %v1447_v6 = vadd.f32 %v1446_v28, %v1445_v22 }
 0x10c   :  { %v1448_v62 = vpop.f32.mrf.mxu1  ;;  %v768_v60 = vadd.f32 %v1419_v31, %v719_v29 }
 0x10d   :  { %v1421_v57 = vpop.f32.mrf.mxu0 }
 0x10e   :  { %v1449_v3 = vpop.f32.mrf.mxu1  ;;  %v1422_v63 = vadd.f32 %v1421_v57, %v1420_v32  ;;  %v2223_v7 = vadd.f32 %v1447_v6, %v768_v60 }
 0x10f   :  { %v1423_v0 = vpop.f32.mrf.mxu0  ;;  %v1450_v9 = vadd.f32 %v1449_v3, %v1448_v62 }
 0x110   :  { %v1451_v1 = vpop.f32.mrf.mxu1  ;;  %v773_v8 = vadd.f32 %v1422_v63, %v724_v59  ;;  %v828_v61 = vadd.f32 %v2223_v7, %v2225_v19 }
 0x111   :  { %v1424_v10 = vpop.f32.mrf.mxu0 }
 0x112   :  { %v1452_v15 = vpop.f32.mrf.mxu1  ;;  %v2227_v20 = vadd.f32 %v1450_v9, %v773_v8  ;;  %v1425_v11 = vadd.f32 %v1424_v10, %v1423_v0 }
 0x113   :  { %v1453_v32 = vadd.f32 %v1452_v15, %v1451_v1 }
 0x114   :  { %v776_v12 = vadd.f32 %v1425_v11, %v727_v17  ;;  %v829_v57 = vadd.f32 %v828_v61, %v2227_v20  ;;  %v1322_v17 = vld [vmem:[%s2328_s5] ss:$0 sm:$0xff] }
 0x116   :  { %v2232_v13 = vadd.f32 %v1453_v32, %v776_v12 }
 0x118   :  { %v830_v59 = vadd.f32 %v829_v57, %v2232_v13 }
 0x11a   :  { %v831_v60 = vrot.slane %v830_v59, 4 }
 0x11c   :  { %v832_v62 = vadd.f32 %v831_v60, %v830_v59 }
 0x11e   :  { %v833_v14 = vrot.slane %v832_v62, 2 }
 0x120   :  { %v834_v58 = vadd.f32 %v833_v14, %v832_v62 }
 0x122   :  { %v835_v16 = vrot.slane %v834_v58, 1 }
 0x124   :  { %v836_v18 = vadd.f32 %v835_v16, %v834_v58 }
 0x126   :  { %1555 = vmatmul.mubr.f32.vlgmr.msra.gmra.mxu0 %v836_v18 }
 0x127   :  { %1593 = vmatpush3.msra.mxu0 %v2011_v33  ;;  %1624 = vmatprep.mubr.msk.f32.mxu0 %vm1731_vm0, %v2344_v21  ;;  %v926_v33 = vld [vmem:[%s2326_s3 + $0x8] sm:$0xff] }
 0x128   :  { %1594 = vmatprep.subr.mxu0 %v2344_v21  ;;  %1586 = vmatpush3.msra.mxu1 %v926_v33 }
 0x129   :  { %1595 = vmatpush3.msra.mxu0 %v2019_v34  ;;  %1587 = vmatprep.subr.mxu1 %v2344_v21  ;;  %v925_v34 = vld [vmem:[%s2326_s3] sm:$0xff] }
 0x12a   :  { %1596 = vmatprep.subr.mxu0 %v2344_v21  ;;  %1588 = vmatpush3.msra.mxu1 %v925_v34 }
 0x12b   :  { %1597 = vmatpush3.msra.mxu0 %v2026_v35  ;;  %1627 = vmatprep.subr.mxu1 %v2344_v21 }
 0x12c   :  { %1598 = vmatprep.subr.mxu0 %v2344_v21 }
 0x12d   :  { %1599 = vmatpush3.msra.mxu0 %v2033_v36 }
 0x12e   :  { %1600 = vmatprep.subr.mxu0 %v2344_v21 }
 0x12f   :  { %1601 = vmatpush3.msra.mxu0 %v2040_v37 }
 0x130   :  { %1602 = vmatprep.subr.mxu0 %v2344_v21 }
 0x131   :  { %1603 = vmatpush3.msra.mxu0 %v2047_v38  ;;  %v2345_v38 = vld [vmem:[#allocation2_spill] sm:$0xff] }
 0x132   :  { %1604 = vmatprep.subr.mxu0 %v2344_v21 }
 0x133   :  { %1605 = vmatpush3.msra.mxu0 %v2054_v39  ;;  %v2346_v39 = vld [vmem:[#allocation3_spill] sm:$0xff] }
 0x134   :  { %1606 = vmatprep.subr.mxu0 %v2344_v21 }
 0x135   :  { %1607 = vmatpush3.msra.mxu0 %v2061_v40  ;;  %v2347_v40 = vld [vmem:[#allocation4_spill] sm:$0xff] }
 0x136   :  { %1608 = vmatprep.subr.mxu0 %v2344_v21 }
 0x137   :  { %1609 = vmatpush3.msra.mxu0 %v2068_v41  ;;  %v2348_v41 = vld [vmem:[#allocation5_spill] sm:$0xff] }
 0x138   :  { %1610 = vmatprep.subr.mxu0 %v2344_v21 }
 0x139   :  { %1611 = vmatpush3.msra.mxu0 %v2075_v42  ;;  %v2349_v42 = vld [vmem:[#allocation6_spill] sm:$0xff] }
 0x13a   :  { %1612 = vmatprep.subr.mxu0 %v2344_v21 }
 0x13b   :  { %1613 = vmatpush3.msra.mxu0 %v2082_v43  ;;  %v2350_v43 = vld [vmem:[#allocation7_spill] sm:$0xff] }
 0x13c   :  { %1614 = vmatprep.subr.mxu0 %v2344_v21 }
 0x13d   :  { %1615 = vmatpush3.msra.mxu0 %v2089_v44  ;;  %v1011_v44 = vlaneseq }
 0x13e   :  { %1616 = vmatprep.subr.mxu0 %v2344_v21 }
 0x13f   :  { %1617 = vmatpush3.msra.mxu0 %v2096_v45  ;;  %v1012_v45 = vshrl.u32 %v1011_v44, 7 }
 0x140   :  { %1618 = vmatprep.subr.mxu0 %v2344_v21 }
 0x141   :  { %1619 = vmatpush3.msra.mxu0 %v2103_v46  ;;  %v1013_v46 = vsub.s32 0, %v1012_v45 }
 0x142   :  { %1620 = vmatprep.subr.mxu0 %v2344_v21 }
 0x143   :  { %1621 = vmatpush3.msra.mxu0 %v2110_v47 }
 0x144   :  { %1622 = vmatprep.subr.mxu0 %v2344_v21 }
 0x145   :  { %1623 = vmatpush3.msra.mxu0 %v2117_v48 }
 0x1e6   :  { %v919_v35 = vpop.f32.mrf.mxu0 }
 0x1e7   :  { %v924_v36 = vmul.f32 0.03125, %v919_v35 }
 0x1e8   :  { %v1556_v37 = vpop.f32.mrf.mxu0 }
 0x1e9   :  { %1590 = vmatmul.mubr.f32.vlgmr.msra.gmra.mxu1 %v924_v36 }
 0x1ea   :  { %1628 = vmatpush3.msra.mxu1 %v2128_v49  ;;  %1659 = vmatprep.mubr.msk.f32.mxu1 %vm1731_vm0, %v2344_v21 }
 0x1eb   :  { %1629 = vmatprep.subr.mxu1 %v2344_v21 }
 0x1ec   :  { %1630 = vmatpush3.msra.mxu1 %v2133_v50 }
 0x1ed   :  { %1631 = vmatprep.subr.mxu1 %v2344_v21 }
 0x1ee   :  { %1632 = vmatpush3.msra.mxu1 %v2140_v51 }
 0x1ef   :  { %1633 = vmatprep.subr.mxu1 %v2344_v21 }
 0x1f0   :  { %1634 = vmatpush3.msra.mxu1 %v2147_v52 }
 0x1f1   :  { %1635 = vmatprep.subr.mxu1 %v2344_v21 }
 0x1f2   :  { %1636 = vmatpush3.msra.mxu1 %v2154_v53 }
 0x1f3   :  { %1637 = vmatprep.subr.mxu1 %v2344_v21 }
 0x1f4   :  { %1638 = vmatpush3.msra.mxu1 %v2161_v54 }
 0x1f5   :  { %1639 = vmatprep.subr.mxu1 %v2344_v21 }
 0x1f6   :  { %1640 = vmatpush3.msra.mxu1 %v2168_v55 }
 0x1f7   :  { %1641 = vmatprep.subr.mxu1 %v2344_v21 }
 0x1f8   :  { %1642 = vmatpush3.msra.mxu1 %v2175_v56 }
 0x1f9   :  { %1643 = vmatprep.subr.mxu1 %v2344_v21 }
 0x1fa   :  { %1644 = vmatpush3.msra.mxu1 %v2345_v38 }
 0x1fb   :  { %1645 = vmatprep.subr.mxu1 %v2344_v21 }
 0x1fc   :  { %1646 = vmatpush3.msra.mxu1 %v2346_v39 }
 0x1fd   :  { %1647 = vmatprep.subr.mxu1 %v2344_v21 }
 0x1fe   :  { %1648 = vmatpush3.msra.mxu1 %v2347_v40 }
 0x1ff   :  { %1649 = vmatprep.subr.mxu1 %v2344_v21 }
 0x200   :  { %1650 = vmatpush3.msra.mxu1 %v2348_v41 }
 0x201   :  { %1651 = vmatprep.subr.mxu1 %v2344_v21 }
 0x202   :  { %1652 = vmatpush3.msra.mxu1 %v2349_v42 }
 0x203   :  { %1653 = vmatprep.subr.mxu1 %v2344_v21 }
 0x204   :  { %1654 = vmatpush3.msra.mxu1 %v2350_v43 }
 0x205   :  { %1655 = vmatprep.subr.mxu1 %v2344_v21 }
 0x206   :  { %1656 = vmatpush3.msra.mxu1 %v926_v33 }
 0x207   :  { %1657 = vmatprep.subr.mxu1 %v2344_v21 }
 0x208   :  { %1658 = vmatpush3.msra.mxu1 %v925_v34 }
 0x2a9   :  { %v1007_v47 = vpop.f32.mrf.mxu1 }
 0x2aa   :  { %v1014_v48 = vrot.slane %v1007_v47, %v1013_v46 }
 0x2ab   :  { %v1591_v49 = vpop.f32.mrf.mxu1 }
 0x2ac   :  { %v1015_v50 = vsub.f32 %v2225_v19, %v1014_v48  ;;  %v1016_v51 = vsub.f32 %v2223_v7, %v1014_v48  ;;  %v1017_v52 = vsub.f32 %v2227_v20, %v1014_v48  ;;  %v1018_v53 = vsub.f32 %v2232_v13, %v1014_v48 }
 0x2ae   :  { %v1019_v54 = vmul.f32 %v1015_v50, %v1015_v50  ;;  %v1020_v55 = vmul.f32 %v1016_v51, %v1016_v51  ;;  %v1021_v56 = vmul.f32 %v1017_v52, %v1017_v52  ;;  %v1022_v23 = vmul.f32 %v1018_v53, %v1018_v53 }
 0x2b0   :  { %v1023_v22 = vadd.f32 %v1020_v55, %v1019_v54 }
 0x2b2   :  { %v1024_v24 = vadd.f32 %v1023_v22, %v1021_v56 }
 0x2b4   :  { %v1025_v25 = vadd.f32 %v1024_v24, %v1022_v23 }
 0x2b6   :  { %v1026_v26 = vrot.slane %v1025_v25, 4 }
 0x2b8   :  { %v1027_v27 = vadd.f32 %v1026_v26, %v1025_v25 }
 0x2ba   :  { %v1028_v28 = vrot.slane %v1027_v27, 2 }
 0x2bc   :  { %v1029_v29 = vadd.f32 %v1028_v28, %v1027_v27 }
 0x2be   :  { %v1030_v30 = vrot.slane %v1029_v29, 1 }
 0x2c0   :  { %v1031_v31 = vadd.f32 %v1030_v30, %v1029_v29 }
 0x2c2   :  { %1625 = vmatmul.mubr.f32.vlgmr.msra.gmra.mxu0 %v1031_v31 }
 0x382   :  { %v1098_v3 = vpop.f32.mrf.mxu0 }
 0x383   :  { %v1102_v4 = vmul.f32 0.03125, %v1098_v3 }
 0x384   :  { %v1626_v5 = vpop.f32.mrf.mxu0 }
 0x385   :  { %v1103_v6 = vadd.f32 1e-05, %v1102_v4 }
 0x387   :  { %1728 = vrsqrt.f32 %v1103_v6 }
 0x394   :  { %v1729_v63 = vpop.eup %1728 }
 0x395   :  { %1660 = vmatmul.mubr.f32.vlgmr.msra.gmra.mxu1 %v1729_v63 }
 0x455   :  { %v1171_v0 = vpop.f32.mrf.mxu1 }
 0x456   :  { %v1178_v1 = vrot.slane %v1171_v0, %v1013_v46 }
 0x457   :  { %v1661_v7 = vpop.f32.mrf.mxu1 }
 0x458   :  { %v1179_v8 = vmul.f32 %v1178_v1, %v1015_v50  ;;  %v1180_v9 = vmul.f32 %v1178_v1, %v1016_v51  ;;  %v1181_v10 = vmul.f32 %v1178_v1, %v1017_v52  ;;  %v1182_v15 = vmul.f32 %v1178_v1, %v1018_v53 }
 0x45a   :  { %v1190_v19 = vmul.f32 %v1321_v2, %v1179_v8  ;;  %v1191_v20 = vmul.f32 %v1321_v2, %v1180_v9  ;;  %v1192_v11 = vmul.f32 %v1321_v2, %v1181_v10  ;;  %v1193_v61 = vmul.f32 %v1321_v2, %v1182_v15 }
 0x45c   :  { %v1201_v12 = vadd.f32 %v1322_v17, %v1190_v19  ;;  %v1202_v32 = vadd.f32 %v1322_v17, %v1191_v20  ;;  %v1203_v57 = vadd.f32 %v1322_v17, %v1192_v11  ;;  %v1204_v13 = vadd.f32 %v1322_v17, %v1193_v61 }
 0x45e   :  { %vm1205_vm1 = vcmp.ge.f32.partialorder %v1201_v12, 0.0  ;;  %vm1206_vm2 = vcmp.ge.f32.partialorder %v1202_v32, 0.0  ;;  %vm1207_vm3 = vcmp.ge.f32.partialorder %v1203_v57, 0.0  ;;  %vm1208_vm4 = vcmp.ge.f32.partialorder %v1204_v13, 0.0 }
 0x45f   :  { %v1209_v59 = vmul.f32 0.2, %v1201_v12  ;;  %v1210_v60 = vmul.f32 0.2, %v1202_v32  ;;  %v1211_v62 = vmul.f32 0.2, %v1203_v57 }
 0x460   :  { %v1212_v14 = vmul.f32 0.2, %v1204_v13 }
 0x461   :  { %v1213_v58 = vsel %vm1205_vm1, %v1201_v12, %v1209_v59  ;;  %v1214_v16 = vsel %vm1206_vm2, %v1202_v32, %v1210_v60  ;;  %v1215_v18 = vsel %vm1207_vm3, %v1203_v57, %v1211_v62 }
 0x462   :  { %v1216_v21 = vsel %vm1208_vm4, %v1204_v13, %v1212_v14  ;;  %v1334_v33 = vpack.c.bf16 %v1214_v16, %v1213_v58 }
 0x463   :  { %v1339_v34 = vpack.c.bf16 %v1216_v21, %v1215_v18 }
 0x464   :  { %1335 = vst [vmem:[%s2329_s6] sm:$0xff] %v1334_v33  }
 0x465   :  { %1341 = vst [vmem:[%s2329_s6 + $0x8] sm:$0xff] %v1339_v34  }

// kernel: forward.11
= control target key start
LH: loop header
LB: loop body
LE: loop exit
PB: predicated region body
PF: predicated region fallthrough
CT: control target
= control target key end

     0   :  { %17 = vsyncpa [#allocation3], 0  ;;  %v3165_v36 = vmov 1966171168   ;;  %v302_v38 = vlaneseq  ;;  %s4124_s0 = inlined_call_operand.vmem [shape: bf16[2,2048], index: 0, kind: input, shape index: {}]   ;;  %s4125_s1 = inlined_call_operand.vmem [shape: bf16[2048,256], index: 1, kind: input, shape index: {}]   ;;  %s4126_s2 = inlined_call_operand.vmem [shape: bf16[256,32], index: 2, kind: input, shape index: {}]   ;;  %s4127_s3 = inlined_call_operand.vmem [shape: f32[1,32], index: 3, kind: input, shape index: {}]   ;;  %s4128_s4 = inlined_call_operand.vmem [shape: bf16[32,8], index: 4, kind: input, shape index: {}]   ;;  %s4129_s5 = inlined_call_operand.vmem [shape: f32[1,8], index: 5, kind: input, shape index: {}]   ;;  %s4130_s6 = inlined_call_operand.vmem [shape: bf16[32,8], index: 6, kind: input, shape index: {}]   ;;  %s4131_s7 = inlined_call_operand.vmem [shape: f32[1,8], index: 7, kind: input, shape index: {}]   ;;  %s4132_s8 = inlined_call_operand.vmem [shape: f32[2,8], index: 8, kind: input, shape index: {}]   ;;  %s4133_s9 = inlined_call_operand.hbm [shape: f32[2,8], index: 9, kind: output, shape index: {0}]   ;;  %s4134_s10 = inlined_call_operand.hbm [shape: f32[2,8], index: 10, kind: output, shape index: {1}]   ;;  %s4135_s11 = inlined_call_operand.vmem [shape: f32[2,8], index: 11, kind: output, shape index: {2}]  }
   0x1   :  { %v2709_v0 = vld [vmem:[%s4125_s1 + $0x74] ss:$8 sps:$4 sm:$0xff]   ;;  %v2713_v2 = vld [vmem:[%s4125_s1 + $0x70] ss:$8 sps:$4 sm:$0xff]   ;;  %v2715_v4 = vld [vmem:[%s4125_s1 + $0x64] ss:$8 sps:$4 sm:$0xff]   ;;  %v300_v37 = vunpack.c.l.s4 %v3165_v36 }
   0x2   :  { %v2711_v1 = vld [vmem:[%s4125_s1 + $0x174] ss:$8 sps:$4 sm:$0xff]   ;;  %1692 = vmatprep.subr.bf16.mxu0 %v2709_v0  ;;  %v2714_v3 = vld [vmem:[%s4125_s1 + $0x170] ss:$8 sps:$4 sm:$0xff]   ;;  %v2717_v5 = vld [vmem:[%s4125_s1 + $0x164] ss:$8 sps:$4 sm:$0xff]  }
   0x3   :  { %1733 = vmatprep.subr.bf16.mxu1 %v2711_v1  ;;  %1693 = vmatpush1.bf16.msra.mxu0 %v2713_v2  ;;  %v2719_v6 = vld [vmem:[%s4125_s1 + $0x60] ss:$8 sps:$4 sm:$0xff]   ;;  %v2721_v8 = vld [vmem:[%s4125_s1 + $0x54] ss:$8 sps:$4 sm:$0xff]   ;;  %v2725_v10 = vld [vmem:[%s4125_s1 + $0x50] ss:$8 sps:$4 sm:$0xff]   ;;  %v301_v42 = vunpack.c.0.s8 %v300_v37 }
   0x4   :  { %1734 = vmatpush1.bf16.msra.mxu1 %v2714_v3  ;;  %1694 = vmatprep.subr.bf16.mxu0 %v2715_v4  ;;  %v2720_v7 = vld [vmem:[%s4125_s1 + $0x160] ss:$8 sps:$4 sm:$0xff]   ;;  %v2723_v9 = vld [vmem:[%s4125_s1 + $0x154] ss:$8 sps:$4 sm:$0xff]   ;;  %v2726_v11 = vld [vmem:[%s4125_s1 + $0x150] ss:$8 sps:$4 sm:$0xff]  }
   0x5   :  { %1735 = vmatprep.subr.bf16.mxu1 %v2717_v5  ;;  %v2727_v12 = vld [vmem:[%s4125_s1 + $0x44] ss:$8 sps:$4 sm:$0xff]   ;;  %v2731_v14 = vld [vmem:[%s4125_s1 + $0x40] ss:$8 sps:$4 sm:$0xff]   ;;  %v2733_v16 = vld [vmem:[%s4125_s1 + $0x34] ss:$8 sps:$4 sm:$0xff]  }
   0x6   :  { %v2729_v13 = vld [vmem:[%s4125_s1 + $0x144] ss:$8 sps:$4 sm:$0xff]   ;;  %v2732_v15 = vld [vmem:[%s4125_s1 + $0x140] ss:$8 sps:$4 sm:$0xff]   ;;  %v2735_v17 = vld [vmem:[%s4125_s1 + $0x134] ss:$8 sps:$4 sm:$0xff]  }
   0x7   :  { %1695 = vmatpush1.bf16.msra.mxu0 %v2719_v6  ;;  %v2737_v18 = vld [vmem:[%s4125_s1 + $0x30] ss:$8 sps:$4 sm:$0xff]   ;;  %v2739_v20 = vld [vmem:[%s4125_s1 + $0x24] ss:$8 sps:$4 sm:$0xff]   ;;  %v2743_v22 = vld [vmem:[%s4125_s1 + $0x20] ss:$8 sps:$4 sm:$0xff]  }
   0x8   :  { %1736 = vmatpush1.bf16.msra.mxu1 %v2720_v7  ;;  %1696 = vmatprep.subr.bf16.mxu0 %v2721_v8  ;;  %v2738_v19 = vld [vmem:[%s4125_s1 + $0x130] ss:$8 sps:$4 sm:$0xff]   ;;  %v2741_v21 = vld [vmem:[%s4125_s1 + $0x124] ss:$8 sps:$4 sm:$0xff]   ;;  %v2744_v23 = vld [vmem:[%s4125_s1 + $0x120] ss:$8 sps:$4 sm:$0xff]  }
   0x9   :  { %1737 = vmatprep.subr.bf16.mxu1 %v2723_v9  ;;  %v2745_v24 = vld [vmem:[%s4125_s1 + $0x14] ss:$8 sps:$4 sm:$0xff]   ;;  %v2749_v26 = vld [vmem:[%s4125_s1 + $0x10] ss:$8 sps:$4 sm:$0xff]   ;;  %v2751_v28 = vld [vmem:[%s4125_s1 + $0x4] ss:$8 sps:$4 sm:$0xff]  }
   0xa   :  { %v2747_v25 = vld [vmem:[%s4125_s1 + $0x114] ss:$8 sps:$4 sm:$0xff]   ;;  %v2750_v27 = vld [vmem:[%s4125_s1 + $0x110] ss:$8 sps:$4 sm:$0xff]   ;;  %v2753_v29 = vld [vmem:[%s4125_s1 + $0x104] ss:$8 sps:$4 sm:$0xff]  }
   0xb   :  { %1697 = vmatpush1.bf16.msra.mxu0 %v2725_v10  ;;  %v2755_v30 = vld [vmem:[%s4125_s1] ss:$8 sps:$4 sm:$0xff]   ;;  %v2757_v32 = vld [vmem:[%s4125_s1 + $0xf4] ss:$8 sps:$4 sm:$0xff]   ;;  %v2761_v34 = vld [vmem:[%s4125_s1 + $0xf0] ss:$8 sps:$4 sm:$0xff]  }
   0xc   :  { %1738 = vmatpush1.bf16.msra.mxu1 %v2726_v11  ;;  %1698 = vmatprep.subr.bf16.mxu0 %v2727_v12  ;;  %v2756_v31 = vld [vmem:[%s4125_s1 + $0x100] ss:$8 sps:$4 sm:$0xff]   ;;  %v2759_v33 = vld [vmem:[%s4125_s1 + $0x1f4] ss:$8 sps:$4 sm:$0xff]   ;;  %v2762_v35 = vld [vmem:[%s4125_s1 + $0x1f0] ss:$8 sps:$4 sm:$0xff]  }
   0xd   :  { %1739 = vmatprep.subr.bf16.mxu1 %v2729_v13  ;;  %v2763_v39 = vld [vmem:[%s4125_s1 + $0xe4] ss:$8 sps:$4 sm:$0xff]   ;;  %v2767_v41 = vld [vmem:[%s4125_s1 + $0xe0] ss:$8 sps:$4 sm:$0xff]   ;;  %v303_v43 = vshrl.u32 %v302_v38, 7 }
   0xe   :  { %v2765_v40 = vld [vmem:[%s4125_s1 + $0x1e4] ss:$8 sps:$4 sm:$0xff]   ;;  %v2768_v44 = vld [vmem:[%s4125_s1 + $0x1e0] ss:$8 sps:$4 sm:$0xff]   ;;  %v2769_v45 = vld [vmem:[%s4125_s1 + $0xd4] ss:$8 sps:$4 sm:$0xff]  }
   0xf   :  { %1699 = vmatpush1.bf16.msra.mxu0 %v2731_v14  ;;  %v2771_v46 = vld [vmem:[%s4125_s1 + $0x1d4] ss:$8 sps:$4 sm:$0xff]   ;;  %v2773_v47 = vld [vmem:[%s4125_s1 + $0xd0] ss:$8 sps:$4 sm:$0xff]   ;;  %v3362_v49 = vsub.s32 %v301_v42, %v303_v43  ;;  %v2775_v50 = vld [vmem:[%s4125_s1 + $0xc4] ss:$8 sps:$4 sm:$0xff]  }
  0x10   :  { %1740 = vmatpush1.bf16.msra.mxu1 %v2732_v15  ;;  %1700 = vmatprep.subr.bf16.mxu0 %v2733_v16  ;;  %v2774_v48 = vld [vmem:[%s4125_s1 + $0x1d0] ss:$8 sps:$4 sm:$0xff]   ;;  %v2777_v51 = vld [vmem:[%s4125_s1 + $0x1c4] ss:$8 sps:$4 sm:$0xff]   ;;  %v2779_v53 = vld [vmem:[%s4125_s1 + $0xc0] ss:$8 sps:$4 sm:$0xff]  }
  0x11   :  { %1741 = vmatprep.subr.bf16.mxu1 %v2735_v17  ;;  %v38_v52 = vld [vmem:[%s4124_s0] sm:$0xff]  ;;  %v2781_v56 = vld [vmem:[%s4125_s1 + $0xb4] ss:$8 sps:$4 sm:$0xff]   ;;  %v2785_v59 = vld [vmem:[%s4125_s1 + $0xb0] ss:$8 sps:$4 sm:$0xff]  }
  0x12   :  { %v305_v54 = vrot.slane %v38_v52, %v3362_v49  ;;  %v2780_v55 = vld [vmem:[%s4125_s1 + $0x1c0] ss:$8 sps:$4 sm:$0xff]   ;;  %v2783_v57 = vld [vmem:[%s4125_s1 + $0x1b4] ss:$8 sps:$4 sm:$0xff]   ;;  %v2786_v61 = vld [vmem:[%s4125_s1 + $0x1b0] ss:$8 sps:$4 sm:$0xff]   ;;  %v298_v1 = vcombine.high %v38_v52, %v38_v52 }
  0x13   :  { %1701 = vmatpush1.bf16.msra.mxu0 %v2737_v18  ;;  %v2787_v62 = vld [vmem:[%s4125_s1 + $0xa4] ss:$8 sps:$4 sm:$0xff]   ;;  %v2791_v2 = vld [vmem:[%s4125_s1 + $0xa0] ss:$8 sps:$4 sm:$0xff]   ;;  %v2793_v4 = vld [vmem:[%s4125_s1 + $0x94] ss:$8 sps:$4 sm:$0xff]  }
  0x14   :  { %1742 = vmatpush1.bf16.msra.mxu1 %v2738_v19  ;;  %1702 = vmatprep.subr.bf16.mxu0 %v2739_v20  ;;  %v313_v58 = vcombine.high %v305_v54, %v305_v54  ;;  %v2789_v63 = vld [vmem:[%s4125_s1 + $0x1a4] ss:$8 sps:$4 sm:$0xff]   ;;  %v2792_v3 = vld [vmem:[%s4125_s1 + $0x1a0] ss:$8 sps:$4 sm:$0xff]   ;;  %v2795_v5 = vld [vmem:[%s4125_s1 + $0x194] ss:$8 sps:$4 sm:$0xff]   ;;  %v3412_v6 = vrot.slane %v298_v1, %v3362_v49  ;;  %v321_v13 = vrot.slane %v305_v54, %v3362_v49 }
  0x15   :  { %1743 = vmatprep.subr.bf16.mxu1 %v2741_v21  ;;  %v2797_v7 = vld [vmem:[%s4125_s1 + $0x90] ss:$8 sps:$4 sm:$0xff]   ;;  %v2799_v9 = vld [vmem:[%s4125_s1 + $0x84] ss:$8 sps:$4 sm:$0xff]   ;;  %v2803_v12 = vld [vmem:[%s4125_s1 + $0x80] ss:$8 sps:$4 sm:$0xff]  }
  0x16   :  { %v335_v60 = vrot.slane %v313_v58, %v3362_v49  ;;  %v2798_v8 = vld [vmem:[%s4125_s1 + $0x190] ss:$8 sps:$4 sm:$0xff]   ;;  %v2801_v10 = vld [vmem:[%s4125_s1 + $0x184] ss:$8 sps:$4 sm:$0xff]   ;;  %v314_v11 = vcombine.high %v3412_v6, %v3412_v6  ;;  %v2804_v14 = vld [vmem:[%s4125_s1 + $0x180] ss:$8 sps:$4 sm:$0xff]   ;;  %v343_v18 = vcombine.high %v321_v13, %v321_v13 }
  0x17   :  { %1703 = vmatpush1.bf16.msra.mxu0 %v2743_v22  ;;  %v2808_v15 = vld [vmem:[%s4125_s1 + $0x274] ss:$8 sps:$4 sm:$0xff]   ;;  %v2806_v19 = vld [vmem:[%s4125_s1 + $0x270] ss:$8 sps:$4 sm:$0xff]   ;;  %v2814_v21 = vld [vmem:[%s4125_s1 + $0x264] ss:$8 sps:$4 sm:$0xff]  }
  0x18   :  { %1744 = vmatpush1.bf16.msra.mxu1 %v2744_v23  ;;  %1704 = vmatprep.subr.bf16.mxu0 %v2745_v24  ;;  %v345_v0 = vcombine.high %v335_v60, %v335_v60  ;;  %v2811_v16 = vld [vmem:[%s4125_s1 + $0x374] ss:$8 sps:$4 sm:$0xff]   ;;  %v342_v17 = vrot.slane %v314_v11, %v3362_v49  ;;  %v2809_v20 = vld [vmem:[%s4125_s1 + $0x370] ss:$8 sps:$4 sm:$0xff]   ;;  %v2817_v22 = vld [vmem:[%s4125_s1 + $0x364] ss:$8 sps:$4 sm:$0xff]  }
  0x19   :  { %1745 = vmatprep.subr.bf16.mxu1 %v2747_v25  ;;  %1724 = vmatprep.mubr.bf16.mxu0 %v335_v60  ;;  %v2812_v24 = vld [vmem:[%s4125_s1 + $0x260] ss:$8 sps:$4 sm:$0xff]   ;;  %v2830_v36 = vld [vmem:[%s4125_s1 + $0x230] ss:$8 sps:$4 sm:$0xff]   ;;  %v2838_v38 = vld [vmem:[%s4125_s1 + $0x224] ss:$8 sps:$4 sm:$0xff]  }
  0x1a   :  { %1765 = vmatprep.mubr.bf16.mxu1 %v345_v0  ;;  %v346_v23 = vcombine.high %v342_v17, %v342_v17  ;;  %v2815_v25 = vld [vmem:[%s4125_s1 + $0x360] ss:$8 sps:$4 sm:$0xff]   ;;  %v2833_v37 = vld [vmem:[%s4125_s1 + $0x330] ss:$8 sps:$4 sm:$0xff]   ;;  %v2844_v42 = vld [vmem:[%s4125_s1 + $0x214] ss:$8 sps:$4 sm:$0xff]  }
  0x1b   :  { %1705 = vmatpush1.bf16.msra.mxu0 %v2749_v26  ;;  %v2820_v26 = vld [vmem:[%s4125_s1 + $0x254] ss:$8 sps:$4 sm:$0xff]   ;;  %v2857_v54 = vld [vmem:[%s4125_s1 + $0x3f0] ss:$8 sps:$4 sm:$0xff]   ;;  %v2863_v58 = vld [vmem:[%s4125_s1 + $0x3e0] ss:$8 sps:$4 sm:$0xff]  }
  0x1c   :  { %1746 = vmatpush1.bf16.msra.mxu1 %v2750_v27  ;;  %1706 = vmatprep.subr.bf16.mxu0 %v2751_v28  ;;  %v2823_v27 = vld [vmem:[%s4125_s1 + $0x354] ss:$8 sps:$4 sm:$0xff]   ;;  %v2818_v28 = vld [vmem:[%s4125_s1 + $0x250] ss:$8 sps:$4 sm:$0xff]   ;;  %v2877_v0 = vld [vmem:[%s4125_s1 + $0x3c4] ss:$8 sps:$4 sm:$0xff]  }
  0x1d   :  { %1747 = vmatprep.subr.bf16.mxu1 %v2753_v29  ;;  %v2821_v29 = vld [vmem:[%s4125_s1 + $0x350] ss:$8 sps:$4 sm:$0xff]   ;;  %v2847_v43 = vld [vmem:[%s4125_s1 + $0x314] ss:$8 sps:$4 sm:$0xff]   ;;  %v2872_v1 = vld [vmem:[%s4125_s1 + $0x2c0] ss:$8 sps:$4 sm:$0xff]  }
  0x1e   :  { %v2859_v52 = vld [vmem:[%s4125_s1 + $0x3f4] ss:$8 sps:$4 sm:$0xff]   ;;  %v2887_v11 = vld [vmem:[%s4125_s1 + $0x3a0] ss:$8 sps:$4 sm:$0xff]  }
  0x1f   :  { %1707 = vmatpush1.bf16.msra.mxu0 %v2755_v30  ;;  %v2826_v30 = vld [vmem:[%s4125_s1 + $0x244] ss:$8 sps:$4 sm:$0xff]   ;;  %v2871_v60 = vld [vmem:[%s4125_s1 + $0x3d4] ss:$8 sps:$4 sm:$0xff]  }
  0x20   :  { %1748 = vmatpush1.bf16.msra.mxu1 %v2756_v31  ;;  %1708 = vmatprep.subr.bf16.mxu0 %v2757_v32  ;;  %v2829_v31 = vld [vmem:[%s4125_s1 + $0x344] ss:$8 sps:$4 sm:$0xff]   ;;  %v2824_v32 = vld [vmem:[%s4125_s1 + $0x240] ss:$8 sps:$4 sm:$0xff]  }
  0x21   :  { %1749 = vmatprep.subr.bf16.mxu1 %v2759_v33  ;;  %v2827_v33 = vld [vmem:[%s4125_s1 + $0x340] ss:$8 sps:$4 sm:$0xff]  }
  0x23   :  { %1709 = vmatpush2.bf16.msra.mxu0 %v2761_v34  ;;  %v2832_v34 = vld [vmem:[%s4125_s1 + $0x234] ss:$8 sps:$4 sm:$0xff]  }
  0x24   :  { %1750 = vmatpush2.bf16.msra.mxu1 %v2762_v35  ;;  %1710 = vmatprep.subr.bf16.mxu0 %v2763_v39  ;;  %v2835_v35 = vld [vmem:[%s4125_s1 + $0x334] ss:$8 sps:$4 sm:$0xff]   ;;  %v2841_v39 = vld [vmem:[%s4125_s1 + $0x324] ss:$8 sps:$4 sm:$0xff]  }
  0x25   :  { %1751 = vmatprep.subr.bf16.mxu1 %v2765_v40  ;;  %v2836_v40 = vld [vmem:[%s4125_s1 + $0x220] ss:$8 sps:$4 sm:$0xff]  }
  0x27   :  { %1711 = vmatpush2.bf16.msra.mxu0 %v2767_v41  ;;  %v2839_v41 = vld [vmem:[%s4125_s1 + $0x320] ss:$8 sps:$4 sm:$0xff]  }
  0x28   :  { %1752 = vmatpush2.bf16.msra.mxu1 %v2768_v44  ;;  %1712 = vmatprep.subr.bf16.mxu0 %v2769_v45  ;;  %v2842_v44 = vld [vmem:[%s4125_s1 + $0x210] ss:$8 sps:$4 sm:$0xff]  }
  0x29   :  { %1753 = vmatprep.subr.bf16.mxu1 %v2771_v46  ;;  %v2845_v45 = vld [vmem:[%s4125_s1 + $0x310] ss:$8 sps:$4 sm:$0xff]   ;;  %v2850_v46 = vld [vmem:[%s4125_s1 + $0x204] ss:$8 sps:$4 sm:$0xff]  }
  0x2b   :  { %1713 = vmatpush2.bf16.msra.mxu0 %v2773_v47  ;;  %v2853_v47 = vld [vmem:[%s4125_s1 + $0x304] ss:$8 sps:$4 sm:$0xff]  }
  0x2c   :  { %1754 = vmatpush2.bf16.msra.mxu1 %v2774_v48  ;;  %1714 = vmatprep.subr.bf16.mxu0 %v2775_v50  ;;  %v2848_v48 = vld [vmem:[%s4125_s1 + $0x200] ss:$8 sps:$4 sm:$0xff]  }
  0x2d   :  { %1755 = vmatprep.subr.bf16.mxu1 %v2777_v51  ;;  %v2851_v50 = vld [vmem:[%s4125_s1 + $0x300] ss:$8 sps:$4 sm:$0xff]   ;;  %v2856_v51 = vld [vmem:[%s4125_s1 + $0x2f4] ss:$8 sps:$4 sm:$0xff]  }
  0x2f   :  { %1715 = vmatpush2.bf16.msra.mxu0 %v2779_v53  ;;  %v2854_v53 = vld [vmem:[%s4125_s1 + $0x2f0] ss:$8 sps:$4 sm:$0xff]  }
  0x30   :  { %1756 = vmatpush2.bf16.msra.mxu1 %v2780_v55  ;;  %1716 = vmatprep.subr.bf16.mxu0 %v2781_v56  ;;  %v2862_v55 = vld [vmem:[%s4125_s1 + $0x2e4] ss:$8 sps:$4 sm:$0xff]  }
  0x31   :  { %1757 = vmatprep.subr.bf16.mxu1 %v2783_v57  ;;  %v2865_v56 = vld [vmem:[%s4125_s1 + $0x3e4] ss:$8 sps:$4 sm:$0xff]   ;;  %v2860_v57 = vld [vmem:[%s4125_s1 + $0x2e0] ss:$8 sps:$4 sm:$0xff]  }
  0x33   :  { %1717 = vmatpush2.bf16.msra.mxu0 %v2785_v59  ;;  %v2868_v59 = vld [vmem:[%s4125_s1 + $0x2d4] ss:$8 sps:$4 sm:$0xff]  }
  0x34   :  { %1758 = vmatpush2.bf16.msra.mxu1 %v2786_v61  ;;  %1718 = vmatprep.subr.bf16.mxu0 %v2787_v62  ;;  %v2866_v61 = vld [vmem:[%s4125_s1 + $0x2d0] ss:$8 sps:$4 sm:$0xff]  }
  0x35   :  { %1759 = vmatprep.subr.bf16.mxu1 %v2789_v63  ;;  %v2869_v62 = vld [vmem:[%s4125_s1 + $0x3d0] ss:$8 sps:$4 sm:$0xff]   ;;  %v2874_v63 = vld [vmem:[%s4125_s1 + $0x2c4] ss:$8 sps:$4 sm:$0xff]  }
  0x37   :  { %1719 = vmatpush2.bf16.msra.mxu0 %v2791_v2  ;;  %v2875_v2 = vld [vmem:[%s4125_s1 + $0x3c0] ss:$8 sps:$4 sm:$0xff]  }
  0x38   :  { %1760 = vmatpush2.bf16.msra.mxu1 %v2792_v3  ;;  %1720 = vmatprep.subr.bf16.mxu0 %v2793_v4  ;;  %v2880_v3 = vld [vmem:[%s4125_s1 + $0x2b4] ss:$8 sps:$4 sm:$0xff]  }
  0x39   :  { %1761 = vmatprep.subr.bf16.mxu1 %v2795_v5  ;;  %v2883_v4 = vld [vmem:[%s4125_s1 + $0x3b4] ss:$8 sps:$4 sm:$0xff]   ;;  %v2878_v5 = vld [vmem:[%s4125_s1 + $0x2b0] ss:$8 sps:$4 sm:$0xff]  }
  0x3b   :  { %1721 = vmatpush2.bf16.msra.mxu0 %v2797_v7  ;;  %v2881_v7 = vld [vmem:[%s4125_s1 + $0x3b0] ss:$8 sps:$4 sm:$0xff]  }
  0x3c   :  { %1762 = vmatpush2.bf16.msra.mxu1 %v2798_v8  ;;  %1722 = vmatprep.subr.bf16.mxu0 %v2799_v9  ;;  %v2886_v8 = vld [vmem:[%s4125_s1 + $0x2a4] ss:$8 sps:$4 sm:$0xff]  }
  0x3d   :  { %1763 = vmatprep.subr.bf16.mxu1 %v2801_v10  ;;  %v2889_v9 = vld [vmem:[%s4125_s1 + $0x3a4] ss:$8 sps:$4 sm:$0xff]   ;;  %v2884_v10 = vld [vmem:[%s4125_s1 + $0x2a0] ss:$8 sps:$4 sm:$0xff]  }
  0x3f   :  { %1723 = vmatpush2.bf16.msra.mxu0 %v2803_v12  ;;  %v2892_v12 = vld [vmem:[%s4125_s1 + $0x294] ss:$8 sps:$4 sm:$0xff]  }
  0x40   :  { %1764 = vmatpush2.bf16.msra.mxu1 %v2804_v14  ;;  %1774 = vmatprep.subr.bf16.mxu0 %v2808_v15  ;;  %v2890_v14 = vld [vmem:[%s4125_s1 + $0x290] ss:$8 sps:$4 sm:$0xff]  }
  0x41   :  { %1815 = vmatprep.subr.bf16.mxu1 %v2811_v16  ;;  %v2893_v15 = vld [vmem:[%s4125_s1 + $0x390] ss:$8 sps:$4 sm:$0xff]   ;;  %v2898_v16 = vld [vmem:[%s4125_s1 + $0x284] ss:$8 sps:$4 sm:$0xff]  }
  0x42   :  { %1725 = vmatmul.mubr.bf16.vlgmr.msra.gmra.mxu0 %v321_v13  ;;  %v2895_v13 = vld [vmem:[%s4125_s1 + $0x394] ss:$8 sps:$4 sm:$0xff]  }
  0x43   :  { %1766 = vmatmul.mubr.bf16.vlgmr.msra.gmra.mxu1 %v343_v18  ;;  %1775 = vmatpush1.bf16.msra.mxu0 %v2806_v19  ;;  %v2896_v18 = vld [vmem:[%s4125_s1 + $0x280] ss:$8 sps:$4 sm:$0xff]   ;;  %v328_v19 = vrot.slane %v3412_v6, %v3362_v49  ;;  %v2902_v6 = vld [vmem:[%s4125_s1 + $0x470] ss:$8 sps:$4 sm:$0xff]  }
  0x44   :  { %1816 = vmatpush1.bf16.msra.mxu1 %v2809_v20  ;;  %1776 = vmatprep.subr.bf16.mxu0 %v2814_v21  ;;  %v2899_v20 = vld [vmem:[%s4125_s1 + $0x380] ss:$8 sps:$4 sm:$0xff]   ;;  %v2904_v21 = vld [vmem:[%s4125_s1 + $0x474] ss:$8 sps:$4 sm:$0xff]  }
  0x45   :  { %1817 = vmatprep.subr.bf16.mxu1 %v2817_v22  ;;  %1806 = vmatprep.mubr.bf16.mxu0 %v342_v17  ;;  %v2901_v17 = vld [vmem:[%s4125_s1 + $0x384] ss:$8 sps:$4 sm:$0xff]   ;;  %v2907_v22 = vld [vmem:[%s4125_s1 + $0x574] ss:$8 sps:$4 sm:$0xff]  }
  0x46   :  { %1847 = vmatprep.mubr.bf16.mxu1 %v346_v23  ;;  %v344_v23 = vcombine.high %v328_v19, %v328_v19 }
  0x47   :  { %1777 = vmatpush1.bf16.msra.mxu0 %v2812_v24  ;;  %v2905_v24 = vld [vmem:[%s4125_s1 + $0x570] ss:$8 sps:$4 sm:$0xff]  }
  0x48   :  { %1818 = vmatpush1.bf16.msra.mxu1 %v2815_v25  ;;  %1778 = vmatprep.subr.bf16.mxu0 %v2820_v26  ;;  %v3645_v25 = vld [vmem:[%s4124_s0 + $0x8] sm:$0xff] }
  0x49   :  { %1819 = vmatprep.subr.bf16.mxu1 %v2823_v27  ;;  %v2910_v26 = vld [vmem:[%s4125_s1 + $0x464] ss:$8 sps:$4 sm:$0xff]  }
  0x4a   :  { %v2913_v27 = vld [vmem:[%s4125_s1 + $0x564] ss:$8 sps:$4 sm:$0xff]  }
  0x4b   :  { %1779 = vmatpush1.bf16.msra.mxu0 %v2818_v28  ;;  %v3655_v28 = vrot.slane %v3645_v25, %v3362_v49 }
  0x4c   :  { %1820 = vmatpush1.bf16.msra.mxu1 %v2821_v29  ;;  %1780 = vmatprep.subr.bf16.mxu0 %v2826_v30  ;;  %v2908_v30 = vld [vmem:[%s4125_s1 + $0x460] ss:$8 sps:$4 sm:$0xff]  }
  0x4d   :  { %1821 = vmatprep.subr.bf16.mxu1 %v2829_v31  ;;  %v362_v29 = vcombine.high %v3655_v28, %v3655_v28  ;;  %v2911_v31 = vld [vmem:[%s4125_s1 + $0x560] ss:$8 sps:$4 sm:$0xff]  }
  0x4f   :  { %1781 = vmatpush1.bf16.msra.mxu0 %v2824_v32  ;;  %v2916_v32 = vld [vmem:[%s4125_s1 + $0x454] ss:$8 sps:$4 sm:$0xff]  }
  0x50   :  { %1822 = vmatpush1.bf16.msra.mxu1 %v2827_v33  ;;  %1782 = vmatprep.subr.bf16.mxu0 %v2832_v34  ;;  %v2919_v33 = vld [vmem:[%s4125_s1 + $0x554] ss:$8 sps:$4 sm:$0xff]   ;;  %v384_v34 = vrot.slane %v362_v29, %v3362_v49 }
  0x51   :  { %1823 = vmatprep.subr.bf16.mxu1 %v2835_v35 }
  0x52   :  { %v394_v35 = vcombine.high %v384_v34, %v384_v34 }
  0x53   :  { %1783 = vmatpush1.bf16.msra.mxu0 %v2830_v36  ;;  %v2914_v36 = vld [vmem:[%s4125_s1 + $0x450] ss:$8 sps:$4 sm:$0xff]  }
  0x54   :  { %1824 = vmatpush1.bf16.msra.mxu1 %v2833_v37  ;;  %1784 = vmatprep.subr.bf16.mxu0 %v2838_v38  ;;  %v2917_v37 = vld [vmem:[%s4125_s1 + $0x550] ss:$8 sps:$4 sm:$0xff]   ;;  %v2922_v38 = vld [vmem:[%s4125_s1 + $0x444] ss:$8 sps:$4 sm:$0xff]  }
  0x55   :  { %1825 = vmatprep.subr.bf16.mxu1 %v2841_v39  ;;  %v2925_v39 = vld [vmem:[%s4125_s1 + $0x544] ss:$8 sps:$4 sm:$0xff]  }
  0x57   :  { %1785 = vmatpush1.bf16.msra.mxu0 %v2836_v40  ;;  %v2920_v40 = vld [vmem:[%s4125_s1 + $0x440] ss:$8 sps:$4 sm:$0xff]  }
  0x58   :  { %1826 = vmatpush1.bf16.msra.mxu1 %v2839_v41  ;;  %1786 = vmatprep.subr.bf16.mxu0 %v2844_v42  ;;  %v2923_v41 = vld [vmem:[%s4125_s1 + $0x540] ss:$8 sps:$4 sm:$0xff]   ;;  %v2928_v42 = vld [vmem:[%s4125_s1 + $0x434] ss:$8 sps:$4 sm:$0xff]  }
  0x59   :  { %1827 = vmatprep.subr.bf16.mxu1 %v2847_v43  ;;  %v2931_v43 = vld [vmem:[%s4125_s1 + $0x534] ss:$8 sps:$4 sm:$0xff]  }
  0x5b   :  { %1787 = vmatpush1.bf16.msra.mxu0 %v2842_v44  ;;  %v2926_v44 = vld [vmem:[%s4125_s1 + $0x430] ss:$8 sps:$4 sm:$0xff]  }
  0x5c   :  { %1828 = vmatpush1.bf16.msra.mxu1 %v2845_v45  ;;  %1788 = vmatprep.subr.bf16.mxu0 %v2850_v46  ;;  %v2929_v45 = vld [vmem:[%s4125_s1 + $0x530] ss:$8 sps:$4 sm:$0xff]   ;;  %v2934_v46 = vld [vmem:[%s4125_s1 + $0x424] ss:$8 sps:$4 sm:$0xff]  }
  0x5d   :  { %1829 = vmatprep.subr.bf16.mxu1 %v2853_v47  ;;  %v2937_v47 = vld [vmem:[%s4125_s1 + $0x524] ss:$8 sps:$4 sm:$0xff]  }
  0x5f   :  { %1789 = vmatpush1.bf16.msra.mxu0 %v2848_v48  ;;  %v2932_v48 = vld [vmem:[%s4125_s1 + $0x420] ss:$8 sps:$4 sm:$0xff]  }
  0x60   :  { %1830 = vmatpush1.bf16.msra.mxu1 %v2851_v50  ;;  %1790 = vmatprep.subr.bf16.mxu0 %v2856_v51  ;;  %v2935_v50 = vld [vmem:[%s4125_s1 + $0x520] ss:$8 sps:$4 sm:$0xff]   ;;  %v2940_v51 = vld [vmem:[%s4125_s1 + $0x414] ss:$8 sps:$4 sm:$0xff]  }
  0x61   :  { %1831 = vmatprep.subr.bf16.mxu1 %v2859_v52  ;;  %v2943_v52 = vld [vmem:[%s4125_s1 + $0x514] ss:$8 sps:$4 sm:$0xff]  }
  0x63   :  { %1791 = vmatpush2.bf16.msra.mxu0 %v2854_v53  ;;  %v2938_v53 = vld [vmem:[%s4125_s1 + $0x410] ss:$8 sps:$4 sm:$0xff]  }
  0x64   :  { %1832 = vmatpush2.bf16.msra.mxu1 %v2857_v54  ;;  %1792 = vmatprep.subr.bf16.mxu0 %v2862_v55  ;;  %v2941_v54 = vld [vmem:[%s4125_s1 + $0x510] ss:$8 sps:$4 sm:$0xff]   ;;  %v2946_v55 = vld [vmem:[%s4125_s1 + $0x404] ss:$8 sps:$4 sm:$0xff]  }
  0x65   :  { %1833 = vmatprep.subr.bf16.mxu1 %v2865_v56  ;;  %v2949_v56 = vld [vmem:[%s4125_s1 + $0x504] ss:$8 sps:$4 sm:$0xff]  }
  0x67   :  { %1793 = vmatpush2.bf16.msra.mxu0 %v2860_v57  ;;  %v2944_v57 = vld [vmem:[%s4125_s1 + $0x400] ss:$8 sps:$4 sm:$0xff]  }
  0x68   :  { %1834 = vmatpush2.bf16.msra.mxu1 %v2863_v58  ;;  %1794 = vmatprep.subr.bf16.mxu0 %v2868_v59  ;;  %v2947_v58 = vld [vmem:[%s4125_s1 + $0x500] ss:$8 sps:$4 sm:$0xff]   ;;  %v2952_v59 = vld [vmem:[%s4125_s1 + $0x4f4] ss:$8 sps:$4 sm:$0xff]  }
  0x69   :  { %1835 = vmatprep.subr.bf16.mxu1 %v2871_v60  ;;  %v2955_v60 = vld [vmem:[%s4125_s1 + $0x5f4] ss:$8 sps:$4 sm:$0xff]  }
  0x6b   :  { %1795 = vmatpush2.bf16.msra.mxu0 %v2866_v61  ;;  %v2950_v61 = vld [vmem:[%s4125_s1 + $0x4f0] ss:$8 sps:$4 sm:$0xff]  }
  0x6c   :  { %1836 = vmatpush2.bf16.msra.mxu1 %v2869_v62  ;;  %1796 = vmatprep.subr.bf16.mxu0 %v2874_v63  ;;  %v2953_v62 = vld [vmem:[%s4125_s1 + $0x5f0] ss:$8 sps:$4 sm:$0xff]   ;;  %v2958_v63 = vld [vmem:[%s4125_s1 + $0x4e4] ss:$8 sps:$4 sm:$0xff]  }
  0x6d   :  { %1837 = vmatprep.subr.bf16.mxu1 %v2877_v0  ;;  %v2961_v0 = vld [vmem:[%s4125_s1 + $0x5e4] ss:$8 sps:$4 sm:$0xff]  }
  0x6f   :  { %1797 = vmatpush2.bf16.msra.mxu0 %v2872_v1  ;;  %v2956_v1 = vld [vmem:[%s4125_s1 + $0x4e0] ss:$8 sps:$4 sm:$0xff]  }
  0x70   :  { %1838 = vmatpush2.bf16.msra.mxu1 %v2875_v2  ;;  %1798 = vmatprep.subr.bf16.mxu0 %v2880_v3  ;;  %v2959_v2 = vld [vmem:[%s4125_s1 + $0x5e0] ss:$8 sps:$4 sm:$0xff]   ;;  %v2964_v3 = vld [vmem:[%s4125_s1 + $0x4d4] ss:$8 sps:$4 sm:$0xff]  }
  0x71   :  { %1839 = vmatprep.subr.bf16.mxu1 %v2883_v4  ;;  %v2967_v4 = vld [vmem:[%s4125_s1 + $0x5d4] ss:$8 sps:$4 sm:$0xff]  }
  0x73   :  { %1799 = vmatpush2.bf16.msra.mxu0 %v2878_v5  ;;  %v2962_v5 = vld [vmem:[%s4125_s1 + $0x4d0] ss:$8 sps:$4 sm:$0xff]  }
  0x74   :  { %1840 = vmatpush2.bf16.msra.mxu1 %v2881_v7  ;;  %1800 = vmatprep.subr.bf16.mxu0 %v2886_v8  ;;  %v2965_v7 = vld [vmem:[%s4125_s1 + $0x5d0] ss:$8 sps:$4 sm:$0xff]   ;;  %v2970_v8 = vld [vmem:[%s4125_s1 + $0x4c4] ss:$8 sps:$4 sm:$0xff]  }
  0x75   :  { %1841 = vmatprep.subr.bf16.mxu1 %v2889_v9  ;;  %v2973_v9 = vld [vmem:[%s4125_s1 + $0x5c4] ss:$8 sps:$4 sm:$0xff]  }
  0x77   :  { %1801 = vmatpush2.bf16.msra.mxu0 %v2884_v10  ;;  %v2968_v10 = vld [vmem:[%s4125_s1 + $0x4c0] ss:$8 sps:$4 sm:$0xff]  }
  0x78   :  { %1842 = vmatpush2.bf16.msra.mxu1 %v2887_v11  ;;  %1802 = vmatprep.subr.bf16.mxu0 %v2892_v12  ;;  %v2971_v11 = vld [vmem:[%s4125_s1 + $0x5c0] ss:$8 sps:$4 sm:$0xff]   ;;  %v2976_v12 = vld [vmem:[%s4125_s1 + $0x4b4] ss:$8 sps:$4 sm:$0xff]  }
  0x79   :  { %1843 = vmatprep.subr.bf16.mxu1 %v2895_v13  ;;  %v2979_v13 = vld [vmem:[%s4125_s1 + $0x5b4] ss:$8 sps:$4 sm:$0xff]  }
  0x7b   :  { %1803 = vmatpush2.bf16.msra.mxu0 %v2890_v14  ;;  %v2974_v14 = vld [vmem:[%s4125_s1 + $0x4b0] ss:$8 sps:$4 sm:$0xff]  }
  0x7c   :  { %1844 = vmatpush2.bf16.msra.mxu1 %v2893_v15  ;;  %1804 = vmatprep.subr.bf16.mxu0 %v2898_v16  ;;  %v2977_v15 = vld [vmem:[%s4125_s1 + $0x5b0] ss:$8 sps:$4 sm:$0xff]   ;;  %v2982_v16 = vld [vmem:[%s4125_s1 + $0x4a4] ss:$8 sps:$4 sm:$0xff]  }
  0x7d   :  { %1845 = vmatprep.subr.bf16.mxu1 %v2901_v17  ;;  %v2985_v17 = vld [vmem:[%s4125_s1 + $0x5a4] ss:$8 sps:$4 sm:$0xff]  }
  0x7f   :  { %1805 = vmatpush2.bf16.msra.mxu0 %v2896_v18  ;;  %v2980_v18 = vld [vmem:[%s4125_s1 + $0x4a0] ss:$8 sps:$4 sm:$0xff]  }
  0x80   :  { %1846 = vmatpush2.bf16.msra.mxu1 %v2899_v20  ;;  %1856 = vmatprep.subr.bf16.mxu0 %v2904_v21  ;;  %v347_v20 = vcombine.high %v3645_v25, %v3645_v25  ;;  %v2988_v21 = vld [vmem:[%s4125_s1 + $0x494] ss:$8 sps:$4 sm:$0xff]  }
  0x81   :  { %1897 = vmatprep.subr.bf16.mxu1 %v2907_v22  ;;  %v2991_v22 = vld [vmem:[%s4125_s1 + $0x594] ss:$8 sps:$4 sm:$0xff]  }
  0x82   :  { %1807 = vmatmul.mubr.bf16.vlgmr.msra.gmra.mxu0 %v328_v19  ;;  %v2983_v19 = vld [vmem:[%s4125_s1 + $0x5a0] ss:$8 sps:$4 sm:$0xff]  }
  0x83   :  { %1848 = vmatmul.mubr.bf16.vlgmr.msra.gmra.mxu1 %v344_v23  ;;  %1857 = vmatpush1.bf16.msra.mxu0 %v2902_v6  ;;  %v2986_v23 = vld [vmem:[%s4125_s1 + $0x490] ss:$8 sps:$4 sm:$0xff]  }
  0x84   :  { %1898 = vmatpush1.bf16.msra.mxu1 %v2905_v24  ;;  %1858 = vmatprep.subr.bf16.mxu0 %v2910_v26  ;;  %v2989_v6 = vld [vmem:[%s4125_s1 + $0x590] ss:$8 sps:$4 sm:$0xff]   ;;  %v3825_v24 = vrot.slane %v347_v20, %v3362_v49 }
  0x85   :  { %1899 = vmatprep.subr.bf16.mxu1 %v2913_v27  ;;  %1888 = vmatprep.mubr.bf16.mxu0 %v384_v34 }
  0x86   :  { %1929 = vmatprep.mubr.bf16.mxu1 %v394_v35 }
  0x87   :  { %1859 = vmatpush1.bf16.msra.mxu0 %v2908_v30 }
  0x88   :  { %1900 = vmatpush1.bf16.msra.mxu1 %v2911_v31  ;;  %1860 = vmatprep.subr.bf16.mxu0 %v2916_v32 }
  0x89   :  { %1901 = vmatprep.subr.bf16.mxu1 %v2919_v33 }
  0x8b   :  { %1861 = vmatpush1.bf16.msra.mxu0 %v2914_v36 }
  0x8c   :  { %1902 = vmatpush1.bf16.msra.mxu1 %v2917_v37  ;;  %1862 = vmatprep.subr.bf16.mxu0 %v2922_v38 }
  0x8d   :  { %1903 = vmatprep.subr.bf16.mxu1 %v2925_v39 }
  0x8f   :  { %1863 = vmatpush1.bf16.msra.mxu0 %v2920_v40 }
  0x90   :  { %1904 = vmatpush1.bf16.msra.mxu1 %v2923_v41  ;;  %1864 = vmatprep.subr.bf16.mxu0 %v2928_v42 }
  0x91   :  { %1905 = vmatprep.subr.bf16.mxu1 %v2931_v43 }
  0x93   :  { %1865 = vmatpush1.bf16.msra.mxu0 %v2926_v44 }
  0x94   :  { %1906 = vmatpush1.bf16.msra.mxu1 %v2929_v45  ;;  %1866 = vmatprep.subr.bf16.mxu0 %v2934_v46 }
  0x95   :  { %1907 = vmatprep.subr.bf16.mxu1 %v2937_v47 }
  0x97   :  { %1867 = vmatpush1.bf16.msra.mxu0 %v2932_v48 }
  0x98   :  { %1908 = vmatpush1.bf16.msra.mxu1 %v2935_v50  ;;  %1868 = vmatprep.subr.bf16.mxu0 %v2940_v51 }
  0x99   :  { %1909 = vmatprep.subr.bf16.mxu1 %v2943_v52 }
  0x9b   :  { %1869 = vmatpush1.bf16.msra.mxu0 %v2938_v53 }
  0x9c   :  { %1910 = vmatpush1.bf16.msra.mxu1 %v2941_v54  ;;  %1870 = vmatprep.subr.bf16.mxu0 %v2946_v55 }
  0x9d   :  { %1911 = vmatprep.subr.bf16.mxu1 %v2949_v56 }
  0x9f   :  { %1871 = vmatpush1.bf16.msra.mxu0 %v2944_v57 }
  0xa0   :  { %1912 = vmatpush1.bf16.msra.mxu1 %v2947_v58  ;;  %1872 = vmatprep.subr.bf16.mxu0 %v2952_v59 }
  0xa1   :  { %1913 = vmatprep.subr.bf16.mxu1 %v2955_v60 }
  0xa3   :  { %1873 = vmatpush2.bf16.msra.mxu0 %v2950_v61 }
  0xa4   :  { %1914 = vmatpush2.bf16.msra.mxu1 %v2953_v62  ;;  %1874 = vmatprep.subr.bf16.mxu0 %v2958_v63 }
  0xa5   :  { %1915 = vmatprep.subr.bf16.mxu1 %v2961_v0 }
  0xa7   :  { %1875 = vmatpush2.bf16.msra.mxu0 %v2956_v1 }
  0xa8   :  { %1916 = vmatpush2.bf16.msra.mxu1 %v2959_v2  ;;  %1876 = vmatprep.subr.bf16.mxu0 %v2964_v3 }
  0xa9   :  { %1917 = vmatprep.subr.bf16.mxu1 %v2967_v4 }
  0xab   :  { %1877 = vmatpush2.bf16.msra.mxu0 %v2962_v5 }
  0xac   :  { %1918 = vmatpush2.bf16.msra.mxu1 %v2965_v7  ;;  %1878 = vmatprep.subr.bf16.mxu0 %v2970_v8 }
  0xad   :  { %1919 = vmatprep.subr.bf16.mxu1 %v2973_v9 }
  0xaf   :  { %1879 = vmatpush2.bf16.msra.mxu0 %v2968_v10 }
  0xb0   :  { %1920 = vmatpush2.bf16.msra.mxu1 %v2971_v11  ;;  %1880 = vmatprep.subr.bf16.mxu0 %v2976_v12 }
  0xb1   :  { %1921 = vmatprep.subr.bf16.mxu1 %v2979_v13 }
  0xb3   :  { %1881 = vmatpush2.bf16.msra.mxu0 %v2974_v14 }
  0xb4   :  { %1922 = vmatpush2.bf16.msra.mxu1 %v2977_v15  ;;  %1882 = vmatprep.subr.bf16.mxu0 %v2982_v16 }
  0xb5   :  { %1923 = vmatprep.subr.bf16.mxu1 %v2985_v17 }
  0xb7   :  { %1883 = vmatpush2.bf16.msra.mxu0 %v2980_v18 }
  0xb8   :  { %1924 = vmatpush2.bf16.msra.mxu1 %v2983_v19 }
  0xb9   :  { %18 = vsyncpa [#allocation5], 0  ;;  %1884 = vmatprep.subr.bf16.mxu0 %v2988_v21  ;;  %1925 = vmatprep.subr.bf16.mxu1 %v2991_v22  ;;  %v2994_v25 = vld [vmem:[%s4125_s1 + $0x484] ss:$8 sps:$4 sm:$0xff]   ;;  %v363_v27 = vcombine.high %v3825_v24, %v3825_v24  ;;  %v370_v29 = vrot.slane %v3655_v28, %v3362_v49  ;;  %v2992_v30 = vld [vmem:[%s4125_s1 + $0x480] ss:$8 sps:$4 sm:$0xff]  }
  0xba   :  { %v2997_v26 = vld [vmem:[%s4125_s1 + $0x584] ss:$8 sps:$4 sm:$0xff]   ;;  %v2995_v31 = vld [vmem:[%s4125_s1 + $0x580] ss:$8 sps:$4 sm:$0xff]   ;;  %v3000_v32 = vld [vmem:[%s4125_s1 + $0x674] ss:$8 sps:$4 sm:$0xff]  }
  0xbb   :  { %1885 = vmatpush2.bf16.msra.mxu0 %v2986_v23  ;;  %v3003_v28 = vld [vmem:[%s4125_s1 + $0x774] ss:$8 sps:$4 sm:$0xff]   ;;  %v391_v33 = vrot.slane %v363_v27, %v3362_v49  ;;  %v392_v34 = vcombine.high %v370_v29, %v370_v29  ;;  %v2998_v35 = vld [vmem:[%s4125_s1 + $0x670] ss:$8 sps:$4 sm:$0xff]   ;;  %v3006_v37 = vld [vmem:[%s4125_s1 + $0x664] ss:$8 sps:$4 sm:$0xff]  }
  0xbc   :  { %1926 = vmatpush2.bf16.msra.mxu1 %v2989_v6  ;;  %1886 = vmatprep.subr.bf16.mxu0 %v2994_v25  ;;  %v3001_v36 = vld [vmem:[%s4125_s1 + $0x770] ss:$8 sps:$4 sm:$0xff]   ;;  %v3009_v38 = vld [vmem:[%s4125_s1 + $0x764] ss:$8 sps:$4 sm:$0xff]   ;;  %v3004_v40 = vld [vmem:[%s4125_s1 + $0x660] ss:$8 sps:$4 sm:$0xff]  }
  0xbd   :  { %1927 = vmatprep.subr.bf16.mxu1 %v2997_v26  ;;  %v395_v39 = vcombine.high %v391_v33, %v391_v33  ;;  %v3007_v41 = vld [vmem:[%s4125_s1 + $0x760] ss:$8 sps:$4 sm:$0xff]   ;;  %v3012_v42 = vld [vmem:[%s4125_s1 + $0x654] ss:$8 sps:$4 sm:$0xff]   ;;  %v3010_v44 = vld [vmem:[%s4125_s1 + $0x650] ss:$8 sps:$4 sm:$0xff]  }
  0xbe   :  { %v3015_v43 = vld [vmem:[%s4125_s1 + $0x754] ss:$8 sps:$4 sm:$0xff]   ;;  %v3013_v45 = vld [vmem:[%s4125_s1 + $0x750] ss:$8 sps:$4 sm:$0xff]   ;;  %v3018_v46 = vld [vmem:[%s4125_s1 + $0x644] ss:$8 sps:$4 sm:$0xff]  }
  0xbf   :  { %1887 = vmatpush2.bf16.msra.mxu0 %v2992_v30  ;;  %v3021_v47 = vld [vmem:[%s4125_s1 + $0x744] ss:$8 sps:$4 sm:$0xff]   ;;  %v3016_v48 = vld [vmem:[%s4125_s1 + $0x640] ss:$8 sps:$4 sm:$0xff]   ;;  %v3024_v51 = vld [vmem:[%s4125_s1 + $0x634] ss:$8 sps:$4 sm:$0xff]  }
  0xc0   :  { %1928 = vmatpush2.bf16.msra.mxu1 %v2995_v31  ;;  %1938 = vmatprep.subr.bf16.mxu0 %v3000_v32  ;;  %v3019_v50 = vld [vmem:[%s4125_s1 + $0x740] ss:$8 sps:$4 sm:$0xff]   ;;  %v3027_v52 = vld [vmem:[%s4125_s1 + $0x734] ss:$8 sps:$4 sm:$0xff]   ;;  %v3022_v53 = vld [vmem:[%s4125_s1 + $0x630] ss:$8 sps:$4 sm:$0xff]  }
  0xc1   :  { %1979 = vmatprep.subr.bf16.mxu1 %v3003_v28  ;;  %v3025_v54 = vld [vmem:[%s4125_s1 + $0x730] ss:$8 sps:$4 sm:$0xff]   ;;  %v3030_v55 = vld [vmem:[%s4125_s1 + $0x624] ss:$8 sps:$4 sm:$0xff]   ;;  %v3028_v57 = vld [vmem:[%s4125_s1 + $0x620] ss:$8 sps:$4 sm:$0xff]  }
  0xc2   :  { %1889 = vmatmul.mubr.bf16.vlgmr.msra.gmra.mxu0 %v370_v29  ;;  %v3033_v56 = vld [vmem:[%s4125_s1 + $0x724] ss:$8 sps:$4 sm:$0xff]   ;;  %v3031_v58 = vld [vmem:[%s4125_s1 + $0x720] ss:$8 sps:$4 sm:$0xff]   ;;  %v3036_v59 = vld [vmem:[%s4125_s1 + $0x614] ss:$8 sps:$4 sm:$0xff]  }
  0xc3   :  { %1930 = vmatmul.mubr.bf16.vlgmr.msra.gmra.mxu1 %v392_v34  ;;  %1939 = vmatpush1.bf16.msra.mxu0 %v2998_v35  ;;  %v3039_v60 = vld [vmem:[%s4125_s1 + $0x714] ss:$8 sps:$4 sm:$0xff]   ;;  %v3034_v61 = vld [vmem:[%s4125_s1 + $0x610] ss:$8 sps:$4 sm:$0xff]   ;;  %v3042_v63 = vld [vmem:[%s4125_s1 + $0x604] ss:$8 sps:$4 sm:$0xff]   ;;  %v377_v34 = vrot.slane %v3825_v24, %v3362_v49 }
  0xc4   :  { %1980 = vmatpush1.bf16.msra.mxu1 %v3001_v36  ;;  %1940 = vmatprep.subr.bf16.mxu0 %v3006_v37  ;;  %v3037_v62 = vld [vmem:[%s4125_s1 + $0x710] ss:$8 sps:$4 sm:$0xff]   ;;  %v3045_v0 = vld [vmem:[%s4125_s1 + $0x704] ss:$8 sps:$4 sm:$0xff]   ;;  %v3040_v1 = vld [vmem:[%s4125_s1 + $0x600] ss:$8 sps:$4 sm:$0xff]  }
  0xc5   :  { %1981 = vmatprep.subr.bf16.mxu1 %v3009_v38  ;;  %1970 = vmatprep.mubr.bf16.mxu0 %v391_v33  ;;  %v3043_v2 = vld [vmem:[%s4125_s1 + $0x700] ss:$8 sps:$4 sm:$0xff]   ;;  %v3048_v3 = vld [vmem:[%s4125_s1 + $0x6f4] ss:$8 sps:$4 sm:$0xff]   ;;  %v3046_v5 = vld [vmem:[%s4125_s1 + $0x6f0] ss:$8 sps:$4 sm:$0xff]   ;;  %v393_v37 = vcombine.high %v377_v34, %v377_v34 }
  0xc6   :  { %2011 = vmatprep.mubr.bf16.mxu1 %v395_v39  ;;  %v3051_v4 = vld [vmem:[%s4125_s1 + $0x7f4] ss:$8 sps:$4 sm:$0xff]   ;;  %v3049_v7 = vld [vmem:[%s4125_s1 + $0x7f0] ss:$8 sps:$4 sm:$0xff]   ;;  %v3054_v8 = vld [vmem:[%s4125_s1 + $0x6e4] ss:$8 sps:$4 sm:$0xff]  }
  0xc7   :  { %1941 = vmatpush1.bf16.msra.mxu0 %v3004_v40  ;;  %v3057_v9 = vld [vmem:[%s4125_s1 + $0x7e4] ss:$8 sps:$4 sm:$0xff]   ;;  %v3052_v10 = vld [vmem:[%s4125_s1 + $0x6e0] ss:$8 sps:$4 sm:$0xff]   ;;  %v3060_v12 = vld [vmem:[%s4125_s1 + $0x6d4] ss:$8 sps:$4 sm:$0xff]  }
  0xc8   :  { %1982 = vmatpush1.bf16.msra.mxu1 %v3007_v41  ;;  %1942 = vmatprep.subr.bf16.mxu0 %v3012_v42  ;;  %v3055_v11 = vld [vmem:[%s4125_s1 + $0x7e0] ss:$8 sps:$4 sm:$0xff]   ;;  %v3063_v13 = vld [vmem:[%s4125_s1 + $0x7d4] ss:$8 sps:$4 sm:$0xff]   ;;  %v3058_v14 = vld [vmem:[%s4125_s1 + $0x6d0] ss:$8 sps:$4 sm:$0xff]  }
  0xc9   :  { %1983 = vmatprep.subr.bf16.mxu1 %v3015_v43  ;;  %v3061_v15 = vld [vmem:[%s4125_s1 + $0x7d0] ss:$8 sps:$4 sm:$0xff]   ;;  %v3066_v16 = vld [vmem:[%s4125_s1 + $0x6c4] ss:$8 sps:$4 sm:$0xff]   ;;  %v3064_v18 = vld [vmem:[%s4125_s1 + $0x6c0] ss:$8 sps:$4 sm:$0xff]  }
  0xca   :  { %v3069_v17 = vld [vmem:[%s4125_s1 + $0x7c4] ss:$8 sps:$4 sm:$0xff]   ;;  %v3067_v19 = vld [vmem:[%s4125_s1 + $0x7c0] ss:$8 sps:$4 sm:$0xff]   ;;  %v3072_v20 = vld [vmem:[%s4125_s1 + $0x6b4] ss:$8 sps:$4 sm:$0xff]  }
  0xcb   :  { %1943 = vmatpush1.bf16.msra.mxu0 %v3010_v44  ;;  %v3075_v21 = vld [vmem:[%s4125_s1 + $0x7b4] ss:$8 sps:$4 sm:$0xff]   ;;  %v3070_v22 = vld [vmem:[%s4125_s1 + $0x6b0] ss:$8 sps:$4 sm:$0xff]   ;;  %v3078_v6 = vld [vmem:[%s4125_s1 + $0x6a4] ss:$8 sps:$4 sm:$0xff]  }
  0xcc   :  { %1984 = vmatpush1.bf16.msra.mxu1 %v3013_v45  ;;  %1944 = vmatprep.subr.bf16.mxu0 %v3018_v46  ;;  %v3073_v23 = vld [vmem:[%s4125_s1 + $0x7b0] ss:$8 sps:$4 sm:$0xff]   ;;  %v3081_v25 = vld [vmem:[%s4125_s1 + $0x7a4] ss:$8 sps:$4 sm:$0xff]   ;;  %v3076_v26 = vld [vmem:[%s4125_s1 + $0x6a0] ss:$8 sps:$4 sm:$0xff]  }
  0xcd   :  { %1985 = vmatprep.subr.bf16.mxu1 %v3021_v47  ;;  %v3079_v27 = vld [vmem:[%s4125_s1 + $0x7a0] ss:$8 sps:$4 sm:$0xff]   ;;  %v3084_v29 = vld [vmem:[%s4125_s1 + $0x694] ss:$8 sps:$4 sm:$0xff]   ;;  %v3082_v31 = vld [vmem:[%s4125_s1 + $0x690] ss:$8 sps:$4 sm:$0xff]  }
  0xce   :  { %v3087_v30 = vld [vmem:[%s4125_s1 + $0x794] ss:$8 sps:$4 sm:$0xff]   ;;  %v3085_v32 = vld [vmem:[%s4125_s1 + $0x790] ss:$8 sps:$4 sm:$0xff]   ;;  %v3090_v28 = vld [vmem:[%s4125_s1 + $0x684] ss:$8 sps:$4 sm:$0xff]  }
  0xcf   :  { %1945 = vmatpush1.bf16.msra.mxu0 %v3016_v48  ;;  %v3093_v33 = vld [vmem:[%s4125_s1 + $0x784] ss:$8 sps:$4 sm:$0xff]   ;;  %v3088_v35 = vld [vmem:[%s4125_s1 + $0x680] ss:$8 sps:$4 sm:$0xff]   ;;  %v3095_v46 = vld [vmem:[%s4126_s2 + $0x78] sm:$0xff]   ;;  %vm3167_vm0 = vmmov 0  }
  0xd0   :  { %1986 = vmatpush1.bf16.msra.mxu1 %v3019_v50  ;;  %1946 = vmatprep.subr.bf16.mxu0 %v3024_v51  ;;  %v3091_v36 = vld [vmem:[%s4125_s1 + $0x780] ss:$8 sps:$4 sm:$0xff]   ;;  %v3096_v47 = vld [vmem:[%s4126_s2 + $0x38] sm:$0xff]   ;;  %v3097_v51 = vld [vmem:[%s4126_s2 + $0x70] sm:$0xff]   ;;  %vm2230_vm1 = vcmask 261120   ;;  %s3168_s25 = smov [#allocation2]  }
  0xd1   :  { %1987 = vmatprep.subr.bf16.mxu1 %v3027_v52  ;;  %s2353_s26 = sshll.u32 %s3168_s25, 4  ;;  %vm2337_vm2 = vcmask 58368   ;;  %s2354_s26 = int_to_ptr.vmem [resolvable:$true] %s2353_s26 }
  0xd2   :  { %p3126_p1 = scmp.lt.s32.totalorder %s2354_s26, %s2354_s26 }
  0xd3   :  { %1947 = vmatpush1.bf16.msra.mxu0 %v3022_v53  ;;  %v3098_v53 = vld [vmem:[%s4126_s2 + $0x30] sm:$0xff]  }
  0xd4   :  { %1988 = vmatpush1.bf16.msra.mxu1 %v3025_v54  ;;  %1948 = vmatprep.subr.bf16.mxu0 %v3030_v55 }
  0xd5   :  { %1989 = vmatprep.subr.bf16.mxu1 %v3033_v56 }
  0xd7   :  { %1949 = vmatpush1.bf16.msra.mxu0 %v3028_v57 }
  0xd8   :  { %1990 = vmatpush1.bf16.msra.mxu1 %v3031_v58  ;;  %1950 = vmatprep.subr.bf16.mxu0 %v3036_v59 }
  0xd9   :  { %1991 = vmatprep.subr.bf16.mxu1 %v3039_v60  ;;  %v3099_v60 = vld [vmem:[%s4126_s2 + $0x68] sm:$0xff]  }
  0xdb   :  { %1951 = vmatpush1.bf16.msra.mxu0 %v3034_v61 }
  0xdc   :  { %1992 = vmatpush1.bf16.msra.mxu1 %v3037_v62  ;;  %1952 = vmatprep.subr.bf16.mxu0 %v3042_v63  ;;  %v3100_v62 = vld [vmem:[%s4126_s2 + $0x28] sm:$0xff]  }
  0xdd   :  { %1993 = vmatprep.subr.bf16.mxu1 %v3045_v0 }
  0xdf   :  { %1953 = vmatpush1.bf16.msra.mxu0 %v3040_v1  ;;  %v3101_v1 = vld [vmem:[%s4126_s2 + $0x60] sm:$0xff]  }
  0xe0   :  { %1994 = vmatpush1.bf16.msra.mxu1 %v3043_v2  ;;  %1954 = vmatprep.subr.bf16.mxu0 %v3048_v3  ;;  %v3102_v2 = vld [vmem:[%s4126_s2 + $0x20] sm:$0xff]   ;;  %v3103_v3 = vld [vmem:[%s4126_s2 + $0x58] sm:$0xff]  }
  0xe1   :  { %1995 = vmatprep.subr.bf16.mxu1 %v3051_v4  ;;  %v3104_v4 = vld [vmem:[%s4126_s2 + $0x18] sm:$0xff]  }
  0xe3   :  { %1955 = vmatpush2.bf16.msra.mxu0 %v3046_v5  ;;  %v3105_v5 = vld [vmem:[%s4126_s2 + $0x50] sm:$0xff]  }
  0xe4   :  { %1996 = vmatpush2.bf16.msra.mxu1 %v3049_v7  ;;  %1956 = vmatprep.subr.bf16.mxu0 %v3054_v8  ;;  %v3106_v7 = vld [vmem:[%s4126_s2 + $0x10] sm:$0xff]   ;;  %v3107_v8 = vld [vmem:[%s4126_s2 + $0x48] sm:$0xff]  }
  0xe5   :  { %1997 = vmatprep.subr.bf16.mxu1 %v3057_v9  ;;  %v3108_v9 = vld [vmem:[%s4126_s2 + $0x8] sm:$0xff]  }
  0xe7   :  { %1957 = vmatpush2.bf16.msra.mxu0 %v3052_v10  ;;  %v3109_v10 = vld [vmem:[%s4126_s2 + $0x40] sm:$0xff]  }
  0xe8   :  { %1998 = vmatpush2.bf16.msra.mxu1 %v3055_v11  ;;  %1958 = vmatprep.subr.bf16.mxu0 %v3060_v12  ;;  %v3110_v11 = vld [vmem:[%s4126_s2] sm:$0xff]  }
  0xe9   :  { %1999 = vmatprep.subr.bf16.mxu1 %v3063_v13 }
  0xeb   :  { %1959 = vmatpush2.bf16.msra.mxu0 %v3058_v14 }
  0xec   :  { %2000 = vmatpush2.bf16.msra.mxu1 %v3061_v15  ;;  %1960 = vmatprep.subr.bf16.mxu0 %v3066_v16 }
  0xed   :  { %2001 = vmatprep.subr.bf16.mxu1 %v3069_v17 }
  0xef   :  { %1961 = vmatpush2.bf16.msra.mxu0 %v3064_v18 }
  0xf0   :  { %2002 = vmatpush2.bf16.msra.mxu1 %v3067_v19  ;;  %1962 = vmatprep.subr.bf16.mxu0 %v3072_v20 }
  0xf1   :  { %2003 = vmatprep.subr.bf16.mxu1 %v3075_v21 }
  0xf3   :  { %1963 = vmatpush2.bf16.msra.mxu0 %v3070_v22 }
  0xf4   :  { %2004 = vmatpush2.bf16.msra.mxu1 %v3073_v23  ;;  %1964 = vmatprep.subr.bf16.mxu0 %v3078_v6 }
  0xf5   :  { %2005 = vmatprep.subr.bf16.mxu1 %v3081_v25 }
  0xf7   :  { %1965 = vmatpush2.bf16.msra.mxu0 %v3076_v26 }
  0xf8   :  { %2006 = vmatpush2.bf16.msra.mxu1 %v3079_v27  ;;  %1966 = vmatprep.subr.bf16.mxu0 %v3084_v29 }
  0xf9   :  { %2007 = vmatprep.subr.bf16.mxu1 %v3087_v30 }
  0xfb   :  { %1967 = vmatpush2.bf16.msra.mxu0 %v3082_v31 }
  0xfc   :  { %2008 = vmatpush2.bf16.msra.mxu1 %v3085_v32  ;;  %1968 = vmatprep.subr.bf16.mxu0 %v3090_v28 }
  0xfd   :  { %2009 = vmatprep.subr.bf16.mxu1 %v3093_v33 }
  0xff   :  { %1969 = vmatpush2.bf16.msra.mxu0 %v3088_v35 }
 0x100   :  { %2010 = vmatpush2.bf16.msra.mxu1 %v3091_v36  ;;  %2660 = vmatprep.subr.bf16.mxu0 %v3095_v46  ;;  %v3112_v46 = vld [vmem:[%s4128_s4] sm:$0xff]  }
 0x102   :  { %v1726_v38 = vpop.f32.mrf.mxu0  ;;  %1971 = vmatmul.mubr.bf16.vlgmr.msra.gmra.mxu0 %v377_v34 }
 0x103   :  { %v1767_v39 = vpop.f32.mrf.mxu1  ;;  %2012 = vmatmul.mubr.bf16.vlgmr.msra.gmra.mxu1 %v393_v37  ;;  %2661 = vmatpush3.bf16.msra.mxu0 %v3096_v47 }
 0x104   :  { %v1768_v49 = vadd.f32 %v1767_v39, %v1726_v38  ;;  %v1728_v24 = vpop.f32.mrf.mxu0  ;;  %2662 = vmatprep.subr.bf16.mxu0 %v3097_v51 }
 0x105   :  { %v1769_v40 = vpop.f32.mrf.mxu1 }
 0x106   :  { %v1770_v41 = vadd.f32 %v1769_v40, %v1728_v24  ;;  %v1730_v42 = vpop.f32.mrf.mxu0 }
 0x107   :  { %v1771_v43 = vpop.f32.mrf.mxu1  ;;  %2663 = vmatpush3.bf16.msra.mxu0 %v3098_v53 }
 0x108   :  { %v1731_v44 = vpop.f32.mrf.mxu0  ;;  %2664 = vmatprep.subr.bf16.mxu0 %v3099_v60 }
 0x109   :  { %v1772_v45 = vpop.f32.mrf.mxu1  ;;  %v3111_v44 = vld [vmem:[%s4128_s4 + $0x8] sm:$0xff]  }
 0x10a   :  { %v3166_v45 = vmov 0.0  }
 0x10b   :  { %2665 = vmatpush3.bf16.msra.mxu0 %v3100_v62  ;;  %2688 = vmatprep.subr.bf16.mxu1 %v3166_v45 }
 0x10c   :  { %2666 = vmatprep.subr.bf16.mxu0 %v3101_v1  ;;  %2689 = vmatpush3.bf16.msra.mxu1 %v3111_v44 }
 0x10d   :  { %2690 = vmatprep.subr.bf16.mxu1 %v3166_v45  ;;  %2692 = vmatprep.mubr.msk.bf16.mxu1 %vm3167_vm0, %v3166_v45 }
 0x10f   :  { %2667 = vmatpush3.bf16.msra.mxu0 %v3102_v2 }
 0x110   :  { %2668 = vmatprep.subr.bf16.mxu0 %v3103_v3  ;;  %2691 = vmatpush3.bf16.msra.mxu1 %v3112_v46 }
 0x111   :  { %2696 = vmatprep.subr.bf16.mxu1 %v3166_v45 }
 0x113   :  { %2669 = vmatpush3.bf16.msra.mxu0 %v3104_v4 }
 0x114   :  { %2670 = vmatprep.subr.bf16.mxu0 %v3105_v5 }
 0x117   :  { %2671 = vmatpush3.bf16.msra.mxu0 %v3106_v7 }
 0x118   :  { %2672 = vmatprep.subr.bf16.mxu0 %v3107_v8 }
 0x11b   :  { %2673 = vmatpush3.bf16.msra.mxu0 %v3108_v9 }
 0x11c   :  { %2674 = vmatprep.subr.bf16.mxu0 %v3109_v10 }
 0x11f   :  { %2675 = vmatpush3.bf16.msra.mxu0 %v3110_v11 }
 0x142   :  { %v1808_v48 = vpop.f32.mrf.mxu0 }
 0x143   :  { %v1849_v50 = vpop.f32.mrf.mxu1  ;;  %v1809_v52 = vadd.f32 %v1808_v48, %v1768_v49  ;;  %v2635_v48 = vld [vmem:[%s4127_s3] ss:$0 sm:$0xff] }
 0x144   :  { %v1810_v54 = vpop.f32.mrf.mxu0 }
 0x145   :  { %v1851_v55 = vpop.f32.mrf.mxu1  ;;  %v1850_v56 = vadd.f32 %v1849_v50, %v1809_v52  ;;  %v1811_v57 = vadd.f32 %v1810_v54, %v1770_v41 }
 0x146   :  { %v1812_v58 = vpop.f32.mrf.mxu0 }
 0x147   :  { %v1853_v59 = vpop.f32.mrf.mxu1  ;;  %v1852_v61 = vadd.f32 %v1851_v55, %v1811_v57  ;;  %v3114_v58 = vld [vmem:[%s4130_s6] sm:$0xff]  }
 0x148   :  { %v1813_v63 = vpop.f32.mrf.mxu0  ;;  %v2652_v59 = vld [vmem:[%s4129_s5] ss:$0 sm:$0xff] }
 0x149   :  { %v1854_v0 = vpop.f32.mrf.mxu1 }
 0x182   :  { %v1890_v12 = vpop.f32.mrf.mxu0 }
 0x183   :  { %v1931_v13 = vpop.f32.mrf.mxu1  ;;  %v1891_v14 = vadd.f32 %v1890_v12, %v1850_v56  ;;  %v3113_v56 = vld [vmem:[%s4130_s6 + $0x8] sm:$0xff]   ;;  %s3121_s6 = scalar_lea.vmem %s2354_s26, 32 }
 0x184   :  { %v1892_v15 = vpop.f32.mrf.mxu0  ;;  %p3122_p0 = scmp.ne.s32.totalorder %s2354_s26, %s3121_s6  ;;  %p3127_p2 = scmp.lt.s32.totalorder %s3121_s6, %s3121_s6 }
 0x185   :  { %v1933_v16 = vpop.f32.mrf.mxu1  ;;  %v1932_v17 = vadd.f32 %v1931_v13, %v1891_v14  ;;  %v1893_v22 = vadd.f32 %v1892_v15, %v1852_v61 }
 0x186   :  { %v1894_v18 = vpop.f32.mrf.mxu0  ;;  %p3128_p3 = por %p3127_p2, %p3126_p1 }
 0x187   :  { %v1935_v19 = vpop.f32.mrf.mxu1  ;;  %v1934_v25 = vadd.f32 %v1933_v16, %v1893_v22 }
 0x188   :  { %v1895_v20 = vpop.f32.mrf.mxu0  ;;  %p3129_p4 = pnand %p3128_p3, %p3122_p0 }
 0x189   :  { %v1936_v21 = vpop.f32.mrf.mxu1 }
 0x1c2   :  { %v1972_v23 = vpop.f32.mrf.mxu0 }
 0x1c3   :  { %v2013_v6 = vpop.f32.mrf.mxu1  ;;  %v1973_v26 = vadd.f32 %v1972_v23, %v1932_v17 }
 0x1c4   :  { %v1974_v27 = vpop.f32.mrf.mxu0 }
 0x1c5   :  { %v2015_v29 = vpop.f32.mrf.mxu1  ;;  %v2014_v30 = vadd.f32 %v2013_v6, %v1973_v26  ;;  %v1975_v31 = vadd.f32 %v1974_v27, %v1934_v25 }
 0x1c6   :  { %v1976_v32 = vpop.f32.mrf.mxu0 }
 0x1c7   :  { %v2017_v28 = vpop.f32.mrf.mxu1  ;;  %v2020_v33 = vmul.f32 0.5, %v2014_v30  ;;  %v2016_v34 = vadd.f32 %v2015_v29, %v1975_v31 }
 0x1c8   :  { %v1977_v35 = vpop.f32.mrf.mxu0 }
 0x1c9   :  { %v2018_v36 = vpop.f32.mrf.mxu1  ;;  %3115 = vtanh.f32 %v2020_v33  ;;  %v2021_v37 = vmul.f32 0.5, %v2016_v34 }
 0x1cb   :  { %3117 = vtanh.f32 %v2021_v37 }
 0x1d6   :  { %v3116_v38 = vpop.eup %3115 }
 0x1d7   :  { %v2024_v39 = vadd.f32 1.0, %v3116_v38 }
 0x1d8   :  { %v3118_v49 = vpop.eup %3117 }
 0x1d9   :  { %v2025_v24 = vadd.f32 1.0, %v3118_v49  ;;  %v2026_v40 = vmul.f32 0.5, %v2024_v39 }
 0x1db   :  { %v2027_v41 = vmul.f32 0.5, %v2025_v24  ;;  %v2028_v43 = vpack.c.bf16 %v2026_v40, %v2026_v40 }
 0x1dd   :  { %v2029_v42 = vpack.c.bf16 %v2027_v41, %v2027_v41 }
 0x1df   :  { %2197 = vmatprep.mubr.bf16.mxu0 %v2029_v42 }
 0x1e0   :  { %2198 = vmatmul.mubr.bf16.vlgmr.msra.gmra.mxu0 %v2028_v43 }
 0x2a0   :  { %v2676_v47 = vpop.f32.mrf.mxu0 }
 0x2a2   :  { %v2677_v50 = vpop.f32.mrf.mxu0 }
 0x2a3   :  { %v2678_v51 = vadd.f32 %v2677_v50, %v2676_v47 }
 0x2a4   :  { %v2679_v52 = vpop.f32.mrf.mxu0 }
 0x2a5   :  { %v2200_v53 = vadd.f32 %v2678_v51, %v2635_v48 }
 0x2a6   :  { %v2680_v54 = vpop.f32.mrf.mxu0 }
 0x2a7   :  { %v2205_v55 = vmax.f32 %v2200_v53, 0.0 }
 0x2a9   :  { %v2206_v57 = vpack.c.bf16 %v2205_v55, %v2205_v55 }
 0x2ab   :  { %2693 = vmatmul.mubr.msk.bf16.vlgmr.msra.gmra.mxu1 %vm2230_vm1, %v2206_v57 }
 0x2ac   :  { %2697 = vmatpush3.bf16.msra.mxu1 %v3113_v56  ;;  %2700 = vmatprep.mubr.msk.bf16.mxu1 %vm3167_vm0, %v3166_v45 }
 0x2ad   :  { %2698 = vmatprep.subr.bf16.mxu1 %v3166_v45 }
 0x2b0   :  { %2699 = vmatpush3.bf16.msra.mxu1 %v3114_v58 }
 0x2b3   :  { %2701 = vmatmul.mubr.msk.bf16.vlgmr.msra.gmra.mxu1 %vm2230_vm1, %v2206_v57 }
 0x36b   :  { %v2268_v60 = vpop.f32.mrf.mxu1 }
 0x36c   :  { %v2269_v61 = vadd.f32 %v2652_v59, %v2268_v60 }
 0x36d   :  { %v2694_v62 = vpop.f32.mrf.mxu1 }
 0x36e   :  { %2338 = vst.msk [vmem:[#allocation2] sm:$0x3] %vm2337_vm2, %v2269_v61 }
 0x36f   :  { %v2271_v63 = vpop.f32.mrf.mxu1 }
 0x370   :  { %3132 = shalt.err (!%p3129_p4)
}
 0x371   :  { %2356 = dma.vmem_to_hbm [thread:$0]  %s2354_s26, 32, %s4133_s9, [#allocation3]   ;;  %v2695_v0 = vpop.f32.mrf.mxu1  ;;  %v2656_v1 = vld [vmem:[%s4131_s7] ss:$0 sm:$0xff] }
 0x372   :  { %s3169_s29 = smov [#allocation4]  }
 0x373   :  { %s2363_s30 = sshll.u32 %s3169_s29, 4  ;;  %v2331_v2 = vpop.f32.mrf.mxu1  ;;  %s2364_s30 = int_to_ptr.vmem [resolvable:$true] %s2363_s30 }
 0x374   :  { %v2332_v3 = vadd.f32 %v2656_v1, %v2331_v2  ;;  %s3141_s12 = scalar_lea.vmem %s2364_s30, 32  ;;  %p3146_p6 = scmp.lt.s32.totalorder %s2364_s30, %s2364_s30 }
 0x375   :  { %v2702_v4 = vpop.f32.mrf.mxu1  ;;  %p3142_p5 = scmp.ne.s32.totalorder %s2364_s30, %s3141_s12  ;;  %p3147_p7 = scmp.lt.s32.totalorder %s3141_s12, %s3141_s12 }
 0x376   :  { %v2341_v5 = vmul.f32 0.5, %v2332_v3  ;;  %2339 = vst.msk [vmem:[#allocation4] sm:$0x3] %vm2337_vm2, %v2332_v3 }
 0x377   :  { %v2334_v7 = vpop.f32.mrf.mxu1  ;;  %p3148_p8 = por %p3147_p7, %p3146_p6 }
 0x379   :  { %p3149_p9 = pnand %p3148_p8, %p3142_p5 }
 0x37b   :  { %3152 = shalt.err (!%p3149_p9)
}
 0x37c   :  { %2366 = dma.vmem_to_hbm [thread:$0]  %s2364_s30, 32, %s4134_s10, [#allocation5]   ;;  %v2342_v8 = vmul.f32 1.442695, %v2341_v5  ;;  %v2703_v9 = vpop.f32.mrf.mxu1  ;;  %v2340_v10 = vld [vmem:[%s4132_s8] sm:$0x3] }
 0x37e   :  { %3119 = vpow2.f32 %v2342_v8 }
 0x38b   :  { %v3120_v11 = vpop.eup %3119 }
 0x38c   :  { %v2344_v12 = vmul.f32 %v3120_v11, %v2340_v10 }
 0x38e   :  { %v2345_v13 = vadd.f32 %v2344_v12, %v2269_v61 }
 0x390   :  { %2346 = vst.msk [vmem:[%s4135_s11] sm:$0x3] %vm2337_vm2, %v2345_v13 }
 0x391   :  { %3161 = dma.done.wait [#allocation3], 32  }
 0x392   :  { %3162 = vsyncadd [#allocation3], 4294967264 }
 0x393   :  { %3163 = dma.done.wait [#allocation5], 32  }
 0x394   :  { %3164 = vsyncadd [#allocation5], 4294967264 }
 0x395   :  { %2377 = vsyncpa [#allocation3], 1 }
 0x396   :  { %2378 = vsyncpa [#allocation5], 1 }

// kernel: forward.12
= control target key start
LH: loop header
LB: loop body
LE: loop exit
PB: predicated region body
PF: predicated region fallthrough
CT: control target
= control target key end

     0   :  { %vm43_vm0 = vcmask 1043456   ;;  %v2723_v0 = vmov 0.0   ;;  %vm2724_vm1 = vmmov 0   ;;  %vm39_vm2 = vcmask 64512   ;;  %s3784_s1 = inlined_call_operand.vmem [shape: bf16[8,32], index: 1, kind: input, shape index: {}]   ;;  %s3785_s0 = inlined_call_operand.vmem [shape: bf16[2,8], index: 0, kind: input, shape index: {}]   ;;  %s3786_s3 = inlined_call_operand.vmem [shape: bf16[32,256], index: 3, kind: input, shape index: {}]   ;;  %s3787_s5 = inlined_call_operand.vmem [shape: bf16[256,2048], index: 5, kind: input, shape index: {}]   ;;  %s3788_s2 = inlined_call_operand.vmem [shape: f32[1,32], index: 2, kind: input, shape index: {}]   ;;  %s3789_s4 = inlined_call_operand.vmem [shape: f32[1,256], index: 4, kind: input, shape index: {}]   ;;  %s3790_s6 = inlined_call_operand.vmem [shape: f32[1,128], index: 6, kind: input, shape index: {}]   ;;  %s3791_s7 = inlined_call_operand.vmem [shape: f32[1,128], index: 7, kind: input, shape index: {}]   ;;  %s3792_s8 = inlined_call_operand.vmem [shape: bf16[2,2048], index: 8, kind: output, shape index: {}]  }
   0x1   :  { %2702 = vmatprep.subr.bf16.mxu0 %v2723_v0  ;;  %v31_v1 = vld [vmem:[%s3784_s1] sm:$0xf]  ;;  %2704 = vmatprep.mubr.msk.bf16.mxu0 %vm2724_vm1, %v2723_v0  ;;  %v2711_v3 = vld [vmem:[%s3786_s3 + $0x14] ss:$8 sps:$4 sm:$0xff]   ;;  %v2713_v5 = vld [vmem:[%s3786_s3 + $0x10] ss:$8 sps:$4 sm:$0xff]  }
   0x2   :  { %v45_v2 = vsel %vm43_vm0, %v31_v1, 0  ;;  %v30_v4 = vld [vmem:[%s3785_s0] sm:$0x1]  ;;  %141 = vmatprep.subr.bf16.mxu1 %v2711_v3  ;;  %v2714_v6 = vld [vmem:[%s3786_s3 + $0x4] ss:$8 sps:$4 sm:$0xff]   ;;  %v2725_v8 = vmov 0  }
   0x3   :  { %2703 = vmatpush3.bf16.msra.mxu0 %v45_v2  ;;  %142 = vmatpush1.bf16.msra.mxu1 %v2713_v5  ;;  %v2716_v7 = vld [vmem:[%s3786_s3] ss:$8 sps:$4 sm:$0xff]   ;;  %vm125_vm3 = vcmask 261120   ;;  %vm2044_vm4 = vcmask 1041408  }
   0x4   :  { %143 = vmatprep.subr.bf16.mxu1 %v2714_v6  ;;  %161 = vmatprep.mubr.bf16.mxu1 %v2725_v8  ;;  %v292_v9 = vld [vmem:[%s3787_s5 + $0x380] sm:$0xff]  ;;  %v2798_v11 = vld [vmem:[%s3787_s5 + $0x388] sm:$0xff] }
   0x5   :  { %v300_v10 = vld [vmem:[%s3787_s5 + $0x3c0] sm:$0xff]  ;;  %v2803_v14 = vld [vmem:[%s3787_s5 + $0x3c8] sm:$0xff] }
   0x6   :  { %2705 = vmatmul.mubr.msk.bf16.vlgmr.msra.gmra.mxu0 %vm39_vm2, %v30_v4  ;;  %v2556_v12 = vcombine.low %v292_v9, %v300_v10  ;;  %v2557_v13 = vcombine.high %v292_v9, %v300_v10  ;;  %v276_v15 = vld [vmem:[%s3787_s5 + $0x300] sm:$0xff]  ;;  %v2558_v17 = vcombine.low %v2798_v11, %v2803_v14  ;;  %v2559_v18 = vcombine.high %v2798_v11, %v2803_v14  ;;  %v277_v57 = vld [vmem:[%s3787_s5 + $0x308] sm:$0xff] }
   0x7   :  { %144 = vmatpush1.bf16.msra.mxu1 %v2716_v7  ;;  %v284_v16 = vld [vmem:[%s3787_s5 + $0x340] sm:$0xff]  ;;  %v285_v58 = vld [vmem:[%s3787_s5 + $0x348] sm:$0xff] }
   0x8   :  { %v2541_v19 = vcombine.high %v276_v15, %v284_v16  ;;  %1716 = vmatprep.subr.bf16.mxu0 %v2557_v13  ;;  %1757 = vmatprep.subr.bf16.mxu1 %v2559_v18  ;;  %v2540_v20 = vcombine.low %v276_v15, %v284_v16  ;;  %v260_v21 = vld [vmem:[%s3787_s5 + $0x280] sm:$0xff]  ;;  %v2543_v62 = vcombine.high %v277_v57, %v285_v58  ;;  %v261_v0 = vld [vmem:[%s3787_s5 + $0x288] sm:$0xff] }
   0x9   :  { %1717 = vmatpush1.bf16.msra.mxu0 %v2556_v12  ;;  %v268_v22 = vld [vmem:[%s3787_s5 + $0x2c0] sm:$0xff]  ;;  %v269_v1 = vld [vmem:[%s3787_s5 + $0x2c8] sm:$0xff]  ;;  %v2542_v2 = vcombine.low %v277_v57, %v285_v58 }
   0xa   :  { %1718 = vmatprep.subr.bf16.mxu0 %v2541_v19  ;;  %v2525_v23 = vcombine.high %v260_v21, %v268_v22  ;;  %v2524_v24 = vcombine.low %v260_v21, %v268_v22  ;;  %v244_v25 = vld [vmem:[%s3787_s5 + $0x200] sm:$0xff]  ;;  %v2527_v3 = vcombine.high %v261_v0, %v269_v1  ;;  %v245_v4 = vld [vmem:[%s3787_s5 + $0x208] sm:$0xff]  ;;  %v2526_v6 = vcombine.low %v261_v0, %v269_v1 }
   0xb   :  { %v252_v26 = vld [vmem:[%s3787_s5 + $0x240] sm:$0xff]  ;;  %v253_v5 = vld [vmem:[%s3787_s5 + $0x248] sm:$0xff] }
   0xc   :  { %v2509_v27 = vcombine.high %v244_v25, %v252_v26  ;;  %v2508_v28 = vcombine.low %v244_v25, %v252_v26  ;;  %v228_v29 = vld [vmem:[%s3787_s5 + $0x180] sm:$0xff]  ;;  %v2511_v7 = vcombine.high %v245_v4, %v253_v5  ;;  %v229_v8 = vld [vmem:[%s3787_s5 + $0x188] sm:$0xff]  ;;  %v2510_v10 = vcombine.low %v245_v4, %v253_v5 }
   0xd   :  { %1719 = vmatpush1.bf16.msra.mxu0 %v2540_v20  ;;  %v236_v30 = vld [vmem:[%s3787_s5 + $0x1c0] sm:$0xff]  ;;  %v237_v9 = vld [vmem:[%s3787_s5 + $0x1c8] sm:$0xff] }
   0xe   :  { %1720 = vmatprep.subr.bf16.mxu0 %v2525_v23  ;;  %v2493_v31 = vcombine.high %v228_v29, %v236_v30  ;;  %v2492_v32 = vcombine.low %v228_v29, %v236_v30  ;;  %v212_v33 = vld [vmem:[%s3787_s5 + $0x100] sm:$0xff]  ;;  %v2495_v11 = vcombine.high %v229_v8, %v237_v9  ;;  %v213_v12 = vld [vmem:[%s3787_s5 + $0x108] sm:$0xff]  ;;  %v2494_v14 = vcombine.low %v229_v8, %v237_v9 }
   0xf   :  { %v220_v34 = vld [vmem:[%s3787_s5 + $0x140] sm:$0xff]  ;;  %v221_v13 = vld [vmem:[%s3787_s5 + $0x148] sm:$0xff] }
  0x10   :  { %v2477_v35 = vcombine.high %v212_v33, %v220_v34  ;;  %v2476_v36 = vcombine.low %v212_v33, %v220_v34  ;;  %v196_v37 = vld [vmem:[%s3787_s5 + $0x80] sm:$0xff]  ;;  %v2479_v15 = vcombine.high %v213_v12, %v221_v13  ;;  %v197_v16 = vld [vmem:[%s3787_s5 + $0x88] sm:$0xff]  ;;  %v2478_v18 = vcombine.low %v213_v12, %v221_v13 }
  0x11   :  { %1721 = vmatpush1.bf16.msra.mxu0 %v2524_v24  ;;  %v204_v38 = vld [vmem:[%s3787_s5 + $0xc0] sm:$0xff]  ;;  %v181_v20 = vld [vmem:[%s3787_s5 + $0x8] sm:$0xff] }
  0x12   :  { %1722 = vmatprep.subr.bf16.mxu0 %v2509_v27  ;;  %v2461_v39 = vcombine.high %v196_v37, %v204_v38  ;;  %v2460_v40 = vcombine.low %v196_v37, %v204_v38  ;;  %v180_v41 = vld [vmem:[%s3787_s5] sm:$0xff]  ;;  %v189_v21 = vld [vmem:[%s3787_s5 + $0x48] sm:$0xff] }
  0x13   :  { %v188_v42 = vld [vmem:[%s3787_s5 + $0x40] sm:$0xff]  ;;  %v2447_v23 = vcombine.high %v181_v20, %v189_v21  ;;  %v421_v24 = vld [vmem:[%s3787_s5 + $0x788] sm:$0xff]  ;;  %v2446_v26 = vcombine.low %v181_v20, %v189_v21  ;;  %v303_v21 = vld [vmem:[%s3787_s5 + $0x3d8] sm:$0xff] }
  0x14   :  { %v2445_v43 = vcombine.high %v180_v41, %v188_v42  ;;  %v2444_v44 = vcombine.low %v180_v41, %v188_v42  ;;  %v420_v45 = vld [vmem:[%s3787_s5 + $0x780] sm:$0xff]  ;;  %v429_v25 = vld [vmem:[%s3787_s5 + $0x7c8] sm:$0xff] }
  0x15   :  { %1723 = vmatpush1.bf16.msra.mxu0 %v2508_v28  ;;  %v428_v46 = vld [vmem:[%s3787_s5 + $0x7c0] sm:$0xff]  ;;  %v2687_v27 = vcombine.high %v421_v24, %v429_v25  ;;  %v405_v28 = vld [vmem:[%s3787_s5 + $0x708] sm:$0xff]  ;;  %v2686_v30 = vcombine.low %v421_v24, %v429_v25  ;;  %v95_v25 = vlaneseq }
  0x16   :  { %1724 = vmatprep.subr.bf16.mxu0 %v2493_v31  ;;  %v2685_v47 = vcombine.high %v420_v45, %v428_v46  ;;  %v2684_v48 = vcombine.low %v420_v45, %v428_v46  ;;  %v404_v49 = vld [vmem:[%s3787_s5 + $0x700] sm:$0xff]  ;;  %v413_v29 = vld [vmem:[%s3787_s5 + $0x748] sm:$0xff] }
  0x17   :  { %v412_v50 = vld [vmem:[%s3787_s5 + $0x740] sm:$0xff]  ;;  %v2671_v31 = vcombine.high %v405_v28, %v413_v29  ;;  %v397_v37 = vld [vmem:[%s3787_s5 + $0x6c8] sm:$0xff] }
  0x18   :  { %v2669_v51 = vcombine.high %v404_v49, %v412_v50  ;;  %v2668_v52 = vcombine.low %v404_v49, %v412_v50  ;;  %v2437_v53 = vld [vmem:[%s3788_s2] ss:$0 sm:$0xff]  ;;  %v381_v45 = vld [vmem:[%s3787_s5 + $0x648] sm:$0xff] }
  0x19   :  { %1725 = vmatpush1.bf16.msra.mxu0 %v2492_v32  ;;  %v2670_v32 = vcombine.low %v405_v28, %v413_v29  ;;  %v388_v33 = vld [vmem:[%s3787_s5 + $0x680] sm:$0xff]  ;;  %v333_v5 = vld [vmem:[%s3787_s5 + $0x4c8] sm:$0xff] }
  0x1a   :  { %1726 = vmatprep.subr.bf16.mxu0 %v2477_v35  ;;  %v396_v34 = vld [vmem:[%s3787_s5 + $0x6c0] sm:$0xff]  ;;  %v389_v35 = vld [vmem:[%s3787_s5 + $0x688] sm:$0xff] }
  0x1b   :  { %v2652_v38 = vcombine.low %v388_v33, %v396_v34  ;;  %v372_v41 = vld [vmem:[%s3787_s5 + $0x600] sm:$0xff]  ;;  %v317_v13 = vld [vmem:[%s3787_s5 + $0x448] sm:$0xff] }
  0x1c   :  { %v380_v42 = vld [vmem:[%s3787_s5 + $0x640] sm:$0xff] }
  0x1d   :  { %1727 = vmatpush1.bf16.msra.mxu0 %v2476_v36  ;;  %v2653_v36 = vcombine.high %v388_v33, %v396_v34  ;;  %v2636_v46 = vcombine.low %v372_v41, %v380_v42  ;;  %v356_v49 = vld [vmem:[%s3787_s5 + $0x580] sm:$0xff] }
  0x1e   :  { %1728 = vmatprep.subr.bf16.mxu0 %v2461_v39  ;;  %v2654_v39 = vcombine.low %v389_v35, %v397_v37  ;;  %v364_v50 = vld [vmem:[%s3787_s5 + $0x5c0] sm:$0xff] }
  0x1f   :  { %v340_v57 = vld [vmem:[%s3787_s5 + $0x500] sm:$0xff] }
  0x20   :  { %v348_v58 = vld [vmem:[%s3787_s5 + $0x540] sm:$0xff] }
  0x21   :  { %1729 = vmatpush1.bf16.msra.mxu0 %v2460_v40  ;;  %v2655_v40 = vcombine.high %v389_v35, %v397_v37  ;;  %v324_v1 = vld [vmem:[%s3787_s5 + $0x480] sm:$0xff] }
  0x22   :  { %1730 = vmatprep.subr.bf16.mxu0 %v2445_v43  ;;  %v373_v43 = vld [vmem:[%s3787_s5 + $0x608] sm:$0xff]  ;;  %v308_v9 = vld [vmem:[%s3787_s5 + $0x400] sm:$0xff] }
  0x23   :  { %v93_v28 = vld [vmem:[%s3789_s4] sm:$0x3] }
  0x25   :  { %1731 = vmatpush1.bf16.msra.mxu0 %v2444_v44  ;;  %v2637_v44 = vcombine.high %v372_v41, %v380_v42 }
  0x26   :  { %1732 = vmatprep.subr.bf16.mxu0 %v2685_v47  ;;  %v2638_v47 = vcombine.low %v373_v43, %v381_v45 }
  0x29   :  { %1733 = vmatpush2.bf16.msra.mxu0 %v2684_v48  ;;  %v2639_v48 = vcombine.high %v373_v43, %v381_v45 }
  0x2a   :  { %1734 = vmatprep.subr.bf16.mxu0 %v2669_v51  ;;  %v357_v51 = vld [vmem:[%s3787_s5 + $0x588] sm:$0xff] }
  0x2d   :  { %1735 = vmatpush2.bf16.msra.mxu0 %v2668_v52  ;;  %v2621_v52 = vcombine.high %v356_v49, %v364_v50 }
  0x2e   :  { %1736 = vmatprep.subr.bf16.mxu0 %v2653_v36 }
  0x31   :  { %1737 = vmatpush2.bf16.msra.mxu0 %v2652_v38 }
  0x32   :  { %1738 = vmatprep.subr.bf16.mxu0 %v2637_v44 }
  0x35   :  { %1739 = vmatpush2.bf16.msra.mxu0 %v2636_v46  ;;  %v278_v46 = vld [vmem:[%s3787_s5 + $0x310] sm:$0xff] }
  0x36   :  { %1740 = vmatprep.subr.bf16.mxu0 %v2621_v52  ;;  %v262_v52 = vld [vmem:[%s3787_s5 + $0x290] sm:$0xff] }
  0xc6   :  { %v81_v54 = vpop.f32.mrf.mxu0 }
  0xc7   :  { %v82_v55 = vadd.f32 %v2437_v53, %v81_v54  ;;  %v365_v53 = vld [vmem:[%s3787_s5 + $0x5c8] sm:$0xff]  ;;  %v2620_v54 = vcombine.low %v356_v49, %v364_v50  ;;  %v287_v49 = vld [vmem:[%s3787_s5 + $0x358] sm:$0xff] }
  0xc8   :  { %v2706_v56 = vpop.f32.mrf.mxu0 }
  0xc9   :  { %v87_v59 = vmax.f32 %v82_v55, 0.0  ;;  %v2622_v55 = vcombine.low %v357_v51, %v365_v53  ;;  %v2623_v56 = vcombine.high %v357_v51, %v365_v53  ;;  %1741 = vmatpush2.bf16.msra.mxu0 %v2620_v54 }
  0xca   :  { %v84_v60 = vpop.f32.mrf.mxu0 }
  0xcb   :  { %v88_v61 = vpack.c.bf16 %v87_v59, %v87_v59  ;;  %v341_v59 = vld [vmem:[%s3787_s5 + $0x508] sm:$0xff]  ;;  %v2605_v60 = vcombine.high %v340_v57, %v348_v58 }
  0xcc   :  { %v2707_v63 = vpop.f32.mrf.mxu0 }
  0xcd   :  { %2443 = vmatmul.mubr.msk.bf16.vlgmr.msra.gmra.mxu1 %vm125_vm3, %v88_v61  ;;  %v349_v61 = vld [vmem:[%s3787_s5 + $0x548] sm:$0xff]  ;;  %1742 = vmatprep.subr.bf16.mxu0 %v2605_v60 }
  0xce   :  { %1758 = vmatpush1.bf16.msra.mxu1 %v2558_v17  ;;  %v205_v17 = vld [vmem:[%s3787_s5 + $0xc8] sm:$0xff]  ;;  %v2606_v63 = vcombine.low %v341_v59, %v349_v61  ;;  %v2607_v0 = vcombine.high %v341_v59, %v349_v61 }
  0xcf   :  { %1759 = vmatprep.subr.bf16.mxu1 %v2543_v62  ;;  %v2463_v19 = vcombine.high %v197_v16, %v205_v17  ;;  %v2462_v22 = vcombine.low %v197_v16, %v205_v17  ;;  %v2604_v62 = vcombine.low %v340_v57, %v348_v58  ;;  %v294_v17 = vld [vmem:[%s3787_s5 + $0x390] sm:$0xff]  ;;  %v271_v57 = vld [vmem:[%s3787_s5 + $0x2d8] sm:$0xff] }
  0xd1   :  { %1743 = vmatpush2.bf16.msra.mxu0 %v2604_v62  ;;  %v246_v62 = vld [vmem:[%s3787_s5 + $0x210] sm:$0xff] }
  0xd2   :  { %1760 = vmatpush1.bf16.msra.mxu1 %v2542_v2  ;;  %v332_v2 = vld [vmem:[%s3787_s5 + $0x4c0] sm:$0xff] }
  0xd3   :  { %1761 = vmatprep.subr.bf16.mxu1 %v2527_v3  ;;  %v325_v3 = vld [vmem:[%s3787_s5 + $0x488] sm:$0xff]  ;;  %v2589_v4 = vcombine.high %v324_v1, %v332_v2 }
  0xd4   :  { %v2591_v8 = vcombine.high %v325_v3, %v333_v5 }
  0xd5   :  { %1744 = vmatprep.subr.bf16.mxu0 %v2589_v4 }
  0xd6   :  { %1762 = vmatpush1.bf16.msra.mxu1 %v2526_v6  ;;  %v2588_v6 = vcombine.low %v324_v1, %v332_v2  ;;  %v255_v1 = vld [vmem:[%s3787_s5 + $0x258] sm:$0xff] }
  0xd7   :  { %1763 = vmatprep.subr.bf16.mxu1 %v2511_v7  ;;  %v2590_v7 = vcombine.low %v325_v3, %v333_v5 }
  0xd8   :  { %1745 = vmatpush2.bf16.msra.mxu0 %v2588_v6  ;;  %v230_v6 = vld [vmem:[%s3787_s5 + $0x190] sm:$0xff] }
  0xda   :  { %1764 = vmatpush1.bf16.msra.mxu1 %v2510_v10  ;;  %v316_v10 = vld [vmem:[%s3787_s5 + $0x440] sm:$0xff] }
  0xdb   :  { %1765 = vmatprep.subr.bf16.mxu1 %v2495_v11  ;;  %v309_v11 = vld [vmem:[%s3787_s5 + $0x408] sm:$0xff]  ;;  %v2573_v12 = vcombine.high %v308_v9, %v316_v10 }
  0xdc   :  { %v2575_v16 = vcombine.high %v309_v11, %v317_v13 }
  0xdd   :  { %1746 = vmatprep.subr.bf16.mxu0 %v2573_v12 }
  0xde   :  { %1766 = vmatpush1.bf16.msra.mxu1 %v2494_v14  ;;  %v2572_v14 = vcombine.low %v308_v9, %v316_v10  ;;  %v239_v9 = vld [vmem:[%s3787_s5 + $0x1d8] sm:$0xff] }
  0xdf   :  { %1767 = vmatprep.subr.bf16.mxu1 %v2479_v15  ;;  %v2574_v15 = vcombine.low %v309_v11, %v317_v13 }
  0xe0   :  { %1747 = vmatpush2.bf16.msra.mxu0 %v2572_v14  ;;  %v214_v14 = vld [vmem:[%s3787_s5 + $0x110] sm:$0xff] }
  0xe2   :  { %1768 = vmatpush1.bf16.msra.mxu1 %v2478_v18  ;;  %v302_v18 = vld [vmem:[%s3787_s5 + $0x3d0] sm:$0xff] }
  0xe3   :  { %1769 = vmatprep.subr.bf16.mxu1 %v2463_v19  ;;  %v295_v19 = vld [vmem:[%s3787_s5 + $0x398] sm:$0xff]  ;;  %v2561_v20 = vcombine.high %v294_v17, %v302_v18 }
  0xe4   :  { %v2563_v24 = vcombine.high %v295_v19, %v303_v21 }
  0xe5   :  { %1798 = vmatprep.subr.bf16.mxu0 %v2561_v20 }
  0xe6   :  { %1770 = vmatpush1.bf16.msra.mxu1 %v2462_v22  ;;  %v2560_v22 = vcombine.low %v294_v17, %v302_v18  ;;  %v223_v17 = vld [vmem:[%s3787_s5 + $0x158] sm:$0xff] }
  0xe7   :  { %1771 = vmatprep.subr.bf16.mxu1 %v2447_v23  ;;  %v2562_v23 = vcombine.low %v295_v19, %v303_v21 }
  0xea   :  { %1772 = vmatpush1.bf16.msra.mxu1 %v2446_v26  ;;  %v96_v26 = vshrl.u32 %v95_v25, 7  ;;  %v207_v25 = vld [vmem:[%s3787_s5 + $0xd8] sm:$0xff] }
  0xeb   :  { %1773 = vmatprep.subr.bf16.mxu1 %v2687_v27 }
  0xec   :  { %v3007_v27 = vsub.s32 0, %v96_v26  ;;  %v101_v29 = vsub.s32 1, %v96_v26 }
  0xee   :  { %1774 = vmatpush2.bf16.msra.mxu1 %v2686_v30  ;;  %v98_v30 = vrot.slane %v93_v28, %v3007_v27 }
  0xef   :  { %1775 = vmatprep.subr.bf16.mxu1 %v2671_v31  ;;  %v102_v31 = vrot.slane %v93_v28, %v101_v29 }
  0xf2   :  { %1776 = vmatpush2.bf16.msra.mxu1 %v2670_v32 }
  0xf3   :  { %1777 = vmatprep.subr.bf16.mxu1 %v2655_v40 }
  0xf6   :  { %1778 = vmatpush2.bf16.msra.mxu1 %v2654_v39 }
  0xf7   :  { %1779 = vmatprep.subr.bf16.mxu1 %v2639_v48  ;;  %v279_v48 = vld [vmem:[%s3787_s5 + $0x318] sm:$0xff] }
  0xf8   :  { %v2547_v54 = vcombine.high %v279_v48, %v287_v49  ;;  %v2546_v59 = vcombine.low %v279_v48, %v287_v49  ;;  %v414_v48 = vld [vmem:[%s3787_s5 + $0x750] sm:$0xff]  ;;  %v407_v49 = vld [vmem:[%s3787_s5 + $0x718] sm:$0xff] }
  0xfa   :  { %1780 = vmatpush2.bf16.msra.mxu1 %v2638_v47  ;;  %v286_v47 = vld [vmem:[%s3787_s5 + $0x350] sm:$0xff] }
  0xfb   :  { %1781 = vmatprep.subr.bf16.mxu1 %v2623_v56  ;;  %v2545_v53 = vcombine.high %v278_v46, %v286_v47  ;;  %v263_v56 = vld [vmem:[%s3787_s5 + $0x298] sm:$0xff]  ;;  %v2544_v58 = vcombine.low %v278_v46, %v286_v47  ;;  %v406_v47 = vld [vmem:[%s3787_s5 + $0x710] sm:$0xff] }
  0xfc   :  { %v2531_v61 = vcombine.high %v263_v56, %v271_v57  ;;  %v2530_v3 = vcombine.low %v263_v56, %v271_v57  ;;  %v390_v57 = vld [vmem:[%s3787_s5 + $0x690] sm:$0xff] }
  0xfe   :  { %1782 = vmatpush2.bf16.msra.mxu1 %v2622_v55  ;;  %v270_v55 = vld [vmem:[%s3787_s5 + $0x2d0] sm:$0xff] }
  0xff   :  { %1783 = vmatprep.subr.bf16.mxu1 %v2607_v0  ;;  %v2529_v60 = vcombine.high %v262_v52, %v270_v55  ;;  %v247_v0 = vld [vmem:[%s3787_s5 + $0x218] sm:$0xff]  ;;  %v2528_v2 = vcombine.low %v262_v52, %v270_v55  ;;  %v2673_v55 = vcombine.high %v406_v47, %v414_v48 }
 0x100   :  { %v2515_v5 = vcombine.high %v247_v0, %v255_v1  ;;  %v2514_v11 = vcombine.low %v247_v0, %v255_v1  ;;  %v415_v52 = vld [vmem:[%s3787_s5 + $0x758] sm:$0xff]  ;;  %v374_v1 = vld [vmem:[%s3787_s5 + $0x610] sm:$0xff] }
 0x101   :  { %v2675_v56 = vcombine.high %v407_v49, %v415_v52 }
 0x102   :  { %1784 = vmatpush2.bf16.msra.mxu1 %v2606_v63  ;;  %v254_v63 = vld [vmem:[%s3787_s5 + $0x250] sm:$0xff] }
 0x103   :  { %1785 = vmatprep.subr.bf16.mxu1 %v2591_v8  ;;  %v2513_v4 = vcombine.high %v246_v62, %v254_v63  ;;  %v231_v8 = vld [vmem:[%s3787_s5 + $0x198] sm:$0xff]  ;;  %v2512_v10 = vcombine.low %v246_v62, %v254_v63  ;;  %v2674_v62 = vcombine.low %v407_v49, %v415_v52  ;;  %v280_v52 = vld [vmem:[%s3787_s5 + $0x320] sm:$0xff] }
 0x104   :  { %v2499_v13 = vcombine.high %v231_v8, %v239_v9  ;;  %v2498_v19 = vcombine.low %v231_v8, %v239_v9  ;;  %v358_v9 = vld [vmem:[%s3787_s5 + $0x590] sm:$0xff] }
 0x106   :  { %1786 = vmatpush2.bf16.msra.mxu1 %v2590_v7  ;;  %v238_v7 = vld [vmem:[%s3787_s5 + $0x1d0] sm:$0xff] }
 0x107   :  { %1787 = vmatprep.subr.bf16.mxu1 %v2575_v16  ;;  %v2497_v12 = vcombine.high %v230_v6, %v238_v7  ;;  %v215_v16 = vld [vmem:[%s3787_s5 + $0x118] sm:$0xff]  ;;  %v2496_v18 = vcombine.low %v230_v6, %v238_v7 }
 0x108   :  { %v2483_v21 = vcombine.high %v215_v16, %v223_v17  ;;  %v2482_v28 = vcombine.low %v215_v16, %v223_v17  ;;  %v342_v17 = vld [vmem:[%s3787_s5 + $0x510] sm:$0xff] }
 0x10a   :  { %1788 = vmatpush2.bf16.msra.mxu1 %v2574_v15  ;;  %v222_v15 = vld [vmem:[%s3787_s5 + $0x150] sm:$0xff] }
 0x10b   :  { %1839 = vmatprep.subr.bf16.mxu1 %v2563_v24  ;;  %v2481_v20 = vcombine.high %v214_v14, %v222_v15  ;;  %v199_v24 = vld [vmem:[%s3787_s5 + $0x98] sm:$0xff]  ;;  %v2480_v26 = vcombine.low %v214_v14, %v222_v15 }
 0x18d   :  { %v163_v32 = vpop.f32.mrf.mxu1 }
 0x18e   :  { %v164_v33 = vadd.f32 %v163_v32, %v98_v30  ;;  %v2467_v30 = vcombine.high %v199_v24, %v207_v25  ;;  %v190_v32 = vld [vmem:[%s3787_s5 + $0x50] sm:$0xff] }
 0x18f   :  { %v165_v34 = vpop.f32.mrf.mxu1 }
 0x190   :  { %v170_v35 = vmul.f32 0.5, %v164_v33  ;;  %v166_v36 = vadd.f32 %v165_v34, %v102_v31  ;;  %v182_v31 = vld [vmem:[%s3787_s5 + $0x10] sm:$0xff]  ;;  %v183_v33 = vld [vmem:[%s3787_s5 + $0x18] sm:$0xff] }
 0x191   :  { %v167_v37 = vpop.f32.mrf.mxu1  ;;  %v191_v34 = vld [vmem:[%s3787_s5 + $0x58] sm:$0xff] }
 0x192   :  { %2717 = vtanh.f32 %v170_v35  ;;  %v171_v38 = vmul.f32 0.5, %v166_v36  ;;  %v2466_v36 = vcombine.low %v199_v24, %v207_v25  ;;  %v2449_v37 = vcombine.high %v182_v31, %v190_v32  ;;  %v326_v25 = vld [vmem:[%s3787_s5 + $0x490] sm:$0xff] }
 0x193   :  { %v168_v39 = vpop.f32.mrf.mxu1 }
 0x194   :  { %2719 = vtanh.f32 %v171_v38  ;;  %v2451_v38 = vcombine.high %v183_v33, %v191_v34  ;;  %v422_v39 = vld [vmem:[%s3787_s5 + $0x790] sm:$0xff] }
 0x19f   :  { %v2718_v40 = vpop.eup %2717 }
 0x1a0   :  { %v174_v41 = vadd.f32 1.0, %v2718_v40  ;;  %v430_v40 = vld [vmem:[%s3787_s5 + $0x7d0] sm:$0xff] }
 0x1a1   :  { %v2720_v42 = vpop.eup %2719 }
 0x1a2   :  { %v175_v43 = vadd.f32 1.0, %v2720_v42  ;;  %v176_v44 = vmul.f32 0.5, %v174_v41  ;;  %v423_v41 = vld [vmem:[%s3787_s5 + $0x798] sm:$0xff] }
 0x1a3   :  { %v431_v42 = vld [vmem:[%s3787_s5 + $0x7d8] sm:$0xff] }
 0x1a4   :  { %v177_v45 = vmul.f32 0.5, %v175_v43  ;;  %v3027_v51 = vpack.c.bf16 %v176_v44, %v176_v44  ;;  %v2448_v43 = vcombine.low %v182_v31, %v190_v32  ;;  %v2450_v44 = vcombine.low %v183_v33, %v191_v34  ;;  %v310_v34 = vld [vmem:[%s3787_s5 + $0x410] sm:$0xff] }
 0x1a5   :  { %v2691_v46 = vcombine.high %v423_v41, %v431_v42 }
 0x1a6   :  { %v3025_v50 = vpack.c.bf16 %v177_v45, %v177_v45  ;;  %v2689_v45 = vcombine.high %v422_v39, %v430_v40 }
 0x1a8   :  { %1748 = vmatprep.mubr.bf16.mxu0 %v3025_v50  ;;  %1789 = vmatprep.mubr.bf16.mxu1 %v3025_v50 }
 0x1a9   :  { %1749 = vmatmul.mubr.bf16.vlgmr.msra.gmra.mxu0 %v3027_v51  ;;  %1790 = vmatmul.mubr.bf16.vlgmr.msra.gmra.mxu1 %v3027_v51 }
 0x1aa   :  { %1799 = vmatpush1.bf16.msra.mxu0 %v2560_v22  ;;  %1840 = vmatpush1.bf16.msra.mxu1 %v2562_v23  ;;  %v198_v22 = vld [vmem:[%s3787_s5 + $0x90] sm:$0xff] }
 0x1ab   :  { %1830 = vmatprep.mubr.bf16.mxu0 %v3025_v50  ;;  %1871 = vmatprep.mubr.bf16.mxu1 %v3025_v50  ;;  %v206_v23 = vld [vmem:[%s3787_s5 + $0xd0] sm:$0xff] }
 0x1ac   :  { %1800 = vmatprep.subr.bf16.mxu0 %v2545_v53  ;;  %1841 = vmatprep.subr.bf16.mxu1 %v2547_v54  ;;  %v2465_v29 = vcombine.high %v198_v22, %v206_v23  ;;  %v2464_v35 = vcombine.low %v198_v22, %v206_v23  ;;  %v2688_v53 = vcombine.low %v422_v39, %v430_v40 }
 0x1ad   :  { %v2690_v54 = vcombine.low %v423_v41, %v431_v42  ;;  %v296_v42 = vld [vmem:[%s3787_s5 + $0x3a0] sm:$0xff] }
 0x1ae   :  { %1801 = vmatpush1.bf16.msra.mxu0 %v2544_v58  ;;  %1842 = vmatpush1.bf16.msra.mxu1 %v2546_v59  ;;  %v398_v58 = vld [vmem:[%s3787_s5 + $0x6d0] sm:$0xff]  ;;  %v391_v59 = vld [vmem:[%s3787_s5 + $0x698] sm:$0xff] }
 0x1af   :  { %1802 = vmatprep.subr.bf16.mxu0 %v2529_v60  ;;  %1843 = vmatprep.subr.bf16.mxu1 %v2531_v61  ;;  %v399_v60 = vld [vmem:[%s3787_s5 + $0x6d8] sm:$0xff]  ;;  %v2672_v61 = vcombine.low %v406_v47, %v414_v48  ;;  %v2657_v63 = vcombine.high %v390_v57, %v398_v58 }
 0x1b0   :  { %v2659_v0 = vcombine.high %v391_v59, %v399_v60  ;;  %v2658_v6 = vcombine.low %v391_v59, %v399_v60  ;;  %v264_v60 = vld [vmem:[%s3787_s5 + $0x2a0] sm:$0xff] }
 0x1b2   :  { %1803 = vmatpush1.bf16.msra.mxu0 %v2528_v2  ;;  %1844 = vmatpush1.bf16.msra.mxu1 %v2530_v3  ;;  %v382_v2 = vld [vmem:[%s3787_s5 + $0x650] sm:$0xff]  ;;  %v375_v3 = vld [vmem:[%s3787_s5 + $0x618] sm:$0xff] }
 0x1b3   :  { %1804 = vmatprep.subr.bf16.mxu0 %v2513_v4  ;;  %1845 = vmatprep.subr.bf16.mxu1 %v2515_v5  ;;  %v383_v4 = vld [vmem:[%s3787_s5 + $0x658] sm:$0xff]  ;;  %v2656_v5 = vcombine.low %v390_v57, %v398_v58  ;;  %v2641_v7 = vcombine.high %v374_v1, %v382_v2 }
 0x1b4   :  { %v2643_v8 = vcombine.high %v375_v3, %v383_v4  ;;  %v2642_v14 = vcombine.low %v375_v3, %v383_v4  ;;  %v248_v4 = vld [vmem:[%s3787_s5 + $0x220] sm:$0xff] }
 0x1b6   :  { %1805 = vmatpush1.bf16.msra.mxu0 %v2512_v10  ;;  %1846 = vmatpush1.bf16.msra.mxu1 %v2514_v11  ;;  %v366_v10 = vld [vmem:[%s3787_s5 + $0x5d0] sm:$0xff]  ;;  %v359_v11 = vld [vmem:[%s3787_s5 + $0x598] sm:$0xff] }
 0x1b7   :  { %1806 = vmatprep.subr.bf16.mxu0 %v2497_v12  ;;  %1847 = vmatprep.subr.bf16.mxu1 %v2499_v13  ;;  %v367_v12 = vld [vmem:[%s3787_s5 + $0x5d8] sm:$0xff]  ;;  %v2640_v13 = vcombine.low %v374_v1, %v382_v2  ;;  %v2625_v15 = vcombine.high %v358_v9, %v366_v10 }
 0x1b8   :  { %v2627_v16 = vcombine.high %v359_v11, %v367_v12  ;;  %v2626_v22 = vcombine.low %v359_v11, %v367_v12  ;;  %v232_v12 = vld [vmem:[%s3787_s5 + $0x1a0] sm:$0xff] }
 0x1ba   :  { %1807 = vmatpush1.bf16.msra.mxu0 %v2496_v18  ;;  %1848 = vmatpush1.bf16.msra.mxu1 %v2498_v19  ;;  %v350_v18 = vld [vmem:[%s3787_s5 + $0x550] sm:$0xff]  ;;  %v343_v19 = vld [vmem:[%s3787_s5 + $0x518] sm:$0xff] }
 0x1bb   :  { %1808 = vmatprep.subr.bf16.mxu0 %v2481_v20  ;;  %1849 = vmatprep.subr.bf16.mxu1 %v2483_v21  ;;  %v351_v20 = vld [vmem:[%s3787_s5 + $0x558] sm:$0xff]  ;;  %v2624_v21 = vcombine.low %v358_v9, %v366_v10  ;;  %v2609_v23 = vcombine.high %v342_v17, %v350_v18 }
 0x1bc   :  { %v2611_v24 = vcombine.high %v343_v19, %v351_v20  ;;  %v2610_v31 = vcombine.low %v343_v19, %v351_v20  ;;  %v216_v20 = vld [vmem:[%s3787_s5 + $0x120] sm:$0xff] }
 0x1be   :  { %1809 = vmatpush1.bf16.msra.mxu0 %v2480_v26  ;;  %1850 = vmatpush1.bf16.msra.mxu1 %v2482_v28  ;;  %v334_v26 = vld [vmem:[%s3787_s5 + $0x4d0] sm:$0xff]  ;;  %v327_v28 = vld [vmem:[%s3787_s5 + $0x498] sm:$0xff] }
 0x1bf   :  { %1810 = vmatprep.subr.bf16.mxu0 %v2465_v29  ;;  %1851 = vmatprep.subr.bf16.mxu1 %v2467_v30  ;;  %v335_v29 = vld [vmem:[%s3787_s5 + $0x4d8] sm:$0xff]  ;;  %v2608_v30 = vcombine.low %v342_v17, %v350_v18  ;;  %v2593_v32 = vcombine.high %v326_v25, %v334_v26 }
 0x1c0   :  { %v2595_v33 = vcombine.high %v327_v28, %v335_v29  ;;  %v2594_v39 = vcombine.low %v327_v28, %v335_v29  ;;  %v200_v29 = vld [vmem:[%s3787_s5 + $0xa0] sm:$0xff] }
 0x1c2   :  { %1811 = vmatpush1.bf16.msra.mxu0 %v2464_v35  ;;  %1852 = vmatpush1.bf16.msra.mxu1 %v2466_v36  ;;  %v318_v35 = vld [vmem:[%s3787_s5 + $0x450] sm:$0xff]  ;;  %v311_v36 = vld [vmem:[%s3787_s5 + $0x418] sm:$0xff] }
 0x1c3   :  { %1812 = vmatprep.subr.bf16.mxu0 %v2449_v37  ;;  %1853 = vmatprep.subr.bf16.mxu1 %v2451_v38  ;;  %v319_v37 = vld [vmem:[%s3787_s5 + $0x458] sm:$0xff]  ;;  %v2592_v38 = vcombine.low %v326_v25, %v334_v26  ;;  %v2577_v40 = vcombine.high %v310_v34, %v318_v35 }
 0x1c4   :  { %v2579_v41 = vcombine.high %v311_v36, %v319_v37  ;;  %v2578_v47 = vcombine.low %v311_v36, %v319_v37  ;;  %v184_v37 = vld [vmem:[%s3787_s5 + $0x20] sm:$0xff] }
 0x1c6   :  { %1813 = vmatpush1.bf16.msra.mxu0 %v2448_v43  ;;  %1854 = vmatpush1.bf16.msra.mxu1 %v2450_v44  ;;  %v304_v43 = vld [vmem:[%s3787_s5 + $0x3e0] sm:$0xff]  ;;  %v297_v44 = vld [vmem:[%s3787_s5 + $0x3a8] sm:$0xff] }
 0x1c7   :  { %1814 = vmatprep.subr.bf16.mxu0 %v2689_v45  ;;  %1855 = vmatprep.subr.bf16.mxu1 %v2691_v46  ;;  %v305_v45 = vld [vmem:[%s3787_s5 + $0x3e8] sm:$0xff]  ;;  %v2576_v46 = vcombine.low %v310_v34, %v318_v35  ;;  %v2565_v48 = vcombine.high %v296_v42, %v304_v43 }
 0x1c8   :  { %v2567_v49 = vcombine.high %v297_v44, %v305_v45  ;;  %v2566_v57 = vcombine.low %v297_v44, %v305_v45  ;;  %v424_v45 = vld [vmem:[%s3787_s5 + $0x7a0] sm:$0xff] }
 0x1ca   :  { %1815 = vmatpush2.bf16.msra.mxu0 %v2688_v53  ;;  %1856 = vmatpush2.bf16.msra.mxu1 %v2690_v54  ;;  %v288_v53 = vld [vmem:[%s3787_s5 + $0x360] sm:$0xff]  ;;  %v281_v54 = vld [vmem:[%s3787_s5 + $0x328] sm:$0xff] }
 0x1cb   :  { %1816 = vmatprep.subr.bf16.mxu0 %v2673_v55  ;;  %1857 = vmatprep.subr.bf16.mxu1 %v2675_v56  ;;  %v289_v55 = vld [vmem:[%s3787_s5 + $0x368] sm:$0xff]  ;;  %v2564_v56 = vcombine.low %v296_v42, %v304_v43  ;;  %v2549_v58 = vcombine.high %v280_v52, %v288_v53 }
 0x1cc   :  { %v2551_v59 = vcombine.high %v281_v54, %v289_v55  ;;  %v2550_v1 = vcombine.low %v281_v54, %v289_v55  ;;  %v408_v55 = vld [vmem:[%s3787_s5 + $0x720] sm:$0xff] }
 0x1ce   :  { %1817 = vmatpush2.bf16.msra.mxu0 %v2672_v61  ;;  %1858 = vmatpush2.bf16.msra.mxu1 %v2674_v62  ;;  %v272_v61 = vld [vmem:[%s3787_s5 + $0x2e0] sm:$0xff]  ;;  %v265_v62 = vld [vmem:[%s3787_s5 + $0x2a8] sm:$0xff] }
 0x1cf   :  { %1818 = vmatprep.subr.bf16.mxu0 %v2657_v63  ;;  %1859 = vmatprep.subr.bf16.mxu1 %v2659_v0  ;;  %v273_v63 = vld [vmem:[%s3787_s5 + $0x2e8] sm:$0xff]  ;;  %v2548_v0 = vcombine.low %v280_v52, %v288_v53  ;;  %v2533_v2 = vcombine.high %v264_v60, %v272_v61 }
 0x1d0   :  { %v2535_v3 = vcombine.high %v265_v62, %v273_v63  ;;  %v2534_v9 = vcombine.low %v265_v62, %v273_v63  ;;  %v392_v63 = vld [vmem:[%s3787_s5 + $0x6a0] sm:$0xff] }
 0x1d2   :  { %1819 = vmatpush2.bf16.msra.mxu0 %v2656_v5  ;;  %1860 = vmatpush2.bf16.msra.mxu1 %v2658_v6  ;;  %v256_v5 = vld [vmem:[%s3787_s5 + $0x260] sm:$0xff]  ;;  %v249_v6 = vld [vmem:[%s3787_s5 + $0x228] sm:$0xff] }
 0x1d3   :  { %1820 = vmatprep.subr.bf16.mxu0 %v2641_v7  ;;  %1861 = vmatprep.subr.bf16.mxu1 %v2643_v8  ;;  %v257_v7 = vld [vmem:[%s3787_s5 + $0x268] sm:$0xff]  ;;  %v2532_v8 = vcombine.low %v264_v60, %v272_v61  ;;  %v2517_v10 = vcombine.high %v248_v4, %v256_v5 }
 0x1d4   :  { %v2519_v11 = vcombine.high %v249_v6, %v257_v7  ;;  %v2518_v17 = vcombine.low %v249_v6, %v257_v7  ;;  %v376_v7 = vld [vmem:[%s3787_s5 + $0x620] sm:$0xff] }
 0x1d6   :  { %1821 = vmatpush2.bf16.msra.mxu0 %v2640_v13  ;;  %1862 = vmatpush2.bf16.msra.mxu1 %v2642_v14  ;;  %v240_v13 = vld [vmem:[%s3787_s5 + $0x1e0] sm:$0xff]  ;;  %v233_v14 = vld [vmem:[%s3787_s5 + $0x1a8] sm:$0xff] }
 0x1d7   :  { %1822 = vmatprep.subr.bf16.mxu0 %v2625_v15  ;;  %1863 = vmatprep.subr.bf16.mxu1 %v2627_v16  ;;  %v241_v15 = vld [vmem:[%s3787_s5 + $0x1e8] sm:$0xff]  ;;  %v2516_v16 = vcombine.low %v248_v4, %v256_v5  ;;  %v2501_v18 = vcombine.high %v232_v12, %v240_v13 }
 0x1d8   :  { %v2503_v19 = vcombine.high %v233_v14, %v241_v15  ;;  %v2502_v25 = vcombine.low %v233_v14, %v241_v15  ;;  %v360_v15 = vld [vmem:[%s3787_s5 + $0x5a0] sm:$0xff] }
 0x1da   :  { %1823 = vmatpush2.bf16.msra.mxu0 %v2624_v21  ;;  %1864 = vmatpush2.bf16.msra.mxu1 %v2626_v22  ;;  %v224_v21 = vld [vmem:[%s3787_s5 + $0x160] sm:$0xff]  ;;  %v217_v22 = vld [vmem:[%s3787_s5 + $0x128] sm:$0xff] }
 0x1db   :  { %1824 = vmatprep.subr.bf16.mxu0 %v2609_v23  ;;  %1865 = vmatprep.subr.bf16.mxu1 %v2611_v24  ;;  %v225_v23 = vld [vmem:[%s3787_s5 + $0x168] sm:$0xff]  ;;  %v2500_v24 = vcombine.low %v232_v12, %v240_v13  ;;  %v2485_v26 = vcombine.high %v216_v20, %v224_v21 }
 0x1dc   :  { %v2487_v28 = vcombine.high %v217_v22, %v225_v23  ;;  %v2486_v34 = vcombine.low %v217_v22, %v225_v23  ;;  %v344_v23 = vld [vmem:[%s3787_s5 + $0x520] sm:$0xff] }
 0x1de   :  { %1825 = vmatpush2.bf16.msra.mxu0 %v2608_v30  ;;  %1866 = vmatpush2.bf16.msra.mxu1 %v2610_v31  ;;  %v208_v30 = vld [vmem:[%s3787_s5 + $0xe0] sm:$0xff]  ;;  %v201_v31 = vld [vmem:[%s3787_s5 + $0xa8] sm:$0xff] }
 0x1df   :  { %1826 = vmatprep.subr.bf16.mxu0 %v2593_v32  ;;  %1867 = vmatprep.subr.bf16.mxu1 %v2595_v33  ;;  %v209_v32 = vld [vmem:[%s3787_s5 + $0xe8] sm:$0xff]  ;;  %v2484_v33 = vcombine.low %v216_v20, %v224_v21  ;;  %v2469_v35 = vcombine.high %v200_v29, %v208_v30 }
 0x1e0   :  { %v2471_v36 = vcombine.high %v201_v31, %v209_v32  ;;  %v2470_v42 = vcombine.low %v201_v31, %v209_v32  ;;  %v328_v32 = vld [vmem:[%s3787_s5 + $0x4a0] sm:$0xff] }
 0x1e2   :  { %1827 = vmatpush2.bf16.msra.mxu0 %v2592_v38  ;;  %1868 = vmatpush2.bf16.msra.mxu1 %v2594_v39  ;;  %v192_v38 = vld [vmem:[%s3787_s5 + $0x60] sm:$0xff]  ;;  %v185_v39 = vld [vmem:[%s3787_s5 + $0x28] sm:$0xff] }
 0x1e3   :  { %1828 = vmatprep.subr.bf16.mxu0 %v2577_v40  ;;  %1869 = vmatprep.subr.bf16.mxu1 %v2579_v41  ;;  %v193_v40 = vld [vmem:[%s3787_s5 + $0x68] sm:$0xff]  ;;  %v2468_v41 = vcombine.low %v200_v29, %v208_v30  ;;  %v2453_v43 = vcombine.high %v184_v37, %v192_v38 }
 0x1e4   :  { %v2455_v44 = vcombine.high %v185_v39, %v193_v40  ;;  %v2454_v52 = vcombine.low %v185_v39, %v193_v40  ;;  %v312_v40 = vld [vmem:[%s3787_s5 + $0x420] sm:$0xff] }
 0x1e6   :  { %1829 = vmatpush2.bf16.msra.mxu0 %v2576_v46  ;;  %1870 = vmatpush2.bf16.msra.mxu1 %v2578_v47  ;;  %v432_v46 = vld [vmem:[%s3787_s5 + $0x7e0] sm:$0xff]  ;;  %v425_v47 = vld [vmem:[%s3787_s5 + $0x7a8] sm:$0xff] }
 0x1e7   :  { %1880 = vmatprep.subr.bf16.mxu0 %v2565_v48  ;;  %1921 = vmatprep.subr.bf16.mxu1 %v2567_v49  ;;  %v433_v48 = vld [vmem:[%s3787_s5 + $0x7e8] sm:$0xff]  ;;  %v2452_v49 = vcombine.low %v184_v37, %v192_v38  ;;  %v2693_v53 = vcombine.high %v424_v45, %v432_v46 }
 0x1e8   :  { %v2695_v54 = vcombine.high %v425_v47, %v433_v48  ;;  %v2694_v60 = vcombine.low %v425_v47, %v433_v48  ;;  %v298_v48 = vld [vmem:[%s3787_s5 + $0x3b0] sm:$0xff] }
 0x1e9   :  { %1831 = vmatmul.mubr.bf16.vlgmr.msra.gmra.mxu0 %v3027_v51  ;;  %1872 = vmatmul.mubr.bf16.vlgmr.msra.gmra.mxu1 %v3027_v51 }
 0x1ea   :  { %1881 = vmatpush1.bf16.msra.mxu0 %v2564_v56  ;;  %1912 = vmatprep.mubr.bf16.mxu0 %v3025_v50  ;;  %v416_v56 = vld [vmem:[%s3787_s5 + $0x760] sm:$0xff] }
 0x1eb   :  { %1922 = vmatpush1.bf16.msra.mxu1 %v2566_v57  ;;  %1953 = vmatprep.mubr.bf16.mxu1 %v3025_v50  ;;  %v409_v57 = vld [vmem:[%s3787_s5 + $0x728] sm:$0xff]  ;;  %v2677_v61 = vcombine.high %v408_v55, %v416_v56 }
 0x1ec   :  { %1882 = vmatprep.subr.bf16.mxu0 %v2549_v58  ;;  %1923 = vmatprep.subr.bf16.mxu1 %v2551_v59  ;;  %v417_v58 = vld [vmem:[%s3787_s5 + $0x768] sm:$0xff]  ;;  %v2692_v59 = vcombine.low %v424_v45, %v432_v46 }
 0x1ed   :  { %v2679_v62 = vcombine.high %v409_v57, %v417_v58  ;;  %v2678_v4 = vcombine.low %v409_v57, %v417_v58  ;;  %v282_v58 = vld [vmem:[%s3787_s5 + $0x330] sm:$0xff] }
 0x1ee   :  { %1883 = vmatpush1.bf16.msra.mxu0 %v2548_v0  ;;  %v400_v0 = vld [vmem:[%s3787_s5 + $0x6e0] sm:$0xff] }
 0x1ef   :  { %1924 = vmatpush1.bf16.msra.mxu1 %v2550_v1  ;;  %1884 = vmatprep.subr.bf16.mxu0 %v2533_v2  ;;  %v393_v1 = vld [vmem:[%s3787_s5 + $0x6a8] sm:$0xff]  ;;  %v2661_v5 = vcombine.high %v392_v63, %v400_v0 }
 0x1f0   :  { %1925 = vmatprep.subr.bf16.mxu1 %v2535_v3  ;;  %v401_v2 = vld [vmem:[%s3787_s5 + $0x6e8] sm:$0xff]  ;;  %v2676_v3 = vcombine.low %v408_v55, %v416_v56 }
 0x1f1   :  { %v2663_v6 = vcombine.high %v393_v1, %v401_v2  ;;  %v2662_v12 = vcombine.low %v393_v1, %v401_v2  ;;  %v266_v1 = vld [vmem:[%s3787_s5 + $0x2b0] sm:$0xff] }
 0x1f2   :  { %1885 = vmatpush1.bf16.msra.mxu0 %v2532_v8  ;;  %v384_v8 = vld [vmem:[%s3787_s5 + $0x660] sm:$0xff]  ;;  %v274_v2 = vld [vmem:[%s3787_s5 + $0x2f0] sm:$0xff] }
 0x1f3   :  { %1926 = vmatpush1.bf16.msra.mxu1 %v2534_v9  ;;  %1886 = vmatprep.subr.bf16.mxu0 %v2517_v10  ;;  %v377_v9 = vld [vmem:[%s3787_s5 + $0x628] sm:$0xff]  ;;  %v2645_v13 = vcombine.high %v376_v7, %v384_v8 }
 0x1f4   :  { %1927 = vmatprep.subr.bf16.mxu1 %v2519_v11  ;;  %v385_v10 = vld [vmem:[%s3787_s5 + $0x668] sm:$0xff]  ;;  %v2660_v11 = vcombine.low %v392_v63, %v400_v0 }
 0x1f5   :  { %v2647_v14 = vcombine.high %v377_v9, %v385_v10  ;;  %v2646_v20 = vcombine.low %v377_v9, %v385_v10  ;;  %v250_v10 = vld [vmem:[%s3787_s5 + $0x230] sm:$0xff] }
 0x1f6   :  { %1887 = vmatpush1.bf16.msra.mxu0 %v2516_v16  ;;  %v368_v16 = vld [vmem:[%s3787_s5 + $0x5e0] sm:$0xff] }
 0x1f7   :  { %1928 = vmatpush1.bf16.msra.mxu1 %v2518_v17  ;;  %1888 = vmatprep.subr.bf16.mxu0 %v2501_v18  ;;  %v361_v17 = vld [vmem:[%s3787_s5 + $0x5a8] sm:$0xff]  ;;  %v2629_v21 = vcombine.high %v360_v15, %v368_v16 }
 0x1f8   :  { %1929 = vmatprep.subr.bf16.mxu1 %v2503_v19  ;;  %v369_v18 = vld [vmem:[%s3787_s5 + $0x5e8] sm:$0xff]  ;;  %v2644_v19 = vcombine.low %v376_v7, %v384_v8  ;;  %v2537_v8 = vcombine.high %v266_v1, %v274_v2 }
 0x1f9   :  { %v2631_v22 = vcombine.high %v361_v17, %v369_v18  ;;  %v2630_v29 = vcombine.low %v361_v17, %v369_v18  ;;  %v234_v17 = vld [vmem:[%s3787_s5 + $0x1b0] sm:$0xff] }
 0x1fa   :  { %1889 = vmatpush1.bf16.msra.mxu0 %v2500_v24  ;;  %v352_v24 = vld [vmem:[%s3787_s5 + $0x560] sm:$0xff]  ;;  %v242_v18 = vld [vmem:[%s3787_s5 + $0x1f0] sm:$0xff] }
 0x1fb   :  { %1930 = vmatpush1.bf16.msra.mxu1 %v2502_v25  ;;  %1890 = vmatprep.subr.bf16.mxu0 %v2485_v26  ;;  %v345_v25 = vld [vmem:[%s3787_s5 + $0x528] sm:$0xff]  ;;  %v2613_v30 = vcombine.high %v344_v23, %v352_v24 }
 0x1fc   :  { %1931 = vmatprep.subr.bf16.mxu1 %v2487_v28  ;;  %v353_v26 = vld [vmem:[%s3787_s5 + $0x568] sm:$0xff]  ;;  %v2628_v28 = vcombine.low %v360_v15, %v368_v16 }
 0x1fd   :  { %v2615_v31 = vcombine.high %v345_v25, %v353_v26  ;;  %v2614_v37 = vcombine.low %v345_v25, %v353_v26  ;;  %v218_v25 = vld [vmem:[%s3787_s5 + $0x130] sm:$0xff] }
 0x1fe   :  { %1891 = vmatpush1.bf16.msra.mxu0 %v2484_v33  ;;  %v336_v33 = vld [vmem:[%s3787_s5 + $0x4e0] sm:$0xff]  ;;  %v226_v26 = vld [vmem:[%s3787_s5 + $0x170] sm:$0xff] }
 0x1ff   :  { %1932 = vmatpush1.bf16.msra.mxu1 %v2486_v34  ;;  %1892 = vmatprep.subr.bf16.mxu0 %v2469_v35  ;;  %v329_v34 = vld [vmem:[%s3787_s5 + $0x4a8] sm:$0xff]  ;;  %v2597_v38 = vcombine.high %v328_v32, %v336_v33 }
 0x200   :  { %1933 = vmatprep.subr.bf16.mxu1 %v2471_v36  ;;  %v337_v35 = vld [vmem:[%s3787_s5 + $0x4e8] sm:$0xff]  ;;  %v2612_v36 = vcombine.low %v344_v23, %v352_v24  ;;  %v2505_v23 = vcombine.high %v234_v17, %v242_v18 }
 0x201   :  { %v2599_v39 = vcombine.high %v329_v34, %v337_v35  ;;  %v2598_v45 = vcombine.low %v329_v34, %v337_v35  ;;  %v202_v34 = vld [vmem:[%s3787_s5 + $0xb0] sm:$0xff] }
 0x202   :  { %1893 = vmatpush1.bf16.msra.mxu0 %v2468_v41  ;;  %v320_v41 = vld [vmem:[%s3787_s5 + $0x460] sm:$0xff]  ;;  %v210_v35 = vld [vmem:[%s3787_s5 + $0xf0] sm:$0xff] }
 0x203   :  { %1934 = vmatpush1.bf16.msra.mxu1 %v2470_v42  ;;  %1894 = vmatprep.subr.bf16.mxu0 %v2453_v43  ;;  %v313_v42 = vld [vmem:[%s3787_s5 + $0x428] sm:$0xff]  ;;  %v2581_v46 = vcombine.high %v312_v40, %v320_v41 }
 0x204   :  { %1935 = vmatprep.subr.bf16.mxu1 %v2455_v44  ;;  %v321_v43 = vld [vmem:[%s3787_s5 + $0x468] sm:$0xff]  ;;  %v2596_v44 = vcombine.low %v328_v32, %v336_v33  ;;  %v2489_v32 = vcombine.high %v218_v25, %v226_v26 }
 0x205   :  { %v2583_v47 = vcombine.high %v313_v42, %v321_v43  ;;  %v2582_v55 = vcombine.low %v313_v42, %v321_v43  ;;  %v186_v42 = vld [vmem:[%s3787_s5 + $0x30] sm:$0xff] }
 0x206   :  { %1895 = vmatpush1.bf16.msra.mxu0 %v2452_v49  ;;  %v306_v49 = vld [vmem:[%s3787_s5 + $0x3f0] sm:$0xff] }
 0x207   :  { %1936 = vmatpush1.bf16.msra.mxu1 %v2454_v52  ;;  %1896 = vmatprep.subr.bf16.mxu0 %v2693_v53  ;;  %v299_v52 = vld [vmem:[%s3787_s5 + $0x3b8] sm:$0xff]  ;;  %v2569_v56 = vcombine.high %v298_v48, %v306_v49  ;;  %v194_v43 = vld [vmem:[%s3787_s5 + $0x70] sm:$0xff] }
 0x208   :  { %1937 = vmatprep.subr.bf16.mxu1 %v2695_v54  ;;  %v307_v53 = vld [vmem:[%s3787_s5 + $0x3f8] sm:$0xff]  ;;  %v2580_v54 = vcombine.low %v312_v40, %v320_v41  ;;  %v2473_v40 = vcombine.high %v202_v34, %v210_v35 }
 0x209   :  { %v2571_v57 = vcombine.high %v299_v52, %v307_v53  ;;  %v2570_v63 = vcombine.low %v299_v52, %v307_v53  ;;  %v426_v52 = vld [vmem:[%s3787_s5 + $0x7b0] sm:$0xff] }
 0x20a   :  { %1897 = vmatpush2.bf16.msra.mxu0 %v2692_v59  ;;  %v290_v59 = vld [vmem:[%s3787_s5 + $0x370] sm:$0xff] }
 0x20b   :  { %1938 = vmatpush2.bf16.msra.mxu1 %v2694_v60  ;;  %1898 = vmatprep.subr.bf16.mxu0 %v2677_v61  ;;  %v2568_v60 = vcombine.low %v298_v48, %v306_v49  ;;  %v283_v61 = vld [vmem:[%s3787_s5 + $0x338] sm:$0xff]  ;;  %v2553_v0 = vcombine.high %v282_v58, %v290_v59  ;;  %v2457_v48 = vcombine.high %v186_v42, %v194_v43  ;;  %v434_v53 = vld [vmem:[%s3787_s5 + $0x7f0] sm:$0xff] }
 0x20c   :  { %1939 = vmatprep.subr.bf16.mxu1 %v2679_v62  ;;  %v291_v62 = vld [vmem:[%s3787_s5 + $0x378] sm:$0xff] }
 0x20d   :  { %v2554_v7 = vcombine.low %v283_v61, %v291_v62 }
 0x20e   :  { %1899 = vmatpush2.bf16.msra.mxu0 %v2676_v3  ;;  %v2555_v3 = vcombine.high %v283_v61, %v291_v62  ;;  %v418_v61 = vld [vmem:[%s3787_s5 + $0x770] sm:$0xff]  ;;  %v411_v62 = vld [vmem:[%s3787_s5 + $0x738] sm:$0xff] }
 0x20f   :  { %1940 = vmatpush2.bf16.msra.mxu1 %v2678_v4  ;;  %1900 = vmatprep.subr.bf16.mxu0 %v2661_v5  ;;  %v267_v4 = vld [vmem:[%s3787_s5 + $0x2b8] sm:$0xff] }
 0x210   :  { %1941 = vmatprep.subr.bf16.mxu1 %v2663_v6  ;;  %v275_v5 = vld [vmem:[%s3787_s5 + $0x2f8] sm:$0xff]  ;;  %v2552_v6 = vcombine.low %v282_v58, %v290_v59  ;;  %v2697_v58 = vcombine.high %v426_v52, %v434_v53 }
 0x211   :  { %v2539_v9 = vcombine.high %v267_v4, %v275_v5 }
 0x212   :  { %1901 = vmatpush2.bf16.msra.mxu0 %v2660_v11  ;;  %v258_v11 = vld [vmem:[%s3787_s5 + $0x270] sm:$0xff] }
 0x213   :  { %1942 = vmatpush2.bf16.msra.mxu1 %v2662_v12  ;;  %1902 = vmatprep.subr.bf16.mxu0 %v2645_v13  ;;  %v251_v12 = vld [vmem:[%s3787_s5 + $0x238] sm:$0xff]  ;;  %v2521_v15 = vcombine.high %v250_v10, %v258_v11 }
 0x214   :  { %1943 = vmatprep.subr.bf16.mxu1 %v2647_v14  ;;  %v259_v13 = vld [vmem:[%s3787_s5 + $0x278] sm:$0xff]  ;;  %v2538_v14 = vcombine.low %v267_v4, %v275_v5  ;;  %v394_v4 = vld [vmem:[%s3787_s5 + $0x6b0] sm:$0xff] }
 0x215   :  { %v2523_v16 = vcombine.high %v251_v12, %v259_v13  ;;  %v402_v5 = vld [vmem:[%s3787_s5 + $0x6f0] sm:$0xff] }
 0x216   :  { %1903 = vmatpush2.bf16.msra.mxu0 %v2644_v19  ;;  %v235_v19 = vld [vmem:[%s3787_s5 + $0x1b8] sm:$0xff] }
 0x217   :  { %1944 = vmatpush2.bf16.msra.mxu1 %v2646_v20  ;;  %1904 = vmatprep.subr.bf16.mxu0 %v2629_v21  ;;  %v243_v20 = vld [vmem:[%s3787_s5 + $0x1f8] sm:$0xff]  ;;  %v2520_v21 = vcombine.low %v250_v10, %v258_v11  ;;  %v2665_v10 = vcombine.high %v394_v4, %v402_v5 }
 0x218   :  { %1945 = vmatprep.subr.bf16.mxu1 %v2631_v22  ;;  %v2522_v22 = vcombine.low %v251_v12, %v259_v13  ;;  %v2507_v24 = vcombine.high %v235_v19, %v243_v20  ;;  %v378_v12 = vld [vmem:[%s3787_s5 + $0x630] sm:$0xff] }
 0x219   :  { %v386_v13 = vld [vmem:[%s3787_s5 + $0x670] sm:$0xff] }
 0x21a   :  { %1905 = vmatpush2.bf16.msra.mxu0 %v2628_v28  ;;  %v219_v28 = vld [vmem:[%s3787_s5 + $0x138] sm:$0xff] }
 0x21b   :  { %1946 = vmatpush2.bf16.msra.mxu1 %v2630_v29  ;;  %1906 = vmatprep.subr.bf16.mxu0 %v2613_v30  ;;  %v227_v29 = vld [vmem:[%s3787_s5 + $0x178] sm:$0xff]  ;;  %v2504_v30 = vcombine.low %v234_v17, %v242_v18  ;;  %v2649_v17 = vcombine.high %v378_v12, %v386_v13 }
 0x21c   :  { %1947 = vmatprep.subr.bf16.mxu1 %v2615_v31  ;;  %v2506_v31 = vcombine.low %v235_v19, %v243_v20  ;;  %v2491_v33 = vcombine.high %v219_v28, %v227_v29  ;;  %v362_v19 = vld [vmem:[%s3787_s5 + $0x5b0] sm:$0xff] }
 0x21d   :  { %v370_v20 = vld [vmem:[%s3787_s5 + $0x5f0] sm:$0xff] }
 0x21e   :  { %1907 = vmatpush2.bf16.msra.mxu0 %v2612_v36  ;;  %v203_v36 = vld [vmem:[%s3787_s5 + $0xb8] sm:$0xff] }
 0x21f   :  { %1948 = vmatpush2.bf16.msra.mxu1 %v2614_v37  ;;  %1908 = vmatprep.subr.bf16.mxu0 %v2597_v38  ;;  %v211_v37 = vld [vmem:[%s3787_s5 + $0xf8] sm:$0xff]  ;;  %v2488_v38 = vcombine.low %v218_v25, %v226_v26  ;;  %v2633_v25 = vcombine.high %v362_v19, %v370_v20 }
 0x220   :  { %1949 = vmatprep.subr.bf16.mxu1 %v2599_v39  ;;  %v2490_v39 = vcombine.low %v219_v28, %v227_v29  ;;  %v2475_v41 = vcombine.high %v203_v36, %v211_v37  ;;  %v346_v28 = vld [vmem:[%s3787_s5 + $0x530] sm:$0xff] }
 0x221   :  { %v354_v29 = vld [vmem:[%s3787_s5 + $0x570] sm:$0xff] }
 0x222   :  { %1909 = vmatpush2.bf16.msra.mxu0 %v2596_v44  ;;  %v187_v44 = vld [vmem:[%s3787_s5 + $0x38] sm:$0xff] }
 0x223   :  { %1950 = vmatpush2.bf16.msra.mxu1 %v2598_v45  ;;  %1910 = vmatprep.subr.bf16.mxu0 %v2581_v46  ;;  %v195_v45 = vld [vmem:[%s3787_s5 + $0x78] sm:$0xff]  ;;  %v2472_v46 = vcombine.low %v202_v34, %v210_v35  ;;  %v2617_v34 = vcombine.high %v346_v28, %v354_v29 }
 0x224   :  { %1951 = vmatprep.subr.bf16.mxu1 %v2583_v47  ;;  %v2474_v47 = vcombine.low %v203_v36, %v211_v37  ;;  %v2459_v49 = vcombine.high %v187_v44, %v195_v45  ;;  %v330_v36 = vld [vmem:[%s3787_s5 + $0x4b0] sm:$0xff] }
 0x225   :  { %v338_v37 = vld [vmem:[%s3787_s5 + $0x4f0] sm:$0xff] }
 0x226   :  { %1911 = vmatpush2.bf16.msra.mxu0 %v2580_v54  ;;  %v427_v54 = vld [vmem:[%s3787_s5 + $0x7b8] sm:$0xff] }
 0x227   :  { %1952 = vmatpush2.bf16.msra.mxu1 %v2582_v55  ;;  %1962 = vmatprep.subr.bf16.mxu0 %v2569_v56  ;;  %v435_v55 = vld [vmem:[%s3787_s5 + $0x7f8] sm:$0xff]  ;;  %v2456_v56 = vcombine.low %v186_v42, %v194_v43  ;;  %v2601_v42 = vcombine.high %v330_v36, %v338_v37 }
 0x228   :  { %2003 = vmatprep.subr.bf16.mxu1 %v2571_v57  ;;  %v2458_v57 = vcombine.low %v187_v44, %v195_v45  ;;  %v2699_v59 = vcombine.high %v427_v54, %v435_v55  ;;  %v314_v44 = vld [vmem:[%s3787_s5 + $0x430] sm:$0xff] }
 0x229   :  { %1913 = vmatmul.mubr.bf16.vlgmr.msra.gmra.mxu0 %v3027_v51  ;;  %v322_v45 = vld [vmem:[%s3787_s5 + $0x470] sm:$0xff] }
 0x22a   :  { %1954 = vmatmul.mubr.bf16.vlgmr.msra.gmra.mxu1 %v3027_v51  ;;  %1963 = vmatpush1.bf16.msra.mxu0 %v2568_v60  ;;  %v410_v60 = vld [vmem:[%s3787_s5 + $0x730] sm:$0xff] }
 0x22b   :  { %1994 = vmatprep.mubr.bf16.mxu0 %v3025_v50  ;;  %2004 = vmatpush1.bf16.msra.mxu1 %v2570_v63  ;;  %v419_v63 = vld [vmem:[%s3787_s5 + $0x778] sm:$0xff] }
 0x22c   :  { %2035 = vmatprep.mubr.bf16.mxu1 %v3025_v50  ;;  %1964 = vmatprep.subr.bf16.mxu0 %v2553_v0  ;;  %v2536_v50 = vcombine.low %v266_v1, %v274_v2  ;;  %v2696_v0 = vcombine.low %v426_v52, %v434_v53  ;;  %v2698_v1 = vcombine.low %v427_v54, %v435_v55 }
 0x22d   :  { %2005 = vmatprep.subr.bf16.mxu1 %v2555_v3  ;;  %v2681_v2 = vcombine.high %v410_v60, %v418_v61  ;;  %v2683_v3 = vcombine.high %v411_v62, %v419_v63  ;;  %v2585_v52 = vcombine.high %v314_v44, %v322_v45  ;;  %v2584_v54 = vcombine.low %v314_v44, %v322_v45 }
 0x22e   :  { %1965 = vmatpush1.bf16.msra.mxu0 %v2552_v6  ;;  %v395_v6 = vld [vmem:[%s3787_s5 + $0x6b8] sm:$0xff] }
 0x22f   :  { %2006 = vmatpush1.bf16.msra.mxu1 %v2554_v7  ;;  %1966 = vmatprep.subr.bf16.mxu0 %v2537_v8  ;;  %v403_v7 = vld [vmem:[%s3787_s5 + $0x6f8] sm:$0xff]  ;;  %v2680_v8 = vcombine.low %v410_v60, %v418_v61 }
 0x230   :  { %2007 = vmatprep.subr.bf16.mxu1 %v2539_v9  ;;  %v2682_v9 = vcombine.low %v411_v62, %v419_v63  ;;  %v2667_v11 = vcombine.high %v395_v6, %v403_v7 }
 0x232   :  { %1967 = vmatpush1.bf16.msra.mxu0 %v2536_v50  ;;  %v379_v50 = vld [vmem:[%s3787_s5 + $0x638] sm:$0xff] }
 0x233   :  { %2008 = vmatpush1.bf16.msra.mxu1 %v2538_v14  ;;  %1968 = vmatprep.subr.bf16.mxu0 %v2521_v15  ;;  %v387_v14 = vld [vmem:[%s3787_s5 + $0x678] sm:$0xff]  ;;  %v2664_v15 = vcombine.low %v394_v4, %v402_v5 }
 0x234   :  { %2009 = vmatprep.subr.bf16.mxu1 %v2523_v16  ;;  %v2666_v16 = vcombine.low %v395_v6, %v403_v7  ;;  %v2651_v18 = vcombine.high %v379_v50, %v387_v14 }
 0x236   :  { %1969 = vmatpush1.bf16.msra.mxu0 %v2520_v21  ;;  %v363_v21 = vld [vmem:[%s3787_s5 + $0x5b8] sm:$0xff] }
 0x237   :  { %2010 = vmatpush1.bf16.msra.mxu1 %v2522_v22  ;;  %1970 = vmatprep.subr.bf16.mxu0 %v2505_v23  ;;  %v371_v22 = vld [vmem:[%s3787_s5 + $0x5f8] sm:$0xff]  ;;  %v2648_v23 = vcombine.low %v378_v12, %v386_v13 }
 0x238   :  { %2011 = vmatprep.subr.bf16.mxu1 %v2507_v24  ;;  %v2650_v24 = vcombine.low %v379_v50, %v387_v14  ;;  %v2635_v26 = vcombine.high %v363_v21, %v371_v22 }
 0x23a   :  { %1971 = vmatpush1.bf16.msra.mxu0 %v2504_v30  ;;  %v347_v30 = vld [vmem:[%s3787_s5 + $0x538] sm:$0xff] }
 0x23b   :  { %2012 = vmatpush1.bf16.msra.mxu1 %v2506_v31  ;;  %1972 = vmatprep.subr.bf16.mxu0 %v2489_v32  ;;  %v355_v31 = vld [vmem:[%s3787_s5 + $0x578] sm:$0xff]  ;;  %v2632_v32 = vcombine.low %v362_v19, %v370_v20 }
 0x23c   :  { %2013 = vmatprep.subr.bf16.mxu1 %v2491_v33  ;;  %v2634_v33 = vcombine.low %v363_v21, %v371_v22  ;;  %v2619_v35 = vcombine.high %v347_v30, %v355_v31 }
 0x23e   :  { %1973 = vmatpush1.bf16.msra.mxu0 %v2488_v38  ;;  %v331_v38 = vld [vmem:[%s3787_s5 + $0x4b8] sm:$0xff] }
 0x23f   :  { %2014 = vmatpush1.bf16.msra.mxu1 %v2490_v39  ;;  %1974 = vmatprep.subr.bf16.mxu0 %v2473_v40  ;;  %v339_v39 = vld [vmem:[%s3787_s5 + $0x4f8] sm:$0xff]  ;;  %v2616_v40 = vcombine.low %v346_v28, %v354_v29 }
 0x240   :  { %2015 = vmatprep.subr.bf16.mxu1 %v2475_v41  ;;  %v2618_v41 = vcombine.low %v347_v30, %v355_v31  ;;  %v2603_v43 = vcombine.high %v331_v38, %v339_v39 }
 0x242   :  { %1975 = vmatpush1.bf16.msra.mxu0 %v2472_v46  ;;  %v315_v46 = vld [vmem:[%s3787_s5 + $0x438] sm:$0xff] }
 0x243   :  { %2016 = vmatpush1.bf16.msra.mxu1 %v2474_v47  ;;  %1976 = vmatprep.subr.bf16.mxu0 %v2457_v48  ;;  %v323_v47 = vld [vmem:[%s3787_s5 + $0x478] sm:$0xff]  ;;  %v2600_v48 = vcombine.low %v330_v36, %v338_v37 }
 0x244   :  { %2017 = vmatprep.subr.bf16.mxu1 %v2459_v49  ;;  %v2602_v49 = vcombine.low %v331_v38, %v339_v39  ;;  %v2587_v53 = vcombine.high %v315_v46, %v323_v47  ;;  %v2586_v55 = vcombine.low %v315_v46, %v323_v47 }
 0x246   :  { %1977 = vmatpush1.bf16.msra.mxu0 %v2456_v56 }
 0x247   :  { %2018 = vmatpush1.bf16.msra.mxu1 %v2458_v57  ;;  %1978 = vmatprep.subr.bf16.mxu0 %v2697_v58 }
 0x248   :  { %2019 = vmatprep.subr.bf16.mxu1 %v2699_v59 }
 0x24a   :  { %1979 = vmatpush2.bf16.msra.mxu0 %v2696_v0 }
 0x24b   :  { %2020 = vmatpush2.bf16.msra.mxu1 %v2698_v1  ;;  %1980 = vmatprep.subr.bf16.mxu0 %v2681_v2 }
 0x24c   :  { %2021 = vmatprep.subr.bf16.mxu1 %v2683_v3 }
 0x24e   :  { %1981 = vmatpush2.bf16.msra.mxu0 %v2680_v8 }
 0x24f   :  { %2022 = vmatpush2.bf16.msra.mxu1 %v2682_v9  ;;  %1982 = vmatprep.subr.bf16.mxu0 %v2665_v10 }
 0x250   :  { %2023 = vmatprep.subr.bf16.mxu1 %v2667_v11 }
 0x252   :  { %1983 = vmatpush2.bf16.msra.mxu0 %v2664_v15 }
 0x253   :  { %2024 = vmatpush2.bf16.msra.mxu1 %v2666_v16  ;;  %1984 = vmatprep.subr.bf16.mxu0 %v2649_v17 }
 0x254   :  { %2025 = vmatprep.subr.bf16.mxu1 %v2651_v18 }
 0x256   :  { %1985 = vmatpush2.bf16.msra.mxu0 %v2648_v23 }
 0x257   :  { %2026 = vmatpush2.bf16.msra.mxu1 %v2650_v24  ;;  %1986 = vmatprep.subr.bf16.mxu0 %v2633_v25 }
 0x258   :  { %2027 = vmatprep.subr.bf16.mxu1 %v2635_v26 }
 0x25a   :  { %1987 = vmatpush2.bf16.msra.mxu0 %v2632_v32 }
 0x25b   :  { %2028 = vmatpush2.bf16.msra.mxu1 %v2634_v33  ;;  %1988 = vmatprep.subr.bf16.mxu0 %v2617_v34 }
 0x25c   :  { %2029 = vmatprep.subr.bf16.mxu1 %v2619_v35 }
 0x25e   :  { %1989 = vmatpush2.bf16.msra.mxu0 %v2616_v40 }
 0x25f   :  { %2030 = vmatpush2.bf16.msra.mxu1 %v2618_v41  ;;  %1990 = vmatprep.subr.bf16.mxu0 %v2601_v42 }
 0x260   :  { %2031 = vmatprep.subr.bf16.mxu1 %v2603_v43 }
 0x262   :  { %1991 = vmatpush2.bf16.msra.mxu0 %v2600_v48 }
 0x263   :  { %2032 = vmatpush2.bf16.msra.mxu1 %v2602_v49  ;;  %1992 = vmatprep.subr.bf16.mxu0 %v2585_v52 }
 0x264   :  { %2033 = vmatprep.subr.bf16.mxu1 %v2587_v53 }
 0x266   :  { %1993 = vmatpush2.bf16.msra.mxu0 %v2584_v54 }
 0x267   :  { %2034 = vmatpush2.bf16.msra.mxu1 %v2586_v55 }
 0x269   :  { %1995 = vmatmul.mubr.bf16.vlgmr.msra.gmra.mxu0 %v3027_v51  ;;  %v3596_v56 = vpop.f32.mrf.mxu0  ;;  %v3598_v57 = vpop.f32.mrf.mxu1 }
 0x26a   :  { %2036 = vmatmul.mubr.bf16.vlgmr.msra.gmra.mxu1 %v3027_v51  ;;  %v2045_v15 = vsel %vm2044_vm4, %v3596_v56, 0.0  ;;  %v2061_v18 = vsel %vm2044_vm4, %v3598_v57, 0.0 }
 0x26b   :  { %v3601_v58 = vpop.f32.mrf.mxu0  ;;  %v3603_v59 = vpop.f32.mrf.mxu1  ;;  %v2046_v17 = vrot.slane %v2045_v15, 4  ;;  %v2062_v20 = vrot.slane %v2061_v18, 4 }
 0x26c   :  { %v2053_v14 = vsel %vm2044_vm4, %v3601_v58, 0.0  ;;  %v2069_v22 = vsel %vm2044_vm4, %v3603_v59, 0.0 }
 0x26d   :  { %v1754_v60 = vpop.f32.mrf.mxu0  ;;  %v1795_v61 = vpop.f32.mrf.mxu1  ;;  %v2054_v16 = vrot.slane %v2053_v14, 4  ;;  %v2047_v21 = vadd.f32 %v2046_v17, %v2045_v15  ;;  %v2063_v25 = vadd.f32 %v2062_v20, %v2061_v18  ;;  %v2070_v28 = vrot.slane %v2069_v22, 4 }
 0x26f   :  { %v1755_v62 = vpop.f32.mrf.mxu0  ;;  %v1796_v63 = vpop.f32.mrf.mxu1  ;;  %v2055_v19 = vadd.f32 %v2054_v16, %v2053_v14  ;;  %v2048_v26 = vrot.slane %v2047_v21, 2  ;;  %v2064_v32 = vrot.slane %v2063_v25, 2  ;;  %v2071_v34 = vadd.f32 %v2070_v28, %v2069_v22 }
 0x271   :  { %v2056_v23 = vrot.slane %v2055_v19, 2  ;;  %v2049_v33 = vadd.f32 %v2048_v26, %v2047_v21  ;;  %v2065_v38 = vadd.f32 %v2064_v32, %v2063_v25  ;;  %v2072_v40 = vrot.slane %v2071_v34, 2 }
 0x273   :  { %v2057_v30 = vadd.f32 %v2056_v23, %v2055_v19  ;;  %v2050_v39 = vrot.slane %v2049_v33, 1  ;;  %v2066_v45 = vrot.slane %v2065_v38, 1  ;;  %v2073_v48 = vadd.f32 %v2072_v40, %v2071_v34 }
 0x275   :  { %v2058_v37 = vrot.slane %v2057_v30, 1  ;;  %v2051_v47 = vadd.f32 %v2050_v39, %v2049_v33  ;;  %v2067_v63 = vadd.f32 %v2066_v45, %v2065_v38 }
 0x277   :  { %v2059_v44 = vadd.f32 %v2058_v37, %v2057_v30 }
 0x279   :  { %v2060_v55 = vadd.f32 %v2059_v44, %v2051_v47 }
 0x2a9   :  { %v3605_v0 = vpop.f32.mrf.mxu0  ;;  %v3607_v1 = vpop.f32.mrf.mxu1 }
 0x2aa   :  { %v2077_v24 = vsel %vm2044_vm4, %v3605_v0, 0.0  ;;  %v2093_v41 = vsel %vm2044_vm4, %v3607_v1, 0.0 }
 0x2ab   :  { %v3609_v2 = vpop.f32.mrf.mxu0  ;;  %v3611_v3 = vpop.f32.mrf.mxu1  ;;  %v2078_v29 = vrot.slane %v2077_v24, 4  ;;  %v2094_v46 = vrot.slane %v2093_v41, 4 }
 0x2ac   :  { %v2085_v31 = vsel %vm2044_vm4, %v3609_v2, 0.0  ;;  %v2101_v49 = vsel %vm2044_vm4, %v3611_v3, 0.0 }
 0x2ad   :  { %v1836_v4 = vpop.f32.mrf.mxu0  ;;  %v1877_v5 = vpop.f32.mrf.mxu1  ;;  %v2079_v35 = vadd.f32 %v2078_v29, %v2077_v24  ;;  %v2086_v36 = vrot.slane %v2085_v31, 4  ;;  %v2095_v60 = vadd.f32 %v2094_v46, %v2093_v41  ;;  %v2102_v61 = vrot.slane %v2101_v49, 4 }
 0x2ae   :  { %v2074_v4 = vrot.slane %v2073_v48, 1 }
 0x2af   :  { %v1837_v6 = vpop.f32.mrf.mxu0  ;;  %v1878_v51 = vpop.f32.mrf.mxu1  ;;  %v2080_v42 = vrot.slane %v2079_v35, 2  ;;  %v2087_v43 = vadd.f32 %v2086_v36, %v2085_v31 }
 0x2b0   :  { %v2075_v15 = vadd.f32 %v2074_v4, %v2073_v48 }
 0x2b1   :  { %v2081_v53 = vadd.f32 %v2080_v42, %v2079_v35  ;;  %v2088_v54 = vrot.slane %v2087_v43, 2 }
 0x2b3   :  { %v2082_v6 = vrot.slane %v2081_v53, 1  ;;  %v2089_v51 = vadd.f32 %v2088_v54, %v2087_v43 }
 0x2b5   :  { %v2083_v16 = vadd.f32 %v2082_v6, %v2081_v53  ;;  %v2090_v17 = vrot.slane %v2089_v51, 1 }
 0x2b7   :  { %v2091_v25 = vadd.f32 %v2090_v17, %v2089_v51 }
 0x2e9   :  { %v3613_v7 = vpop.f32.mrf.mxu0 }
 0x2ea   :  { %v3615_v8 = vpop.f32.mrf.mxu1  ;;  %v2109_v52 = vsel %vm2044_vm4, %v3613_v7, 0.0 }
 0x2eb   :  { %v3617_v9 = vpop.f32.mrf.mxu0  ;;  %v2110_v62 = vrot.slane %v2109_v52, 4  ;;  %v2125_v19 = vsel %vm2044_vm4, %v3615_v8, 0.0 }
 0x2ec   :  { %v3619_v10 = vpop.f32.mrf.mxu1  ;;  %v2117_v5 = vsel %vm2044_vm4, %v3617_v9, 0.0  ;;  %v2126_v26 = vrot.slane %v2125_v19, 4 }
 0x2ed   :  { %v1918_v11 = vpop.f32.mrf.mxu0  ;;  %v2118_v14 = vrot.slane %v2117_v5, 4  ;;  %v2133_v28 = vsel %vm2044_vm4, %v3619_v10, 0.0 }
 0x2ee   :  { %v1959_v12 = vpop.f32.mrf.mxu1  ;;  %v2068_v11 = vadd.f32 %v2067_v63, %v2060_v55  ;;  %v2127_v34 = vadd.f32 %v2126_v26, %v2125_v19  ;;  %v2134_v35 = vrot.slane %v2133_v28, 4 }
 0x2ef   :  { %v1919_v13 = vpop.f32.mrf.mxu0  ;;  %v2096_v12 = vrot.slane %v2095_v60, 2  ;;  %v2119_v23 = vadd.f32 %v2118_v14, %v2117_v5 }
 0x2f0   :  { %v1960_v50 = vpop.f32.mrf.mxu1  ;;  %v2103_v13 = vadd.f32 %v2102_v61, %v2101_v49  ;;  %v2076_v18 = vadd.f32 %v2075_v15, %v2068_v11  ;;  %v2128_v41 = vrot.slane %v2127_v34, 2  ;;  %v2135_v42 = vadd.f32 %v2134_v35, %v2133_v28 }
 0x2f1   :  { %v2111_v50 = vadd.f32 %v2110_v62, %v2109_v52  ;;  %v2097_v20 = vadd.f32 %v2096_v12, %v2095_v60  ;;  %v2120_v32 = vrot.slane %v2119_v23, 2 }
 0x2f2   :  { %v2104_v21 = vrot.slane %v2103_v13, 2  ;;  %v2084_v24 = vadd.f32 %v2083_v16, %v2076_v18  ;;  %v2129_v47 = vadd.f32 %v2128_v41, %v2127_v34  ;;  %v2136_v48 = vrot.slane %v2135_v42, 2 }
 0x2f3   :  { %v2112_v22 = vrot.slane %v2111_v50, 2  ;;  %v2098_v29 = vrot.slane %v2097_v20, 1  ;;  %v2121_v39 = vadd.f32 %v2120_v32, %v2119_v23 }
 0x2f4   :  { %v2105_v30 = vadd.f32 %v2104_v21, %v2103_v13  ;;  %v2092_v33 = vadd.f32 %v2091_v25, %v2084_v24  ;;  %v2130_v60 = vrot.slane %v2129_v47, 1  ;;  %v2137_v61 = vadd.f32 %v2136_v48, %v2135_v42 }
 0x2f5   :  { %v2113_v31 = vadd.f32 %v2112_v22, %v2111_v50  ;;  %v2099_v36 = vadd.f32 %v2098_v29, %v2097_v20  ;;  %v2122_v45 = vrot.slane %v2121_v39, 1 }
 0x2f6   :  { %v2106_v37 = vrot.slane %v2105_v30, 1  ;;  %v2131_v18 = vadd.f32 %v2130_v60, %v2129_v47  ;;  %v2138_v19 = vrot.slane %v2137_v61, 1 }
 0x2f7   :  { %v2114_v38 = vrot.slane %v2113_v31, 1  ;;  %v2100_v40 = vadd.f32 %v2099_v36, %v2092_v33  ;;  %v2123_v52 = vadd.f32 %v2122_v45, %v2121_v39 }
 0x2f8   :  { %v2107_v43 = vadd.f32 %v2106_v37, %v2105_v30  ;;  %v2139_v32 = vadd.f32 %v2138_v19, %v2137_v61 }
 0x2f9   :  { %v2115_v44 = vadd.f32 %v2114_v38, %v2113_v31 }
 0x2fa   :  { %v2108_v46 = vadd.f32 %v2107_v43, %v2100_v40 }
 0x2fc   :  { %v2116_v49 = vadd.f32 %v2115_v44, %v2108_v46 }
 0x2fe   :  { %v2124_v11 = vadd.f32 %v2123_v52, %v2116_v49 }
 0x300   :  { %v2132_v26 = vadd.f32 %v2131_v18, %v2124_v11 }
 0x302   :  { %v2140_v36 = vadd.f32 %v2139_v32, %v2132_v26 }
 0x329   :  { %v3645_v53 = vpop.f32.mrf.mxu0 }
 0x32a   :  { %v2141_v54 = vsel %vm2044_vm4, %v3645_v53, 0.0  ;;  %v3649_v55 = vpop.f32.mrf.mxu1 }
 0x32b   :  { %v2142_v62 = vrot.slane %v2141_v54, 4  ;;  %v2157_v63 = vsel %vm2044_vm4, %v3649_v55, 0.0  ;;  %v3653_v4 = vpop.f32.mrf.mxu0 }
 0x32c   :  { %v2158_v5 = vrot.slane %v2157_v63, 4  ;;  %v2149_v6 = vsel %vm2044_vm4, %v3653_v4, 0.0  ;;  %v3657_v51 = vpop.f32.mrf.mxu1 }
 0x32d   :  { %v2143_v12 = vadd.f32 %v2142_v62, %v2141_v54  ;;  %v2150_v13 = vrot.slane %v2149_v6, 4  ;;  %v2165_v50 = vsel %vm2044_vm4, %v3657_v51, 0.0  ;;  %v2000_v14 = vpop.f32.mrf.mxu0 }
 0x32e   :  { %v2159_v15 = vadd.f32 %v2158_v5, %v2157_v63  ;;  %v2166_v16 = vrot.slane %v2165_v50, 4  ;;  %v2041_v17 = vpop.f32.mrf.mxu1 }
 0x32f   :  { %v2144_v20 = vrot.slane %v2143_v12, 2  ;;  %v2151_v21 = vadd.f32 %v2150_v13, %v2149_v6  ;;  %v2001_v22 = vpop.f32.mrf.mxu0 }
 0x330   :  { %v2160_v23 = vrot.slane %v2159_v15, 2  ;;  %v2167_v24 = vadd.f32 %v2166_v16, %v2165_v50  ;;  %v2042_v25 = vpop.f32.mrf.mxu1 }
 0x331   :  { %v2145_v28 = vadd.f32 %v2144_v20, %v2143_v12  ;;  %v2152_v29 = vrot.slane %v2151_v21, 2 }
 0x332   :  { %v2161_v30 = vadd.f32 %v2160_v23, %v2159_v15  ;;  %v2168_v31 = vrot.slane %v2167_v24, 2 }
 0x333   :  { %v2146_v33 = vrot.slane %v2145_v28, 1  ;;  %v2153_v34 = vadd.f32 %v2152_v29, %v2151_v21 }
 0x334   :  { %v2169_v35 = vadd.f32 %v2168_v31, %v2167_v24  ;;  %v2162_v38 = vrot.slane %v2161_v30, 1 }
 0x335   :  { %v2147_v37 = vadd.f32 %v2146_v33, %v2145_v28  ;;  %v2154_v39 = vrot.slane %v2153_v34, 1 }
 0x336   :  { %v2170_v42 = vrot.slane %v2169_v35, 1  ;;  %v2163_v43 = vadd.f32 %v2162_v38, %v2161_v30 }
 0x337   :  { %v2148_v40 = vadd.f32 %v2147_v37, %v2140_v36  ;;  %v2155_v41 = vadd.f32 %v2154_v39, %v2153_v34 }
 0x338   :  { %v2171_v46 = vadd.f32 %v2170_v42, %v2169_v35 }
 0x339   :  { %v2156_v44 = vadd.f32 %v2155_v41, %v2148_v40 }
 0x33b   :  { %v2164_v45 = vadd.f32 %v2163_v43, %v2156_v44 }
 0x33d   :  { %v2172_v47 = vadd.f32 %v2171_v46, %v2164_v45 }
 0x33f   :  { %v3661_v48 = vmul.f32 0.03125, %v2172_v47 }
 0x341   :  { %v2175_v49 = vsub.f32 %v3596_v56, %v3661_v48  ;;  %v2185_v52 = vsub.f32 %v3601_v58, %v3661_v48  ;;  %v2195_v54 = vsub.f32 %v3598_v57, %v3661_v48  ;;  %v2205_v60 = vsub.f32 %v3603_v59, %v3661_v48 }
 0x342   :  { %v2215_v61 = vsub.f32 %v3605_v0, %v3661_v48  ;;  %v2225_v62 = vsub.f32 %v3609_v2, %v3661_v48  ;;  %v2235_v63 = vsub.f32 %v3607_v1, %v3661_v48  ;;  %v2245_v5 = vsub.f32 %v3611_v3, %v3661_v48 }
 0x343   :  { %v2176_v6 = vmul.f32 %v2175_v49, %v2175_v49  ;;  %v2186_v11 = vmul.f32 %v2185_v52, %v2185_v52  ;;  %v2196_v12 = vmul.f32 %v2195_v54, %v2195_v54  ;;  %v2206_v13 = vmul.f32 %v2205_v60, %v2205_v60 }
 0x344   :  { %v2216_v50 = vmul.f32 %v2215_v61, %v2215_v61  ;;  %v2226_v14 = vmul.f32 %v2225_v62, %v2225_v62  ;;  %v2236_v15 = vmul.f32 %v2235_v63, %v2235_v63  ;;  %v2246_v16 = vmul.f32 %v2245_v5, %v2245_v5 }
 0x345   :  { %v2177_v17 = vsel %vm2044_vm4, %v2176_v6, 0.0  ;;  %v2187_v18 = vsel %vm2044_vm4, %v2186_v11, 0.0  ;;  %v2197_v19 = vsel %vm2044_vm4, %v2196_v12, 0.0  ;;  %v2207_v20 = vsel %vm2044_vm4, %v2206_v13, 0.0 }
 0x346   :  { %v2178_v21 = vrot.slane %v2177_v17, 4  ;;  %v2188_v22 = vrot.slane %v2187_v18, 4  ;;  %v2198_v23 = vrot.slane %v2197_v19, 4  ;;  %v2208_v24 = vrot.slane %v2207_v20, 4 }
 0x347   :  { %v2217_v25 = vsel %vm2044_vm4, %v2216_v50, 0.0  ;;  %v2227_v26 = vsel %vm2044_vm4, %v2226_v14, 0.0  ;;  %v2237_v28 = vsel %vm2044_vm4, %v2236_v15, 0.0  ;;  %v2247_v29 = vsel %vm2044_vm4, %v2246_v16, 0.0 }
 0x348   :  { %v2179_v30 = vadd.f32 %v2178_v21, %v2177_v17  ;;  %v2189_v31 = vadd.f32 %v2188_v22, %v2187_v18  ;;  %v2199_v32 = vadd.f32 %v2198_v23, %v2197_v19  ;;  %v2209_v33 = vadd.f32 %v2208_v24, %v2207_v20 }
 0x349   :  { %v2218_v34 = vrot.slane %v2217_v25, 4  ;;  %v2228_v35 = vrot.slane %v2227_v26, 4  ;;  %v2238_v36 = vrot.slane %v2237_v28, 4  ;;  %v2248_v37 = vrot.slane %v2247_v29, 4 }
 0x34a   :  { %v2180_v38 = vrot.slane %v2179_v30, 2  ;;  %v2190_v39 = vrot.slane %v2189_v31, 2  ;;  %v2200_v40 = vrot.slane %v2199_v32, 2  ;;  %v2210_v41 = vrot.slane %v2209_v33, 2 }
 0x34b   :  { %v2219_v42 = vadd.f32 %v2218_v34, %v2217_v25  ;;  %v2229_v43 = vadd.f32 %v2228_v35, %v2227_v26  ;;  %v2239_v44 = vadd.f32 %v2238_v36, %v2237_v28  ;;  %v2249_v45 = vadd.f32 %v2248_v37, %v2247_v29 }
 0x34c   :  { %v2181_v46 = vadd.f32 %v2180_v38, %v2179_v30  ;;  %v2191_v47 = vadd.f32 %v2190_v39, %v2189_v31  ;;  %v2201_v49 = vadd.f32 %v2200_v40, %v2199_v32  ;;  %v2211_v52 = vadd.f32 %v2210_v41, %v2209_v33 }
 0x34d   :  { %v2220_v54 = vrot.slane %v2219_v42, 2  ;;  %v2230_v60 = vrot.slane %v2229_v43, 2  ;;  %v2240_v61 = vrot.slane %v2239_v44, 2  ;;  %v2250_v62 = vrot.slane %v2249_v45, 2 }
 0x34e   :  { %v2182_v63 = vrot.slane %v2181_v46, 1  ;;  %v2192_v5 = vrot.slane %v2191_v47, 1  ;;  %v2202_v6 = vrot.slane %v2201_v49, 1  ;;  %v2212_v11 = vrot.slane %v2211_v52, 1 }
 0x34f   :  { %v2221_v12 = vadd.f32 %v2220_v54, %v2219_v42  ;;  %v2231_v13 = vadd.f32 %v2230_v60, %v2229_v43  ;;  %v2241_v50 = vadd.f32 %v2240_v61, %v2239_v44  ;;  %v2251_v14 = vadd.f32 %v2250_v62, %v2249_v45 }
 0x350   :  { %v2183_v15 = vadd.f32 %v2182_v63, %v2181_v46  ;;  %v2193_v16 = vadd.f32 %v2192_v5, %v2191_v47  ;;  %v2203_v17 = vadd.f32 %v2202_v6, %v2201_v49  ;;  %v2213_v18 = vadd.f32 %v2212_v11, %v2211_v52 }
 0x351   :  { %v2222_v19 = vrot.slane %v2221_v12, 1  ;;  %v2232_v20 = vrot.slane %v2231_v13, 1  ;;  %v2242_v21 = vrot.slane %v2241_v50, 1  ;;  %v2252_v22 = vrot.slane %v2251_v14, 1 }
 0x352   :  { %v2194_v23 = vadd.f32 %v2193_v16, %v2183_v15  ;;  %v2255_v24 = vsub.f32 %v3613_v7, %v3661_v48  ;;  %v2265_v25 = vsub.f32 %v3617_v9, %v3661_v48  ;;  %v2275_v26 = vsub.f32 %v3615_v8, %v3661_v48 }
 0x353   :  { %v2223_v28 = vadd.f32 %v2222_v19, %v2221_v12  ;;  %v2233_v29 = vadd.f32 %v2232_v20, %v2231_v13  ;;  %v2243_v30 = vadd.f32 %v2242_v21, %v2241_v50  ;;  %v2253_v31 = vadd.f32 %v2252_v22, %v2251_v14 }
 0x354   :  { %v2204_v32 = vadd.f32 %v2203_v17, %v2194_v23  ;;  %v2256_v33 = vmul.f32 %v2255_v24, %v2255_v24  ;;  %v2266_v34 = vmul.f32 %v2265_v25, %v2265_v25  ;;  %v2276_v35 = vmul.f32 %v2275_v26, %v2275_v26 }
 0x355   :  { %v2285_v36 = vsub.f32 %v3619_v10, %v3661_v48  ;;  %v2295_v37 = vsub.f32 %v3645_v53, %v3661_v48  ;;  %v2305_v38 = vsub.f32 %v3653_v4, %v3661_v48  ;;  %v2315_v39 = vsub.f32 %v3649_v55, %v3661_v48 }
 0x356   :  { %v2214_v40 = vadd.f32 %v2213_v18, %v2204_v32  ;;  %v2257_v41 = vsel %vm2044_vm4, %v2256_v33, 0.0  ;;  %v2267_v42 = vsel %vm2044_vm4, %v2266_v34, 0.0  ;;  %v2277_v43 = vsel %vm2044_vm4, %v2276_v35, 0.0 }
 0x357   :  { %v2258_v44 = vrot.slane %v2257_v41, 4  ;;  %v2268_v45 = vrot.slane %v2267_v42, 4  ;;  %v2278_v46 = vrot.slane %v2277_v43, 4  ;;  %v2286_v47 = vmul.f32 %v2285_v36, %v2285_v36 }
 0x358   :  { %v2224_v49 = vadd.f32 %v2223_v28, %v2214_v40  ;;  %v2296_v52 = vmul.f32 %v2295_v37, %v2295_v37  ;;  %v2306_v54 = vmul.f32 %v2305_v38, %v2305_v38  ;;  %v2316_v60 = vmul.f32 %v2315_v39, %v2315_v39 }
 0x359   :  { %v2259_v61 = vadd.f32 %v2258_v44, %v2257_v41  ;;  %v2269_v62 = vadd.f32 %v2268_v45, %v2267_v42  ;;  %v2279_v63 = vadd.f32 %v2278_v46, %v2277_v43  ;;  %v2287_v5 = vsel %vm2044_vm4, %v2286_v47, 0.0 }
 0x35a   :  { %v2234_v6 = vadd.f32 %v2233_v29, %v2224_v49  ;;  %v2288_v11 = vrot.slane %v2287_v5, 4  ;;  %v2297_v12 = vsel %vm2044_vm4, %v2296_v52, 0.0  ;;  %v2307_v13 = vsel %vm2044_vm4, %v2306_v54, 0.0 }
 0x35b   :  { %v2260_v50 = vrot.slane %v2259_v61, 2  ;;  %v2270_v14 = vrot.slane %v2269_v62, 2  ;;  %v2280_v15 = vrot.slane %v2279_v63, 2  ;;  %v2298_v16 = vrot.slane %v2297_v12, 4 }
 0x35c   :  { %v2244_v17 = vadd.f32 %v2243_v30, %v2234_v6  ;;  %v2289_v18 = vadd.f32 %v2288_v11, %v2287_v5  ;;  %v2308_v19 = vrot.slane %v2307_v13, 4  ;;  %v2317_v20 = vsel %vm2044_vm4, %v2316_v60, 0.0 }
 0x35d   :  { %v2261_v21 = vadd.f32 %v2260_v50, %v2259_v61  ;;  %v2271_v22 = vadd.f32 %v2270_v14, %v2269_v62  ;;  %v2281_v23 = vadd.f32 %v2280_v15, %v2279_v63  ;;  %v2299_v24 = vadd.f32 %v2298_v16, %v2297_v12 }
 0x35e   :  { %v2254_v25 = vadd.f32 %v2253_v31, %v2244_v17  ;;  %v2290_v26 = vrot.slane %v2289_v18, 2  ;;  %v2309_v28 = vadd.f32 %v2308_v19, %v2307_v13  ;;  %v2318_v29 = vrot.slane %v2317_v20, 4 }
 0x35f   :  { %v2262_v32 = vrot.slane %v2261_v21, 1  ;;  %v2272_v33 = vrot.slane %v2271_v22, 1  ;;  %v2282_v34 = vrot.slane %v2281_v23, 1  ;;  %v2300_v35 = vrot.slane %v2299_v24, 2 }
 0x360   :  { %v2291_v36 = vadd.f32 %v2290_v26, %v2289_v18  ;;  %v2310_v37 = vrot.slane %v2309_v28, 2  ;;  %v2319_v38 = vadd.f32 %v2318_v29, %v2317_v20  ;;  %v2325_v30 = vsub.f32 %v3657_v51, %v3661_v48 }
 0x361   :  { %v2263_v39 = vadd.f32 %v2262_v32, %v2261_v21  ;;  %v2301_v40 = vadd.f32 %v2300_v35, %v2299_v24  ;;  %v2273_v44 = vadd.f32 %v2272_v33, %v2271_v22  ;;  %v2283_v46 = vadd.f32 %v2282_v34, %v2281_v23  ;;  %v2338_v24 = vld [vmem:[%s3790_s6] sm:$0x1] }
 0x362   :  { %v2320_v41 = vrot.slane %v2319_v38, 2  ;;  %v2326_v42 = vmul.f32 %v2325_v30, %v2325_v30  ;;  %v2292_v31 = vrot.slane %v2291_v36, 1  ;;  %v2311_v45 = vadd.f32 %v2310_v37, %v2309_v28  ;;  %v2340_v28 = vld [vmem:[%s3791_s7] sm:$0x1] }
 0x363   :  { %v2264_v43 = vadd.f32 %v2263_v39, %v2254_v25  ;;  %v2302_v52 = vrot.slane %v2301_v40, 1 }
 0x364   :  { %v2327_v47 = vsel %vm2044_vm4, %v2326_v42, 0.0  ;;  %v2321_v54 = vadd.f32 %v2320_v41, %v2319_v38  ;;  %v2293_v62 = vadd.f32 %v2292_v31, %v2291_v36  ;;  %v2312_v63 = vrot.slane %v2311_v45, 1 }
 0x365   :  { %v2274_v49 = vadd.f32 %v2273_v44, %v2264_v43  ;;  %v2328_v60 = vrot.slane %v2327_v47, 4  ;;  %v2303_v11 = vadd.f32 %v2302_v52, %v2301_v40 }
 0x366   :  { %v2322_v12 = vrot.slane %v2321_v54, 1  ;;  %v2313_v14 = vadd.f32 %v2312_v63, %v2311_v45 }
 0x367   :  { %v2284_v61 = vadd.f32 %v2283_v46, %v2274_v49  ;;  %v2329_v5 = vadd.f32 %v2328_v60, %v2327_v47 }
 0x368   :  { %v2323_v17 = vadd.f32 %v2322_v12, %v2321_v54 }
 0x369   :  { %v2294_v6 = vadd.f32 %v2293_v62, %v2284_v61  ;;  %v2330_v13 = vrot.slane %v2329_v5, 2 }
 0x36b   :  { %v2304_v50 = vadd.f32 %v2303_v11, %v2294_v6  ;;  %v2331_v15 = vadd.f32 %v2330_v13, %v2329_v5 }
 0x36d   :  { %v2314_v16 = vadd.f32 %v2313_v14, %v2304_v50  ;;  %v2332_v18 = vrot.slane %v2331_v15, 1 }
 0x36f   :  { %v2324_v19 = vadd.f32 %v2323_v17, %v2314_v16  ;;  %v2333_v20 = vadd.f32 %v2332_v18, %v2331_v15 }
 0x371   :  { %v2334_v21 = vadd.f32 %v2333_v20, %v2324_v19 }
 0x373   :  { %v2335_v22 = vmul.f32 0.03125, %v2334_v21 }
 0x375   :  { %v2336_v23 = vadd.f32 1e-05, %v2335_v22 }
 0x377   :  { %2721 = vrsqrt.f32 %v2336_v23 }
 0x384   :  { %v2722_v25 = vpop.eup %2721 }
 0x385   :  { %v2339_v26 = vmul.f32 %v2722_v25, %v2338_v24 }
 0x387   :  { %v2341_v29 = vmul.f32 %v2339_v26, %v3661_v48  ;;  %v2346_v32 = vrot.slane %v2339_v26, %v3007_v27 }
 0x389   :  { %v2342_v33 = vsub.f32 %v2340_v28, %v2341_v29  ;;  %v2347_v34 = vmul.f32 %v2346_v32, %v3596_v56  ;;  %v2358_v35 = vmul.f32 %v2346_v32, %v3601_v58  ;;  %v2363_v36 = vmul.f32 %v2346_v32, %v3598_v57 }
 0x38a   :  { %v2368_v37 = vmul.f32 %v2346_v32, %v3603_v59  ;;  %v2373_v38 = vmul.f32 %v2346_v32, %v3605_v0  ;;  %v2378_v30 = vmul.f32 %v2346_v32, %v3609_v2  ;;  %v2383_v39 = vmul.f32 %v2346_v32, %v3607_v1 }
 0x38b   :  { %v2352_v40 = vrot.slane %v2342_v33, %v3007_v27  ;;  %v2388_v48 = vmul.f32 %v2346_v32, %v3611_v3  ;;  %v2393_v41 = vmul.f32 %v2346_v32, %v3613_v7  ;;  %v2398_v56 = vmul.f32 %v2346_v32, %v3617_v9 }
 0x38c   :  { %v2403_v58 = vmul.f32 %v2346_v32, %v3615_v8  ;;  %v2408_v57 = vmul.f32 %v2346_v32, %v3619_v10  ;;  %v2413_v59 = vmul.f32 %v2346_v32, %v3645_v53  ;;  %v2418_v0 = vmul.f32 %v2346_v32, %v3653_v4 }
 0x38d   :  { %v2354_v42 = vadd.f32 %v2352_v40, %v2347_v34  ;;  %v2359_v2 = vadd.f32 %v2358_v35, %v2352_v40  ;;  %v2364_v43 = vadd.f32 %v2363_v36, %v2352_v40  ;;  %v2369_v1 = vadd.f32 %v2368_v37, %v2352_v40 }
 0x38e   :  { %v2374_v44 = vadd.f32 %v2373_v38, %v2352_v40  ;;  %v2379_v27 = vadd.f32 %v2378_v30, %v2352_v40  ;;  %v2384_v31 = vadd.f32 %v2383_v39, %v2352_v40  ;;  %v2389_v3 = vadd.f32 %v2388_v48, %v2352_v40 }
 0x38f   :  { %v2355_v45 = vmax.f32 %v2354_v42, 0.0  ;;  %v2360_v7 = vmax.f32 %v2359_v2, 0.0  ;;  %v2365_v46 = vmax.f32 %v2364_v43, 0.0  ;;  %v2370_v9 = vmax.f32 %v2369_v1, 0.0 }
 0x390   :  { %v2375_v47 = vmax.f32 %v2374_v44, 0.0  ;;  %v2380_v8 = vmax.f32 %v2379_v27, 0.0  ;;  %v2385_v49 = vmax.f32 %v2384_v31, 0.0  ;;  %v2390_v10 = vmax.f32 %v2389_v3, 0.0 }
 0x391   :  { %v2356_v52 = vpack.c.bf16 %v2355_v45, %v2355_v45  ;;  %v2361_v53 = vpack.c.bf16 %v2360_v7, %v2360_v7  ;;  %v2366_v54 = vpack.c.bf16 %v2365_v46, %v2365_v46  ;;  %v2371_v4 = vpack.c.bf16 %v2370_v9, %v2370_v9 }
 0x392   :  { %v2376_v60 = vpack.c.bf16 %v2375_v47, %v2375_v47  ;;  %v2381_v61 = vpack.c.bf16 %v2380_v8, %v2380_v8  ;;  %v2386_v62 = vpack.c.bf16 %v2385_v49, %v2385_v49  ;;  %v2391_v63 = vpack.c.bf16 %v2390_v10, %v2390_v10 }
 0x393   :  { %2357 = vst [vmem:[%s3792_s8] sm:$0x1] %v2356_v52  ;;  %2362 = vst [vmem:[%s3792_s8 + $0x1] sm:$0x1] %v2361_v53  ;;  %v2394_v5 = vadd.f32 %v2393_v41, %v2352_v40  ;;  %v2399_v6 = vadd.f32 %v2398_v56, %v2352_v40  ;;  %v2404_v11 = vadd.f32 %v2403_v58, %v2352_v40 }
 0x394   :  { %2367 = vst [vmem:[%s3792_s8 + $0x2] sm:$0x1] %v2366_v54  ;;  %2372 = vst [vmem:[%s3792_s8 + $0x3] sm:$0x1] %v2371_v4  ;;  %v2409_v12 = vadd.f32 %v2408_v57, %v2352_v40  ;;  %v2414_v13 = vadd.f32 %v2413_v59, %v2352_v40  ;;  %v2419_v50 = vadd.f32 %v2418_v0, %v2352_v40 }
 0x395   :  { %2377 = vst [vmem:[%s3792_s8 + $0x4] sm:$0x1] %v2376_v60  ;;  %2382 = vst [vmem:[%s3792_s8 + $0x5] sm:$0x1] %v2381_v61  ;;  %v2423_v14 = vmul.f32 %v2346_v32, %v3649_v55  ;;  %v2428_v15 = vmul.f32 %v2346_v32, %v3657_v51  ;;  %v2395_v16 = vmax.f32 %v2394_v5, 0.0  ;;  %v2400_v17 = vmax.f32 %v2399_v6, 0.0 }
 0x396   :  { %2387 = vst [vmem:[%s3792_s8 + $0x6] sm:$0x1] %v2386_v62  ;;  %2392 = vst [vmem:[%s3792_s8 + $0x7] sm:$0x1] %v2391_v63  ;;  %v2405_v18 = vmax.f32 %v2404_v11, 0.0  ;;  %v2410_v19 = vmax.f32 %v2409_v12, 0.0 }
 0x397   :  { %v2415_v20 = vmax.f32 %v2414_v13, 0.0  ;;  %v2420_v21 = vmax.f32 %v2419_v50, 0.0  ;;  %v2424_v22 = vadd.f32 %v2423_v14, %v2352_v40  ;;  %v2429_v23 = vadd.f32 %v2428_v15, %v2352_v40 }
 0x398   :  { %v2396_v24 = vpack.c.bf16 %v2395_v16, %v2395_v16  ;;  %v2401_v25 = vpack.c.bf16 %v2400_v17, %v2400_v17  ;;  %v2406_v26 = vpack.c.bf16 %v2405_v18, %v2405_v18  ;;  %v2411_v28 = vpack.c.bf16 %v2410_v19, %v2410_v19 }
 0x399   :  { %v2416_v29 = vpack.c.bf16 %v2415_v20, %v2415_v20  ;;  %v2421_v33 = vpack.c.bf16 %v2420_v21, %v2420_v21  ;;  %v2425_v34 = vmax.f32 %v2424_v22, 0.0  ;;  %v2430_v35 = vmax.f32 %v2429_v23, 0.0 }
 0x39a   :  { %2397 = vst [vmem:[%s3792_s8 + $0x8] sm:$0x1] %v2396_v24  ;;  %2402 = vst [vmem:[%s3792_s8 + $0x9] sm:$0x1] %v2401_v25 }
 0x39b   :  { %2407 = vst [vmem:[%s3792_s8 + $0xa] sm:$0x1] %v2406_v26  ;;  %2412 = vst [vmem:[%s3792_s8 + $0xb] sm:$0x1] %v2411_v28  ;;  %v2426_v55 = vpack.c.bf16 %v2425_v34, %v2425_v34  ;;  %v2431_v51 = vpack.c.bf16 %v2430_v35, %v2430_v35 }
 0x39c   :  { %2417 = vst [vmem:[%s3792_s8 + $0xc] sm:$0x1] %v2416_v29  ;;  %2422 = vst [vmem:[%s3792_s8 + $0xd] sm:$0x1] %v2421_v33 }
 0x39d   :  { %2427 = vst [vmem:[%s3792_s8 + $0xe] sm:$0x1] %v2426_v55  ;;  %2432 = vst [vmem:[%s3792_s8 + $0xf] sm:$0x1] %v2431_v51 }

// kernel: forward.13
= control target key start
LH: loop header
LB: loop body
LE: loop exit
PB: predicated region body
PF: predicated region fallthrough
CT: control target
= control target key end

     0   :  { %vm1403_vm0 = vcmask 523264   ;;  %s3150_s1 = inlined_call_operand.vmem [shape: bf16[1152,256], index: 1, kind: input, shape index: {}]   ;;  %s3151_s0 = inlined_call_operand.vmem [shape: bf16[32,1152], index: 0, kind: input, shape index: {}]   ;;  %s3152_s2 = inlined_call_operand.vmem [shape: f32[256,64], index: 2, kind: input, shape index: {}]   ;;  %s3153_s3 = inlined_call_operand.vmem [shape: f32[64,256], index: 3, kind: input, shape index: {}]   ;;  %s3154_s4 = inlined_call_operand.vmem [shape: f32[1,256], index: 4, kind: input, shape index: {}]   ;;  %s3155_s5 = inlined_call_operand.vmem [shape: f32[1,256], index: 5, kind: input, shape index: {}]   ;;  %s3156_s6 = inlined_call_operand.vmem [shape: bf16[32,256], index: 6, kind: output, shape index: {}]  }
   0x1   :  { %v2007_v0 = vld [vmem:[%s3150_s1 + $0x74] ss:$8 sps:$4 sm:$0xff]   ;;  %v2011_v2 = vld [vmem:[%s3150_s1 + $0x70] ss:$8 sps:$4 sm:$0xff]   ;;  %v2013_v4 = vld [vmem:[%s3150_s1 + $0x64] ss:$8 sps:$4 sm:$0xff]  }
   0x2   :  { %v2009_v1 = vld [vmem:[%s3150_s1 + $0x174] ss:$8 sps:$4 sm:$0xff]   ;;  %1000 = vmatprep.subr.bf16.mxu0 %v2007_v0  ;;  %v2012_v3 = vld [vmem:[%s3150_s1 + $0x170] ss:$8 sps:$4 sm:$0xff]   ;;  %v2015_v5 = vld [vmem:[%s3150_s1 + $0x164] ss:$8 sps:$4 sm:$0xff]  }
   0x3   :  { %1053 = vmatprep.subr.bf16.mxu1 %v2009_v1  ;;  %1001 = vmatpush1.bf16.msra.mxu0 %v2011_v2  ;;  %v2017_v6 = vld [vmem:[%s3150_s1 + $0x60] ss:$8 sps:$4 sm:$0xff]   ;;  %v2019_v8 = vld [vmem:[%s3150_s1 + $0x54] ss:$8 sps:$4 sm:$0xff]   ;;  %v2023_v10 = vld [vmem:[%s3150_s1 + $0x50] ss:$8 sps:$4 sm:$0xff]  }
   0x4   :  { %1054 = vmatpush1.bf16.msra.mxu1 %v2012_v3  ;;  %1002 = vmatprep.subr.bf16.mxu0 %v2013_v4  ;;  %v2018_v7 = vld [vmem:[%s3150_s1 + $0x160] ss:$8 sps:$4 sm:$0xff]   ;;  %v2021_v9 = vld [vmem:[%s3150_s1 + $0x154] ss:$8 sps:$4 sm:$0xff]   ;;  %v2024_v11 = vld [vmem:[%s3150_s1 + $0x150] ss:$8 sps:$4 sm:$0xff]  }
   0x5   :  { %1055 = vmatprep.subr.bf16.mxu1 %v2015_v5  ;;  %v2025_v12 = vld [vmem:[%s3150_s1 + $0x44] ss:$8 sps:$4 sm:$0xff]   ;;  %v2029_v14 = vld [vmem:[%s3150_s1 + $0x40] ss:$8 sps:$4 sm:$0xff]   ;;  %v2031_v16 = vld [vmem:[%s3150_s1 + $0x34] ss:$8 sps:$4 sm:$0xff]  }
   0x6   :  { %v2027_v13 = vld [vmem:[%s3150_s1 + $0x144] ss:$8 sps:$4 sm:$0xff]   ;;  %v2030_v15 = vld [vmem:[%s3150_s1 + $0x140] ss:$8 sps:$4 sm:$0xff]   ;;  %v2033_v17 = vld [vmem:[%s3150_s1 + $0x134] ss:$8 sps:$4 sm:$0xff]  }
   0x7   :  { %1003 = vmatpush1.bf16.msra.mxu0 %v2017_v6  ;;  %v2035_v18 = vld [vmem:[%s3150_s1 + $0x30] ss:$8 sps:$4 sm:$0xff]   ;;  %v2037_v20 = vld [vmem:[%s3150_s1 + $0x24] ss:$8 sps:$4 sm:$0xff]   ;;  %v2041_v22 = vld [vmem:[%s3150_s1 + $0x20] ss:$8 sps:$4 sm:$0xff]  }
   0x8   :  { %1056 = vmatpush1.bf16.msra.mxu1 %v2018_v7  ;;  %1004 = vmatprep.subr.bf16.mxu0 %v2019_v8  ;;  %v2036_v19 = vld [vmem:[%s3150_s1 + $0x130] ss:$8 sps:$4 sm:$0xff]   ;;  %v2039_v21 = vld [vmem:[%s3150_s1 + $0x124] ss:$8 sps:$4 sm:$0xff]   ;;  %v2042_v23 = vld [vmem:[%s3150_s1 + $0x120] ss:$8 sps:$4 sm:$0xff]  }
   0x9   :  { %1057 = vmatprep.subr.bf16.mxu1 %v2021_v9  ;;  %v2043_v24 = vld [vmem:[%s3150_s1 + $0x14] ss:$8 sps:$4 sm:$0xff]   ;;  %v2047_v26 = vld [vmem:[%s3150_s1 + $0x10] ss:$8 sps:$4 sm:$0xff]   ;;  %v2049_v28 = vld [vmem:[%s3150_s1 + $0x4] ss:$8 sps:$4 sm:$0xff]  }
   0xa   :  { %v2045_v25 = vld [vmem:[%s3150_s1 + $0x114] ss:$8 sps:$4 sm:$0xff]   ;;  %v2048_v27 = vld [vmem:[%s3150_s1 + $0x110] ss:$8 sps:$4 sm:$0xff]   ;;  %v2051_v29 = vld [vmem:[%s3150_s1 + $0x104] ss:$8 sps:$4 sm:$0xff]  }
   0xb   :  { %1005 = vmatpush1.bf16.msra.mxu0 %v2023_v10  ;;  %v2053_v30 = vld [vmem:[%s3150_s1] ss:$8 sps:$4 sm:$0xff]   ;;  %v2055_v32 = vld [vmem:[%s3150_s1 + $0xf4] ss:$8 sps:$4 sm:$0xff]   ;;  %v2059_v34 = vld [vmem:[%s3150_s1 + $0xf0] ss:$8 sps:$4 sm:$0xff]  }
   0xc   :  { %1058 = vmatpush1.bf16.msra.mxu1 %v2024_v11  ;;  %1006 = vmatprep.subr.bf16.mxu0 %v2025_v12  ;;  %v2054_v31 = vld [vmem:[%s3150_s1 + $0x100] ss:$8 sps:$4 sm:$0xff]   ;;  %v2057_v33 = vld [vmem:[%s3150_s1 + $0x1f4] ss:$8 sps:$4 sm:$0xff]   ;;  %v2060_v35 = vld [vmem:[%s3150_s1 + $0x1f0] ss:$8 sps:$4 sm:$0xff]  }
   0xd   :  { %1059 = vmatprep.subr.bf16.mxu1 %v2027_v13  ;;  %v2061_v36 = vld [vmem:[%s3150_s1 + $0xe4] ss:$8 sps:$4 sm:$0xff]   ;;  %v2065_v38 = vld [vmem:[%s3150_s1 + $0xe0] ss:$8 sps:$4 sm:$0xff]   ;;  %v2067_v40 = vld [vmem:[%s3150_s1 + $0xd4] ss:$8 sps:$4 sm:$0xff]  }
   0xe   :  { %v2063_v37 = vld [vmem:[%s3150_s1 + $0x1e4] ss:$8 sps:$4 sm:$0xff]   ;;  %v2066_v39 = vld [vmem:[%s3150_s1 + $0x1e0] ss:$8 sps:$4 sm:$0xff]   ;;  %v2069_v41 = vld [vmem:[%s3150_s1 + $0x1d4] ss:$8 sps:$4 sm:$0xff]  }
   0xf   :  { %1007 = vmatpush1.bf16.msra.mxu0 %v2029_v14  ;;  %v2071_v42 = vld [vmem:[%s3150_s1 + $0xd0] ss:$8 sps:$4 sm:$0xff]   ;;  %v2073_v44 = vld [vmem:[%s3150_s1 + $0xc4] ss:$8 sps:$4 sm:$0xff]   ;;  %v2077_v46 = vld [vmem:[%s3150_s1 + $0xc0] ss:$8 sps:$4 sm:$0xff]  }
  0x10   :  { %1060 = vmatpush1.bf16.msra.mxu1 %v2030_v15  ;;  %1008 = vmatprep.subr.bf16.mxu0 %v2031_v16  ;;  %v2072_v43 = vld [vmem:[%s3150_s1 + $0x1d0] ss:$8 sps:$4 sm:$0xff]   ;;  %v2075_v45 = vld [vmem:[%s3150_s1 + $0x1c4] ss:$8 sps:$4 sm:$0xff]   ;;  %v2078_v47 = vld [vmem:[%s3150_s1 + $0x1c0] ss:$8 sps:$4 sm:$0xff]  }
  0x11   :  { %1061 = vmatprep.subr.bf16.mxu1 %v2033_v17  ;;  %v2079_v48 = vld [vmem:[%s3150_s1 + $0xb4] ss:$8 sps:$4 sm:$0xff]   ;;  %v2105_v49 = vld [vmem:[%s3151_s0 + $0x4] ss:$36 sps:$4 sm:$0xff]   ;;  %v2108_v51 = vld [vmem:[%s3151_s0 + $0xc] ss:$36 sps:$4 sm:$0xff]  }
  0x12   :  { %v2081_v50 = vld [vmem:[%s3150_s1 + $0x1b4] ss:$8 sps:$4 sm:$0xff]   ;;  %1032 = vmatprep.mubr.bf16.mxu0 %v2105_v49  ;;  %v2083_v52 = vld [vmem:[%s3150_s1 + $0xb0] ss:$8 sps:$4 sm:$0xff]   ;;  %1085 = vmatprep.mubr.bf16.mxu1 %v2108_v51  ;;  %v2085_v54 = vld [vmem:[%s3150_s1 + $0xa4] ss:$8 sps:$4 sm:$0xff]  }
  0x13   :  { %1009 = vmatpush1.bf16.msra.mxu0 %v2035_v18  ;;  %v2084_v53 = vld [vmem:[%s3150_s1 + $0x1b0] ss:$8 sps:$4 sm:$0xff]   ;;  %v2087_v55 = vld [vmem:[%s3150_s1 + $0x1a4] ss:$8 sps:$4 sm:$0xff]   ;;  %v2089_v56 = vld [vmem:[%s3150_s1 + $0xa0] ss:$8 sps:$4 sm:$0xff]  }
  0x14   :  { %1062 = vmatpush1.bf16.msra.mxu1 %v2036_v19  ;;  %1010 = vmatprep.subr.bf16.mxu0 %v2037_v20  ;;  %v2090_v57 = vld [vmem:[%s3150_s1 + $0x1a0] ss:$8 sps:$4 sm:$0xff]   ;;  %v2091_v58 = vld [vmem:[%s3150_s1 + $0x94] ss:$8 sps:$4 sm:$0xff]   ;;  %v2095_v60 = vld [vmem:[%s3150_s1 + $0x90] ss:$8 sps:$4 sm:$0xff]  }
  0x15   :  { %1063 = vmatprep.subr.bf16.mxu1 %v2039_v21  ;;  %v2093_v59 = vld [vmem:[%s3150_s1 + $0x194] ss:$8 sps:$4 sm:$0xff]   ;;  %v2096_v61 = vld [vmem:[%s3150_s1 + $0x190] ss:$8 sps:$4 sm:$0xff]   ;;  %v2097_v62 = vld [vmem:[%s3150_s1 + $0x84] ss:$8 sps:$4 sm:$0xff]  }
  0x16   :  { %v2099_v63 = vld [vmem:[%s3150_s1 + $0x184] ss:$8 sps:$4 sm:$0xff]   ;;  %v2101_v0 = vld [vmem:[%s3150_s1 + $0x80] ss:$8 sps:$4 sm:$0xff]   ;;  %v2111_v2 = vld [vmem:[%s3150_s1 + $0x274] ss:$8 sps:$4 sm:$0xff]  }
  0x17   :  { %1011 = vmatpush1.bf16.msra.mxu0 %v2041_v22  ;;  %v2102_v1 = vld [vmem:[%s3150_s1 + $0x180] ss:$8 sps:$4 sm:$0xff]   ;;  %v2114_v3 = vld [vmem:[%s3150_s1 + $0x374] ss:$8 sps:$4 sm:$0xff]   ;;  %v2109_v6 = vld [vmem:[%s3150_s1 + $0x270] ss:$8 sps:$4 sm:$0xff]  }
  0x18   :  { %1064 = vmatpush1.bf16.msra.mxu1 %v2042_v23  ;;  %1012 = vmatprep.subr.bf16.mxu0 %v2043_v24  ;;  %v2103_v4 = vld [vmem:[%s3151_s0] ss:$36 sps:$4 sm:$0xff]   ;;  %v2106_v5 = vld [vmem:[%s3151_s0 + $0x8] ss:$36 sps:$4 sm:$0xff]   ;;  %v2112_v7 = vld [vmem:[%s3150_s1 + $0x370] ss:$8 sps:$4 sm:$0xff]  }
  0x19   :  { %1065 = vmatprep.subr.bf16.mxu1 %v2045_v25  ;;  %v2117_v8 = vld [vmem:[%s3150_s1 + $0x264] ss:$8 sps:$4 sm:$0xff]   ;;  %v2115_v10 = vld [vmem:[%s3150_s1 + $0x260] ss:$8 sps:$4 sm:$0xff]   ;;  %v2123_v12 = vld [vmem:[%s3150_s1 + $0x254] ss:$8 sps:$4 sm:$0xff]  }
  0x1a   :  { %v2120_v9 = vld [vmem:[%s3150_s1 + $0x364] ss:$8 sps:$4 sm:$0xff]   ;;  %v2118_v11 = vld [vmem:[%s3150_s1 + $0x360] ss:$8 sps:$4 sm:$0xff]   ;;  %v2126_v13 = vld [vmem:[%s3150_s1 + $0x354] ss:$8 sps:$4 sm:$0xff]  }
  0x1b   :  { %1013 = vmatpush1.bf16.msra.mxu0 %v2047_v26  ;;  %v2121_v14 = vld [vmem:[%s3150_s1 + $0x250] ss:$8 sps:$4 sm:$0xff]   ;;  %v2129_v16 = vld [vmem:[%s3150_s1 + $0x244] ss:$8 sps:$4 sm:$0xff]   ;;  %v2127_v18 = vld [vmem:[%s3150_s1 + $0x240] ss:$8 sps:$4 sm:$0xff]  }
  0x1c   :  { %1066 = vmatpush1.bf16.msra.mxu1 %v2048_v27  ;;  %1014 = vmatprep.subr.bf16.mxu0 %v2049_v28  ;;  %v2124_v15 = vld [vmem:[%s3150_s1 + $0x350] ss:$8 sps:$4 sm:$0xff]   ;;  %v2132_v17 = vld [vmem:[%s3150_s1 + $0x344] ss:$8 sps:$4 sm:$0xff]   ;;  %v2130_v19 = vld [vmem:[%s3150_s1 + $0x340] ss:$8 sps:$4 sm:$0xff]  }
  0x1d   :  { %1067 = vmatprep.subr.bf16.mxu1 %v2051_v29  ;;  %v2135_v20 = vld [vmem:[%s3150_s1 + $0x234] ss:$8 sps:$4 sm:$0xff]   ;;  %v2133_v22 = vld [vmem:[%s3150_s1 + $0x230] ss:$8 sps:$4 sm:$0xff]   ;;  %v2141_v26 = vld [vmem:[%s3150_s1 + $0x224] ss:$8 sps:$4 sm:$0xff]  }
  0x1e   :  { %v2138_v21 = vld [vmem:[%s3150_s1 + $0x334] ss:$8 sps:$4 sm:$0xff]   ;;  %v2136_v23 = vld [vmem:[%s3150_s1 + $0x330] ss:$8 sps:$4 sm:$0xff]   ;;  %v2144_v27 = vld [vmem:[%s3150_s1 + $0x324] ss:$8 sps:$4 sm:$0xff]  }
  0x1f   :  { %1015 = vmatpush1.bf16.msra.mxu0 %v2053_v30  ;;  %v2184_v24 = vld [vmem:[%s3151_s0 + $0x4c] ss:$36 sps:$4 sm:$0xff]   ;;  %v2186_v25 = vld [vmem:[%s3151_s0 + $0x54] ss:$36 sps:$4 sm:$0xff]   ;;  %v2139_v30 = vld [vmem:[%s3150_s1 + $0x220] ss:$8 sps:$4 sm:$0xff]  }
  0x20   :  { %1068 = vmatpush1.bf16.msra.mxu1 %v2054_v31  ;;  %1016 = vmatprep.subr.bf16.mxu0 %v2055_v32  ;;  %v2191_v28 = vld [vmem:[%s3151_s0 + $0x48] ss:$36 sps:$4 sm:$0xff]   ;;  %v2192_v29 = vld [vmem:[%s3151_s0 + $0x50] ss:$36 sps:$4 sm:$0xff]  }
  0x21   :  { %1069 = vmatprep.subr.bf16.mxu1 %v2057_v33  ;;  %v2142_v31 = vld [vmem:[%s3150_s1 + $0x320] ss:$8 sps:$4 sm:$0xff]   ;;  %v2147_v32 = vld [vmem:[%s3150_s1 + $0x214] ss:$8 sps:$4 sm:$0xff]  }
  0x22   :  { %v2150_v33 = vld [vmem:[%s3150_s1 + $0x314] ss:$8 sps:$4 sm:$0xff]   ;;  %v2166_v49 = vld [vmem:[%s3150_s1 + $0x3e0] ss:$8 sps:$4 sm:$0xff]  }
  0x23   :  { %1017 = vmatpush2.bf16.msra.mxu0 %v2059_v34  ;;  %v2145_v34 = vld [vmem:[%s3150_s1 + $0x210] ss:$8 sps:$4 sm:$0xff]   ;;  %v2174_v51 = vld [vmem:[%s3150_s1 + $0x3d4] ss:$8 sps:$4 sm:$0xff]  }
  0x24   :  { %1070 = vmatpush2.bf16.msra.mxu1 %v2060_v35  ;;  %1018 = vmatprep.subr.bf16.mxu0 %v2061_v36  ;;  %v2148_v35 = vld [vmem:[%s3150_s1 + $0x310] ss:$8 sps:$4 sm:$0xff]   ;;  %v2153_v36 = vld [vmem:[%s3150_s1 + $0x204] ss:$8 sps:$4 sm:$0xff]  }
  0x25   :  { %1071 = vmatprep.subr.bf16.mxu1 %v2063_v37  ;;  %v2156_v37 = vld [vmem:[%s3150_s1 + $0x304] ss:$8 sps:$4 sm:$0xff]  }
  0x27   :  { %1019 = vmatpush2.bf16.msra.mxu0 %v2065_v38  ;;  %v2151_v38 = vld [vmem:[%s3150_s1 + $0x200] ss:$8 sps:$4 sm:$0xff]  }
  0x28   :  { %1072 = vmatpush2.bf16.msra.mxu1 %v2066_v39  ;;  %1020 = vmatprep.subr.bf16.mxu0 %v2067_v40  ;;  %v2154_v39 = vld [vmem:[%s3150_s1 + $0x300] ss:$8 sps:$4 sm:$0xff]   ;;  %v2213_v40 = vld [vmem:[%s3151_s0 + $0x14] ss:$36 sps:$4 sm:$0xff]  }
  0x29   :  { %1073 = vmatprep.subr.bf16.mxu1 %v2069_v41  ;;  %v2159_v41 = vld [vmem:[%s3150_s1 + $0x2f4] ss:$8 sps:$4 sm:$0xff]  }
  0x2b   :  { %1021 = vmatpush2.bf16.msra.mxu0 %v2071_v42  ;;  %v2162_v42 = vld [vmem:[%s3150_s1 + $0x3f4] ss:$8 sps:$4 sm:$0xff]  }
  0x2c   :  { %1074 = vmatpush2.bf16.msra.mxu1 %v2072_v43  ;;  %1022 = vmatprep.subr.bf16.mxu0 %v2073_v44  ;;  %v2219_v43 = vld [vmem:[%s3151_s0 + $0x1c] ss:$36 sps:$4 sm:$0xff]   ;;  %v2157_v44 = vld [vmem:[%s3150_s1 + $0x2f0] ss:$8 sps:$4 sm:$0xff]  }
  0x2d   :  { %1075 = vmatprep.subr.bf16.mxu1 %v2075_v45  ;;  %v2160_v45 = vld [vmem:[%s3150_s1 + $0x3f0] ss:$8 sps:$4 sm:$0xff]  }
  0x2f   :  { %1023 = vmatpush2.bf16.msra.mxu0 %v2077_v46  ;;  %v2165_v46 = vld [vmem:[%s3150_s1 + $0x2e4] ss:$8 sps:$4 sm:$0xff]  }
  0x30   :  { %1076 = vmatpush2.bf16.msra.mxu1 %v2078_v47  ;;  %1024 = vmatprep.subr.bf16.mxu0 %v2079_v48  ;;  %v2168_v47 = vld [vmem:[%s3150_s1 + $0x3e4] ss:$8 sps:$4 sm:$0xff]   ;;  %v2163_v48 = vld [vmem:[%s3150_s1 + $0x2e0] ss:$8 sps:$4 sm:$0xff]  }
  0x31   :  { %1077 = vmatprep.subr.bf16.mxu1 %v2081_v50  ;;  %v2171_v50 = vld [vmem:[%s3150_s1 + $0x2d4] ss:$8 sps:$4 sm:$0xff]  }
  0x33   :  { %1025 = vmatpush2.bf16.msra.mxu0 %v2083_v52  ;;  %v2169_v52 = vld [vmem:[%s3150_s1 + $0x2d0] ss:$8 sps:$4 sm:$0xff]  }
  0x34   :  { %1078 = vmatpush2.bf16.msra.mxu1 %v2084_v53  ;;  %1026 = vmatprep.subr.bf16.mxu0 %v2085_v54  ;;  %v2172_v53 = vld [vmem:[%s3150_s1 + $0x3d0] ss:$8 sps:$4 sm:$0xff]   ;;  %v2177_v54 = vld [vmem:[%s3150_s1 + $0x2c4] ss:$8 sps:$4 sm:$0xff]  }
  0x35   :  { %1079 = vmatprep.subr.bf16.mxu1 %v2087_v55  ;;  %v2180_v55 = vld [vmem:[%s3150_s1 + $0x3c4] ss:$8 sps:$4 sm:$0xff]  }
  0x37   :  { %1027 = vmatpush2.bf16.msra.mxu0 %v2089_v56  ;;  %v2175_v56 = vld [vmem:[%s3150_s1 + $0x2c0] ss:$8 sps:$4 sm:$0xff]  }
  0x38   :  { %1080 = vmatpush2.bf16.msra.mxu1 %v2090_v57  ;;  %1028 = vmatprep.subr.bf16.mxu0 %v2091_v58  ;;  %v2178_v57 = vld [vmem:[%s3150_s1 + $0x3c0] ss:$8 sps:$4 sm:$0xff]   ;;  %v2183_v58 = vld [vmem:[%s3150_s1 + $0x2b4] ss:$8 sps:$4 sm:$0xff]  }
  0x39   :  { %1081 = vmatprep.subr.bf16.mxu1 %v2093_v59  ;;  %v2190_v59 = vld [vmem:[%s3150_s1 + $0x3b4] ss:$8 sps:$4 sm:$0xff]  }
  0x3b   :  { %1029 = vmatpush2.bf16.msra.mxu0 %v2095_v60  ;;  %v2181_v60 = vld [vmem:[%s3150_s1 + $0x2b0] ss:$8 sps:$4 sm:$0xff]  }
  0x3c   :  { %1082 = vmatpush2.bf16.msra.mxu1 %v2096_v61  ;;  %1030 = vmatprep.subr.bf16.mxu0 %v2097_v62  ;;  %v2188_v61 = vld [vmem:[%s3150_s1 + $0x3b0] ss:$8 sps:$4 sm:$0xff]   ;;  %v2195_v62 = vld [vmem:[%s3150_s1 + $0x2a4] ss:$8 sps:$4 sm:$0xff]  }
  0x3d   :  { %1083 = vmatprep.subr.bf16.mxu1 %v2099_v63  ;;  %v2198_v63 = vld [vmem:[%s3150_s1 + $0x3a4] ss:$8 sps:$4 sm:$0xff]  }
  0x3f   :  { %1031 = vmatpush2.bf16.msra.mxu0 %v2101_v0  ;;  %v2193_v0 = vld [vmem:[%s3150_s1 + $0x2a0] ss:$8 sps:$4 sm:$0xff]  }
  0x40   :  { %1084 = vmatpush2.bf16.msra.mxu1 %v2102_v1  ;;  %1106 = vmatprep.subr.bf16.mxu0 %v2111_v2  ;;  %v2196_v1 = vld [vmem:[%s3150_s1 + $0x3a0] ss:$8 sps:$4 sm:$0xff]   ;;  %v2201_v2 = vld [vmem:[%s3150_s1 + $0x294] ss:$8 sps:$4 sm:$0xff]  }
  0x41   :  { %1159 = vmatprep.subr.bf16.mxu1 %v2114_v3  ;;  %v2204_v3 = vld [vmem:[%s3150_s1 + $0x394] ss:$8 sps:$4 sm:$0xff]  }
  0x42   :  { %1033 = vmatmul.mubr.bf16.vlgmr.msra.gmra.mxu0 %v2103_v4  ;;  %v2199_v4 = vld [vmem:[%s3150_s1 + $0x290] ss:$8 sps:$4 sm:$0xff]  }
  0x43   :  { %1086 = vmatmul.mubr.bf16.vlgmr.msra.gmra.mxu1 %v2106_v5  ;;  %1107 = vmatpush1.bf16.msra.mxu0 %v2109_v6  ;;  %v2202_v5 = vld [vmem:[%s3150_s1 + $0x390] ss:$8 sps:$4 sm:$0xff]   ;;  %v2207_v6 = vld [vmem:[%s3150_s1 + $0x284] ss:$8 sps:$4 sm:$0xff]  }
  0x44   :  { %1160 = vmatpush1.bf16.msra.mxu1 %v2112_v7  ;;  %1108 = vmatprep.subr.bf16.mxu0 %v2117_v8  ;;  %v2210_v7 = vld [vmem:[%s3150_s1 + $0x384] ss:$8 sps:$4 sm:$0xff]   ;;  %v2205_v8 = vld [vmem:[%s3150_s1 + $0x280] ss:$8 sps:$4 sm:$0xff]  }
  0x45   :  { %1161 = vmatprep.subr.bf16.mxu1 %v2120_v9  ;;  %1042 = vmatprep.mubr.bf16.mxu0 %v2184_v24  ;;  %v2208_v9 = vld [vmem:[%s3150_s1 + $0x380] ss:$8 sps:$4 sm:$0xff]   ;;  %v2251_v24 = vmov 0  }
  0x46   :  { %1095 = vmatprep.mubr.bf16.mxu1 %v2186_v25  ;;  %v2237_v25 = vld [vmem:[%s3150_s1 + $0x434] ss:$8 sps:$4 sm:$0xff]  }
  0x47   :  { %1109 = vmatpush1.bf16.msra.mxu0 %v2115_v10  ;;  %v2216_v10 = vld [vmem:[%s3150_s1 + $0x474] ss:$8 sps:$4 sm:$0xff]  }
  0x48   :  { %1162 = vmatpush1.bf16.msra.mxu1 %v2118_v11  ;;  %1110 = vmatprep.subr.bf16.mxu0 %v2123_v12  ;;  %v2211_v11 = vld [vmem:[%s3151_s0 + $0x10] ss:$36 sps:$4 sm:$0xff]   ;;  %v2217_v12 = vld [vmem:[%s3151_s0 + $0x18] ss:$36 sps:$4 sm:$0xff]  }
  0x49   :  { %1163 = vmatprep.subr.bf16.mxu1 %v2126_v13  ;;  %v2214_v13 = vld [vmem:[%s3150_s1 + $0x470] ss:$8 sps:$4 sm:$0xff]  }
  0x4a   :  { %1043 = vmatmul.mubr.bf16.gmra.mxu0 %v2191_v28  ;;  %v2238_v28 = vld [vmem:[%s3150_s1 + $0x420] ss:$8 sps:$4 sm:$0xff]  }
  0x4b   :  { %1111 = vmatpush1.bf16.msra.mxu0 %v2121_v14  ;;  %1096 = vmatmul.mubr.bf16.gmra.mxu1 %v2192_v29  ;;  %v2223_v14 = vld [vmem:[%s3151_s0 + $0x5c] ss:$36 sps:$4 sm:$0xff]  }
  0x4c   :  { %1164 = vmatpush1.bf16.msra.mxu1 %v2124_v15  ;;  %1112 = vmatprep.subr.bf16.mxu0 %v2129_v16  ;;  %v2222_v15 = vld [vmem:[%s3150_s1 + $0x464] ss:$8 sps:$4 sm:$0xff]   ;;  %v2243_v29 = vld [vmem:[%s3150_s1 + $0x414] ss:$8 sps:$4 sm:$0xff]  }
  0x4d   :  { %1165 = vmatprep.subr.bf16.mxu1 %v2132_v17  ;;  %1138 = vmatprep.mubr.bf16.mxu0 %v2213_v40  ;;  %v2229_v16 = vld [vmem:[%s3151_s0 + $0x64] ss:$36 sps:$4 sm:$0xff]  }
  0x4e   :  { %1191 = vmatprep.mubr.bf16.mxu1 %v2219_v43  ;;  %v2220_v17 = vld [vmem:[%s3150_s1 + $0x460] ss:$8 sps:$4 sm:$0xff]   ;;  %v2825_v43 = vld [vmem:[%s3152_s2 + $0xd8] sm:$0xff] }
  0x4f   :  { %1113 = vmatpush1.bf16.msra.mxu0 %v2127_v18  ;;  %v2228_v18 = vld [vmem:[%s3150_s1 + $0x454] ss:$8 sps:$4 sm:$0xff]   ;;  %v2807_v40 = vld [vmem:[%s3152_s2 + $0x68] sm:$0xff] }
  0x50   :  { %1166 = vmatpush1.bf16.msra.mxu1 %v2130_v19  ;;  %1114 = vmatprep.subr.bf16.mxu0 %v2135_v20  ;;  %v2225_v19 = vld [vmem:[%s3151_s0 + $0x58] ss:$36 sps:$4 sm:$0xff]   ;;  %v2231_v20 = vld [vmem:[%s3151_s0 + $0x60] ss:$36 sps:$4 sm:$0xff]  }
  0x51   :  { %1167 = vmatprep.subr.bf16.mxu1 %v2138_v21  ;;  %v2226_v21 = vld [vmem:[%s3150_s1 + $0x450] ss:$8 sps:$4 sm:$0xff]  }
  0x53   :  { %1115 = vmatpush1.bf16.msra.mxu0 %v2133_v22  ;;  %v2234_v22 = vld [vmem:[%s3150_s1 + $0x444] ss:$8 sps:$4 sm:$0xff]  }
  0x54   :  { %1168 = vmatpush1.bf16.msra.mxu1 %v2136_v23  ;;  %1116 = vmatprep.subr.bf16.mxu0 %v2141_v26  ;;  %v2232_v23 = vld [vmem:[%s3150_s1 + $0x440] ss:$8 sps:$4 sm:$0xff]   ;;  %v2235_v26 = vld [vmem:[%s3150_s1 + $0x430] ss:$8 sps:$4 sm:$0xff]  }
  0x55   :  { %1169 = vmatprep.subr.bf16.mxu1 %v2144_v27  ;;  %v2240_v27 = vld [vmem:[%s3150_s1 + $0x424] ss:$8 sps:$4 sm:$0xff]  }
  0x57   :  { %1117 = vmatpush1.bf16.msra.mxu0 %v2139_v30  ;;  %v2241_v30 = vld [vmem:[%s3150_s1 + $0x410] ss:$8 sps:$4 sm:$0xff]  }
  0x58   :  { %1170 = vmatpush1.bf16.msra.mxu1 %v2142_v31  ;;  %1118 = vmatprep.subr.bf16.mxu0 %v2147_v32  ;;  %v2246_v31 = vld [vmem:[%s3150_s1 + $0x404] ss:$8 sps:$4 sm:$0xff]   ;;  %v2244_v32 = vld [vmem:[%s3150_s1 + $0x400] ss:$8 sps:$4 sm:$0xff]  }
  0x59   :  { %1171 = vmatprep.subr.bf16.mxu1 %v2150_v33  ;;  %v2247_v33 = vld [vmem:[%s3151_s0 + $0x20] ss:$36 sps:$4 sm:$0xff]  }
  0x5b   :  { %1119 = vmatpush1.bf16.msra.mxu0 %v2145_v34  ;;  %v2248_v34 = vld [vmem:[%s3151_s0 + $0x68] ss:$36 sps:$4 sm:$0xff]  }
  0x5c   :  { %1172 = vmatpush1.bf16.msra.mxu1 %v2148_v35  ;;  %1120 = vmatprep.subr.bf16.mxu0 %v2153_v36  ;;  %v2777_v35 = vld [vmem:[%s3152_s2 + $0xf8] sm:$0xff] }
  0x5d   :  { %1173 = vmatprep.subr.bf16.mxu1 %v2156_v37  ;;  %v2783_v36 = vld [vmem:[%s3152_s2 + $0x78] sm:$0xff]  ;;  %v2789_v37 = vld [vmem:[%s3152_s2 + $0xf0] sm:$0xff] }
  0x5f   :  { %1121 = vmatpush1.bf16.msra.mxu0 %v2151_v38  ;;  %v2795_v38 = vld [vmem:[%s3152_s2 + $0x70] sm:$0xff] }
  0x60   :  { %1174 = vmatpush1.bf16.msra.mxu1 %v2154_v39  ;;  %1122 = vmatprep.subr.bf16.mxu0 %v2159_v41  ;;  %v2801_v39 = vld [vmem:[%s3152_s2 + $0xe8] sm:$0xff]  ;;  %v2813_v41 = vld [vmem:[%s3152_s2 + $0xe0] sm:$0xff] }
  0x61   :  { %1175 = vmatprep.subr.bf16.mxu1 %v2162_v42  ;;  %v2819_v42 = vld [vmem:[%s3152_s2 + $0x60] sm:$0xff] }
  0x63   :  { %1123 = vmatpush2.bf16.msra.mxu0 %v2157_v44  ;;  %v2831_v44 = vld [vmem:[%s3152_s2 + $0x58] sm:$0xff] }
  0x64   :  { %1176 = vmatpush2.bf16.msra.mxu1 %v2160_v45  ;;  %1124 = vmatprep.subr.bf16.mxu0 %v2165_v46  ;;  %v2837_v45 = vld [vmem:[%s3152_s2 + $0xd0] sm:$0xff] }
  0x65   :  { %1177 = vmatprep.subr.bf16.mxu1 %v2168_v47  ;;  %v2843_v46 = vld [vmem:[%s3152_s2 + $0x50] sm:$0xff]  ;;  %v2849_v47 = vld [vmem:[%s3152_s2 + $0xc8] sm:$0xff] }
  0x67   :  { %1125 = vmatpush2.bf16.msra.mxu0 %v2163_v48  ;;  %v2855_v48 = vld [vmem:[%s3152_s2 + $0x48] sm:$0xff] }
  0x68   :  { %1178 = vmatpush2.bf16.msra.mxu1 %v2166_v49  ;;  %1126 = vmatprep.subr.bf16.mxu0 %v2171_v50  ;;  %v2861_v49 = vld [vmem:[%s3152_s2 + $0xc0] sm:$0xff] }
  0x69   :  { %1179 = vmatprep.subr.bf16.mxu1 %v2174_v51  ;;  %v2867_v50 = vld [vmem:[%s3152_s2 + $0x40] sm:$0xff]  ;;  %v2873_v51 = vld [vmem:[%s3152_s2 + $0xb8] sm:$0xff] }
  0x6a   :  { %3183 = vst [vmem:[#allocation2_spill] sm:$0xff] %v2873_v51 }
  0x6b   :  { %1127 = vmatpush2.bf16.msra.mxu0 %v2169_v52  ;;  %v2879_v52 = vld [vmem:[%s3152_s2 + $0x38] sm:$0xff] }
  0x6c   :  { %1180 = vmatpush2.bf16.msra.mxu1 %v2172_v53  ;;  %1128 = vmatprep.subr.bf16.mxu0 %v2177_v54  ;;  %3184 = vst [vmem:[#allocation3_spill] sm:$0xff] %v2879_v52  ;;  %v2885_v53 = vld [vmem:[%s3152_s2 + $0xb0] sm:$0xff] }
  0x6d   :  { %1181 = vmatprep.subr.bf16.mxu1 %v2180_v55  ;;  %3185 = vst [vmem:[#allocation4_spill] sm:$0xff] %v2885_v53  ;;  %v2891_v54 = vld [vmem:[%s3152_s2 + $0x30] sm:$0xff]  ;;  %v2897_v55 = vld [vmem:[%s3152_s2 + $0xa8] sm:$0xff] }
  0x6e   :  { %3186 = vst [vmem:[#allocation5_spill] sm:$0xff] %v2891_v54  ;;  %3187 = vst [vmem:[#allocation6_spill] sm:$0xff] %v2897_v55 }
  0x6f   :  { %1129 = vmatpush2.bf16.msra.mxu0 %v2175_v56  ;;  %v2903_v56 = vld [vmem:[%s3152_s2 + $0x28] sm:$0xff] }
  0x70   :  { %1182 = vmatpush2.bf16.msra.mxu1 %v2178_v57  ;;  %1130 = vmatprep.subr.bf16.mxu0 %v2183_v58  ;;  %3188 = vst [vmem:[#allocation7_spill] sm:$0xff] %v2903_v56  ;;  %v2909_v57 = vld [vmem:[%s3152_s2 + $0xa0] sm:$0xff] }
  0x71   :  { %1183 = vmatprep.subr.bf16.mxu1 %v2190_v59  ;;  %3189 = vst [vmem:[#allocation8_spill] sm:$0xff] %v2909_v57  ;;  %v2915_v58 = vld [vmem:[%s3152_s2 + $0x20] sm:$0xff]  ;;  %v2921_v59 = vld [vmem:[%s3152_s2 + $0x98] sm:$0xff] }
  0x72   :  { %3190 = vst [vmem:[#allocation9_spill] sm:$0xff] %v2915_v58  ;;  %3191 = vst [vmem:[#allocation10_spill] sm:$0xff] %v2921_v59 }
  0x73   :  { %1131 = vmatpush2.bf16.msra.mxu0 %v2181_v60  ;;  %v2927_v60 = vld [vmem:[%s3152_s2 + $0x18] sm:$0xff] }
  0x74   :  { %1184 = vmatpush2.bf16.msra.mxu1 %v2188_v61  ;;  %1132 = vmatprep.subr.bf16.mxu0 %v2195_v62  ;;  %3192 = vst [vmem:[#allocation11_spill] sm:$0xff] %v2927_v60  ;;  %v2933_v61 = vld [vmem:[%s3152_s2 + $0x90] sm:$0xff] }
  0x75   :  { %1185 = vmatprep.subr.bf16.mxu1 %v2198_v63  ;;  %3193 = vst [vmem:[#allocation12_spill] sm:$0xff] %v2933_v61  ;;  %v2939_v62 = vld [vmem:[%s3152_s2 + $0x10] sm:$0xff]  ;;  %v2945_v63 = vld [vmem:[%s3152_s2 + $0x88] sm:$0xff] }
  0x76   :  { %3194 = vst [vmem:[#allocation13_spill] sm:$0xff] %v2939_v62  ;;  %3195 = vst [vmem:[#allocation14_spill] sm:$0xff] %v2945_v63 }
  0x77   :  { %1133 = vmatpush2.bf16.msra.mxu0 %v2193_v0  ;;  %v2950_v0 = vld [vmem:[%s3152_s2 + $0x8] sm:$0xff] }
  0x78   :  { %1186 = vmatpush2.bf16.msra.mxu1 %v2196_v1  ;;  %1134 = vmatprep.subr.bf16.mxu0 %v2201_v2  ;;  %3196 = vst [vmem:[#allocation15_spill] sm:$0xff] %v2950_v0  ;;  %v2955_v1 = vld [vmem:[%s3152_s2 + $0x80] sm:$0xff] }
  0x79   :  { %1187 = vmatprep.subr.bf16.mxu1 %v2204_v3  ;;  %3197 = vst [vmem:[#allocation16_spill] sm:$0xff] %v2955_v1  ;;  %v2961_v2 = vld [vmem:[%s3152_s2] sm:$0xff]  ;;  %v2970_v3 = vld [vmem:[%s3153_s3 + $0x78] sm:$0xff] }
  0x7a   :  { %3198 = vst [vmem:[#allocation17_spill] sm:$0xff] %v2961_v2  ;;  %3199 = vst [vmem:[#allocation18_spill] sm:$0xff] %v2970_v3 }
  0x7b   :  { %1135 = vmatpush2.bf16.msra.mxu0 %v2199_v4  ;;  %v2975_v4 = vld [vmem:[%s3153_s3 + $0x70] sm:$0xff] }
  0x7c   :  { %1188 = vmatpush2.bf16.msra.mxu1 %v2202_v5  ;;  %1136 = vmatprep.subr.bf16.mxu0 %v2207_v6  ;;  %3200 = vst [vmem:[#allocation19_spill] sm:$0xff] %v2975_v4  ;;  %v2980_v5 = vld [vmem:[%s3153_s3 + $0x68] sm:$0xff]  ;;  %v2986_v6 = vld [vmem:[%s3153_s3 + $0x60] sm:$0xff] }
  0x7d   :  { %1189 = vmatprep.subr.bf16.mxu1 %v2210_v7  ;;  %3201 = vst [vmem:[#allocation20_spill] sm:$0xff] %v2980_v5  ;;  %3202 = vst [vmem:[#allocation21_spill] sm:$0xff] %v2986_v6  ;;  %v2992_v7 = vld [vmem:[%s3153_s3 + $0x58] sm:$0xff] }
  0x7e   :  { %3203 = vst [vmem:[#allocation22_spill] sm:$0xff] %v2992_v7 }
  0x7f   :  { %1137 = vmatpush2.bf16.msra.mxu0 %v2205_v8  ;;  %v2998_v8 = vld [vmem:[%s3153_s3 + $0x50] sm:$0xff] }
  0x80   :  { %1190 = vmatpush2.bf16.msra.mxu1 %v2208_v9  ;;  %1212 = vmatprep.subr.bf16.mxu0 %v2216_v10  ;;  %3204 = vst [vmem:[#allocation23_spill] sm:$0xff] %v2998_v8  ;;  %v3004_v9 = vld [vmem:[%s3153_s3 + $0x48] sm:$0xff]  ;;  %v3010_v10 = vld [vmem:[%s3153_s3 + $0x40] sm:$0xff] }
  0x81   :  { %1935 = vmatprep.subr.mxu1 %v2777_v35  ;;  %3205 = vst [vmem:[#allocation24_spill] sm:$0xff] %v3004_v9  ;;  %3206 = vst [vmem:[#allocation25_spill] sm:$0xff] %v3010_v10 }
  0x82   :  { %1139 = vmatmul.mubr.bf16.vlgmr.msra.gmra.mxu0 %v2211_v11  ;;  %v3016_v11 = vld [vmem:[%s3153_s3 + $0x38] sm:$0xff] }
  0x83   :  { %1192 = vmatmul.mubr.bf16.vlgmr.msra.gmra.mxu1 %v2217_v12  ;;  %1213 = vmatpush1.bf16.msra.mxu0 %v2214_v13  ;;  %3207 = vst [vmem:[#allocation26_spill] sm:$0xff] %v3016_v11  ;;  %v3022_v12 = vld [vmem:[%s3153_s3 + $0x30] sm:$0xff] }
  0x84   :  { %1148 = vmatprep.mubr.bf16.mxu0 %v2223_v14  ;;  %1214 = vmatprep.subr.bf16.mxu0 %v2222_v15  ;;  %3208 = vst [vmem:[#allocation27_spill] sm:$0xff] %v3022_v12 }
  0x85   :  { %1201 = vmatprep.mubr.bf16.mxu1 %v2229_v16  ;;  %1936 = vmatpush3.msra.mxu1 %v2783_v36 }
  0x86   :  { %1937 = vmatprep.subr.mxu1 %v2789_v37 }
  0x87   :  { %1215 = vmatpush1.bf16.msra.mxu0 %v2220_v17  ;;  %1938 = vmatpush3.msra.mxu1 %v2795_v38 }
  0x88   :  { %1216 = vmatprep.subr.bf16.mxu0 %v2228_v18  ;;  %1939 = vmatprep.subr.mxu1 %v2801_v39 }
  0x89   :  { %1940 = vmatpush3.msra.mxu1 %v2807_v40 }
  0x8a   :  { %1149 = vmatmul.mubr.bf16.gmra.mxu0 %v2225_v19  ;;  %1941 = vmatprep.subr.mxu1 %v2813_v41 }
  0x8b   :  { %1202 = vmatmul.mubr.bf16.gmra.mxu1 %v2231_v20  ;;  %1217 = vmatpush1.bf16.msra.mxu0 %v2226_v21 }
  0x8c   :  { %1244 = vmatprep.mubr.bf16.mxu0 %v2251_v24  ;;  %1218 = vmatprep.subr.bf16.mxu0 %v2234_v22 }
  0x8d   :  { %1942 = vmatpush3.msra.mxu1 %v2819_v42 }
  0x8e   :  { %1943 = vmatprep.subr.mxu1 %v2825_v43 }
  0x8f   :  { %1219 = vmatpush1.bf16.msra.mxu0 %v2232_v23  ;;  %1944 = vmatpush3.msra.mxu1 %v2831_v44 }
  0x90   :  { %1220 = vmatprep.subr.bf16.mxu0 %v2237_v25  ;;  %1945 = vmatprep.subr.mxu1 %v2837_v45 }
  0x91   :  { %1946 = vmatpush3.msra.mxu1 %v2843_v46 }
  0x92   :  { %1947 = vmatprep.subr.mxu1 %v2849_v47 }
  0x93   :  { %1221 = vmatpush1.bf16.msra.mxu0 %v2235_v26  ;;  %1948 = vmatpush3.msra.mxu1 %v2855_v48 }
  0x94   :  { %1222 = vmatprep.subr.bf16.mxu0 %v2240_v27  ;;  %1949 = vmatprep.subr.mxu1 %v2861_v49 }
  0x95   :  { %1950 = vmatpush3.msra.mxu1 %v2867_v50 }
  0x96   :  { %1951 = vmatprep.subr.mxu1 %v2873_v51 }
  0x97   :  { %1223 = vmatpush1.bf16.msra.mxu0 %v2238_v28  ;;  %1952 = vmatpush3.msra.mxu1 %v2879_v52 }
  0x98   :  { %1224 = vmatprep.subr.bf16.mxu0 %v2243_v29  ;;  %1953 = vmatprep.subr.mxu1 %v2885_v53 }
  0x99   :  { %1954 = vmatpush3.msra.mxu1 %v2891_v54 }
  0x9a   :  { %1955 = vmatprep.subr.mxu1 %v2897_v55 }
  0x9b   :  { %1225 = vmatpush1.bf16.msra.mxu0 %v2241_v30  ;;  %1956 = vmatpush3.msra.mxu1 %v2903_v56 }
  0x9c   :  { %1226 = vmatprep.subr.bf16.mxu0 %v2246_v31  ;;  %1957 = vmatprep.subr.mxu1 %v2909_v57 }
  0x9d   :  { %1958 = vmatpush3.msra.mxu1 %v2915_v58 }
  0x9e   :  { %1959 = vmatprep.subr.mxu1 %v2921_v59 }
  0x9f   :  { %1227 = vmatpush1.bf16.msra.mxu0 %v2244_v32  ;;  %1960 = vmatpush3.msra.mxu1 %v2927_v60 }
  0xa0   :  { %1961 = vmatprep.subr.mxu1 %v2933_v61  ;;  %1423 = vmatprep.subr.mxu0 %v2970_v3 }
  0xa1   :  { %1962 = vmatpush3.msra.mxu1 %v2939_v62 }
  0xa2   :  { %1245 = vmatmul.mubr.bf16.vlgmr.msra.gmra.mxu0 %v2247_v33  ;;  %1963 = vmatprep.subr.mxu1 %v2945_v63 }
  0xa3   :  { %1254 = vmatprep.mubr.bf16.mxu0 %v2251_v24  ;;  %1964 = vmatpush3.msra.mxu1 %v2950_v0 }
  0xa4   :  { %1965 = vmatprep.subr.mxu1 %v2955_v1  ;;  %1424 = vmatpush1.msra.mxu0 %v2975_v4 }
  0xa5   :  { %1966 = vmatpush3.msra.mxu1 %v2961_v2  ;;  %1425 = vmatprep.subr.mxu0 %v2980_v5 }
  0xa6   :  { %1970 = vmatprep.subr.mxu1 %v2777_v35  ;;  %1426 = vmatpush1.msra.mxu0 %v2986_v6 }
  0xa7   :  { %1427 = vmatprep.subr.mxu0 %v2992_v7 }
  0xa8   :  { %1428 = vmatpush1.msra.mxu0 %v2998_v8 }
  0xa9   :  { %1429 = vmatprep.subr.mxu0 %v3004_v9 }
  0xaa   :  { %1255 = vmatmul.mubr.bf16.gmra.mxu0 %v2248_v34 }
  0xab   :  { %1430 = vmatpush1.msra.mxu0 %v3010_v10 }
  0xac   :  { %1431 = vmatprep.subr.mxu0 %v3016_v11 }
  0xad   :  { %1432 = vmatpush1.msra.mxu0 %v3022_v12 }
 0x102   :  { %v1034_v13 = vpop.f32.mrf.mxu0 }
 0x103   :  { %v1087_v16 = vpop.f32.mrf.mxu1 }
 0x104   :  { %v1036_v14 = vpop.f32.mrf.mxu0  ;;  %v1088_v5 = vadd.f32 %v1087_v16, %v1034_v13 }
 0x105   :  { %v1089_v19 = vpop.f32.mrf.mxu1 }
 0x106   :  { %v1038_v15 = vpop.f32.mrf.mxu0  ;;  %v1090_v0 = vadd.f32 %v1089_v19, %v1036_v14 }
 0x107   :  { %v1091_v21 = vpop.f32.mrf.mxu1 }
 0x108   :  { %v1040_v17 = vpop.f32.mrf.mxu0  ;;  %v1092_v6 = vadd.f32 %v1091_v21, %v1038_v15 }
 0x109   :  { %v1093_v23 = vpop.f32.mrf.mxu1 }
 0x10a   :  { %v1044_v18 = vpop.f32.mrf.mxu0  ;;  %v1094_v3 = vadd.f32 %v1093_v23, %v1040_v17 }
 0x10b   :  { %v1097_v24 = vpop.f32.mrf.mxu1 }
 0x10c   :  { %v1046_v20 = vpop.f32.mrf.mxu0  ;;  %v1098_v2 = vadd.f32 %v1097_v24, %v1044_v18 }
 0x10d   :  { %v1099_v27 = vpop.f32.mrf.mxu1 }
 0x10e   :  { %v1048_v22 = vpop.f32.mrf.mxu0  ;;  %v1100_v63 = vadd.f32 %v1099_v27, %v1046_v20 }
 0x10f   :  { %v1101_v29 = vpop.f32.mrf.mxu1 }
 0x110   :  { %v1050_v25 = vpop.f32.mrf.mxu0  ;;  %v1102_v54 = vadd.f32 %v1101_v29, %v1048_v22  ;;  %v1392_v29 = vld [vmem:[%s3153_s3 + $0x28] sm:$0xff] }
 0x111   :  { %v1103_v31 = vpop.f32.mrf.mxu1  ;;  %1433 = vmatprep.subr.mxu0 %v1392_v29 }
 0x112   :  { %v1104_v52 = vadd.f32 %v1103_v31, %v1050_v25  ;;  %v1390_v31 = vld [vmem:[%s3153_s3 + $0x18] sm:$0xff] }
 0x142   :  { %v1140_v26 = vpop.f32.mrf.mxu0 }
 0x143   :  { %v1193_v32 = vpop.f32.mrf.mxu1  ;;  %v1141_v62 = vadd.f32 %v1140_v26, %v1088_v5 }
 0x144   :  { %v1142_v28 = vpop.f32.mrf.mxu0 }
 0x145   :  { %v1195_v34 = vpop.f32.mrf.mxu1  ;;  %v1143_v57 = vadd.f32 %v1142_v28, %v1090_v0  ;;  %v1194_v51 = vadd.f32 %v1193_v32, %v1141_v62  ;;  %v3224_v28 = vld [vmem:[#allocation17_spill] sm:$0xff]  ;;  %v1389_v32 = vld [vmem:[%s3153_s3 + $0x10] sm:$0xff] }
 0x146   :  { %v1144_v30 = vpop.f32.mrf.mxu0 }
 0x147   :  { %v1197_v12 = vpop.f32.mrf.mxu1  ;;  %v1145_v1 = vadd.f32 %v1144_v30, %v1092_v6  ;;  %v1196_v14 = vadd.f32 %v1195_v34, %v1143_v57  ;;  %v1391_v30 = vld [vmem:[%s3153_s3 + $0x20] sm:$0xff] }
 0x148   :  { %v1146_v33 = vpop.f32.mrf.mxu0  ;;  %1434 = vmatpush1.msra.mxu0 %v1391_v30  ;;  %v1387_v34 = vld [vmem:[%s3153_s3] sm:$0xff] }
 0x149   :  { %v1199_v10 = vpop.f32.mrf.mxu1  ;;  %v1147_v59 = vadd.f32 %v1146_v33, %v1094_v3  ;;  %v1198_v53 = vadd.f32 %v1197_v12, %v1145_v1  ;;  %1435 = vmatprep.subr.mxu0 %v1390_v31  ;;  %v1388_v33 = vld [vmem:[%s3153_s3 + $0x8] sm:$0xff] }
 0x14a   :  { %v1150_v35 = vpop.f32.mrf.mxu0  ;;  %1436 = vmatpush1.msra.mxu0 %v1389_v32 }
 0x14b   :  { %v1203_v8 = vpop.f32.mrf.mxu1  ;;  %v1151_v58 = vadd.f32 %v1150_v35, %v1098_v2  ;;  %v1200_v16 = vadd.f32 %v1199_v10, %v1147_v59  ;;  %1437 = vmatprep.subr.mxu0 %v1388_v33  ;;  %v2252_v35 = vmov 0.0  }
 0x14c   :  { %v1152_v11 = vpop.f32.mrf.mxu0  ;;  %1438 = vmatpush1.msra.mxu0 %v1387_v34  ;;  %1471 = vmatprep.mubr.f32.mxu0 %v2252_v35 }
 0x14d   :  { %v1205_v61 = vpop.f32.mrf.mxu1  ;;  %v1153_v56 = vadd.f32 %v1152_v11, %v1100_v63  ;;  %v1204_v17 = vadd.f32 %v1203_v8, %v1151_v58 }
 0x14e   :  { %v1154_v9 = vpop.f32.mrf.mxu0 }
 0x14f   :  { %v1207_v15 = vpop.f32.mrf.mxu1  ;;  %v1155_v18 = vadd.f32 %v1154_v9, %v1102_v54  ;;  %v1206_v5 = vadd.f32 %v1205_v61, %v1153_v56 }
 0x150   :  { %v1156_v7 = vpop.f32.mrf.mxu0 }
 0x151   :  { %v1157_v20 = vadd.f32 %v1156_v7, %v1104_v52  ;;  %v1209_v1 = vpop.f32.mrf.mxu1  ;;  %v1208_v62 = vadd.f32 %v1207_v15, %v1155_v18  ;;  %v3225_v15 = vld [vmem:[#allocation18_spill] sm:$0xff] }
 0x152   :  { %1612 = vmatprep.subr.mxu0 %v3225_v15 }
 0x153   :  { %v1210_v56 = vadd.f32 %v1209_v1, %v1157_v20  ;;  %v3229_v20 = vld [vmem:[#allocation22_spill] sm:$0xff]  ;;  %v3230_v1 = vld [vmem:[#allocation23_spill] sm:$0xff] }
 0x162   :  { %v1246_v4 = vpop.f32.mrf.mxu0 }
 0x163   :  { %v3029_v3 = vadd.f32 %v1246_v4, %v1194_v51 }
 0x164   :  { %v1248_v60 = vpop.f32.mrf.mxu0 }
 0x165   :  { %v3035_v11 = vadd.f32 %v1248_v60, %v1196_v14  ;;  %v3226_v14 = vld [vmem:[#allocation19_spill] sm:$0xff] }
 0x166   :  { %v1250_v55 = vpop.f32.mrf.mxu0 }
 0x167   :  { %v3027_v6 = vadd.f32 %v1250_v55, %v1198_v53 }
 0x168   :  { %v1252_v13 = vpop.f32.mrf.mxu0 }
 0x169   :  { %v3031_v0 = vadd.f32 %v1252_v13, %v1200_v16  ;;  %v1265_v54 = vadd.f32 %v3027_v6, %v3029_v3 }
 0x16a   :  { %v1256_v19 = vpop.f32.mrf.mxu0 }
 0x16b   :  { %v3033_v63 = vadd.f32 %v1256_v19, %v1204_v17  ;;  %v1274_v51 = vadd.f32 %v3031_v0, %v3035_v11  ;;  %v3228_v19 = vld [vmem:[#allocation21_spill] sm:$0xff] }
 0x16c   :  { %v1258_v2 = vpop.f32.mrf.mxu0 }
 0x16d   :  { %v3039_v53 = vadd.f32 %v1258_v2, %v1206_v5  ;;  %v1266_v52 = vadd.f32 %v1265_v54, %v3033_v63  ;;  %v3227_v5 = vld [vmem:[#allocation20_spill] sm:$0xff]  ;;  %v3233_v54 = vld [vmem:[#allocation26_spill] sm:$0xff] }
 0x16e   :  { %v1260_v55 = vpop.f32.mrf.mxu0  ;;  %v3231_v2 = vld [vmem:[#allocation24_spill] sm:$0xff] }
 0x16f   :  { %v3044_v57 = vadd.f32 %v1260_v55, %v1208_v62  ;;  %v1275_v59 = vadd.f32 %v1274_v51, %v3039_v53  ;;  %v3232_v62 = vld [vmem:[#allocation25_spill] sm:$0xff]  ;;  %v3234_v55 = vld [vmem:[#allocation27_spill] sm:$0xff] }
 0x170   :  { %v1262_v58 = vpop.f32.mrf.mxu0 }
 0x171   :  { %v1267_v60 = vadd.f32 %v1266_v52, %v3044_v57  ;;  %v3048_v61 = vadd.f32 %v1262_v58, %v1210_v56  ;;  %v1478_v56 = vlaneseq }
 0x173   :  { %v1268_v4 = vrot.slane %v1267_v60, 4  ;;  %v1276_v7 = vadd.f32 %v1275_v59, %v3048_v61  ;;  %v3111_v51 = vshrl.u32 %v1478_v56, 7 }
 0x175   :  { %v1269_v8 = vadd.f32 %v1268_v4, %v1267_v60  ;;  %v1277_v9 = vrot.slane %v1276_v7, 4  ;;  %v3114_v52 = vsub.s32 0, %v3111_v51  ;;  %v1691_v15 = vsub.s32 1, %v3111_v51 }
 0x177   :  { %v1270_v10 = vrot.slane %v1269_v8, 2  ;;  %v1278_v12 = vadd.f32 %v1277_v9, %v1276_v7 }
 0x179   :  { %v1271_v21 = vadd.f32 %v1270_v10, %v1269_v8  ;;  %v1279_v22 = vrot.slane %v1278_v12, 2 }
 0x17b   :  { %v1280_v23 = vadd.f32 %v1279_v22, %v1278_v12  ;;  %v1272_v24 = vrot.slane %v1271_v21, 1 }
 0x17d   :  { %v1281_v25 = vrot.slane %v1280_v23, 1  ;;  %v1273_v27 = vadd.f32 %v1272_v24, %v1271_v21 }
 0x17f   :  { %v1282_v26 = vadd.f32 %v1281_v25, %v1280_v23 }
 0x181   :  { %1379 = vmatprep.mubr.f32.mxu1 %v1282_v26 }
 0x182   :  { %1380 = vmatmul.mubr.f32.vlgmr.msra.gmra.mxu1 %v1273_v27 }
 0x183   :  { %1971 = vmatpush3.msra.mxu1 %v2783_v36  ;;  %v3209_v36 = vld [vmem:[#allocation2_spill] sm:$0xff] }
 0x184   :  { %1972 = vmatprep.subr.mxu1 %v2789_v37  ;;  %v3210_v37 = vld [vmem:[#allocation3_spill] sm:$0xff] }
 0x185   :  { %1973 = vmatpush3.msra.mxu1 %v2795_v38  ;;  %v3211_v38 = vld [vmem:[#allocation4_spill] sm:$0xff] }
 0x186   :  { %1974 = vmatprep.subr.mxu1 %v2801_v39  ;;  %v3212_v39 = vld [vmem:[#allocation5_spill] sm:$0xff] }
 0x187   :  { %1975 = vmatpush3.msra.mxu1 %v2807_v40  ;;  %v3213_v40 = vld [vmem:[#allocation6_spill] sm:$0xff] }
 0x188   :  { %1976 = vmatprep.subr.mxu1 %v2813_v41  ;;  %v3214_v41 = vld [vmem:[#allocation7_spill] sm:$0xff] }
 0x189   :  { %1977 = vmatpush3.msra.mxu1 %v2819_v42  ;;  %v3215_v42 = vld [vmem:[#allocation8_spill] sm:$0xff] }
 0x18a   :  { %1978 = vmatprep.subr.mxu1 %v2825_v43  ;;  %v3216_v43 = vld [vmem:[#allocation9_spill] sm:$0xff] }
 0x18b   :  { %1979 = vmatpush3.msra.mxu1 %v2831_v44  ;;  %v3217_v44 = vld [vmem:[#allocation10_spill] sm:$0xff] }
 0x18c   :  { %1980 = vmatprep.subr.mxu1 %v2837_v45  ;;  %v3218_v45 = vld [vmem:[#allocation11_spill] sm:$0xff] }
 0x18d   :  { %1981 = vmatpush3.msra.mxu1 %v2843_v46  ;;  %v3219_v46 = vld [vmem:[#allocation12_spill] sm:$0xff] }
 0x18e   :  { %1982 = vmatprep.subr.mxu1 %v2849_v47  ;;  %v3220_v47 = vld [vmem:[#allocation13_spill] sm:$0xff] }
 0x18f   :  { %1983 = vmatpush3.msra.mxu1 %v2855_v48  ;;  %v3221_v48 = vld [vmem:[#allocation14_spill] sm:$0xff] }
 0x190   :  { %1984 = vmatprep.subr.mxu1 %v2861_v49  ;;  %v3222_v49 = vld [vmem:[#allocation15_spill] sm:$0xff] }
 0x191   :  { %1985 = vmatpush3.msra.mxu1 %v2867_v50  ;;  %v3223_v50 = vld [vmem:[#allocation16_spill] sm:$0xff] }
 0x192   :  { %1986 = vmatprep.subr.mxu1 %v3209_v36 }
 0x193   :  { %1987 = vmatpush3.msra.mxu1 %v3210_v37 }
 0x194   :  { %1988 = vmatprep.subr.mxu1 %v3211_v38 }
 0x195   :  { %1989 = vmatpush3.msra.mxu1 %v3212_v39 }
 0x196   :  { %1990 = vmatprep.subr.mxu1 %v3213_v40 }
 0x197   :  { %1991 = vmatpush3.msra.mxu1 %v3214_v41 }
 0x198   :  { %1992 = vmatprep.subr.mxu1 %v3215_v42 }
 0x199   :  { %1993 = vmatpush3.msra.mxu1 %v3216_v43 }
 0x19a   :  { %1994 = vmatprep.subr.mxu1 %v3217_v44 }
 0x19b   :  { %1995 = vmatpush3.msra.mxu1 %v3218_v45 }
 0x19c   :  { %1996 = vmatprep.subr.mxu1 %v3219_v46 }
 0x19d   :  { %1997 = vmatpush3.msra.mxu1 %v3220_v47 }
 0x19e   :  { %1998 = vmatprep.subr.mxu1 %v3221_v48 }
 0x19f   :  { %1999 = vmatpush3.msra.mxu1 %v3222_v49 }
 0x1a0   :  { %2000 = vmatprep.subr.mxu1 %v3223_v50 }
 0x1a1   :  { %2001 = vmatpush3.msra.mxu1 %v3224_v28 }
 0x242   :  { %v1967_v13 = vpop.f32.mrf.mxu1 }
 0x244   :  { %v1968_v16 = vpop.f32.mrf.mxu1 }
 0x245   :  { %v1969_v17 = vadd.f32 %v1968_v16, %v1967_v13 }
 0x247   :  { %v1386_v18 = vmul.f32 0.0078125, %v1969_v17 }
 0x249   :  { %1925 = vmatmul.mubr.msk.f32.vlgmr.msra.gmra.mxu0 %vm1403_vm0, %v1386_v18 }
 0x24a   :  { %1613 = vmatpush1.msra.mxu0 %v3226_v14  ;;  %1660 = vmatprep.mubr.f32.mxu0 %v2252_v35 }
 0x24b   :  { %1614 = vmatprep.subr.mxu0 %v3227_v5 }
 0x24c   :  { %1615 = vmatpush1.msra.mxu0 %v3228_v19 }
 0x24d   :  { %1616 = vmatprep.subr.mxu0 %v3229_v20 }
 0x24e   :  { %1617 = vmatpush1.msra.mxu0 %v3230_v1 }
 0x24f   :  { %1618 = vmatprep.subr.mxu0 %v3231_v2 }
 0x250   :  { %1619 = vmatpush1.msra.mxu0 %v3232_v62 }
 0x251   :  { %1620 = vmatprep.subr.mxu0 %v3233_v54 }
 0x252   :  { %1621 = vmatpush1.msra.mxu0 %v3234_v55 }
 0x253   :  { %1622 = vmatprep.subr.mxu0 %v1392_v29 }
 0x254   :  { %1623 = vmatpush1.msra.mxu0 %v1391_v30 }
 0x255   :  { %1624 = vmatprep.subr.mxu0 %v1390_v31 }
 0x256   :  { %1625 = vmatpush1.msra.mxu0 %v1389_v32 }
 0x257   :  { %1626 = vmatprep.subr.mxu0 %v1388_v33  ;;  %v1683_v33 = vld [vmem:[%s3154_s4] sm:$0x3] }
 0x258   :  { %1627 = vmatpush1.msra.mxu0 %v1387_v34  ;;  %v1703_v34 = vld [vmem:[%s3155_s5] sm:$0x3]  ;;  %v1688_v16 = vrot.slane %v1683_v33, %v3114_v52  ;;  %v1692_v2 = vrot.slane %v1683_v33, %v1691_v15 }
 0x259   :  { %v1708_v17 = vrot.slane %v1703_v34, %v3114_v52  ;;  %v1712_v62 = vrot.slane %v1703_v34, %v1691_v15 }
 0x309   :  { %v1473_v58 = vpop.f32.mrf.mxu0 }
 0x30a   :  { %v1481_v59 = vrot.slane %v1473_v58, %v3114_v52 }
 0x30b   :  { %v1475_v60 = vpop.f32.mrf.mxu0 }
 0x30c   :  { %v1486_v4 = vsub.f32 %v3029_v3, %v1481_v59  ;;  %v1488_v7 = vsub.f32 %v3027_v6, %v1481_v59  ;;  %v1490_v8 = vsub.f32 %v3033_v63, %v1481_v59  ;;  %v1485_v9 = vrot.slane %v1475_v60, %v3114_v52 }
 0x30d   :  { %v1492_v10 = vsub.f32 %v3044_v57, %v1481_v59 }
 0x30e   :  { %v1494_v12 = vmul.f32 %v1486_v4, %v1486_v4  ;;  %v1496_v21 = vmul.f32 %v1488_v7, %v1488_v7  ;;  %v1487_v22 = vsub.f32 %v3035_v11, %v1485_v9  ;;  %v1489_v23 = vsub.f32 %v3031_v0, %v1485_v9 }
 0x30f   :  { %v1491_v24 = vsub.f32 %v3039_v53, %v1485_v9  ;;  %v1498_v25 = vmul.f32 %v1490_v8, %v1490_v8  ;;  %v1493_v3 = vsub.f32 %v3048_v61, %v1485_v9  ;;  %v1500_v36 = vmul.f32 %v1492_v10, %v1492_v10 }
 0x310   :  { %v1502_v26 = vadd.f32 %v1496_v21, %v1494_v12  ;;  %v1495_v27 = vmul.f32 %v1487_v22, %v1487_v22  ;;  %v1497_v6 = vmul.f32 %v1489_v23, %v1489_v23 }
 0x311   :  { %v1499_v37 = vmul.f32 %v1491_v24, %v1491_v24  ;;  %v1501_v57 = vmul.f32 %v1493_v3, %v1493_v3 }
 0x312   :  { %v1503_v63 = vadd.f32 %v1502_v26, %v1498_v25  ;;  %v1511_v38 = vadd.f32 %v1497_v6, %v1495_v27 }
 0x314   :  { %v1504_v39 = vadd.f32 %v1503_v63, %v1500_v36  ;;  %v1512_v40 = vadd.f32 %v1511_v38, %v1499_v37 }
 0x316   :  { %v1505_v41 = vrot.slane %v1504_v39, 4  ;;  %v1513_v42 = vadd.f32 %v1512_v40, %v1501_v57 }
 0x318   :  { %v1506_v11 = vadd.f32 %v1505_v41, %v1504_v39  ;;  %v1514_v43 = vrot.slane %v1513_v42, 4 }
 0x31a   :  { %v1507_v0 = vrot.slane %v1506_v11, 2  ;;  %v1515_v44 = vadd.f32 %v1514_v43, %v1513_v42 }
 0x31c   :  { %v1508_v53 = vadd.f32 %v1507_v0, %v1506_v11  ;;  %v1516_v45 = vrot.slane %v1515_v44, 2 }
 0x31e   :  { %v1517_v46 = vadd.f32 %v1516_v45, %v1515_v44  ;;  %v1509_v47 = vrot.slane %v1508_v53, 1 }
 0x320   :  { %v1518_v61 = vrot.slane %v1517_v46, 1  ;;  %v1510_v49 = vadd.f32 %v1509_v47, %v1508_v53 }
 0x322   :  { %v1519_v48 = vadd.f32 %v1518_v61, %v1517_v46 }
 0x324   :  { %1584 = vmatprep.mubr.f32.mxu1 %v1519_v48 }
 0x325   :  { %1585 = vmatmul.mubr.f32.vlgmr.msra.gmra.mxu1 %v1510_v49 }
 0x3e5   :  { %v2002_v50 = vpop.f32.mrf.mxu1 }
 0x3e7   :  { %v2003_v28 = vpop.f32.mrf.mxu1 }
 0x3e8   :  { %v2004_v29 = vadd.f32 %v2003_v28, %v2002_v50 }
 0x3ea   :  { %v1590_v30 = vmul.f32 0.0078125, %v2004_v29 }
 0x3ec   :  { %v1591_v31 = vadd.f32 1e-05, %v1590_v30 }
 0x3ee   :  { %2249 = vrsqrt.f32 %v1591_v31 }
 0x3fb   :  { %v2250_v32 = vpop.eup %2249 }
 0x3fc   :  { %1926 = vmatmul.mubr.msk.f32.vlgmr.msra.gmra.mxu0 %vm1403_vm0, %v2250_v32 }
 0x4bc   :  { %v1662_v35 = vpop.f32.mrf.mxu0 }
 0x4bd   :  { %v1670_v13 = vrot.slane %v1662_v35, %v3114_v52 }
 0x4be   :  { %v1664_v18 = vpop.f32.mrf.mxu0 }
 0x4bf   :  { %v1675_v14 = vmul.f32 %v1670_v13, %v1486_v4  ;;  %v1677_v5 = vmul.f32 %v1670_v13, %v1488_v7  ;;  %v1679_v19 = vmul.f32 %v1670_v13, %v1490_v8  ;;  %v1681_v20 = vmul.f32 %v1670_v13, %v1492_v10 }
 0x4c0   :  { %v1674_v1 = vrot.slane %v1664_v18, %v3114_v52 }
 0x4c1   :  { %v1695_v54 = vmul.f32 %v1688_v16, %v1675_v14  ;;  %v1697_v55 = vmul.f32 %v1688_v16, %v1677_v5  ;;  %v1699_v56 = vmul.f32 %v1688_v16, %v1679_v19  ;;  %v1701_v58 = vmul.f32 %v1688_v16, %v1681_v20 }
 0x4c2   :  { %v1676_v51 = vmul.f32 %v1674_v1, %v1487_v22  ;;  %v1678_v59 = vmul.f32 %v1674_v1, %v1489_v23  ;;  %v1680_v60 = vmul.f32 %v1674_v1, %v1491_v24  ;;  %v1682_v9 = vmul.f32 %v1674_v1, %v1493_v3 }
 0x4c3   :  { %v1715_v12 = vadd.f32 %v1708_v17, %v1695_v54  ;;  %v1717_v21 = vadd.f32 %v1708_v17, %v1697_v55  ;;  %v1719_v25 = vadd.f32 %v1708_v17, %v1699_v56  ;;  %v1721_v26 = vadd.f32 %v1708_v17, %v1701_v58 }
 0x4c4   :  { %v1696_v4 = vmul.f32 %v1692_v2, %v1676_v51  ;;  %v1698_v7 = vmul.f32 %v1692_v2, %v1678_v59  ;;  %v1700_v8 = vmul.f32 %v1692_v2, %v1680_v60  ;;  %v1702_v10 = vmul.f32 %v1692_v2, %v1682_v9 }
 0x4c5   :  { %v1723_v63 = vmax.f32 %v1715_v12, 0.0  ;;  %v1725_v37 = vmax.f32 %v1717_v21, 0.0  ;;  %v1727_v38 = vmax.f32 %v1719_v25, 0.0  ;;  %v1729_v39 = vmax.f32 %v1721_v26, 0.0 }
 0x4c6   :  { %v1716_v27 = vadd.f32 %v1712_v62, %v1696_v4  ;;  %v1718_v52 = vadd.f32 %v1712_v62, %v1698_v7  ;;  %v1720_v6 = vadd.f32 %v1712_v62, %v1700_v8  ;;  %v1722_v36 = vadd.f32 %v1712_v62, %v1702_v10 }
 0x4c8   :  { %v1724_v22 = vmax.f32 %v1716_v27, 0.0  ;;  %v1726_v23 = vmax.f32 %v1718_v52, 0.0  ;;  %v1728_v24 = vmax.f32 %v1720_v6, 0.0  ;;  %v1730_v3 = vmax.f32 %v1722_v36, 0.0 }
 0x4ca   :  { %v1931_v57 = vpack.c.bf16 %v1724_v22, %v1723_v63  ;;  %v1932_v40 = vpack.c.bf16 %v1726_v23, %v1725_v37  ;;  %v1933_v41 = vpack.c.bf16 %v1728_v24, %v1727_v38  ;;  %v1934_v42 = vpack.c.bf16 %v1730_v3, %v1729_v39 }
 0x4cc   :  { %1755 = vst [vmem:[%s3156_s6] sm:$0xff] %v1931_v57  ;;  %1756 = vst [vmem:[%s3156_s6 + $0x8] sm:$0xff] %v1932_v40 }
 0x4cd   :  { %1757 = vst [vmem:[%s3156_s6 + $0x10] sm:$0xff] %v1933_v41  ;;  %1758 = vst [vmem:[%s3156_s6 + $0x18] sm:$0xff] %v1934_v42 }

// kernel: forward.14
= control target key start
LH: loop header
LB: loop body
LE: loop exit
PB: predicated region body
PF: predicated region fallthrough
CT: control target
= control target key end

     0   :  { %vm560_vm0 = vcmask 523264   ;;  %vm1996_vm1 = vmmov 0   ;;  %vm989_vm2 = vcmask 261120   ;;  %s2582_s1 = inlined_call_operand.vmem [shape: bf16[576,128], index: 1, kind: input, shape index: {}]   ;;  %s2583_s0 = inlined_call_operand.vmem [shape: bf16[128,576], index: 0, kind: input, shape index: {}]   ;;  %s2584_s2 = inlined_call_operand.vmem [shape: f32[128,32], index: 2, kind: input, shape index: {}]   ;;  %s2585_s3 = inlined_call_operand.vmem [shape: f32[32,128], index: 3, kind: input, shape index: {}]   ;;  %s2586_s4 = inlined_call_operand.vmem [shape: f32[1,128], index: 4, kind: input, shape index: {}]   ;;  %s2587_s5 = inlined_call_operand.vmem [shape: f32[1,128], index: 5, kind: input, shape index: {}]   ;;  %s2588_s6 = inlined_call_operand.vmem [shape: bf16[128,128], index: 6, kind: output, shape index: {}]  }
   0x1   :  { %v1901_v0 = vld [vmem:[%s2582_s1 + $0x78] sm:$0xff]   ;;  %v1905_v4 = vld [vmem:[%s2582_s1 + $0x70] sm:$0xff]   ;;  %v1909_v8 = vld [vmem:[%s2582_s1 + $0x68] sm:$0xff]  }
   0x2   :  { %v1902_v1 = vld [vmem:[%s2582_s1 + $0xf8] sm:$0xff]   ;;  %1599 = vmatprep.subr.bf16.mxu0 %v1901_v0  ;;  %v1906_v5 = vld [vmem:[%s2582_s1 + $0xf0] sm:$0xff]   ;;  %v1910_v9 = vld [vmem:[%s2582_s1 + $0xe8] sm:$0xff]  }
   0x3   :  { %v1903_v2 = vld [vmem:[%s2582_s1 + $0x38] sm:$0xff]   ;;  %1663 = vmatprep.subr.bf16.mxu1 %v1902_v1  ;;  %v1907_v6 = vld [vmem:[%s2582_s1 + $0x30] sm:$0xff]   ;;  %v1911_v10 = vld [vmem:[%s2582_s1 + $0x28] sm:$0xff]  }
   0x4   :  { %v1904_v3 = vld [vmem:[%s2582_s1 + $0xb8] sm:$0xff]   ;;  %1600 = vmatpush3.bf16.msra.mxu0 %v1903_v2  ;;  %v1908_v7 = vld [vmem:[%s2582_s1 + $0xb0] sm:$0xff]   ;;  %v1912_v11 = vld [vmem:[%s2582_s1 + $0xa8] sm:$0xff]  }
   0x5   :  { %1664 = vmatpush3.bf16.msra.mxu1 %v1904_v3  ;;  %1601 = vmatprep.subr.bf16.mxu0 %v1905_v4  ;;  %v1913_v12 = vld [vmem:[%s2582_s1 + $0x60] sm:$0xff]   ;;  %v1917_v16 = vld [vmem:[%s2582_s1 + $0x58] sm:$0xff]   ;;  %v1921_v20 = vld [vmem:[%s2582_s1 + $0x50] sm:$0xff]  }
   0x6   :  { %1665 = vmatprep.subr.bf16.mxu1 %v1906_v5  ;;  %v1914_v13 = vld [vmem:[%s2582_s1 + $0xe0] sm:$0xff]   ;;  %v1918_v17 = vld [vmem:[%s2582_s1 + $0xd8] sm:$0xff]   ;;  %v1922_v21 = vld [vmem:[%s2582_s1 + $0xd0] sm:$0xff]  }
   0x7   :  { %v1915_v14 = vld [vmem:[%s2582_s1 + $0x20] sm:$0xff]   ;;  %v1919_v18 = vld [vmem:[%s2582_s1 + $0x18] sm:$0xff]   ;;  %v1923_v22 = vld [vmem:[%s2582_s1 + $0x10] sm:$0xff]  }
   0x8   :  { %1602 = vmatpush3.bf16.msra.mxu0 %v1907_v6  ;;  %v1916_v15 = vld [vmem:[%s2582_s1 + $0xa0] sm:$0xff]   ;;  %v1920_v19 = vld [vmem:[%s2582_s1 + $0x98] sm:$0xff]   ;;  %v1924_v23 = vld [vmem:[%s2582_s1 + $0x90] sm:$0xff]  }
   0x9   :  { %1666 = vmatpush3.bf16.msra.mxu1 %v1908_v7  ;;  %1603 = vmatprep.subr.bf16.mxu0 %v1909_v8  ;;  %v1925_v24 = vld [vmem:[%s2582_s1 + $0x48] sm:$0xff]   ;;  %v1929_v28 = vld [vmem:[%s2582_s1 + $0x40] sm:$0xff]   ;;  %v1939_v36 = vld [vmem:[%s2582_s1 + $0x118] sm:$0xff]  }
   0xa   :  { %1667 = vmatprep.subr.bf16.mxu1 %v1910_v9  ;;  %v1926_v25 = vld [vmem:[%s2582_s1 + $0xc8] sm:$0xff]   ;;  %v1930_v29 = vld [vmem:[%s2582_s1 + $0xc0] sm:$0xff]   ;;  %v1952_v42 = vld [vmem:[%s2582_s1 + $0x110] sm:$0xff]  }
   0xb   :  { %v1927_v26 = vld [vmem:[%s2582_s1 + $0x8] sm:$0xff]   ;;  %v1931_v30 = vld [vmem:[%s2582_s1] sm:$0xff]   ;;  %v1948_v43 = vld [vmem:[%s2583_s0 + $0x5c] ss:$20 sps:$4 sm:$0xff]  }
   0xc   :  { %1604 = vmatpush3.bf16.msra.mxu0 %v1911_v10  ;;  %v1928_v27 = vld [vmem:[%s2582_s1 + $0x88] sm:$0xff]   ;;  %v1932_v31 = vld [vmem:[%s2582_s1 + $0x80] sm:$0xff]   ;;  %v1953_v47 = vld [vmem:[%s2583_s0 + $0x7c] ss:$20 sps:$4 sm:$0xff]  }
   0xd   :  { %1668 = vmatpush3.bf16.msra.mxu1 %v1912_v11  ;;  %1605 = vmatprep.subr.bf16.mxu0 %v1913_v12  ;;  %v1933_v32 = vld [vmem:[%s2583_s0] ss:$20 sps:$4 sm:$0xff]   ;;  %v1935_v33 = vld [vmem:[%s2583_s0 + $0x4] ss:$20 sps:$4 sm:$0xff]   ;;  %v1936_v34 = vld [vmem:[%s2583_s0 + $0x8] ss:$20 sps:$4 sm:$0xff]  }
   0xe   :  { %1669 = vmatprep.subr.bf16.mxu1 %v1914_v13  ;;  %v1938_v35 = vld [vmem:[%s2583_s0 + $0xc] ss:$20 sps:$4 sm:$0xff]   ;;  %617 = vmatprep.mubr.bf16.mxu0 %v1935_v33  ;;  %v1942_v38 = vld [vmem:[%s2583_s0 + $0x34] ss:$20 sps:$4 sm:$0xff]   ;;  %v1945_v40 = vld [vmem:[%s2583_s0 + $0x30] ss:$20 sps:$4 sm:$0xff]  }
   0xf   :  { %714 = vmatprep.mubr.bf16.mxu1 %v1938_v35  ;;  %v1940_v37 = vld [vmem:[%s2583_s0 + $0x2c] ss:$20 sps:$4 sm:$0xff]   ;;  %v1944_v39 = vld [vmem:[%s2583_s0 + $0x28] ss:$20 sps:$4 sm:$0xff]   ;;  %v1950_v44 = vld [vmem:[%s2583_s0 + $0x50] ss:$20 sps:$4 sm:$0xff]  }
  0x10   :  { %1606 = vmatpush3.bf16.msra.mxu0 %v1915_v14  ;;  %v1946_v41 = vld [vmem:[%s2583_s0 + $0x54] ss:$20 sps:$4 sm:$0xff]   ;;  %v1951_v45 = vld [vmem:[%s2583_s0 + $0x58] ss:$20 sps:$4 sm:$0xff]   ;;  %v1978_v49 = vld [vmem:[%s2582_s1 + $0x100] sm:$0xff]   ;;  %v2589_v12 = vmov 0.0  }
  0x11   :  { %1670 = vmatpush3.bf16.msra.mxu1 %v1916_v15  ;;  %1607 = vmatprep.subr.bf16.mxu0 %v1917_v16  ;;  %v1965_v46 = vld [vmem:[%s2582_s1 + $0x108] sm:$0xff]   ;;  %v1955_v48 = vld [vmem:[%s2583_s0 + $0x84] ss:$20 sps:$4 sm:$0xff]   ;;  %v1958_v51 = vld [vmem:[%s2583_s0 + $0x80] ss:$20 sps:$4 sm:$0xff]  }
  0x12   :  { %1671 = vmatprep.subr.bf16.mxu1 %v1918_v17  ;;  %v1957_v50 = vld [vmem:[%s2583_s0 + $0x78] ss:$20 sps:$4 sm:$0xff]   ;;  %v1963_v54 = vld [vmem:[%s2583_s0 + $0xa0] ss:$20 sps:$4 sm:$0xff]   ;;  %v1964_v55 = vld [vmem:[%s2583_s0 + $0xa8] ss:$20 sps:$4 sm:$0xff]  }
  0x13   :  { %v1959_v52 = vld [vmem:[%s2583_s0 + $0xa4] ss:$20 sps:$4 sm:$0xff]   ;;  %v1961_v53 = vld [vmem:[%s2583_s0 + $0xac] ss:$20 sps:$4 sm:$0xff]   ;;  %v1968_v57 = vld [vmem:[%s2583_s0 + $0xd4] ss:$20 sps:$4 sm:$0xff]  }
  0x14   :  { %1608 = vmatpush3.bf16.msra.mxu0 %v1919_v18  ;;  %v1966_v56 = vld [vmem:[%s2583_s0 + $0xcc] ss:$20 sps:$4 sm:$0xff]   ;;  %v1970_v58 = vld [vmem:[%s2583_s0 + $0xc8] ss:$20 sps:$4 sm:$0xff]   ;;  %v1971_v59 = vld [vmem:[%s2583_s0 + $0xd0] ss:$20 sps:$4 sm:$0xff]  }
  0x15   :  { %1672 = vmatpush3.bf16.msra.mxu1 %v1920_v19  ;;  %1609 = vmatprep.subr.bf16.mxu0 %v1921_v20  ;;  %v1972_v60 = vld [vmem:[%s2583_s0 + $0xf4] ss:$20 sps:$4 sm:$0xff]   ;;  %v1974_v61 = vld [vmem:[%s2583_s0 + $0xfc] ss:$20 sps:$4 sm:$0xff]   ;;  %v1977_v63 = vld [vmem:[%s2583_s0 + $0xf8] ss:$20 sps:$4 sm:$0xff]  }
  0x16   :  { %1673 = vmatprep.subr.bf16.mxu1 %v1922_v21  ;;  %v1976_v62 = vld [vmem:[%s2583_s0 + $0xf0] ss:$20 sps:$4 sm:$0xff]   ;;  %v1983_v2 = vld [vmem:[%s2583_s0 + $0x118] ss:$20 sps:$4 sm:$0xff]   ;;  %v1984_v3 = vld [vmem:[%s2583_s0 + $0x120] ss:$20 sps:$4 sm:$0xff]  }
  0x17   :  { %v1979_v0 = vld [vmem:[%s2583_s0 + $0x11c] ss:$20 sps:$4 sm:$0xff]   ;;  %v1981_v1 = vld [vmem:[%s2583_s0 + $0x124] ss:$20 sps:$4 sm:$0xff]   ;;  %v1987_v6 = vld [vmem:[%s2583_s0 + $0x60] ss:$20 sps:$4 sm:$0xff]  }
  0x18   :  { %1610 = vmatpush3.bf16.msra.mxu0 %v1923_v22  ;;  %v1985_v4 = vld [vmem:[%s2583_s0 + $0x10] ss:$20 sps:$4 sm:$0xff]   ;;  %v1986_v5 = vld [vmem:[%s2583_s0 + $0x38] ss:$20 sps:$4 sm:$0xff]   ;;  %v1988_v7 = vld [vmem:[%s2583_s0 + $0x88] ss:$20 sps:$4 sm:$0xff]  }
  0x19   :  { %1674 = vmatpush3.bf16.msra.mxu1 %v1924_v23  ;;  %1611 = vmatprep.subr.bf16.mxu0 %v1925_v24  ;;  %v1989_v8 = vld [vmem:[%s2583_s0 + $0xb0] ss:$20 sps:$4 sm:$0xff]   ;;  %v1990_v9 = vld [vmem:[%s2583_s0 + $0xd8] ss:$20 sps:$4 sm:$0xff]   ;;  %v1991_v10 = vld [vmem:[%s2583_s0 + $0x100] ss:$20 sps:$4 sm:$0xff]  }
  0x1a   :  { %1675 = vmatprep.subr.bf16.mxu1 %v1926_v25  ;;  %v1992_v11 = vld [vmem:[%s2583_s0 + $0x128] ss:$20 sps:$4 sm:$0xff]   ;;  %v911_v14 = vld [vmem:[%s2584_s2 + $0x70] sm:$0xff]  ;;  %v909_v16 = vld [vmem:[%s2584_s2 + $0x60] sm:$0xff] }
  0x1b   :  { %v912_v13 = vld [vmem:[%s2584_s2 + $0x78] sm:$0xff]  ;;  %v910_v15 = vld [vmem:[%s2584_s2 + $0x68] sm:$0xff]  ;;  %v907_v18 = vld [vmem:[%s2584_s2 + $0x50] sm:$0xff] }
  0x1c   :  { %1612 = vmatpush3.bf16.msra.mxu0 %v1927_v26  ;;  %v908_v17 = vld [vmem:[%s2584_s2 + $0x58] sm:$0xff]  ;;  %v906_v19 = vld [vmem:[%s2584_s2 + $0x48] sm:$0xff]  ;;  %v905_v20 = vld [vmem:[%s2584_s2 + $0x40] sm:$0xff] }
  0x1d   :  { %1676 = vmatpush3.bf16.msra.mxu1 %v1928_v27  ;;  %1613 = vmatprep.subr.bf16.mxu0 %v1929_v28  ;;  %v904_v21 = vld [vmem:[%s2584_s2 + $0x38] sm:$0xff]  ;;  %v903_v22 = vld [vmem:[%s2584_s2 + $0x30] sm:$0xff]  ;;  %v902_v23 = vld [vmem:[%s2584_s2 + $0x28] sm:$0xff] }
  0x1e   :  { %1677 = vmatprep.subr.bf16.mxu1 %v1930_v29  ;;  %v901_v24 = vld [vmem:[%s2584_s2 + $0x20] sm:$0xff]  ;;  %v900_v25 = vld [vmem:[%s2584_s2 + $0x18] sm:$0xff]  ;;  %v899_v26 = vld [vmem:[%s2584_s2 + $0x10] sm:$0xff] }
  0x1f   :  { %v898_v27 = vld [vmem:[%s2584_s2 + $0x8] sm:$0xff]  ;;  %v897_v28 = vld [vmem:[%s2584_s2] sm:$0xff] }
  0x20   :  { %1614 = vmatpush3.bf16.msra.mxu0 %v1931_v30 }
  0x21   :  { %1678 = vmatpush3.bf16.msra.mxu1 %v1932_v31  ;;  %1783 = vmatprep.subr.bf16.mxu0 %v1939_v36 }
  0x22   :  { %1807 = vmatprep.subr.mxu1 %v2589_v12 }
  0x23   :  { %618 = vmatmul.mubr.bf16.vlgmr.msra.gmra.mxu0 %v1933_v32 }
  0x24   :  { %715 = vmatmul.mubr.bf16.vlgmr.msra.gmra.mxu1 %v1936_v34  ;;  %1784 = vmatpush3.bf16.msra.mxu0 %v1939_v36 }
  0x25   :  { %625 = vmatprep.mubr.bf16.mxu0 %v1940_v37  ;;  %722 = vmatprep.mubr.bf16.mxu1 %v1942_v38 }
  0x26   :  { %1785 = vmatprep.subr.bf16.mxu0 %v1952_v42  ;;  %1808 = vmatpush3.msra.mxu1 %v912_v13 }
  0x27   :  { %1809 = vmatprep.subr.mxu1 %v2589_v12 }
  0x28   :  { %1786 = vmatpush3.bf16.msra.mxu0 %v1952_v42  ;;  %1810 = vmatpush3.msra.mxu1 %v911_v14 }
  0x29   :  { %1787 = vmatprep.subr.bf16.mxu0 %v1965_v46  ;;  %1811 = vmatprep.subr.mxu1 %v2589_v12 }
  0x2a   :  { %1812 = vmatpush3.msra.mxu1 %v910_v15 }
  0x2b   :  { %626 = vmatmul.mubr.bf16.gmra.mxu0 %v1944_v39  ;;  %1813 = vmatprep.subr.mxu1 %v2589_v12 }
  0x2c   :  { %723 = vmatmul.mubr.bf16.gmra.mxu1 %v1945_v40  ;;  %633 = vmatprep.mubr.bf16.mxu0 %v1946_v41 }
  0x2d   :  { %730 = vmatprep.mubr.bf16.mxu1 %v1948_v43  ;;  %1788 = vmatpush3.bf16.msra.mxu0 %v1965_v46 }
  0x2e   :  { %1789 = vmatprep.subr.bf16.mxu0 %v1978_v49  ;;  %1814 = vmatpush3.msra.mxu1 %v909_v16 }
  0x2f   :  { %1815 = vmatprep.subr.mxu1 %v2589_v12 }
  0x30   :  { %1816 = vmatpush3.msra.mxu1 %v908_v17 }
  0x31   :  { %1790 = vmatpush3.bf16.msra.mxu0 %v1978_v49  ;;  %1817 = vmatprep.subr.mxu1 %v2589_v12 }
  0x32   :  { %1853 = vmatprep.subr.mxu0 %v2589_v12  ;;  %1818 = vmatpush3.msra.mxu1 %v907_v18 }
  0x33   :  { %634 = vmatmul.mubr.bf16.gmra.mxu0 %v1950_v44  ;;  %1819 = vmatprep.subr.mxu1 %v2589_v12 }
  0x34   :  { %731 = vmatmul.mubr.bf16.gmra.mxu1 %v1951_v45  ;;  %641 = vmatprep.mubr.bf16.mxu0 %v1953_v47 }
  0x35   :  { %738 = vmatprep.mubr.bf16.mxu1 %v1955_v48  ;;  %1820 = vmatpush3.msra.mxu1 %v906_v19 }
  0x36   :  { %1821 = vmatprep.subr.mxu1 %v2589_v12 }
  0x37   :  { %1822 = vmatpush3.msra.mxu1 %v905_v20 }
  0x38   :  { %1823 = vmatprep.subr.mxu1 %v2589_v12 }
  0x39   :  { %1824 = vmatpush3.msra.mxu1 %v904_v21 }
  0x3a   :  { %1825 = vmatprep.subr.mxu1 %v2589_v12 }
  0x3b   :  { %642 = vmatmul.mubr.bf16.gmra.mxu0 %v1957_v50  ;;  %1826 = vmatpush3.msra.mxu1 %v903_v22 }
  0x3c   :  { %739 = vmatmul.mubr.bf16.gmra.mxu1 %v1958_v51  ;;  %649 = vmatprep.mubr.bf16.mxu0 %v1959_v52 }
  0x3d   :  { %746 = vmatprep.mubr.bf16.mxu1 %v1961_v53  ;;  %1827 = vmatprep.subr.mxu1 %v2589_v12 }
  0x3e   :  { %1828 = vmatpush3.msra.mxu1 %v902_v23 }
  0x3f   :  { %1829 = vmatprep.subr.mxu1 %v2589_v12 }
  0x40   :  { %1830 = vmatpush3.msra.mxu1 %v901_v24 }
  0x41   :  { %1831 = vmatprep.subr.mxu1 %v2589_v12 }
  0x42   :  { %1832 = vmatpush3.msra.mxu1 %v900_v25 }
  0x43   :  { %650 = vmatmul.mubr.bf16.gmra.mxu0 %v1963_v54  ;;  %1833 = vmatprep.subr.mxu1 %v2589_v12 }
  0x44   :  { %747 = vmatmul.mubr.bf16.gmra.mxu1 %v1964_v55  ;;  %657 = vmatprep.mubr.bf16.mxu0 %v1966_v56 }
  0x45   :  { %754 = vmatprep.mubr.bf16.mxu1 %v1968_v57  ;;  %1834 = vmatpush3.msra.mxu1 %v899_v26 }
  0x46   :  { %1835 = vmatprep.subr.mxu1 %v2589_v12 }
  0x47   :  { %1836 = vmatpush3.msra.mxu1 %v898_v27 }
  0x48   :  { %1837 = vmatprep.subr.mxu1 %v2589_v12 }
  0x49   :  { %1838 = vmatpush3.msra.mxu1 %v897_v28 }
  0x4a   :  { %1842 = vmatprep.subr.mxu1 %v2589_v12 }
  0x4b   :  { %658 = vmatmul.mubr.bf16.gmra.mxu0 %v1970_v58 }
  0x4c   :  { %755 = vmatmul.mubr.bf16.gmra.mxu1 %v1971_v59  ;;  %665 = vmatprep.mubr.bf16.mxu0 %v1972_v60 }
  0x4d   :  { %762 = vmatprep.mubr.bf16.mxu1 %v1974_v61 }
  0x53   :  { %666 = vmatmul.mubr.bf16.gmra.mxu0 %v1976_v62 }
  0x54   :  { %763 = vmatmul.mubr.bf16.gmra.mxu1 %v1977_v63  ;;  %673 = vmatprep.mubr.bf16.mxu0 %v1979_v0 }
  0x55   :  { %770 = vmatprep.mubr.bf16.mxu1 %v1981_v1 }
  0x5b   :  { %674 = vmatmul.mubr.bf16.gmra.mxu0 %v1983_v2 }
  0x5c   :  { %771 = vmatmul.mubr.bf16.gmra.mxu1 %v1984_v3  ;;  %1791 = vmatprep.mubr.msk.bf16.mxu0 %vm560_vm0, %v1985_v4 }
  0x5d   :  { %1839 = vmatprep.mubr.msk.f32.mxu1 %vm1996_vm1, %v2589_v12 }
  0x63   :  { %1792 = vmatmul.mubr.msk.bf16.vlgmr.msra.gmra.mxu0 %vm560_vm0, %v1986_v5 }
  0x64   :  { %1795 = vmatprep.mubr.msk.bf16.mxu0 %vm560_vm0, %v1987_v6  ;;  %1854 = vmatpush3.msra.mxu0 %v912_v13 }
  0x65   :  { %1855 = vmatprep.subr.mxu0 %v2589_v12 }
  0x66   :  { %1856 = vmatpush3.msra.mxu0 %v911_v14 }
  0x67   :  { %1857 = vmatprep.subr.mxu0 %v2589_v12 }
  0x68   :  { %1858 = vmatpush3.msra.mxu0 %v910_v15 }
  0x69   :  { %1859 = vmatprep.subr.mxu0 %v2589_v12 }
  0x6a   :  { %1860 = vmatpush3.msra.mxu0 %v909_v16 }
  0x6b   :  { %1796 = vmatmul.mubr.msk.bf16.gmra.mxu0 %vm560_vm0, %v1988_v7  ;;  %1861 = vmatprep.subr.mxu0 %v2589_v12 }
  0x6c   :  { %1799 = vmatprep.mubr.msk.bf16.mxu0 %vm560_vm0, %v1989_v8  ;;  %1862 = vmatpush3.msra.mxu0 %v908_v17 }
  0x6d   :  { %1863 = vmatprep.subr.mxu0 %v2589_v12 }
  0x6e   :  { %1864 = vmatpush3.msra.mxu0 %v907_v18 }
  0x6f   :  { %1865 = vmatprep.subr.mxu0 %v2589_v12 }
  0x70   :  { %1866 = vmatpush3.msra.mxu0 %v906_v19 }
  0x71   :  { %1867 = vmatprep.subr.mxu0 %v2589_v12 }
  0x72   :  { %1868 = vmatpush3.msra.mxu0 %v905_v20 }
  0x73   :  { %1800 = vmatmul.mubr.msk.bf16.gmra.mxu0 %vm560_vm0, %v1990_v9  ;;  %1869 = vmatprep.subr.mxu0 %v2589_v12 }
  0x74   :  { %1803 = vmatprep.mubr.msk.bf16.mxu0 %vm560_vm0, %v1991_v10  ;;  %1870 = vmatpush3.msra.mxu0 %v904_v21 }
  0x75   :  { %1871 = vmatprep.subr.mxu0 %v2589_v12 }
  0x76   :  { %1872 = vmatpush3.msra.mxu0 %v903_v22 }
  0x77   :  { %1873 = vmatprep.subr.mxu0 %v2589_v12 }
  0x78   :  { %1874 = vmatpush3.msra.mxu0 %v902_v23 }
  0x79   :  { %1875 = vmatprep.subr.mxu0 %v2589_v12 }
  0x7a   :  { %1876 = vmatpush3.msra.mxu0 %v901_v24 }
  0x7b   :  { %1804 = vmatmul.mubr.msk.bf16.gmra.mxu0 %vm560_vm0, %v1992_v11  ;;  %1877 = vmatprep.subr.mxu0 %v2589_v12 }
  0x7c   :  { %1878 = vmatpush3.msra.mxu0 %v900_v25  ;;  %1885 = vmatprep.mubr.msk.f32.mxu0 %vm1996_vm1, %v2589_v12 }
  0x7d   :  { %1879 = vmatprep.subr.mxu0 %v2589_v12 }
  0x7e   :  { %1880 = vmatpush3.msra.mxu0 %v899_v26 }
  0x7f   :  { %1881 = vmatprep.subr.mxu0 %v2589_v12 }
  0x80   :  { %1882 = vmatpush3.msra.mxu0 %v898_v27 }
  0x81   :  { %1883 = vmatprep.subr.mxu0 %v2589_v12 }
  0x82   :  { %1884 = vmatpush3.msra.mxu0 %v897_v28 }
  0xe3   :  { %v1615_v29 = vpop.f32.mrf.mxu0 }
  0xe4   :  { %v1679_v30 = vpop.f32.mrf.mxu1 }
  0xe5   :  { %v1616_v31 = vpop.f32.mrf.mxu0 }
  0xe6   :  { %v2353_v32 = vadd.f32 %v1616_v31, %v1615_v29  ;;  %v1680_v33 = vpop.f32.mrf.mxu1 }
  0xe7   :  { %v1618_v34 = vpop.f32.mrf.mxu0  ;;  %v1681_v25 = vadd.f32 %v1680_v33, %v1679_v30 }
  0xe8   :  { %v1682_v35 = vpop.f32.mrf.mxu1 }
  0xe9   :  { %v1619_v36 = vpop.f32.mrf.mxu0 }
  0xea   :  { %v1683_v37 = vpop.f32.mrf.mxu1  ;;  %v1620_v26 = vadd.f32 %v1619_v36, %v1618_v34 }
  0xeb   :  { %v1621_v38 = vpop.f32.mrf.mxu0  ;;  %v1684_v27 = vadd.f32 %v1683_v37, %v1682_v35 }
  0xec   :  { %v1685_v39 = vpop.f32.mrf.mxu1 }
  0xed   :  { %v1622_v40 = vpop.f32.mrf.mxu0 }
  0xee   :  { %v1686_v41 = vpop.f32.mrf.mxu1  ;;  %v1623_v31 = vadd.f32 %v1622_v40, %v1621_v38 }
  0xef   :  { %v1624_v42 = vpop.f32.mrf.mxu0  ;;  %v1687_v12 = vadd.f32 %v1686_v41, %v1685_v39 }
  0xf0   :  { %v1688_v43 = vpop.f32.mrf.mxu1 }
  0xf1   :  { %v1625_v44 = vpop.f32.mrf.mxu0 }
  0xf2   :  { %v1689_v45 = vpop.f32.mrf.mxu1 }
  0xf3   :  { %v1627_v46 = vpop.f32.mrf.mxu0 }
  0xf4   :  { %v1691_v47 = vpop.f32.mrf.mxu1 }
  0xf5   :  { %v1628_v48 = vpop.f32.mrf.mxu0 }
  0xf6   :  { %v1692_v49 = vpop.f32.mrf.mxu1 }
  0xf7   :  { %v1630_v50 = vpop.f32.mrf.mxu0 }
  0xf8   :  { %v1694_v51 = vpop.f32.mrf.mxu1 }
  0xf9   :  { %v1631_v52 = vpop.f32.mrf.mxu0 }
  0xfa   :  { %v1695_v53 = vpop.f32.mrf.mxu1  ;;  %v1632_v33 = vadd.f32 %v1631_v52, %v1630_v50 }
  0xfb   :  { %v1633_v54 = vpop.f32.mrf.mxu0  ;;  %v1696_v34 = vadd.f32 %v1695_v53, %v1694_v51 }
  0xfc   :  { %v1697_v55 = vpop.f32.mrf.mxu1 }
  0xfd   :  { %v1634_v56 = vpop.f32.mrf.mxu0 }
  0xfe   :  { %v1698_v57 = vpop.f32.mrf.mxu1  ;;  %v1635_v41 = vadd.f32 %v1634_v56, %v1633_v54 }
  0xff   :  { %v2355_v58 = vpop.f32.mrf.mxu0 }
 0x100   :  { %v2357_v59 = vpop.f32.mrf.mxu1 }
 0x101   :  { %v1637_v60 = vpop.f32.mrf.mxu0 }
 0x102   :  { %v1701_v61 = vpop.f32.mrf.mxu1 }
 0x103   :  { %v2359_v62 = vpop.f32.mrf.mxu0 }
 0x104   :  { %v2361_v63 = vpop.f32.mrf.mxu1 }
 0x105   :  { %v1640_v0 = vpop.f32.mrf.mxu0 }
 0x106   :  { %v1704_v1 = vpop.f32.mrf.mxu1  ;;  %v1641_v50 = vadd.f32 %v1640_v0, %v2359_v62 }
 0x107   :  { %v2363_v2 = vpop.f32.mrf.mxu0  ;;  %v1705_v51 = vadd.f32 %v1704_v1, %v2361_v63 }
 0x108   :  { %v2365_v3 = vpop.f32.mrf.mxu1 }
 0x109   :  { %v2367_v4 = vpop.f32.mrf.mxu0  ;;  %v749_v0 = vadd.f32 %v1705_v51, %v1641_v50 }
 0x10a   :  { %v2371_v6 = vpop.f32.mrf.mxu1 }
 0x10b   :  { %v2369_v5 = vpop.f32.mrf.mxu0 }
 0x10c   :  { %v2377_v9 = vpop.f32.mrf.mxu1 }
 0x10d   :  { %v2373_v7 = vpop.f32.mrf.mxu0 }
 0x10e   :  { %v2383_v13 = vpop.f32.mrf.mxu1 }
 0x10f   :  { %v2375_v8 = vpop.f32.mrf.mxu0 }
 0x110   :  { %v2389_v16 = vpop.f32.mrf.mxu1 }
 0x111   :  { %v2379_v10 = vpop.f32.mrf.mxu0  ;;  %2594 = vst [vmem:[#allocation5_spill] sm:$0xff] %v2389_v16  ;;  %v725_v16 = vadd.f32 %v1687_v12, %v1623_v31 }
 0x112   :  { %v2395_v19 = vpop.f32.mrf.mxu1 }
 0x113   :  { %v2381_v11 = vpop.f32.mrf.mxu0  ;;  %2597 = vst [vmem:[#allocation8_spill] sm:$0xff] %v2395_v19 }
 0x114   :  { %2591 = vst [vmem:[#allocation2_spill] sm:$0xff] %v2381_v11  ;;  %v2401_v22 = vpop.f32.mrf.mxu1  ;;  %v1629_v11 = vadd.f32 %v1628_v48, %v1627_v46  ;;  %v1638_v46 = vadd.f32 %v1637_v60, %v2355_v58  ;;  %v1708_v58 = vadd.f32 %v2371_v6, %v2365_v3  ;;  %v1650_v6 = vadd.f32 %v2379_v10, %v2375_v8 }
 0x115   :  { %v2385_v14 = vpop.f32.mrf.mxu0  ;;  %2600 = vst [vmem:[#allocation11_spill] sm:$0xff] %v2401_v22 }
 0x116   :  { %2592 = vst [vmem:[#allocation3_spill] sm:$0xff] %v2385_v14  ;;  %v1716_v28 = vpop.f32.mrf.mxu1  ;;  %v717_v14 = vadd.f32 %v1681_v25, %v2353_v32 }
 0x117   :  { %v2387_v15 = vpop.f32.mrf.mxu0 }
 0x118   :  { %2593 = vst [vmem:[#allocation4_spill] sm:$0xff] %v2387_v15  ;;  %v1690_v15 = vadd.f32 %v1689_v45, %v1688_v43  ;;  %v1718_v19 = vpop.f32.mrf.mxu1  ;;  %v736_v45 = vadd.f32 %v1696_v34, %v1632_v33 }
 0x119   :  { %v2391_v17 = vpop.f32.mrf.mxu0 }
 0x11a   :  { %2595 = vst [vmem:[#allocation6_spill] sm:$0xff] %v2391_v17  ;;  %v1719_v32 = vpop.f32.mrf.mxu1 }
 0x11b   :  { %v2393_v18 = vpop.f32.mrf.mxu0  ;;  %v1720_v33 = vadd.f32 %v1719_v32, %v1718_v19 }
 0x11c   :  { %2596 = vst [vmem:[#allocation7_spill] sm:$0xff] %v2393_v18  ;;  %v1626_v18 = vadd.f32 %v1625_v44, %v1624_v42  ;;  %v1699_v42 = vadd.f32 %v1698_v57, %v1697_v55  ;;  %v1721_v52 = vpop.f32.mrf.mxu1  ;;  %v1644_v57 = vadd.f32 %v2367_v4, %v2363_v2 }
 0x11d   :  { %v2397_v20 = vpop.f32.mrf.mxu0 }
 0x11e   :  { %2598 = vst [vmem:[#allocation9_spill] sm:$0xff] %v2397_v20  ;;  %v720_v20 = vadd.f32 %v1684_v27, %v1620_v26  ;;  %v728_v37 = vadd.f32 %v1690_v15, %v1626_v18  ;;  %v741_v54 = vadd.f32 %v1699_v42, %v1635_v41  ;;  %v1722_v63 = vpop.f32.mrf.mxu1  ;;  %v752_v4 = vadd.f32 %v1708_v58, %v1644_v57 }
 0x11f   :  { %v2399_v21 = vpop.f32.mrf.mxu0  ;;  %v2607_v8 = vld [vmem:[#allocation4_spill] sm:$0xff] }
 0x120   :  { %2599 = vst [vmem:[#allocation10_spill] sm:$0xff] %v2399_v21  ;;  %v1693_v21 = vadd.f32 %v1692_v49, %v1691_v47  ;;  %v1702_v47 = vadd.f32 %v1701_v61, %v2357_v59 }
 0x121   :  { %v2403_v23 = vpop.f32.mrf.mxu0  ;;  %v2608_v10 = vld [vmem:[#allocation6_spill] sm:$0xff] }
 0x122   :  { %2601 = vst [vmem:[#allocation12_spill] sm:$0xff] %v2403_v23  ;;  %v733_v39 = vadd.f32 %v1693_v21, %v1629_v11  ;;  %v744_v61 = vadd.f32 %v1702_v47, %v1638_v46  ;;  %v1647_v11 = vadd.f32 %v2373_v7, %v2369_v5  ;;  %v2604_v5 = vld [vmem:[#allocation2_spill] sm:$0xff]  ;;  %v2605_v7 = vld [vmem:[#allocation3_spill] sm:$0xff]  ;;  %v1656_v31 = vadd.f32 %v2608_v10, %v2607_v8 }
 0x123   :  { %v1793_v24 = vpop.f32.mrf.mxu0  ;;  %v2609_v41 = vld [vmem:[#allocation7_spill] sm:$0xff] }
 0x124   :  { %v2410_v36 = vadd.f32 %v1793_v24, %v725_v16  ;;  %v2602_v16 = vld [vmem:[#allocation5_spill] sm:$0xff]  ;;  %v1724_v24 = vpop.f32.mrf.mxu1 }
 0x125   :  { %v813_v29 = vpop.f32.mrf.mxu0  ;;  %v2610_v42 = vld [vmem:[#allocation9_spill] sm:$0xff] }
 0x126   :  { %v2406_v23 = vadd.f32 %v813_v29, %v717_v14  ;;  %v1711_v14 = vadd.f32 %v2383_v13, %v2377_v9  ;;  %v2606_v9 = vld [vmem:[#allocation11_spill] sm:$0xff] }
 0x127   :  { %v1794_v17 = vpop.f32.mrf.mxu0  ;;  %v1717_v13 = vadd.f32 %v1716_v28, %v2606_v9  ;;  %v2611_v19 = vld [vmem:[#allocation10_spill] sm:$0xff] }
 0x128   :  { %v2414_v43 = vadd.f32 %v1794_v17, %v728_v37  ;;  %v2603_v17 = vld [vmem:[#allocation8_spill] sm:$0xff]  ;;  %v757_v26 = vadd.f32 %v1711_v14, %v1647_v11 }
 0x129   :  { %v816_v22 = vpop.f32.mrf.mxu0  ;;  %v1714_v18 = vadd.f32 %v2603_v17, %v2602_v16  ;;  %v2612_v32 = vld [vmem:[#allocation12_spill] sm:$0xff]  ;;  %v988_v16 = vld [vmem:[%s2585_s3 + $0x18] sm:$0xff] }
 0x12a   :  { %v2408_v30 = vadd.f32 %v816_v22, %v720_v20  ;;  %v1653_v22 = vadd.f32 %v2605_v7, %v2604_v5  ;;  %v1662_v50 = vadd.f32 %v2612_v32, %v2611_v19  ;;  %v987_v17 = vld [vmem:[%s2585_s3 + $0x10] sm:$0xff]  ;;  %v985_v5 = vld [vmem:[%s2585_s3] sm:$0xff] }
 0x12b   :  { %v1797_v35 = vpop.f32.mrf.mxu0  ;;  %v760_v37 = vadd.f32 %v1714_v18, %v1650_v6  ;;  %v2613_v18 = vmov 0.0  }
 0x12c   :  { %v876_v38 = vadd.f32 %v2408_v30, %v2406_v23  ;;  %v2431_v60 = vadd.f32 %v1797_v35, %v741_v54 }
 0x12d   :  { %v829_v40 = vpop.f32.mrf.mxu0 }
 0x12e   :  { %v877_v12 = vadd.f32 %v876_v38, %v2410_v36  ;;  %v2419_v48 = vadd.f32 %v829_v40, %v733_v39  ;;  %v1725_v39 = vpop.f32.mrf.mxu1  ;;  %v765_v40 = vadd.f32 %v1717_v13, %v1653_v22  ;;  %v1063_v13 = vlaneseq }
 0x12f   :  { %v1798_v44 = vpop.f32.mrf.mxu0  ;;  %v1726_v51 = vadd.f32 %v1725_v39, %v1724_v24 }
 0x130   :  { %v878_v49 = vadd.f32 %v877_v12, %v2414_v43  ;;  %v2438_v15 = vadd.f32 %v1798_v44, %v744_v61  ;;  %v1659_v12 = vadd.f32 %v2610_v42, %v2609_v41  ;;  %v1723_v44 = vadd.f32 %v1722_v63, %v1721_v52 }
 0x131   :  { %v832_v53 = vpop.f32.mrf.mxu0  ;;  %v776_v61 = vadd.f32 %v1726_v51, %v1662_v50  ;;  %v2503_v24 = vshrl.u32 %v1063_v13, 7 }
 0x132   :  { %v879_v55 = vadd.f32 %v878_v49, %v2419_v48  ;;  %v2425_v56 = vadd.f32 %v832_v53, %v736_v45  ;;  %v768_v49 = vadd.f32 %v1720_v33, %v1656_v31  ;;  %v773_v57 = vadd.f32 %v1723_v44, %v1659_v12 }
 0x133   :  { %v1801_v59 = vpop.f32.mrf.mxu0 }
 0x134   :  { %v880_v62 = vadd.f32 %v879_v55, %v2425_v56  ;;  %v2456_v35 = vadd.f32 %v1801_v59, %v757_v26 }
 0x135   :  { %v845_v1 = vpop.f32.mrf.mxu0 }
 0x136   :  { %v881_v2 = vadd.f32 %v880_v62, %v2431_v60  ;;  %v2445_v20 = vadd.f32 %v845_v1, %v749_v0 }
 0x137   :  { %v1802_v3 = vpop.f32.mrf.mxu0 }
 0x138   :  { %v882_v21 = vadd.f32 %v881_v2, %v2438_v15  ;;  %v2461_v45 = vadd.f32 %v1802_v3, %v760_v37 }
 0x139   :  { %v848_v25 = vpop.f32.mrf.mxu0 }
 0x13a   :  { %v883_v27 = vadd.f32 %v882_v21, %v2445_v20  ;;  %v2452_v29 = vadd.f32 %v848_v25, %v752_v4  ;;  %v986_v21 = vld [vmem:[%s2585_s3 + $0x8] sm:$0xff]  ;;  %v1065_v25 = vsub.s32 0, %v2503_v24 }
 0x13b   :  { %v1805_v34 = vpop.f32.mrf.mxu0 }
 0x13c   :  { %v884_v38 = vadd.f32 %v883_v27, %v2452_v29  ;;  %v2472_v52 = vadd.f32 %v1805_v34, %v773_v57 }
 0x13d   :  { %v861_v28 = vpop.f32.mrf.mxu0 }
 0x13e   :  { %v885_v46 = vadd.f32 %v884_v38, %v2456_v35  ;;  %v2466_v53 = vadd.f32 %v861_v28, %v765_v40 }
 0x13f   :  { %v1806_v47 = vpop.f32.mrf.mxu0 }
 0x140   :  { %v886_v54 = vadd.f32 %v885_v46, %v2461_v45  ;;  %v2475_v63 = vadd.f32 %v1806_v47, %v776_v61 }
 0x141   :  { %v864_v55 = vpop.f32.mrf.mxu0 }
 0x142   :  { %v887_v58 = vadd.f32 %v886_v54, %v2466_v53  ;;  %v2470_v59 = vadd.f32 %v864_v55, %v768_v49 }
 0x144   :  { %v888_v62 = vadd.f32 %v887_v58, %v2470_v59 }
 0x146   :  { %v889_v0 = vadd.f32 %v888_v62, %v2472_v52 }
 0x148   :  { %v890_v1 = vadd.f32 %v889_v0, %v2475_v63 }
 0x14a   :  { %v891_v11 = vrot.slane %v890_v1, 4 }
 0x14c   :  { %v892_v14 = vadd.f32 %v891_v11, %v890_v1 }
 0x14e   :  { %v893_v2 = vrot.slane %v892_v14, 2 }
 0x150   :  { %v894_v3 = vadd.f32 %v893_v2, %v892_v14 }
 0x152   :  { %v895_v4 = vrot.slane %v894_v3, 1 }
 0x154   :  { %v896_v6 = vadd.f32 %v895_v4, %v894_v3 }
 0x156   :  { %1840 = vmatmul.mubr.f32.vlgmr.msra.gmra.mxu1 %v896_v6 }
 0x157   :  { %1843 = vmatpush3.msra.mxu1 %v988_v16  ;;  %1850 = vmatprep.mubr.msk.f32.mxu1 %vm1996_vm1, %v2613_v18 }
 0x158   :  { %1844 = vmatprep.subr.mxu1 %v2613_v18 }
 0x159   :  { %1845 = vmatpush3.msra.mxu1 %v987_v17 }
 0x15a   :  { %1846 = vmatprep.subr.mxu1 %v2613_v18 }
 0x15b   :  { %1847 = vmatpush3.msra.mxu1 %v986_v21 }
 0x15c   :  { %1848 = vmatprep.subr.mxu1 %v2613_v18 }
 0x15d   :  { %1849 = vmatpush3.msra.mxu1 %v985_v5 }
 0x15e   :  { %1888 = vmatprep.subr.mxu1 %v2613_v18 }
 0x216   :  { %v979_v7 = vpop.f32.mrf.mxu1 }
 0x217   :  { %v984_v22 = vmul.f32 0.001953125, %v979_v7 }
 0x218   :  { %v1841_v9 = vpop.f32.mrf.mxu1 }
 0x219   :  { %1851 = vmatmul.mubr.msk.f32.vlgmr.msra.gmra.mxu1 %vm989_vm2, %v984_v22 }
 0x21a   :  { %1889 = vmatpush3.msra.mxu1 %v988_v16  ;;  %1896 = vmatprep.mubr.msk.f32.mxu1 %vm1996_vm1, %v2613_v18 }
 0x21b   :  { %1890 = vmatprep.subr.mxu1 %v2613_v18 }
 0x21c   :  { %1891 = vmatpush3.msra.mxu1 %v987_v17 }
 0x21d   :  { %1892 = vmatprep.subr.mxu1 %v2613_v18 }
 0x21e   :  { %1893 = vmatpush3.msra.mxu1 %v986_v21 }
 0x21f   :  { %1894 = vmatprep.subr.mxu1 %v2613_v18 }
 0x220   :  { %1895 = vmatpush3.msra.mxu1 %v985_v5 }
 0x2d9   :  { %v1059_v26 = vpop.f32.mrf.mxu1 }
 0x2da   :  { %v1066_v27 = vrot.slane %v1059_v26, %v1065_v25 }
 0x2db   :  { %v1852_v8 = vpop.f32.mrf.mxu1 }
 0x2dc   :  { %v2509_v10 = vsub.f32 %v2406_v23, %v1066_v27  ;;  %v2512_v31 = vsub.f32 %v2408_v30, %v1066_v27  ;;  %v2515_v33 = vsub.f32 %v2410_v36, %v1066_v27  ;;  %v2522_v38 = vsub.f32 %v2414_v43, %v1066_v27 }
 0x2dd   :  { %v2525_v39 = vsub.f32 %v2419_v48, %v1066_v27  ;;  %v1072_v40 = vsub.f32 %v2425_v56, %v1066_v27  ;;  %v1073_v41 = vsub.f32 %v2431_v60, %v1066_v27  ;;  %v1074_v12 = vsub.f32 %v2438_v15, %v1066_v27 }
 0x2de   :  { %v1083_v34 = vmul.f32 %v2509_v10, %v2509_v10  ;;  %v1084_v37 = vmul.f32 %v2512_v31, %v2512_v31  ;;  %v1085_v23 = vmul.f32 %v2515_v33, %v2515_v33  ;;  %v1086_v36 = vmul.f32 %v2522_v38, %v2522_v38 }
 0x2df   :  { %v1087_v42 = vmul.f32 %v2525_v39, %v2525_v39  ;;  %v1088_v48 = vmul.f32 %v1072_v40, %v1072_v40  ;;  %v1075_v46 = vsub.f32 %v2445_v20, %v1066_v27  ;;  %v1089_v47 = vmul.f32 %v1073_v41, %v1073_v41 }
 0x2e0   :  { %v1099_v30 = vadd.f32 %v1084_v37, %v1083_v34  ;;  %v1076_v56 = vsub.f32 %v2452_v29, %v1066_v27  ;;  %v1090_v19 = vmul.f32 %v1074_v12, %v1074_v12  ;;  %v1077_v50 = vsub.f32 %v2456_v35, %v1066_v27 }
 0x2e1   :  { %v1091_v51 = vmul.f32 %v1075_v46, %v1075_v46  ;;  %v1078_v54 = vsub.f32 %v2461_v45, %v1066_v27  ;;  %v1079_v15 = vsub.f32 %v2466_v53, %v1066_v27  ;;  %v1080_v20 = vsub.f32 %v2470_v59, %v1066_v27 }
 0x2e2   :  { %v1100_v28 = vadd.f32 %v1099_v30, %v1085_v23  ;;  %v1092_v55 = vmul.f32 %v1076_v56, %v1076_v56  ;;  %v1093_v58 = vmul.f32 %v1077_v50, %v1077_v50  ;;  %v1081_v29 = vsub.f32 %v2472_v52, %v1066_v27 }
 0x2e3   :  { %v1094_v62 = vmul.f32 %v1078_v54, %v1078_v54  ;;  %v1095_v1 = vmul.f32 %v1079_v15, %v1079_v15  ;;  %v1082_v35 = vsub.f32 %v2475_v63, %v1066_v27  ;;  %v1096_v14 = vmul.f32 %v1080_v20, %v1080_v20 }
 0x2e4   :  { %v1101_v43 = vadd.f32 %v1100_v28, %v1086_v36  ;;  %v1097_v3 = vmul.f32 %v1081_v29, %v1081_v29 }
 0x2e5   :  { %v1098_v4 = vmul.f32 %v1082_v35, %v1082_v35 }
 0x2e6   :  { %v1102_v44 = vadd.f32 %v1101_v43, %v1087_v42  ;;  %v1518_v43 = vld [vmem:[%s2586_s4] ss:$0 sm:$0xff] }
 0x2e8   :  { %v1103_v49 = vadd.f32 %v1102_v44, %v1088_v48 }
 0x2ea   :  { %v1104_v32 = vadd.f32 %v1103_v49, %v1089_v47 }
 0x2ec   :  { %v1105_v60 = vadd.f32 %v1104_v32, %v1090_v19 }
 0x2ee   :  { %v1106_v57 = vadd.f32 %v1105_v60, %v1091_v51  ;;  %v1519_v51 = vld [vmem:[%s2587_s5] ss:$0 sm:$0xff] }
 0x2f0   :  { %v1107_v61 = vadd.f32 %v1106_v57, %v1092_v55 }
 0x2f2   :  { %v1108_v0 = vadd.f32 %v1107_v61, %v1093_v58 }
 0x2f4   :  { %v1109_v11 = vadd.f32 %v1108_v0, %v1094_v62 }
 0x2f6   :  { %v1110_v2 = vadd.f32 %v1109_v11, %v1095_v1 }
 0x2f8   :  { %v1111_v45 = vadd.f32 %v1110_v2, %v1096_v14 }
 0x2fa   :  { %v1112_v6 = vadd.f32 %v1111_v45, %v1097_v3 }
 0x2fc   :  { %v1113_v16 = vadd.f32 %v1112_v6, %v1098_v4 }
 0x2fe   :  { %v1114_v53 = vrot.slane %v1113_v16, 4 }
 0x300   :  { %v1115_v17 = vadd.f32 %v1114_v53, %v1113_v16 }
 0x302   :  { %v1116_v18 = vrot.slane %v1115_v17, 2 }
 0x304   :  { %v1117_v21 = vadd.f32 %v1116_v18, %v1115_v17 }
 0x306   :  { %v1118_v59 = vrot.slane %v1117_v21, 1 }
 0x308   :  { %v1119_v5 = vadd.f32 %v1118_v59, %v1117_v21 }
 0x30a   :  { %1886 = vmatmul.mubr.f32.vlgmr.msra.gmra.mxu0 %v1119_v5 }
 0x3ca   :  { %v1186_v7 = vpop.f32.mrf.mxu0 }
 0x3cb   :  { %v1190_v52 = vmul.f32 0.001953125, %v1186_v7 }
 0x3cc   :  { %v1887_v22 = vpop.f32.mrf.mxu0 }
 0x3cd   :  { %v1191_v9 = vadd.f32 1e-05, %v1190_v52 }
 0x3cf   :  { %1993 = vrsqrt.f32 %v1191_v9 }
 0x3dc   :  { %v1994_v63 = vpop.eup %1993 }
 0x3dd   :  { %1897 = vmatmul.mubr.msk.f32.vlgmr.msra.gmra.mxu1 %vm989_vm2, %v1994_v63 }
 0x49d   :  { %v1262_v13 = vpop.f32.mrf.mxu1 }
 0x49e   :  { %v1269_v26 = vrot.slane %v1262_v13, %v1065_v25 }
 0x49f   :  { %v1898_v27 = vpop.f32.mrf.mxu1 }
 0x4a0   :  { %v1270_v8 = vmul.f32 %v1269_v26, %v2509_v10  ;;  %v1271_v34 = vmul.f32 %v1269_v26, %v2512_v31  ;;  %v1272_v37 = vmul.f32 %v1269_v26, %v2515_v33  ;;  %v1273_v23 = vmul.f32 %v1269_v26, %v2522_v38 }
 0x4a1   :  { %v1274_v30 = vmul.f32 %v1269_v26, %v2525_v39  ;;  %v1275_v36 = vmul.f32 %v1269_v26, %v1072_v40  ;;  %v1276_v28 = vmul.f32 %v1269_v26, %v1073_v41  ;;  %v1277_v42 = vmul.f32 %v1269_v26, %v1074_v12 }
 0x4a2   :  { %v1278_v24 = vmul.f32 %v1269_v26, %v1075_v46  ;;  %v1279_v25 = vmul.f32 %v1269_v26, %v1076_v56  ;;  %v1280_v48 = vmul.f32 %v1269_v26, %v1077_v50  ;;  %v1281_v44 = vmul.f32 %v1269_v26, %v1078_v54 }
 0x4a3   :  { %v1282_v10 = vmul.f32 %v1269_v26, %v1079_v15  ;;  %v1283_v47 = vmul.f32 %v1269_v26, %v1080_v20  ;;  %v1284_v31 = vmul.f32 %v1269_v26, %v1081_v29  ;;  %v1285_v49 = vmul.f32 %v1269_v26, %v1082_v35 }
 0x4a4   :  { %v1293_v33 = vmul.f32 %v1518_v43, %v1270_v8  ;;  %v1294_v19 = vmul.f32 %v1518_v43, %v1271_v34  ;;  %v1295_v38 = vmul.f32 %v1518_v43, %v1272_v37  ;;  %v1296_v32 = vmul.f32 %v1518_v43, %v1273_v23 }
 0x4a5   :  { %v1297_v39 = vmul.f32 %v1518_v43, %v1274_v30  ;;  %v1298_v40 = vmul.f32 %v1518_v43, %v1275_v36  ;;  %v1299_v41 = vmul.f32 %v1518_v43, %v1276_v28  ;;  %v1300_v12 = vmul.f32 %v1518_v43, %v1277_v42 }
 0x4a6   :  { %v1301_v46 = vmul.f32 %v1518_v43, %v1278_v24  ;;  %v1302_v56 = vmul.f32 %v1518_v43, %v1279_v25  ;;  %v1303_v50 = vmul.f32 %v1518_v43, %v1280_v48  ;;  %v1304_v60 = vmul.f32 %v1518_v43, %v1281_v44 }
 0x4a7   :  { %v1305_v54 = vmul.f32 %v1518_v43, %v1282_v10  ;;  %v1306_v55 = vmul.f32 %v1518_v43, %v1283_v47  ;;  %v1307_v57 = vmul.f32 %v1518_v43, %v1284_v31  ;;  %v1308_v15 = vmul.f32 %v1518_v43, %v1285_v49 }
 0x4a8   :  { %v1316_v58 = vadd.f32 %v1519_v51, %v1293_v33  ;;  %v1317_v61 = vadd.f32 %v1519_v51, %v1294_v19  ;;  %v1318_v20 = vadd.f32 %v1519_v51, %v1295_v38  ;;  %v1319_v62 = vadd.f32 %v1519_v51, %v1296_v32 }
 0x4a9   :  { %v1320_v0 = vadd.f32 %v1519_v51, %v1297_v39  ;;  %v1321_v29 = vadd.f32 %v1519_v51, %v1298_v40  ;;  %v1322_v1 = vadd.f32 %v1519_v51, %v1299_v41  ;;  %v1323_v11 = vadd.f32 %v1519_v51, %v1300_v12 }
 0x4aa   :  { %v1324_v35 = vadd.f32 %v1519_v51, %v1301_v46  ;;  %v1325_v14 = vadd.f32 %v1519_v51, %v1302_v56  ;;  %v1326_v2 = vadd.f32 %v1519_v51, %v1303_v50  ;;  %v1327_v3 = vadd.f32 %v1519_v51, %v1304_v60 }
 0x4ab   :  { %v1328_v45 = vadd.f32 %v1519_v51, %v1305_v54  ;;  %v1329_v4 = vadd.f32 %v1519_v51, %v1306_v55  ;;  %v1330_v6 = vadd.f32 %v1519_v51, %v1307_v57  ;;  %v1331_v16 = vadd.f32 %v1519_v51, %v1308_v15 }
 0x4ac   :  { %v1332_v53 = vmax.f32 %v1316_v58, 0.0  ;;  %v1333_v17 = vmax.f32 %v1317_v61, 0.0  ;;  %v1334_v18 = vmax.f32 %v1318_v20, 0.0  ;;  %v1335_v21 = vmax.f32 %v1319_v62, 0.0 }
 0x4ad   :  { %v1336_v59 = vmax.f32 %v1320_v0, 0.0  ;;  %v1337_v5 = vmax.f32 %v1321_v29, 0.0  ;;  %v1338_v7 = vmax.f32 %v1322_v1, 0.0  ;;  %v1339_v52 = vmax.f32 %v1323_v11, 0.0 }
 0x4ae   :  { %v1340_v22 = vmax.f32 %v1324_v35, 0.0  ;;  %v1341_v9 = vmax.f32 %v1325_v14, 0.0  ;;  %v1342_v63 = vmax.f32 %v1326_v2, 0.0  ;;  %v1343_v13 = vmax.f32 %v1327_v3, 0.0 }
 0x4af   :  { %v1344_v26 = vmax.f32 %v1328_v45, 0.0  ;;  %v1345_v27 = vmax.f32 %v1329_v4, 0.0  ;;  %v1346_v8 = vmax.f32 %v1330_v6, 0.0  ;;  %v1347_v34 = vmax.f32 %v1331_v16, 0.0 }
 0x4b0   :  { %v1555_v37 = vpack.c.bf16 %v1333_v17, %v1332_v53  ;;  %v1560_v23 = vpack.c.bf16 %v1335_v21, %v1334_v18  ;;  %v1565_v30 = vpack.c.bf16 %v1337_v5, %v1336_v59  ;;  %v1570_v36 = vpack.c.bf16 %v1339_v52, %v1338_v7 }
 0x4b1   :  { %v1575_v28 = vpack.c.bf16 %v1341_v9, %v1340_v22  ;;  %v1580_v42 = vpack.c.bf16 %v1343_v13, %v1342_v63  ;;  %v1585_v43 = vpack.c.bf16 %v1345_v27, %v1344_v26  ;;  %v1590_v24 = vpack.c.bf16 %v1347_v34, %v1346_v8 }
 0x4b2   :  { %1556 = vst [vmem:[%s2588_s6] sm:$0xff] %v1555_v37   ;;  %1592 = vst [vmem:[%s2588_s6 + $0x8] sm:$0xff] %v1560_v23  }
 0x4b3   :  { %1593 = vst [vmem:[%s2588_s6 + $0x10] sm:$0xff] %v1565_v30   ;;  %1594 = vst [vmem:[%s2588_s6 + $0x18] sm:$0xff] %v1570_v36  }
 0x4b4   :  { %1595 = vst [vmem:[%s2588_s6 + $0x20] sm:$0xff] %v1575_v28   ;;  %1596 = vst [vmem:[%s2588_s6 + $0x28] sm:$0xff] %v1580_v42  }
 0x4b5   :  { %1597 = vst [vmem:[%s2588_s6 + $0x30] sm:$0xff] %v1585_v43   ;;  %1598 = vst [vmem:[%s2588_s6 + $0x38] sm:$0xff] %v1590_v24  }

// kernel: forward.15
= control target key start
LH: loop header
LB: loop body
LE: loop exit
PB: predicated region body
PF: predicated region fallthrough
CT: control target
= control target key end

     0   :  { %s665_s9 = smov 0   ;;  %s724_s0 = inlined_call_operand.vmem [shape: bf16[4,3,128], index: 0, kind: input, shape index: {}]   ;;  %s725_s1 = inlined_call_operand.vmem [shape: bf16[4,128,512], index: 1, kind: input, shape index: {}]   ;;  %s726_s2 = inlined_call_operand.vmem [shape: f32[4,3,512], index: 2, kind: output, shape index: {}]  }
   0x1 LB: > { %s530_s10 = sadd.s32 4294967295, %s647_s9   ;;  %p534_p0 = scmp.ge.s32.totalorder %s647_s9, 1  ;;  %s647_s9 = sphi %s665_s9, %s12_s9  }
   0x2   : > { %p121_p1 = scmp.lt.s32.totalorder %s647_s9, 5 }
   0x4   : > { %p122_p2 = pnand %p534_p0, %p121_p1 }
   0x5   : > { %p147_p3 = scmp.lt.s32.totalorder (!%p122_p2), %s530_s10, 3 }
   0x6   : > { %125 = sbr.rel (%p122_p2) target bundleno = 266 (0x10a), region = 28 }
   0xb   : > { %v649_v0 = vmov 0   ;;  %s728_s10 = smov (!%p147_p3, %s530_s10), 3 }
   0xc   : > { %387 = vmatprep.mubr.bf16.mxu0 %v649_v0  ;;  %428 = vmatprep.mubr.bf16.mxu1 %v649_v0  ;;  %s574_s11 = sshll.u32 %s728_s10, 8  ;;  %s535_s15 = sshll.u32 %s728_s10, 1 }
   0xd   : > { %s679_s14 = scalar_lea.vmem %s725_s1, %s574_s11  ;;  %s150_s18 = scalar_lea.vmem %s724_s0, %s535_s15 }
   0xe   : > { %v585_v1 = vld [vmem:[%s679_s14 + $0xe4] ss:$16 sps:$4 sm:$0xff]   ;;  %v587_v2 = vld [vmem:[%s679_s14 + $0xec] ss:$16 sps:$4 sm:$0xff]   ;;  %v589_v3 = vld [vmem:[%s679_s14 + $0xe0] ss:$16 sps:$4 sm:$0xff]  }
   0xf   : > { %355 = vmatprep.subr.bf16.mxu0 %v585_v1  ;;  %v590_v4 = vld [vmem:[%s679_s14 + $0xe8] ss:$16 sps:$4 sm:$0xff]   ;;  %396 = vmatprep.subr.bf16.mxu1 %v587_v2  ;;  %v591_v5 = vld [vmem:[%s679_s14 + $0xc4] ss:$16 sps:$4 sm:$0xff]   ;;  %v593_v6 = vld [vmem:[%s679_s14 + $0xcc] ss:$16 sps:$4 sm:$0xff]  }
  0x10   : > { %356 = vmatpush1.bf16.msra.mxu0 %v589_v3  ;;  %397 = vmatpush1.bf16.msra.mxu1 %v590_v4  ;;  %v595_v7 = vld [vmem:[%s679_s14 + $0xc0] ss:$16 sps:$4 sm:$0xff]   ;;  %v596_v8 = vld [vmem:[%s679_s14 + $0xc8] ss:$16 sps:$4 sm:$0xff]   ;;  %v597_v9 = vld [vmem:[%s679_s14 + $0xa4] ss:$16 sps:$4 sm:$0xff]  }
  0x11   : > { %357 = vmatprep.subr.bf16.mxu0 %v591_v5  ;;  %398 = vmatprep.subr.bf16.mxu1 %v593_v6  ;;  %v599_v10 = vld [vmem:[%s679_s14 + $0xac] ss:$16 sps:$4 sm:$0xff]   ;;  %v601_v11 = vld [vmem:[%s679_s14 + $0xa0] ss:$16 sps:$4 sm:$0xff]   ;;  %v602_v12 = vld [vmem:[%s679_s14 + $0xa8] ss:$16 sps:$4 sm:$0xff]  }
  0x12   : > { %v603_v13 = vld [vmem:[%s679_s14 + $0x84] ss:$16 sps:$4 sm:$0xff]   ;;  %v605_v14 = vld [vmem:[%s679_s14 + $0x8c] ss:$16 sps:$4 sm:$0xff]   ;;  %v607_v15 = vld [vmem:[%s679_s14 + $0x80] ss:$16 sps:$4 sm:$0xff]  }
  0x13   : > { %v608_v16 = vld [vmem:[%s679_s14 + $0x88] ss:$16 sps:$4 sm:$0xff]   ;;  %v609_v17 = vld [vmem:[%s679_s14 + $0x64] ss:$16 sps:$4 sm:$0xff]   ;;  %v611_v18 = vld [vmem:[%s679_s14 + $0x6c] ss:$16 sps:$4 sm:$0xff]  }
  0x14   : > { %358 = vmatpush1.bf16.msra.mxu0 %v595_v7  ;;  %399 = vmatpush1.bf16.msra.mxu1 %v596_v8  ;;  %v613_v19 = vld [vmem:[%s679_s14 + $0x60] ss:$16 sps:$4 sm:$0xff]   ;;  %v614_v20 = vld [vmem:[%s679_s14 + $0x68] ss:$16 sps:$4 sm:$0xff]   ;;  %v615_v21 = vld [vmem:[%s679_s14 + $0x44] ss:$16 sps:$4 sm:$0xff]  }
  0x15   : > { %359 = vmatprep.subr.bf16.mxu0 %v597_v9  ;;  %400 = vmatprep.subr.bf16.mxu1 %v599_v10  ;;  %v617_v22 = vld [vmem:[%s679_s14 + $0x4c] ss:$16 sps:$4 sm:$0xff]   ;;  %v619_v23 = vld [vmem:[%s679_s14 + $0x40] ss:$16 sps:$4 sm:$0xff]   ;;  %v620_v24 = vld [vmem:[%s679_s14 + $0x48] ss:$16 sps:$4 sm:$0xff]  }
  0x16   : > { %v621_v25 = vld [vmem:[%s679_s14 + $0x24] ss:$16 sps:$4 sm:$0xff]   ;;  %v623_v26 = vld [vmem:[%s679_s14 + $0x2c] ss:$16 sps:$4 sm:$0xff]   ;;  %v625_v27 = vld [vmem:[%s679_s14 + $0x20] ss:$16 sps:$4 sm:$0xff]  }
  0x17   : > { %v626_v28 = vld [vmem:[%s679_s14 + $0x28] ss:$16 sps:$4 sm:$0xff]   ;;  %v627_v29 = vld [vmem:[%s679_s14 + $0x4] ss:$16 sps:$4 sm:$0xff]   ;;  %v629_v30 = vld [vmem:[%s679_s14 + $0xc] ss:$16 sps:$4 sm:$0xff]  }
  0x18   : > { %360 = vmatpush1.bf16.msra.mxu0 %v601_v11  ;;  %401 = vmatpush1.bf16.msra.mxu1 %v602_v12  ;;  %v631_v31 = vld [vmem:[%s679_s14] ss:$16 sps:$4 sm:$0xff]   ;;  %v632_v32 = vld [vmem:[%s679_s14 + $0x8] ss:$16 sps:$4 sm:$0xff]   ;;  %s575_s19 = sshll.u32 %s728_s10, 4 }
  0x19   : > { %361 = vmatprep.subr.bf16.mxu0 %v603_v13  ;;  %402 = vmatprep.subr.bf16.mxu1 %v605_v14  ;;  %v162_v33 = vld [vmem:[%s150_s18] sm:$0x3]  ;;  %s160_s22 = scalar_lea.vmem %s726_s2, %s575_s19 }
  0x1c   : > { %362 = vmatpush1.bf16.msra.mxu0 %v607_v15  ;;  %403 = vmatpush1.bf16.msra.mxu1 %v608_v16 }
  0x1d   : > { %363 = vmatprep.subr.bf16.mxu0 %v609_v17  ;;  %404 = vmatprep.subr.bf16.mxu1 %v611_v18 }
  0x20   : > { %364 = vmatpush1.bf16.msra.mxu0 %v613_v19  ;;  %405 = vmatpush1.bf16.msra.mxu1 %v614_v20 }
  0x21   : > { %365 = vmatprep.subr.bf16.mxu0 %v615_v21  ;;  %406 = vmatprep.subr.bf16.mxu1 %v617_v22 }
  0x24   : > { %366 = vmatpush1.bf16.msra.mxu0 %v619_v23  ;;  %407 = vmatpush1.bf16.msra.mxu1 %v620_v24 }
  0x25   : > { %367 = vmatprep.subr.bf16.mxu0 %v621_v25  ;;  %408 = vmatprep.subr.bf16.mxu1 %v623_v26 }
  0x28   : > { %368 = vmatpush1.bf16.msra.mxu0 %v625_v27  ;;  %409 = vmatpush1.bf16.msra.mxu1 %v626_v28 }
  0x29   : > { %369 = vmatprep.subr.bf16.mxu0 %v627_v29  ;;  %410 = vmatprep.subr.bf16.mxu1 %v629_v30 }
  0x2c   : > { %370 = vmatpush1.bf16.msra.mxu0 %v631_v31  ;;  %411 = vmatpush1.bf16.msra.mxu1 %v632_v32 }
  0x2f   : > { %388 = vmatmul.mubr.bf16.vlgmr.msra.gmra.mxu0 %v162_v33  ;;  %429 = vmatmul.mubr.bf16.vlgmr.msra.gmra.mxu1 %v162_v33 }
  0xef   : > { %v389_v34 = vpop.f32.mrf.mxu0  ;;  %v430_v35 = vpop.f32.mrf.mxu1 }
  0xf0   : > { %v437_v36 = vmul.f32 0.5, %v389_v34  ;;  %v439_v37 = vmul.f32 0.5, %v430_v35 }
  0xf1   : > { %v391_v38 = vpop.f32.mrf.mxu0  ;;  %v432_v39 = vpop.f32.mrf.mxu1 }
  0xf2   : > { %633 = vtanh.f32 %v437_v36  ;;  %v438_v40 = vmul.f32 0.5, %v391_v38  ;;  %v440_v41 = vmul.f32 0.5, %v432_v39 }
  0xf3   : > { %635 = vtanh.f32 %v439_v37  ;;  %v393_v42 = vpop.f32.mrf.mxu0  ;;  %v434_v43 = vpop.f32.mrf.mxu1 }
  0xf4   : > { %637 = vtanh.f32 %v438_v40 }
  0xf5   : > { %639 = vtanh.f32 %v440_v41  ;;  %v394_v44 = vpop.f32.mrf.mxu0  ;;  %v435_v45 = vpop.f32.mrf.mxu1 }
  0xff   : > { %v634_v46 = vpop.eup %633 }
 0x100   : > { %v636_v47 = vpop.eup %635  ;;  %v445_v48 = vadd.f32 1.0, %v634_v46 }
 0x101   : > { %v638_v49 = vpop.eup %637  ;;  %v447_v50 = vadd.f32 1.0, %v636_v47 }
 0x102   : > { %v640_v51 = vpop.eup %639  ;;  %v446_v52 = vadd.f32 1.0, %v638_v49  ;;  %v449_v54 = vmul.f32 0.5, %v445_v48 }
 0x103   : > { %v448_v53 = vadd.f32 1.0, %v640_v51  ;;  %v451_v56 = vmul.f32 0.5, %v447_v50 }
 0x104   : > { %v450_v55 = vmul.f32 0.5, %v446_v52 }
 0x105   : > { %v452_v57 = vmul.f32 0.5, %v448_v53 }
 0x106   : > { %v457_v58 = vcombine.low %v449_v54, %v450_v55 }
 0x107   : > { %v458_v59 = vcombine.low %v451_v56, %v452_v57 }
 0x108   : > { %461 = vst [vmem:[%s160_s22] sm:$0x77] %v457_v58 }
 0x109   : > { %462 = vst [vmem:[%s160_s22 + $0x8] sm:$0x77] %v458_v59 }
 0x10a PF: > { %s12_s9 = sadd.s32 1, %s647_s9  }
 0x10b   : > { %p9_p4 = scmp.ge.s32.totalorder %s12_s9, 6  }
 0x10d   :  { %11 = sbr.rel (!%p9_p4) target bundleno = 1 (0x1), region = 61 }

</bundles_post_ra>
